<compile_context>
chip_gen: v7x
topology: tpu7x:2x2x1
jax: 0.10.0
libtpu: 0.0.40
codegen_flags: <defaults>
</compile_context>

<pallas_src>
import functools

import jax
import jax.numpy as jnp
from jax import lax
from jax.experimental import pallas as pl
from jax.experimental.pallas import tpu as pltpu


def _round_up(x, m):
    return (x + m - 1) // m * m


def _vmem_limit_bytes():
    """Per-generation VMEM budget (leave headroom under the physical size)."""
    try:
        kind = jax.devices()[0].device_kind.lower()
    except Exception:
        kind = ""
    if "v7" in kind or "7x" in kind:
        return 48 * 1024 * 1024          # v7x: 64 MiB physical per TC
    if "v2" in kind or "v3" in kind:
        return 12 * 1024 * 1024
    return 100 * 1024 * 1024             # v4 / v5e / v6e: 128 MiB physical


def _choose_b_blk(B, T, din_max, hp, vmem_limit):
    """Largest 16-aligned batch block whose per-layer VMEM footprint fits."""
    budget = int(vmem_limit * 0.7)
    # double-buffered bf16 weight blocks (one direction at a time) + bounded
    # f32 projection temporary
    fixed = 2 * 2 * (din_max * 4 * hp + hp * 4 * hp) + 4 * 1024 * 1024
    # per batch row: bf16 gx scratch + double-buffered bf16 x and out blocks
    per_row = T * (12 * hp + 4 * din_max)
    cap = max(16, ((budget - fixed) // max(per_row, 1)) // 16 * 16)
    cap = min(cap, 256)
    return min(_round_up(B, 16), cap)


# ----------------------------------------------------------------------------
# Pallas kernels
# ----------------------------------------------------------------------------
def _bilstm_dir_kernel(hp, proj_tc, len_ref, x_ref, wih_ref, whh_ref, b_ref,
                       out_ref, gx_ref):
    """One direction (grid axis 1: 0=fwd, 1=bwd) of one LSTM layer over a
    (T, b_blk) batch block, full T inside.

    len_ref : (Bb, 1) int32    sequence lengths (0 for padded batch rows)
    x_ref   : (T, Bb, Din)     bf16 layer input (time-major, lane-padded)
    wih_ref : (1, Din, 4*Hp)   bf16 input->gate weights (per-gate lane padded)
    whh_ref : (1, Hp, 4*Hp)    bf16 recurrent weights
    b_ref   : (1, 1, 4*Hp)     f32 bias (b_ih + b_hh)
    out_ref : (T, Bb, Hp)      bf16 hidden states, zeros at padded positions
    gx_ref  : (T*Bb, 4*Hp)     bf16 scratch: precomputed x @ W_ih + b
    """
    T, B, Din = x_ref.shape
    d = pl.program_id(1)                       # 0 = forward, 1 = backward

    # ---- hoisted input projection: large MXU matmuls, time-chunked so the
    #      f32 dot temporary stays O(proj_tc*B); stored straight to bf16 scratch
    def proj_chunk(t0, nsteps):
        xc = x_ref[pl.ds(t0, nsteps), :, :].reshape(nsteps * B, Din)
        g = jnp.dot(xc, wih_ref[0], preferred_element_type=jnp.float32)
        g = g + b_ref[0]
        row0 = pl.multiple_of(t0 * B, B)
        gx_ref[pl.ds(row0, nsteps * B), :] = g.astype(gx_ref.dtype)

    n_full = T // proj_tc
    if n_full > 0:
        @pl.loop(0, n_full)
        def _(ci):
            proj_chunk(pl.multiple_of(ci * proj_tc, proj_tc), proj_tc)
    if T % proj_tc:
        proj_chunk(n_full * proj_tc, T % proj_tc)

    lens = len_ref[...]                        # (B, 1) int32

    # TODO(synk): hold W_hh in MXU weight registers across the time loop via
    # pltpu.matmul_push_rhs / matmul_acc_lhs instead of re-streaming it.
    def step(i, carry):
        h, c = carry
        t = jnp.where(d == 0, i, T - 1 - i)
        row = pl.multiple_of(t * B, B)
        gx_t = gx_ref[pl.ds(row, B), :].astype(jnp.float32)
        # serial critical path: bf16 x bf16 MXU matmul, f32 accumulation
        g = gx_t + jnp.dot(h.astype(jnp.bfloat16), whh_ref[0],
                           preferred_element_type=jnp.float32)
        i_g = jax.nn.sigmoid(g[:, 0 * hp:1 * hp])   # lane-aligned gate slices
        f_g = jax.nn.sigmoid(g[:, 1 * hp:2 * hp])
        g_g = jnp.tanh(g[:, 2 * hp:3 * hp])
        o_g = jax.nn.sigmoid(g[:, 3 * hp:4 * hp])
        c_new = f_g * c + i_g * g_g
        h_new = o_g * jnp.tanh(c_new)
        m = t < lens                                # packed-sequence mask
        h = jnp.where(m, h_new, h)
        c = jnp.where(m, c_new, c)
        out_ref[t, :, :] = jnp.where(m, h_new, 0.0).astype(out_ref.dtype)
        return h, c

    z = jnp.zeros((B, hp), jnp.float32)
    unroll = True if T <= 32 else 8
    lax.fori_loop(0, T, step, (z, z), unroll=unroll)


def _linear_kernel(x_ref, w_ref, b_ref, o_ref):
    o_ref[...] = (jnp.dot(x_ref[...], w_ref[...],
                          preferred_element_type=jnp.float32)
                  + b_ref[...]).astype(o_ref.dtype)


# ----------------------------------------------------------------------------
# pallas_call wrappers
# ----------------------------------------------------------------------------
def bilstm_layer(x, lens2d, wih, whh, bias, hp, *, b_blk, vmem_limit):
    """x: (T, Bp, Din) bf16 -> (T, Bp, 2*hp) bf16 ([h_fwd | h_bwd])."""
    T, Bp, Din = x.shape
    nb = Bp // b_blk
    # time-chunk size so the f32 projection temporary stays ~<= 4 MiB
    proj_rows = max(b_blk, (4 * 1024 * 1024) // (4 * hp * 4))
    proj_tc = max(1, min(T, proj_rows // b_blk))
    return pl.pallas_call(
        functools.partial(_bilstm_dir_kernel, hp, proj_tc),
        out_shape=jax.ShapeDtypeStruct((T, Bp, 2 * hp), jnp.bfloat16),
        grid_spec=pltpu.PrefetchScalarGridSpec(
            num_scalar_prefetch=0,
            grid=(nb, 2),                                       # (batch, dir)
            in_specs=[
                pl.BlockSpec((b_blk, 1), lambda b, d: (b, 0)),        # lengths
                pl.BlockSpec((T, b_blk, Din), lambda b, d: (0, b, 0)),  # x
                pl.BlockSpec((1, Din, 4 * hp), lambda b, d: (d, 0, 0)),  # W_ih
                pl.BlockSpec((1, hp, 4 * hp), lambda b, d: (d, 0, 0)),   # W_hh
                pl.BlockSpec((1, 1, 4 * hp), lambda b, d: (d, 0, 0)),    # bias
            ],
            out_specs=pl.BlockSpec((T, b_blk, hp), lambda b, d: (0, b, d)),
            scratch_shapes=[pltpu.VMEM((T * b_blk, 4 * hp), jnp.bfloat16)],
        ),
        compiler_params=pltpu.CompilerParams(
            dimension_semantics=("parallel", "parallel"),
            vmem_limit_bytes=vmem_limit),
    )(lens2d, x, wih, whh, bias)


def linear_head(x2d, w, b, *, vmem_limit, block_rows=1024):
    rows, din = x2d.shape
    dout = w.shape[1]
    br = min(block_rows, rows)
    rows_pad = _round_up(rows, br)
    if rows_pad != rows:
        x2d = jnp.pad(x2d, ((0, rows_pad - rows), (0, 0)))
    out = pl.pallas_call(
        _linear_kernel,
        out_shape=jax.ShapeDtypeStruct((rows_pad, dout), jnp.float32),
        grid_spec=pltpu.PrefetchScalarGridSpec(
            num_scalar_prefetch=0,
            grid=(rows_pad // br,),
            in_specs=[pl.BlockSpec((br, din), lambda i: (i, 0)),
                      pl.BlockSpec((din, dout), lambda i: (0, 0)),
                      pl.BlockSpec((1, dout), lambda i: (0, 0))],
            out_specs=pl.BlockSpec((br, dout), lambda i: (i, 0))),
        compiler_params=pltpu.CompilerParams(
            dimension_semantics=("parallel",),
            vmem_limit_bytes=vmem_limit),
    )(x2d, w, b)
    return out[:rows]


# ----------------------------------------------------------------------------
# One-time parameter packing (lane/sublane-aligned, bf16 transport)
# ----------------------------------------------------------------------------
def _pad_gate_cols(w, H, Hp):
    """(in_dim, 4H) -> (in_dim, 4Hp) with each gate block lane-padded to Hp."""
    in_dim = w.shape[0]
    w4 = w.reshape(in_dim, 4, H)
    w4 = jnp.pad(w4, ((0, 0), (0, 0), (0, Hp - H)))
    return w4.reshape(in_dim, 4 * Hp)


def _pad_rows(w_cols, H, Hp, in_pad, split_bidir):
    """Scatter real rows into the padded input layout ([fwd | bwd] for l>0)."""
    out = jnp.zeros((in_pad, w_cols.shape[1]), w_cols.dtype)
    if split_bidir:
        out = out.at[:H].set(w_cols[:H])
        out = out.at[Hp:Hp + H].set(w_cols[H:])
    else:
        out = out.at[:w_cols.shape[0]].set(w_cols)
    return out


def _pack_lstm_layer(layer, H, Hp, in_pad, split_bidir):
    def prep_ih(w):
        return _pad_rows(_pad_gate_cols(w, H, Hp), H, Hp, in_pad, split_bidir)

    def prep_hh(w):
        return _pad_rows(_pad_gate_cols(w, H, Hp), H, Hp, Hp, False)

    def prep_b(b):
        return jnp.pad(b.reshape(4, H), ((0, 0), (0, Hp - H))).reshape(1, 4 * Hp)

    wih = jnp.stack([prep_ih(layer["wih_f"]),
                     prep_ih(layer["wih_b"])]).astype(jnp.bfloat16)
    whh = jnp.stack([prep_hh(layer["whh_f"]),
                     prep_hh(layer["whh_b"])]).astype(jnp.bfloat16)
    bias = jnp.stack([prep_b(layer["b_f"]),
                      prep_b(layer["b_b"])]).astype(jnp.float32)
    return wih, whh, bias


def pack_params(params):
    """One-time padding/packing; reused across forward calls (inference)."""
    emb = params["embedding"]
    E = emb.shape[1]
    H = params["lstm"][0]["whh_f"].shape[0]
    num_tags = params["w_out"].shape[1]
    # TODO(synk): for H << 128 (e.g. H=32) per-gate padding to 128 lanes
    # over-pads the recurrent matmul; a fused 4H<=128 gate block would cut it.
    Hp = _round_up(H, 128)
    Ep = _round_up(E, 128)
    Tg = _round_up(num_tags, 128)

    emb_p = jnp.pad(emb, ((0, 0), (0, Ep - E))).astype(jnp.bfloat16)

    layers = []
    in_pad = Ep
    for li, layer in enumerate(params["lstm"]):
        layers.append(_pack_lstm_layer(layer, H, Hp, in_pad,
                                       split_bidir=(li > 0)))
        in_pad = 2 * Hp

    w_out_p = jnp.zeros((2 * Hp, Tg), jnp.float32)
    w_out_p = w_out_p.at[:H, :num_tags].set(params["w_out"][:H])
    w_out_p = w_out_p.at[Hp:Hp + H, :num_tags].set(params["w_out"][H:])
    b_out_p = jnp.zeros((1, Tg), jnp.float32).at[:, :num_tags].set(
        params["b_out"].reshape(1, -1))

    return {
        "emb": emb_p,
        "layers": layers,
        "w_out": w_out_p.astype(jnp.bfloat16),
        "b_out": b_out_p,
        "dims": dict(H=H, Hp=Hp, E=E, Ep=Ep, num_tags=num_tags, Tg=Tg),
    }


# ----------------------------------------------------------------------------
# Model forward (glue in plain JAX, hot path in Pallas)
# ----------------------------------------------------------------------------
def bilstm_ner_forward(packed, sentences, sent_lengths):
    """sentences: (B, T) int32, sent_lengths: (B,) int32 -> (B, T, num_tags)."""
    B, T = sentences.shape
    dims = packed["dims"]
    Hp, Ep, num_tags, Tg = dims["Hp"], dims["Ep"], dims["num_tags"], dims["Tg"]

    vmem_limit = _vmem_limit_bytes()
    din_max = max(Ep, 2 * Hp)
    b_blk = _choose_b_blk(B, T, din_max, Hp, vmem_limit)
    Bp = _round_up(B, b_blk)

    # embedding lookup straight from the pre-padded bf16 table: the gather
    # output is already lane-padded + bf16 (no extra pad/cast round trips)
    ids = jnp.pad(sentences.astype(jnp.int32), ((0, Bp - B), (0, 0))).T  # (T,Bp)
    x = packed["emb"][ids]                                   # (T, Bp, Ep) bf16
    lens2d = jnp.pad(sent_lengths.astype(jnp.int32), (0, Bp - B)).reshape(Bp, 1)

    for (wih, whh, bias) in packed["layers"]:
        x = bilstm_layer(x, lens2d, wih, whh, bias, Hp,
                         b_blk=b_blk, vmem_limit=vmem_limit)
        # TODO(synk): nn.LSTM(dropout=0.2) between layers applies only in
        # training mode; this forward matches eval-mode (no dropout).

    # tag head on time-major activations; transpose only the small logits
    logits = linear_head(x.reshape(T * Bp, 2 * Hp), packed["w_out"],
                         packed["b_out"], vmem_limit=vmem_limit)   # (T*Bp, Tg)
    logits = logits.reshape(T, Bp, Tg)
    logits = jnp.transpose(logits, (1, 0, 2))[:B, :, :num_tags]    # (B, T, tags)
    return logits


# ----------------------------------------------------------------------------
# Deterministic parameter init (shapes per nn.Embedding / nn.LSTM / nn.Linear)
# ----------------------------------------------------------------------------
def init_params(key, vocab_size, num_tags, embed_dim, hidden_dim, num_layers):
    scale = 1.0 / float(hidden_dim) ** 0.5
    keys = jax.random.split(key, 3 + num_layers)
    params = {
        "embedding": jax.random.normal(keys[0], (vocab_size, embed_dim),
                                       jnp.float32),
        "w_out": jax.random.uniform(keys[1], (2 * hidden_dim, num_tags),
                                    jnp.float32, -scale, scale),
        "b_out": jax.random.uniform(keys[2], (1, num_tags),
                                    jnp.float32, -scale, scale),
    }
    lstm = []
    in_dim = embed_dim
    for l in range(num_layers):
        k = jax.random.split(keys[3 + l], 6)
        layer = {
            "wih_f": jax.random.uniform(k[0], (in_dim, 4 * hidden_dim),
                                        jnp.float32, -scale, scale),
            "whh_f": jax.random.uniform(k[1], (hidden_dim, 4 * hidden_dim),
                                        jnp.float32, -scale, scale),
            "b_f": jax.random.uniform(k[2], (1, 4 * hidden_dim),
                                      jnp.float32, -scale, scale),
            "wih_b": jax.random.uniform(k[3], (in_dim, 4 * hidden_dim),
                                        jnp.float32, -scale, scale),
            "whh_b": jax.random.uniform(k[4], (hidden_dim, 4 * hidden_dim),
                                        jnp.float32, -scale, scale),
            "b_b": jax.random.uniform(k[5], (1, 4 * hidden_dim),
                                      jnp.float32, -scale, scale),
        }
        lstm.append(layer)
        in_dim = 2 * hidden_dim  # bidirectional: next layer sees concat(fwd,bwd)
    params["lstm"] = lstm
    return params


if __name__ == "__main__":
    B, T = 2, 8
    vocab_size, num_tags = 50, 10
    embed_dim, hidden_dim, num_layers = 32, 32, 3

    key = jax.random.PRNGKey(0)
    pkey, skey = jax.random.split(key)
    params = init_params(pkey, vocab_size, num_tags, embed_dim, hidden_dim,
                         num_layers)
    packed = pack_params(params)          # one-time setup, outside the forward

    sentences = jax.random.randint(skey, (B, T), 0, vocab_size, dtype=jnp.int32)
    # max(sent_lengths) == T so pad_packed_sequence output length equals T
    sent_lengths = jnp.array([T, 5], dtype=jnp.int32)

    forward = jax.jit(lambda s, l: bilstm_ner_forward(packed, s, l))
    logits = forward(sentences, sent_lengths)
    jax.block_until_ready(logits)
    assert logits.shape == (B, T, num_tags)
    assert bool(jnp.all(jnp.isfinite(logits)))
    print("KERNEL_OK")
</pallas_src>

<mosaic_0001>
module attributes {stable_mosaic.version = 11 : i64} {
  func.func @_bilstm_dir_kernel(%arg0: i32, %arg1: i32, %arg2: memref<16x1xi32, #tpu.memory_space<vmem>>, %arg3: memref<8x16x128xbf16, #tpu.memory_space<vmem>>, %arg4: memref<1x128x512xbf16, #tpu.memory_space<vmem>>, %arg5: memref<1x128x512xbf16, #tpu.memory_space<vmem>>, %arg6: memref<1x1x512xf32, #tpu.memory_space<vmem>>, %arg7: memref<8x16x128xbf16, #tpu.memory_space<vmem>>, %arg8: memref<128x512xbf16, #tpu.memory_space<vmem>>) attributes {dimension_semantics = [#tpu.dimension_semantics<parallel>, #tpu.dimension_semantics<parallel>], iteration_bounds = array<i64: 1, 2>, scalar_prefetch = 0 : i64, scratch_operands = 1 : i64, tpu.core_type = #tpu.core_type<tc>, window_params = [{transform_indices = @transform_0, window_bounds = array<i64: 16, 1>}, {transform_indices = @transform_1, window_bounds = array<i64: 8, 16, 128>}, {transform_indices = @transform_2, window_bounds = array<i64: 1, 128, 512>}, {transform_indices = @transform_3, window_bounds = array<i64: 1, 128, 512>}, {transform_indices = @transform_4, window_bounds = array<i64: 1, 1, 512>}, {transform_indices = @transform_5, window_bounds = array<i64: 8, 16, 128>}]} {
    %c0_i32 = arith.constant 0 : i32
    %c1_i32 = arith.constant 1 : i32
    %0 = arith.muli %c0_i32, %c1_i32 : i32
    %c0_i32_0 = arith.constant 0 : i32
    %1 = arith.addi %c0_i32_0, %0 : i32
    %c8_i32 = arith.constant 8 : i32
    %2 = arith.muli %1, %c8_i32 : i32
    %3 = tpu.assume_multiple %2, 8 : i32
    %4 = arith.index_cast %3 : i32 to index
    %c0 = arith.constant 0 : index
    %c0_1 = arith.constant 0 : index
    %5 = vector.load %arg3[%4, %c0, %c0_1] : memref<8x16x128xbf16, #tpu.memory_space<vmem>>, vector<8x16x128xbf16>
    %6 = vector.shape_cast %5 : vector<8x16x128xbf16> to vector<128x128xbf16>
    %c0_2 = arith.constant 0 : index
    %c0_3 = arith.constant 0 : index
    %c0_4 = arith.constant 0 : index
    %7 = vector.load %arg4[%c0_2, %c0_3, %c0_4] : memref<1x128x512xbf16, #tpu.memory_space<vmem>>, vector<1x128x512xbf16>
    %8 = vector.shape_cast %7 : vector<1x128x512xbf16> to vector<128x512xbf16>
    %cst = arith.constant dense<0.000000e+00> : vector<128x512xf32>
    %9 = tpu.matmul %6, %8, %cst {dimension_numbers = #tpu.dot_dimension_numbers<[1], [0], [0], [1], [0, 0, 1, 1], [], []>} : vector<128x128xbf16>, vector<128x512xbf16>, vector<128x512xf32> -> vector<128x512xf32>
    %c0_5 = arith.constant 0 : index
    %c0_6 = arith.constant 0 : index
    %c0_7 = arith.constant 0 : index
    %10 = vector.load %arg6[%c0_5, %c0_6, %c0_7] : memref<1x1x512xf32, #tpu.memory_space<vmem>>, vector<1x1x512xf32>
    %11 = vector.shape_cast %10 : vector<1x1x512xf32> to vector<1x512xf32>
    %12 = vector.broadcast %11 : vector<1x512xf32> to vector<128x512xf32>
    %13 = arith.addf %9, %12 : vector<128x512xf32>
    %c16_i32 = arith.constant 16 : i32
    %14 = arith.muli %3, %c16_i32 : i32
    %15 = tpu.assume_multiple %14, 16 : i32
    %16 = arith.truncf %13 : vector<128x512xf32> to vector<128x512xbf16>
    %17 = arith.index_cast %15 : i32 to index
    %c0_8 = arith.constant 0 : index
    %18 = vector.load %arg8[%17, %c0_8] : memref<128x512xbf16, #tpu.memory_space<vmem>>, vector<128x512xbf16>
    tpu.vector_store %arg8[%17, %c0_8], %16 {strides = array<i32>} : memref<128x512xbf16, #tpu.memory_space<vmem>>, vector<128x512xbf16>,
    %c1_i32_9 = arith.constant 1 : i32
    %c0_10 = arith.constant 0 : index
    %c0_11 = arith.constant 0 : index
    %19 = vector.load %arg2[%c0_10, %c0_11] : memref<16x1xi32, #tpu.memory_space<vmem>>, vector<16x1xi32>
    %cst_12 = arith.constant 0.000000e+00 : f32
    %20 = vector.broadcast %cst_12 : f32 to vector<16x128xf32>
    %c0_i32_13 = arith.constant 0 : i32
    %c0_i32_14 = arith.constant 0 : i32
    %21 = arith.cmpi eq, %arg1, %c0_i32_14 : i32
    %c7_i32 = arith.constant 7 : i32
    %22 = arith.subi %c7_i32, %c0_i32_13 : i32
    %23 = arith.select %21, %c0_i32_13, %22 : i32
    %c16_i32_15 = arith.constant 16 : i32
    %24 = arith.muli %23, %c16_i32_15 : i32
    %25 = tpu.assume_multiple %24, 16 : i32
    %26 = arith.index_cast %25 : i32 to index
    %c0_16 = arith.constant 0 : index
    %27 = vector.load %arg8[%26, %c0_16] : memref<128x512xbf16, #tpu.memory_space<vmem>>, vector<16x512xbf16>
    %28 = arith.extf %27 : vector<16x512xbf16> to vector<16x512xf32>
    %29 = arith.truncf %20 : vector<16x128xf32> to vector<16x128xbf16>
    %c0_17 = arith.constant 0 : index
    %c0_18 = arith.constant 0 : index
    %c0_19 = arith.constant 0 : index
    %30 = vector.load %arg5[%c0_17, %c0_18, %c0_19] : memref<1x128x512xbf16, #tpu.memory_space<vmem>>, vector<1x128x512xbf16>
    %31 = vector.shape_cast %30 : vector<1x128x512xbf16> to vector<128x512xbf16>
    %cst_20 = arith.constant dense<0.000000e+00> : vector<16x512xf32>
    %32 = tpu.matmul %29, %31, %cst_20 {dimension_numbers = #tpu.dot_dimension_numbers<[1], [0], [0], [1], [0, 0, 1, 1], [], []>} : vector<16x128xbf16>, vector<128x512xbf16>, vector<16x512xf32> -> vector<16x512xf32>
    %33 = arith.addf %28, %32 : vector<16x512xf32>
    %34 = vector.extract_strided_slice %33 {offsets = [0, 0], sizes = [16, 128], strides = [1, 1]} : vector<16x512xf32> to vector<16x128xf32>
    %35 = arith.negf %34 : vector<16x128xf32>
    %36 = math.exp %35 : vector<16x128xf32>
    %cst_21 = arith.constant 1.000000e+00 : f32
    %37 = vector.broadcast %cst_21 : f32 to vector<16x128xf32>
    %38 = arith.addf %37, %36 : vector<16x128xf32>
    %39 = arith.divf %37, %38 : vector<16x128xf32>
    %40 = vector.extract_strided_slice %33 {offsets = [0, 128], sizes = [16, 128], strides = [1, 1]} : vector<16x512xf32> to vector<16x128xf32>
    %41 = arith.negf %40 : vector<16x128xf32>
    %42 = math.exp %41 : vector<16x128xf32>
    %cst_22 = arith.constant 1.000000e+00 : f32
    %43 = vector.broadcast %cst_22 : f32 to vector<16x128xf32>
    %44 = arith.addf %43, %42 : vector<16x128xf32>
    %45 = arith.divf %43, %44 : vector<16x128xf32>
    %46 = vector.extract_strided_slice %33 {offsets = [0, 256], sizes = [16, 128], strides = [1, 1]} : vector<16x512xf32> to vector<16x128xf32>
    %47 = math.tanh %46 : vector<16x128xf32>
    %48 = vector.extract_strided_slice %33 {offsets = [0, 384], sizes = [16, 128], strides = [1, 1]} : vector<16x512xf32> to vector<16x128xf32>
    %49 = arith.negf %48 : vector<16x128xf32>
    %50 = math.exp %49 : vector<16x128xf32>
    %cst_23 = arith.constant 1.000000e+00 : f32
    %51 = vector.broadcast %cst_23 : f32 to vector<16x128xf32>
    %52 = arith.addf %51, %50 : vector<16x128xf32>
    %53 = arith.divf %51, %52 : vector<16x128xf32>
    %54 = arith.mulf %45, %20 : vector<16x128xf32>
    %55 = arith.mulf %39, %47 : vector<16x128xf32>
    %56 = arith.addf %54, %55 : vector<16x128xf32>
    %57 = math.tanh %56 : vector<16x128xf32>
    %58 = arith.mulf %53, %57 : vector<16x128xf32>
    %59 = vector.broadcast %23 : i32 to vector<16x1xi32>
    %60 = arith.cmpi slt, %59, %19 : vector<16x1xi32>
    %61 = vector.shape_cast %60 : vector<16x1xi1> to vector<16x1xi1>
    %62 = vector.broadcast %61 : vector<16x1xi1> to vector<16x128xi1>
    %63 = arith.select %62, %58, %20 : vector<16x128xi1>, vector<16x128xf32>
    %64 = vector.shape_cast %60 : vector<16x1xi1> to vector<16x1xi1>
    %65 = vector.broadcast %64 : vector<16x1xi1> to vector<16x128xi1>
    %66 = arith.select %65, %56, %20 : vector<16x128xi1>, vector<16x128xf32>
    %cst_24 = arith.constant 0.000000e+00 : f32
    %67 = vector.shape_cast %60 : vector<16x1xi1> to vector<16x1xi1>
    %68 = vector.broadcast %67 : vector<16x1xi1> to vector<16x128xi1>
    %69 = vector.broadcast %cst_24 : f32 to vector<16x128xf32>
    %70 = arith.select %68, %58, %69 : vector<16x128xi1>, vector<16x128xf32>
    %71 = arith.truncf %70 : vector<16x128xf32> to vector<16x128xbf16>
    %72 = arith.index_cast %23 : i32 to index
    %c0_25 = arith.constant 0 : index
    %c0_26 = arith.constant 0 : index
    %73 = vector.load %arg7[%72, %c0_25, %c0_26] : memref<8x16x128xbf16, #tpu.memory_space<vmem>>, vector<1x16x128xbf16>
    %74 = vector.shape_cast %73 : vector<1x16x128xbf16> to vector<16x128xbf16>
    %75 = vector.shape_cast %71 : vector<16x128xbf16> to vector<1x16x128xbf16>
    tpu.vector_store %arg7[%72, %c0_25, %c0_26], %75 {strides = array<i32>} : memref<8x16x128xbf16, #tpu.memory_space<vmem>>, vector<1x16x128xbf16>,
    %c1_i32_27 = arith.constant 1 : i32
    %c0_i32_28 = arith.constant 0 : i32
    %76 = arith.cmpi eq, %arg1, %c0_i32_28 : i32
    %c7_i32_29 = arith.constant 7 : i32
    %77 = arith.subi %c7_i32_29, %c1_i32_27 : i32
    %78 = arith.select %76, %c1_i32_27, %77 : i32
    %c16_i32_30 = arith.constant 16 : i32
    %79 = arith.muli %78, %c16_i32_30 : i32
    %80 = tpu.assume_multiple %79, 16 : i32
    %81 = arith.index_cast %80 : i32 to index
    %c0_31 = arith.constant 0 : index
    %82 = vector.load %arg8[%81, %c0_31] : memref<128x512xbf16, #tpu.memory_space<vmem>>, vector<16x512xbf16>
    %83 = arith.extf %82 : vector<16x512xbf16> to vector<16x512xf32>
    %84 = arith.truncf %63 : vector<16x128xf32> to vector<16x128xbf16>
    %c0_32 = arith.constant 0 : index
    %c0_33 = arith.constant 0 : index
    %c0_34 = arith.constant 0 : index
    %85 = vector.load %arg5[%c0_32, %c0_33, %c0_34] : memref<1x128x512xbf16, #tpu.memory_space<vmem>>, vector<1x128x512xbf16>
    %86 = vector.shape_cast %85 : vector<1x128x512xbf16> to vector<128x512xbf16>
    %cst_35 = arith.constant dense<0.000000e+00> : vector<16x512xf32>
    %87 = tpu.matmul %84, %86, %cst_35 {dimension_numbers = #tpu.dot_dimension_numbers<[1], [0], [0], [1], [0, 0, 1, 1], [], []>} : vector<16x128xbf16>, vector<128x512xbf16>, vector<16x512xf32> -> vector<16x512xf32>
    %88 = arith.addf %83, %87 : vector<16x512xf32>
    %89 = vector.extract_strided_slice %88 {offsets = [0, 0], sizes = [16, 128], strides = [1, 1]} : vector<16x512xf32> to vector<16x128xf32>
    %90 = arith.negf %89 : vector<16x128xf32>
    %91 = math.exp %90 : vector<16x128xf32>
    %cst_36 = arith.constant 1.000000e+00 : f32
    %92 = vector.broadcast %cst_36 : f32 to vector<16x128xf32>
    %93 = arith.addf %92, %91 : vector<16x128xf32>
    %94 = arith.divf %92, %93 : vector<16x128xf32>
    %95 = vector.extract_strided_slice %88 {offsets = [0, 128], sizes = [16, 128], strides = [1, 1]} : vector<16x512xf32> to vector<16x128xf32>
    %96 = arith.negf %95 : vector<16x128xf32>
    %97 = math.exp %96 : vector<16x128xf32>
    %cst_37 = arith.constant 1.000000e+00 : f32
    %98 = vector.broadcast %cst_37 : f32 to vector<16x128xf32>
    %99 = arith.addf %98, %97 : vector<16x128xf32>
    %100 = arith.divf %98, %99 : vector<16x128xf32>
    %101 = vector.extract_strided_slice %88 {offsets = [0, 256], sizes = [16, 128], strides = [1, 1]} : vector<16x512xf32> to vector<16x128xf32>
    %102 = math.tanh %101 : vector<16x128xf32>
    %103 = vector.extract_strided_slice %88 {offsets = [0, 384], sizes = [16, 128], strides = [1, 1]} : vector<16x512xf32> to vector<16x128xf32>
    %104 = arith.negf %103 : vector<16x128xf32>
    %105 = math.exp %104 : vector<16x128xf32>
    %cst_38 = arith.constant 1.000000e+00 : f32
    %106 = vector.broadcast %cst_38 : f32 to vector<16x128xf32>
    %107 = arith.addf %106, %105 : vector<16x128xf32>
    %108 = arith.divf %106, %107 : vector<16x128xf32>
    %109 = arith.mulf %100, %66 : vector<16x128xf32>
    %110 = arith.mulf %94, %102 : vector<16x128xf32>
    %111 = arith.addf %109, %110 : vector<16x128xf32>
    %112 = math.tanh %111 : vector<16x128xf32>
    %113 = arith.mulf %108, %112 : vector<16x128xf32>
    %114 = vector.broadcast %78 : i32 to vector<16x1xi32>
    %115 = arith.cmpi slt, %114, %19 : vector<16x1xi32>
    %116 = vector.shape_cast %115 : vector<16x1xi1> to vector<16x1xi1>
    %117 = vector.broadcast %116 : vector<16x1xi1> to vector<16x128xi1>
    %118 = arith.select %117, %113, %63 : vector<16x128xi1>, vector<16x128xf32>
    %119 = vector.shape_cast %115 : vector<16x1xi1> to vector<16x1xi1>
    %120 = vector.broadcast %119 : vector<16x1xi1> to vector<16x128xi1>
    %121 = arith.select %120, %111, %66 : vector<16x128xi1>, vector<16x128xf32>
    %cst_39 = arith.constant 0.000000e+00 : f32
    %122 = vector.shape_cast %115 : vector<16x1xi1> to vector<16x1xi1>
    %123 = vector.broadcast %122 : vector<16x1xi1> to vector<16x128xi1>
    %124 = vector.broadcast %cst_39 : f32 to vector<16x128xf32>
    %125 = arith.select %123, %113, %124 : vector<16x128xi1>, vector<16x128xf32>
    %126 = arith.truncf %125 : vector<16x128xf32> to vector<16x128xbf16>
    %127 = arith.index_cast %78 : i32 to index
    %c0_40 = arith.constant 0 : index
    %c0_41 = arith.constant 0 : index
    %128 = vector.load %arg7[%127, %c0_40, %c0_41] : memref<8x16x128xbf16, #tpu.memory_space<vmem>>, vector<1x16x128xbf16>
    %129 = vector.shape_cast %128 : vector<1x16x128xbf16> to vector<16x128xbf16>
    %130 = vector.shape_cast %126 : vector<16x128xbf16> to vector<1x16x128xbf16>
    tpu.vector_store %arg7[%127, %c0_40, %c0_41], %130 {strides = array<i32>} : memref<8x16x128xbf16, #tpu.memory_space<vmem>>, vector<1x16x128xbf16>,
    %c2_i32 = arith.constant 2 : i32
    %c0_i32_42 = arith.constant 0 : i32
    %131 = arith.cmpi eq, %arg1, %c0_i32_42 : i32
    %c7_i32_43 = arith.constant 7 : i32
    %132 = arith.subi %c7_i32_43, %c2_i32 : i32
    %133 = arith.select %131, %c2_i32, %132 : i32
    %c16_i32_44 = arith.constant 16 : i32
    %134 = arith.muli %133, %c16_i32_44 : i32
    %135 = tpu.assume_multiple %134, 16 : i32
    %136 = arith.index_cast %135 : i32 to index
    %c0_45 = arith.constant 0 : index
    %137 = vector.load %arg8[%136, %c0_45] : memref<128x512xbf16, #tpu.memory_space<vmem>>, vector<16x512xbf16>
    %138 = arith.extf %137 : vector<16x512xbf16> to vector<16x512xf32>
    %139 = arith.truncf %118 : vector<16x128xf32> to vector<16x128xbf16>
    %c0_46 = arith.constant 0 : index
    %c0_47 = arith.constant 0 : index
    %c0_48 = arith.constant 0 : index
    %140 = vector.load %arg5[%c0_46, %c0_47, %c0_48] : memref<1x128x512xbf16, #tpu.memory_space<vmem>>, vector<1x128x512xbf16>
    %141 = vector.shape_cast %140 : vector<1x128x512xbf16> to vector<128x512xbf16>
    %cst_49 = arith.constant dense<0.000000e+00> : vector<16x512xf32>
    %142 = tpu.matmul %139, %141, %cst_49 {dimension_numbers = #tpu.dot_dimension_numbers<[1], [0], [0], [1], [0, 0, 1, 1], [], []>} : vector<16x128xbf16>, vector<128x512xbf16>, vector<16x512xf32> -> vector<16x512xf32>
    %143 = arith.addf %138, %142 : vector<16x512xf32>
    %144 = vector.extract_strided_slice %143 {offsets = [0, 0], sizes = [16, 128], strides = [1, 1]} : vector<16x512xf32> to vector<16x128xf32>
    %145 = arith.negf %144 : vector<16x128xf32>
    %146 = math.exp %145 : vector<16x128xf32>
    %cst_50 = arith.constant 1.000000e+00 : f32
    %147 = vector.broadcast %cst_50 : f32 to vector<16x128xf32>
    %148 = arith.addf %147, %146 : vector<16x128xf32>
    %149 = arith.divf %147, %148 : vector<16x128xf32>
    %150 = vector.extract_strided_slice %143 {offsets = [0, 128], sizes = [16, 128], strides = [1, 1]} : vector<16x512xf32> to vector<16x128xf32>
    %151 = arith.negf %150 : vector<16x128xf32>
    %152 = math.exp %151 : vector<16x128xf32>
    %cst_51 = arith.constant 1.000000e+00 : f32
    %153 = vector.broadcast %cst_51 : f32 to vector<16x128xf32>
    %154 = arith.addf %153, %152 : vector<16x128xf32>
    %155 = arith.divf %153, %154 : vector<16x128xf32>
    %156 = vector.extract_strided_slice %143 {offsets = [0, 256], sizes = [16, 128], strides = [1, 1]} : vector<16x512xf32> to vector<16x128xf32>
    %157 = math.tanh %156 : vector<16x128xf32>
    %158 = vector.extract_strided_slice %143 {offsets = [0, 384], sizes = [16, 128], strides = [1, 1]} : vector<16x512xf32> to vector<16x128xf32>
    %159 = arith.negf %158 : vector<16x128xf32>
    %160 = math.exp %159 : vector<16x128xf32>
    %cst_52 = arith.constant 1.000000e+00 : f32
    %161 = vector.broadcast %cst_52 : f32 to vector<16x128xf32>
    %162 = arith.addf %161, %160 : vector<16x128xf32>
    %163 = arith.divf %161, %162 : vector<16x128xf32>
    %164 = arith.mulf %155, %121 : vector<16x128xf32>
    %165 = arith.mulf %149, %157 : vector<16x128xf32>
    %166 = arith.addf %164, %165 : vector<16x128xf32>
    %167 = math.tanh %166 : vector<16x128xf32>
    %168 = arith.mulf %163, %167 : vector<16x128xf32>
    %169 = vector.broadcast %133 : i32 to vector<16x1xi32>
    %170 = arith.cmpi slt, %169, %19 : vector<16x1xi32>
    %171 = vector.shape_cast %170 : vector<16x1xi1> to vector<16x1xi1>
    %172 = vector.broadcast %171 : vector<16x1xi1> to vector<16x128xi1>
    %173 = arith.select %172, %168, %118 : vector<16x128xi1>, vector<16x128xf32>
    %174 = vector.shape_cast %170 : vector<16x1xi1> to vector<16x1xi1>
    %175 = vector.broadcast %174 : vector<16x1xi1> to vector<16x128xi1>
    %176 = arith.select %175, %166, %121 : vector<16x128xi1>, vector<16x128xf32>
    %cst_53 = arith.constant 0.000000e+00 : f32
    %177 = vector.shape_cast %170 : vector<16x1xi1> to vector<16x1xi1>
    %178 = vector.broadcast %177 : vector<16x1xi1> to vector<16x128xi1>
    %179 = vector.broadcast %cst_53 : f32 to vector<16x128xf32>
    %180 = arith.select %178, %168, %179 : vector<16x128xi1>, vector<16x128xf32>
    %181 = arith.truncf %180 : vector<16x128xf32> to vector<16x128xbf16>
    %182 = arith.index_cast %133 : i32 to index
    %c0_54 = arith.constant 0 : index
    %c0_55 = arith.constant 0 : index
    %183 = vector.load %arg7[%182, %c0_54, %c0_55] : memref<8x16x128xbf16, #tpu.memory_space<vmem>>, vector<1x16x128xbf16>
    %184 = vector.shape_cast %183 : vector<1x16x128xbf16> to vector<16x128xbf16>
    %185 = vector.shape_cast %181 : vector<16x128xbf16> to vector<1x16x128xbf16>
    tpu.vector_store %arg7[%182, %c0_54, %c0_55], %185 {strides = array<i32>} : memref<8x16x128xbf16, #tpu.memory_space<vmem>>, vector<1x16x128xbf16>,
    %c3_i32 = arith.constant 3 : i32
    %c0_i32_56 = arith.constant 0 : i32
    %186 = arith.cmpi eq, %arg1, %c0_i32_56 : i32
    %c7_i32_57 = arith.constant 7 : i32
    %187 = arith.subi %c7_i32_57, %c3_i32 : i32
    %188 = arith.select %186, %c3_i32, %187 : i32
    %c16_i32_58 = arith.constant 16 : i32
    %189 = arith.muli %188, %c16_i32_58 : i32
    %190 = tpu.assume_multiple %189, 16 : i32
    %191 = arith.index_cast %190 : i32 to index
    %c0_59 = arith.constant 0 : index
    %192 = vector.load %arg8[%191, %c0_59] : memref<128x512xbf16, #tpu.memory_space<vmem>>, vector<16x512xbf16>
    %193 = arith.extf %192 : vector<16x512xbf16> to vector<16x512xf32>
    %194 = arith.truncf %173 : vector<16x128xf32> to vector<16x128xbf16>
    %c0_60 = arith.constant 0 : index
    %c0_61 = arith.constant 0 : index
    %c0_62 = arith.constant 0 : index
    %195 = vector.load %arg5[%c0_60, %c0_61, %c0_62] : memref<1x128x512xbf16, #tpu.memory_space<vmem>>, vector<1x128x512xbf16>
    %196 = vector.shape_cast %195 : vector<1x128x512xbf16> to vector<128x512xbf16>
    %cst_63 = arith.constant dense<0.000000e+00> : vector<16x512xf32>
    %197 = tpu.matmul %194, %196, %cst_63 {dimension_numbers = #tpu.dot_dimension_numbers<[1], [0], [0], [1], [0, 0, 1, 1], [], []>} : vector<16x128xbf16>, vector<128x512xbf16>, vector<16x512xf32> -> vector<16x512xf32>
    %198 = arith.addf %193, %197 : vector<16x512xf32>
    %199 = vector.extract_strided_slice %198 {offsets = [0, 0], sizes = [16, 128], strides = [1, 1]} : vector<16x512xf32> to vector<16x128xf32>
    %200 = arith.negf %199 : vector<16x128xf32>
    %201 = math.exp %200 : vector<16x128xf32>
    %cst_64 = arith.constant 1.000000e+00 : f32
    %202 = vector.broadcast %cst_64 : f32 to vector<16x128xf32>
    %203 = arith.addf %202, %201 : vector<16x128xf32>
    %204 = arith.divf %202, %203 : vector<16x128xf32>
    %205 = vector.extract_strided_slice %198 {offsets = [0, 128], sizes = [16, 128], strides = [1, 1]} : vector<16x512xf32> to vector<16x128xf32>
    %206 = arith.negf %205 : vector<16x128xf32>
    %207 = math.exp %206 : vector<16x128xf32>
    %cst_65 = arith.constant 1.000000e+00 : f32
    %208 = vector.broadcast %cst_65 : f32 to vector<16x128xf32>
    %209 = arith.addf %208, %207 : vector<16x128xf32>
    %210 = arith.divf %208, %209 : vector<16x128xf32>
    %211 = vector.extract_strided_slice %198 {offsets = [0, 256], sizes = [16, 128], strides = [1, 1]} : vector<16x512xf32> to vector<16x128xf32>
    %212 = math.tanh %211 : vector<16x128xf32>
    %213 = vector.extract_strided_slice %198 {offsets = [0, 384], sizes = [16, 128], strides = [1, 1]} : vector<16x512xf32> to vector<16x128xf32>
    %214 = arith.negf %213 : vector<16x128xf32>
    %215 = math.exp %214 : vector<16x128xf32>
    %cst_66 = arith.constant 1.000000e+00 : f32
    %216 = vector.broadcast %cst_66 : f32 to vector<16x128xf32>
    %217 = arith.addf %216, %215 : vector<16x128xf32>
    %218 = arith.divf %216, %217 : vector<16x128xf32>
    %219 = arith.mulf %210, %176 : vector<16x128xf32>
    %220 = arith.mulf %204, %212 : vector<16x128xf32>
    %221 = arith.addf %219, %220 : vector<16x128xf32>
    %222 = math.tanh %221 : vector<16x128xf32>
    %223 = arith.mulf %218, %222 : vector<16x128xf32>
    %224 = vector.broadcast %188 : i32 to vector<16x1xi32>
    %225 = arith.cmpi slt, %224, %19 : vector<16x1xi32>
    %226 = vector.shape_cast %225 : vector<16x1xi1> to vector<16x1xi1>
    %227 = vector.broadcast %226 : vector<16x1xi1> to vector<16x128xi1>
    %228 = arith.select %227, %223, %173 : vector<16x128xi1>, vector<16x128xf32>
    %229 = vector.shape_cast %225 : vector<16x1xi1> to vector<16x1xi1>
    %230 = vector.broadcast %229 : vector<16x1xi1> to vector<16x128xi1>
    %231 = arith.select %230, %221, %176 : vector<16x128xi1>, vector<16x128xf32>
    %cst_67 = arith.constant 0.000000e+00 : f32
    %232 = vector.shape_cast %225 : vector<16x1xi1> to vector<16x1xi1>
    %233 = vector.broadcast %232 : vector<16x1xi1> to vector<16x128xi1>
    %234 = vector.broadcast %cst_67 : f32 to vector<16x128xf32>
    %235 = arith.select %233, %223, %234 : vector<16x128xi1>, vector<16x128xf32>
    %236 = arith.truncf %235 : vector<16x128xf32> to vector<16x128xbf16>
    %237 = arith.index_cast %188 : i32 to index
    %c0_68 = arith.constant 0 : index
    %c0_69 = arith.constant 0 : index
    %238 = vector.load %arg7[%237, %c0_68, %c0_69] : memref<8x16x128xbf16, #tpu.memory_space<vmem>>, vector<1x16x128xbf16>
    %239 = vector.shape_cast %238 : vector<1x16x128xbf16> to vector<16x128xbf16>
    %240 = vector.shape_cast %236 : vector<16x128xbf16> to vector<1x16x128xbf16>
    tpu.vector_store %arg7[%237, %c0_68, %c0_69], %240 {strides = array<i32>} : memref<8x16x128xbf16, #tpu.memory_space<vmem>>, vector<1x16x128xbf16>,
    %c4_i32 = arith.constant 4 : i32
    %c0_i32_70 = arith.constant 0 : i32
    %241 = arith.cmpi eq, %arg1, %c0_i32_70 : i32
    %c7_i32_71 = arith.constant 7 : i32
    %242 = arith.subi %c7_i32_71, %c4_i32 : i32
    %243 = arith.select %241, %c4_i32, %242 : i32
    %c16_i32_72 = arith.constant 16 : i32
    %244 = arith.muli %243, %c16_i32_72 : i32
    %245 = tpu.assume_multiple %244, 16 : i32
    %246 = arith.index_cast %245 : i32 to index
    %c0_73 = arith.constant 0 : index
    %247 = vector.load %arg8[%246, %c0_73] : memref<128x512xbf16, #tpu.memory_space<vmem>>, vector<16x512xbf16>
    %248 = arith.extf %247 : vector<16x512xbf16> to vector<16x512xf32>
    %249 = arith.truncf %228 : vector<16x128xf32> to vector<16x128xbf16>
    %c0_74 = arith.constant 0 : index
    %c0_75 = arith.constant 0 : index
    %c0_76 = arith.constant 0 : index
    %250 = vector.load %arg5[%c0_74, %c0_75, %c0_76] : memref<1x128x512xbf16, #tpu.memory_space<vmem>>, vector<1x128x512xbf16>
    %251 = vector.shape_cast %250 : vector<1x128x512xbf16> to vector<128x512xbf16>
    %cst_77 = arith.constant dense<0.000000e+00> : vector<16x512xf32>
    %252 = tpu.matmul %249, %251, %cst_77 {dimension_numbers = #tpu.dot_dimension_numbers<[1], [0], [0], [1], [0, 0, 1, 1], [], []>} : vector<16x128xbf16>, vector<128x512xbf16>, vector<16x512xf32> -> vector<16x512xf32>
    %253 = arith.addf %248, %252 : vector<16x512xf32>
    %254 = vector.extract_strided_slice %253 {offsets = [0, 0], sizes = [16, 128], strides = [1, 1]} : vector<16x512xf32> to vector<16x128xf32>
    %255 = arith.negf %254 : vector<16x128xf32>
    %256 = math.exp %255 : vector<16x128xf32>
    %cst_78 = arith.constant 1.000000e+00 : f32
    %257 = vector.broadcast %cst_78 : f32 to vector<16x128xf32>
    %258 = arith.addf %257, %256 : vector<16x128xf32>
    %259 = arith.divf %257, %258 : vector<16x128xf32>
    %260 = vector.extract_strided_slice %253 {offsets = [0, 128], sizes = [16, 128], strides = [1, 1]} : vector<16x512xf32> to vector<16x128xf32>
    %261 = arith.negf %260 : vector<16x128xf32>
    %262 = math.exp %261 : vector<16x128xf32>
    %cst_79 = arith.constant 1.000000e+00 : f32
    %263 = vector.broadcast %cst_79 : f32 to vector<16x128xf32>
    %264 = arith.addf %263, %262 : vector<16x128xf32>
    %265 = arith.divf %263, %264 : vector<16x128xf32>
    %266 = vector.extract_strided_slice %253 {offsets = [0, 256], sizes = [16, 128], strides = [1, 1]} : vector<16x512xf32> to vector<16x128xf32>
    %267 = math.tanh %266 : vector<16x128xf32>
    %268 = vector.extract_strided_slice %253 {offsets = [0, 384], sizes = [16, 128], strides = [1, 1]} : vector<16x512xf32> to vector<16x128xf32>
    %269 = arith.negf %268 : vector<16x128xf32>
    %270 = math.exp %269 : vector<16x128xf32>
    %cst_80 = arith.constant 1.000000e+00 : f32
    %271 = vector.broadcast %cst_80 : f32 to vector<16x128xf32>
    %272 = arith.addf %271, %270 : vector<16x128xf32>
    %273 = arith.divf %271, %272 : vector<16x128xf32>
    %274 = arith.mulf %265, %231 : vector<16x128xf32>
    %275 = arith.mulf %259, %267 : vector<16x128xf32>
    %276 = arith.addf %274, %275 : vector<16x128xf32>
    %277 = math.tanh %276 : vector<16x128xf32>
    %278 = arith.mulf %273, %277 : vector<16x128xf32>
    %279 = vector.broadcast %243 : i32 to vector<16x1xi32>
    %280 = arith.cmpi slt, %279, %19 : vector<16x1xi32>
    %281 = vector.shape_cast %280 : vector<16x1xi1> to vector<16x1xi1>
    %282 = vector.broadcast %281 : vector<16x1xi1> to vector<16x128xi1>
    %283 = arith.select %282, %278, %228 : vector<16x128xi1>, vector<16x128xf32>
    %284 = vector.shape_cast %280 : vector<16x1xi1> to vector<16x1xi1>
    %285 = vector.broadcast %284 : vector<16x1xi1> to vector<16x128xi1>
    %286 = arith.select %285, %276, %231 : vector<16x128xi1>, vector<16x128xf32>
    %cst_81 = arith.constant 0.000000e+00 : f32
    %287 = vector.shape_cast %280 : vector<16x1xi1> to vector<16x1xi1>
    %288 = vector.broadcast %287 : vector<16x1xi1> to vector<16x128xi1>
    %289 = vector.broadcast %cst_81 : f32 to vector<16x128xf32>
    %290 = arith.select %288, %278, %289 : vector<16x128xi1>, vector<16x128xf32>
    %291 = arith.truncf %290 : vector<16x128xf32> to vector<16x128xbf16>
    %292 = arith.index_cast %243 : i32 to index
    %c0_82 = arith.constant 0 : index
    %c0_83 = arith.constant 0 : index
    %293 = vector.load %arg7[%292, %c0_82, %c0_83] : memref<8x16x128xbf16, #tpu.memory_space<vmem>>, vector<1x16x128xbf16>
    %294 = vector.shape_cast %293 : vector<1x16x128xbf16> to vector<16x128xbf16>
    %295 = vector.shape_cast %291 : vector<16x128xbf16> to vector<1x16x128xbf16>
    tpu.vector_store %arg7[%292, %c0_82, %c0_83], %295 {strides = array<i32>} : memref<8x16x128xbf16, #tpu.memory_space<vmem>>, vector<1x16x128xbf16>,
    %c5_i32 = arith.constant 5 : i32
    %c0_i32_84 = arith.constant 0 : i32
    %296 = arith.cmpi eq, %arg1, %c0_i32_84 : i32
    %c7_i32_85 = arith.constant 7 : i32
    %297 = arith.subi %c7_i32_85, %c5_i32 : i32
    %298 = arith.select %296, %c5_i32, %297 : i32
    %c16_i32_86 = arith.constant 16 : i32
    %299 = arith.muli %298, %c16_i32_86 : i32
    %300 = tpu.assume_multiple %299, 16 : i32
    %301 = arith.index_cast %300 : i32 to index
    %c0_87 = arith.constant 0 : index
    %302 = vector.load %arg8[%301, %c0_87] : memref<128x512xbf16, #tpu.memory_space<vmem>>, vector<16x512xbf16>
    %303 = arith.extf %302 : vector<16x512xbf16> to vector<16x512xf32>
    %304 = arith.truncf %283 : vector<16x128xf32> to vector<16x128xbf16>
    %c0_88 = arith.constant 0 : index
    %c0_89 = arith.constant 0 : index
    %c0_90 = arith.constant 0 : index
    %305 = vector.load %arg5[%c0_88, %c0_89, %c0_90] : memref<1x128x512xbf16, #tpu.memory_space<vmem>>, vector<1x128x512xbf16>
    %306 = vector.shape_cast %305 : vector<1x128x512xbf16> to vector<128x512xbf16>
    %cst_91 = arith.constant dense<0.000000e+00> : vector<16x512xf32>
    %307 = tpu.matmul %304, %306, %cst_91 {dimension_numbers = #tpu.dot_dimension_numbers<[1], [0], [0], [1], [0, 0, 1, 1], [], []>} : vector<16x128xbf16>, vector<128x512xbf16>, vector<16x512xf32> -> vector<16x512xf32>
    %308 = arith.addf %303, %307 : vector<16x512xf32>
    %309 = vector.extract_strided_slice %308 {offsets = [0, 0], sizes = [16, 128], strides = [1, 1]} : vector<16x512xf32> to vector<16x128xf32>
    %310 = arith.negf %309 : vector<16x128xf32>
    %311 = math.exp %310 : vector<16x128xf32>
    %cst_92 = arith.constant 1.000000e+00 : f32
    %312 = vector.broadcast %cst_92 : f32 to vector<16x128xf32>
    %313 = arith.addf %312, %311 : vector<16x128xf32>
    %314 = arith.divf %312, %313 : vector<16x128xf32>
    %315 = vector.extract_strided_slice %308 {offsets = [0, 128], sizes = [16, 128], strides = [1, 1]} : vector<16x512xf32> to vector<16x128xf32>
    %316 = arith.negf %315 : vector<16x128xf32>
    %317 = math.exp %316 : vector<16x128xf32>
    %cst_93 = arith.constant 1.000000e+00 : f32
    %318 = vector.broadcast %cst_93 : f32 to vector<16x128xf32>
    %319 = arith.addf %318, %317 : vector<16x128xf32>
    %320 = arith.divf %318, %319 : vector<16x128xf32>
    %321 = vector.extract_strided_slice %308 {offsets = [0, 256], sizes = [16, 128], strides = [1, 1]} : vector<16x512xf32> to vector<16x128xf32>
    %322 = math.tanh %321 : vector<16x128xf32>
    %323 = vector.extract_strided_slice %308 {offsets = [0, 384], sizes = [16, 128], strides = [1, 1]} : vector<16x512xf32> to vector<16x128xf32>
    %324 = arith.negf %323 : vector<16x128xf32>
    %325 = math.exp %324 : vector<16x128xf32>
    %cst_94 = arith.constant 1.000000e+00 : f32
    %326 = vector.broadcast %cst_94 : f32 to vector<16x128xf32>
    %327 = arith.addf %326, %325 : vector<16x128xf32>
    %328 = arith.divf %326, %327 : vector<16x128xf32>
    %329 = arith.mulf %320, %286 : vector<16x128xf32>
    %330 = arith.mulf %314, %322 : vector<16x128xf32>
    %331 = arith.addf %329, %330 : vector<16x128xf32>
    %332 = math.tanh %331 : vector<16x128xf32>
    %333 = arith.mulf %328, %332 : vector<16x128xf32>
    %334 = vector.broadcast %298 : i32 to vector<16x1xi32>
    %335 = arith.cmpi slt, %334, %19 : vector<16x1xi32>
    %336 = vector.shape_cast %335 : vector<16x1xi1> to vector<16x1xi1>
    %337 = vector.broadcast %336 : vector<16x1xi1> to vector<16x128xi1>
    %338 = arith.select %337, %333, %283 : vector<16x128xi1>, vector<16x128xf32>
    %339 = vector.shape_cast %335 : vector<16x1xi1> to vector<16x1xi1>
    %340 = vector.broadcast %339 : vector<16x1xi1> to vector<16x128xi1>
    %341 = arith.select %340, %331, %286 : vector<16x128xi1>, vector<16x128xf32>
    %cst_95 = arith.constant 0.000000e+00 : f32
    %342 = vector.shape_cast %335 : vector<16x1xi1> to vector<16x1xi1>
    %343 = vector.broadcast %342 : vector<16x1xi1> to vector<16x128xi1>
    %344 = vector.broadcast %cst_95 : f32 to vector<16x128xf32>
    %345 = arith.select %343, %333, %344 : vector<16x128xi1>, vector<16x128xf32>
    %346 = arith.truncf %345 : vector<16x128xf32> to vector<16x128xbf16>
    %347 = arith.index_cast %298 : i32 to index
    %c0_96 = arith.constant 0 : index
    %c0_97 = arith.constant 0 : index
    %348 = vector.load %arg7[%347, %c0_96, %c0_97] : memref<8x16x128xbf16, #tpu.memory_space<vmem>>, vector<1x16x128xbf16>
    %349 = vector.shape_cast %348 : vector<1x16x128xbf16> to vector<16x128xbf16>
    %350 = vector.shape_cast %346 : vector<16x128xbf16> to vector<1x16x128xbf16>
    tpu.vector_store %arg7[%347, %c0_96, %c0_97], %350 {strides = array<i32>} : memref<8x16x128xbf16, #tpu.memory_space<vmem>>, vector<1x16x128xbf16>,
    %c6_i32 = arith.constant 6 : i32
    %c0_i32_98 = arith.constant 0 : i32
    %351 = arith.cmpi eq, %arg1, %c0_i32_98 : i32
    %c7_i32_99 = arith.constant 7 : i32
    %352 = arith.subi %c7_i32_99, %c6_i32 : i32
    %353 = arith.select %351, %c6_i32, %352 : i32
    %c16_i32_100 = arith.constant 16 : i32
    %354 = arith.muli %353, %c16_i32_100 : i32
    %355 = tpu.assume_multiple %354, 16 : i32
    %356 = arith.index_cast %355 : i32 to index
    %c0_101 = arith.constant 0 : index
    %357 = vector.load %arg8[%356, %c0_101] : memref<128x512xbf16, #tpu.memory_space<vmem>>, vector<16x512xbf16>
    %358 = arith.extf %357 : vector<16x512xbf16> to vector<16x512xf32>
    %359 = arith.truncf %338 : vector<16x128xf32> to vector<16x128xbf16>
    %c0_102 = arith.constant 0 : index
    %c0_103 = arith.constant 0 : index
    %c0_104 = arith.constant 0 : index
    %360 = vector.load %arg5[%c0_102, %c0_103, %c0_104] : memref<1x128x512xbf16, #tpu.memory_space<vmem>>, vector<1x128x512xbf16>
    %361 = vector.shape_cast %360 : vector<1x128x512xbf16> to vector<128x512xbf16>
    %cst_105 = arith.constant dense<0.000000e+00> : vector<16x512xf32>
    %362 = tpu.matmul %359, %361, %cst_105 {dimension_numbers = #tpu.dot_dimension_numbers<[1], [0], [0], [1], [0, 0, 1, 1], [], []>} : vector<16x128xbf16>, vector<128x512xbf16>, vector<16x512xf32> -> vector<16x512xf32>
    %363 = arith.addf %358, %362 : vector<16x512xf32>
    %364 = vector.extract_strided_slice %363 {offsets = [0, 0], sizes = [16, 128], strides = [1, 1]} : vector<16x512xf32> to vector<16x128xf32>
    %365 = arith.negf %364 : vector<16x128xf32>
    %366 = math.exp %365 : vector<16x128xf32>
    %cst_106 = arith.constant 1.000000e+00 : f32
    %367 = vector.broadcast %cst_106 : f32 to vector<16x128xf32>
    %368 = arith.addf %367, %366 : vector<16x128xf32>
    %369 = arith.divf %367, %368 : vector<16x128xf32>
    %370 = vector.extract_strided_slice %363 {offsets = [0, 128], sizes = [16, 128], strides = [1, 1]} : vector<16x512xf32> to vector<16x128xf32>
    %371 = arith.negf %370 : vector<16x128xf32>
    %372 = math.exp %371 : vector<16x128xf32>
    %cst_107 = arith.constant 1.000000e+00 : f32
    %373 = vector.broadcast %cst_107 : f32 to vector<16x128xf32>
    %374 = arith.addf %373, %372 : vector<16x128xf32>
    %375 = arith.divf %373, %374 : vector<16x128xf32>
    %376 = vector.extract_strided_slice %363 {offsets = [0, 256], sizes = [16, 128], strides = [1, 1]} : vector<16x512xf32> to vector<16x128xf32>
    %377 = math.tanh %376 : vector<16x128xf32>
    %378 = vector.extract_strided_slice %363 {offsets = [0, 384], sizes = [16, 128], strides = [1, 1]} : vector<16x512xf32> to vector<16x128xf32>
    %379 = arith.negf %378 : vector<16x128xf32>
    %380 = math.exp %379 : vector<16x128xf32>
    %cst_108 = arith.constant 1.000000e+00 : f32
    %381 = vector.broadcast %cst_108 : f32 to vector<16x128xf32>
    %382 = arith.addf %381, %380 : vector<16x128xf32>
    %383 = arith.divf %381, %382 : vector<16x128xf32>
    %384 = arith.mulf %375, %341 : vector<16x128xf32>
    %385 = arith.mulf %369, %377 : vector<16x128xf32>
    %386 = arith.addf %384, %385 : vector<16x128xf32>
    %387 = math.tanh %386 : vector<16x128xf32>
    %388 = arith.mulf %383, %387 : vector<16x128xf32>
    %389 = vector.broadcast %353 : i32 to vector<16x1xi32>
    %390 = arith.cmpi slt, %389, %19 : vector<16x1xi32>
    %391 = vector.shape_cast %390 : vector<16x1xi1> to vector<16x1xi1>
    %392 = vector.broadcast %391 : vector<16x1xi1> to vector<16x128xi1>
    %393 = arith.select %392, %388, %338 : vector<16x128xi1>, vector<16x128xf32>
    %394 = vector.shape_cast %390 : vector<16x1xi1> to vector<16x1xi1>
    %395 = vector.broadcast %394 : vector<16x1xi1> to vector<16x128xi1>
    %396 = arith.select %395, %386, %341 : vector<16x128xi1>, vector<16x128xf32>
    %cst_109 = arith.constant 0.000000e+00 : f32
    %397 = vector.shape_cast %390 : vector<16x1xi1> to vector<16x1xi1>
    %398 = vector.broadcast %397 : vector<16x1xi1> to vector<16x128xi1>
    %399 = vector.broadcast %cst_109 : f32 to vector<16x128xf32>
    %400 = arith.select %398, %388, %399 : vector<16x128xi1>, vector<16x128xf32>
    %401 = arith.truncf %400 : vector<16x128xf32> to vector<16x128xbf16>
    %402 = arith.index_cast %353 : i32 to index
    %c0_110 = arith.constant 0 : index
    %c0_111 = arith.constant 0 : index
    %403 = vector.load %arg7[%402, %c0_110, %c0_111] : memref<8x16x128xbf16, #tpu.memory_space<vmem>>, vector<1x16x128xbf16>
    %404 = vector.shape_cast %403 : vector<1x16x128xbf16> to vector<16x128xbf16>
    %405 = vector.shape_cast %401 : vector<16x128xbf16> to vector<1x16x128xbf16>
    tpu.vector_store %arg7[%402, %c0_110, %c0_111], %405 {strides = array<i32>} : memref<8x16x128xbf16, #tpu.memory_space<vmem>>, vector<1x16x128xbf16>,
    %c7_i32_112 = arith.constant 7 : i32
    %c0_i32_113 = arith.constant 0 : i32
    %406 = arith.cmpi eq, %arg1, %c0_i32_113 : i32
    %c7_i32_114 = arith.constant 7 : i32
    %407 = arith.subi %c7_i32_114, %c7_i32_112 : i32
    %408 = arith.select %406, %c7_i32_112, %407 : i32
    %c16_i32_115 = arith.constant 16 : i32
    %409 = arith.muli %408, %c16_i32_115 : i32
    %410 = tpu.assume_multiple %409, 16 : i32
    %411 = arith.index_cast %410 : i32 to index
    %c0_116 = arith.constant 0 : index
    %412 = vector.load %arg8[%411, %c0_116] : memref<128x512xbf16, #tpu.memory_space<vmem>>, vector<16x512xbf16>
    %413 = arith.extf %412 : vector<16x512xbf16> to vector<16x512xf32>
    %414 = arith.truncf %393 : vector<16x128xf32> to vector<16x128xbf16>
    %c0_117 = arith.constant 0 : index
    %c0_118 = arith.constant 0 : index
    %c0_119 = arith.constant 0 : index
    %415 = vector.load %arg5[%c0_117, %c0_118, %c0_119] : memref<1x128x512xbf16, #tpu.memory_space<vmem>>, vector<1x128x512xbf16>
    %416 = vector.shape_cast %415 : vector<1x128x512xbf16> to vector<128x512xbf16>
    %cst_120 = arith.constant dense<0.000000e+00> : vector<16x512xf32>
    %417 = tpu.matmul %414, %416, %cst_120 {dimension_numbers = #tpu.dot_dimension_numbers<[1], [0], [0], [1], [0, 0, 1, 1], [], []>} : vector<16x128xbf16>, vector<128x512xbf16>, vector<16x512xf32> -> vector<16x512xf32>
    %418 = arith.addf %413, %417 : vector<16x512xf32>
    %419 = vector.extract_strided_slice %418 {offsets = [0, 0], sizes = [16, 128], strides = [1, 1]} : vector<16x512xf32> to vector<16x128xf32>
    %420 = arith.negf %419 : vector<16x128xf32>
    %421 = math.exp %420 : vector<16x128xf32>
    %cst_121 = arith.constant 1.000000e+00 : f32
    %422 = vector.broadcast %cst_121 : f32 to vector<16x128xf32>
    %423 = arith.addf %422, %421 : vector<16x128xf32>
    %424 = arith.divf %422, %423 : vector<16x128xf32>
    %425 = vector.extract_strided_slice %418 {offsets = [0, 128], sizes = [16, 128], strides = [1, 1]} : vector<16x512xf32> to vector<16x128xf32>
    %426 = arith.negf %425 : vector<16x128xf32>
    %427 = math.exp %426 : vector<16x128xf32>
    %cst_122 = arith.constant 1.000000e+00 : f32
    %428 = vector.broadcast %cst_122 : f32 to vector<16x128xf32>
    %429 = arith.addf %428, %427 : vector<16x128xf32>
    %430 = arith.divf %428, %429 : vector<16x128xf32>
    %431 = vector.extract_strided_slice %418 {offsets = [0, 256], sizes = [16, 128], strides = [1, 1]} : vector<16x512xf32> to vector<16x128xf32>
    %432 = math.tanh %431 : vector<16x128xf32>
    %433 = vector.extract_strided_slice %418 {offsets = [0, 384], sizes = [16, 128], strides = [1, 1]} : vector<16x512xf32> to vector<16x128xf32>
    %434 = arith.negf %433 : vector<16x128xf32>
    %435 = math.exp %434 : vector<16x128xf32>
    %cst_123 = arith.constant 1.000000e+00 : f32
    %436 = vector.broadcast %cst_123 : f32 to vector<16x128xf32>
    %437 = arith.addf %436, %435 : vector<16x128xf32>
    %438 = arith.divf %436, %437 : vector<16x128xf32>
    %439 = arith.mulf %430, %396 : vector<16x128xf32>
    %440 = arith.mulf %424, %432 : vector<16x128xf32>
    %441 = arith.addf %439, %440 : vector<16x128xf32>
    %442 = math.tanh %441 : vector<16x128xf32>
    %443 = arith.mulf %438, %442 : vector<16x128xf32>
    %444 = vector.broadcast %408 : i32 to vector<16x1xi32>
    %445 = arith.cmpi slt, %444, %19 : vector<16x1xi32>
    %446 = vector.shape_cast %445 : vector<16x1xi1> to vector<16x1xi1>
    %447 = vector.broadcast %446 : vector<16x1xi1> to vector<16x128xi1>
    %448 = arith.select %447, %443, %393 : vector<16x128xi1>, vector<16x128xf32>
    %449 = vector.shape_cast %445 : vector<16x1xi1> to vector<16x1xi1>
    %450 = vector.broadcast %449 : vector<16x1xi1> to vector<16x128xi1>
    %451 = arith.select %450, %441, %396 : vector<16x128xi1>, vector<16x128xf32>
    %cst_124 = arith.constant 0.000000e+00 : f32
    %452 = vector.shape_cast %445 : vector<16x1xi1> to vector<16x1xi1>
    %453 = vector.broadcast %452 : vector<16x1xi1> to vector<16x128xi1>
    %454 = vector.broadcast %cst_124 : f32 to vector<16x128xf32>
    %455 = arith.select %453, %443, %454 : vector<16x128xi1>, vector<16x128xf32>
    %456 = arith.truncf %455 : vector<16x128xf32> to vector<16x128xbf16>
    %457 = arith.index_cast %408 : i32 to index
    %c0_125 = arith.constant 0 : index
    %c0_126 = arith.constant 0 : index
    %458 = vector.load %arg7[%457, %c0_125, %c0_126] : memref<8x16x128xbf16, #tpu.memory_space<vmem>>, vector<1x16x128xbf16>
    %459 = vector.shape_cast %458 : vector<1x16x128xbf16> to vector<16x128xbf16>
    %460 = vector.shape_cast %456 : vector<16x128xbf16> to vector<1x16x128xbf16>
    tpu.vector_store %arg7[%457, %c0_125, %c0_126], %460 {strides = array<i32>} : memref<8x16x128xbf16, #tpu.memory_space<vmem>>, vector<1x16x128xbf16>,
    %c8_i32_127 = arith.constant 8 : i32
    return
  }
  func.func @transform_0(%arg0: i32, %arg1: i32) -> (i32, i32) {
    %c0_i32 = arith.constant 0 : i32
    %c0_i32_0 = arith.constant 0 : i32
    return %arg0, %c0_i32 : i32, i32
  }
  func.func @transform_1(%arg0: i32, %arg1: i32) -> (i32, i32, i32) {
    %c0_i32 = arith.constant 0 : i32
    %c0_i32_0 = arith.constant 0 : i32
    %c0_i32_1 = arith.constant 0 : i32
    return %c0_i32, %arg0, %c0_i32_0 : i32, i32, i32
  }
  func.func @transform_2(%arg0: i32, %arg1: i32) -> (i32, i32, i32) {
    %c0_i32 = arith.constant 0 : i32
    %c0_i32_0 = arith.constant 0 : i32
    %c0_i32_1 = arith.constant 0 : i32
    return %arg1, %c0_i32, %c0_i32_0 : i32, i32, i32
  }
  func.func @transform_3(%arg0: i32, %arg1: i32) -> (i32, i32, i32) {
    %c0_i32 = arith.constant 0 : i32
    %c0_i32_0 = arith.constant 0 : i32
    %c0_i32_1 = arith.constant 0 : i32
    return %arg1, %c0_i32, %c0_i32_0 : i32, i32, i32
  }
  func.func @transform_4(%arg0: i32, %arg1: i32) -> (i32, i32, i32) {
    %c0_i32 = arith.constant 0 : i32
    %c0_i32_0 = arith.constant 0 : i32
    %c0_i32_1 = arith.constant 0 : i32
    return %arg1, %c0_i32, %c0_i32_0 : i32, i32, i32
  }
  func.func @transform_5(%arg0: i32, %arg1: i32) -> (i32, i32, i32) {
    %c0_i32 = arith.constant 0 : i32
    %c0_i32_0 = arith.constant 0 : i32
    return %c0_i32, %arg0, %arg1 : i32, i32, i32
  }
}

module attributes {stable_mosaic.version = 11 : i64} {
  func.func @_linear_kernel(%arg0: i32, %arg1: memref<128x256xbf16, #tpu.memory_space<vmem>>, %arg2: memref<256x128xbf16, #tpu.memory_space<vmem>>, %arg3: memref<1x128xf32, #tpu.memory_space<vmem>>, %arg4: memref<128x128xf32, #tpu.memory_space<vmem>>) attributes {dimension_semantics = [#tpu.dimension_semantics<parallel>], iteration_bounds = array<i64: 1>, scalar_prefetch = 0 : i64, scratch_operands = 0 : i64, tpu.core_type = #tpu.core_type<tc>, window_params = [{transform_indices = @transform_0, window_bounds = array<i64: 128, 256>}, {pipeline_mode = #tpu.pipeline_mode<synchronous>, transform_indices = @transform_1, window_bounds = array<i64: 256, 128>}, {pipeline_mode = #tpu.pipeline_mode<synchronous>, transform_indices = @transform_2, window_bounds = array<i64: 1, 128>}, {transform_indices = @transform_3, window_bounds = array<i64: 128, 128>}]} {
    %c0 = arith.constant 0 : index
    %c0_0 = arith.constant 0 : index
    %0 = vector.load %arg1[%c0, %c0_0] : memref<128x256xbf16, #tpu.memory_space<vmem>>, vector<128x256xbf16>
    %c0_1 = arith.constant 0 : index
    %c0_2 = arith.constant 0 : index
    %1 = vector.load %arg2[%c0_1, %c0_2] : memref<256x128xbf16, #tpu.memory_space<vmem>>, vector<256x128xbf16>
    %cst = arith.constant dense<0.000000e+00> : vector<128x128xf32>
    %2 = tpu.matmul %0, %1, %cst {dimension_numbers = #tpu.dot_dimension_numbers<[1], [0], [0], [1], [0, 0, 1, 1], [], []>} : vector<128x256xbf16>, vector<256x128xbf16>, vector<128x128xf32> -> vector<128x128xf32>
    %c0_3 = arith.constant 0 : index
    %c0_4 = arith.constant 0 : index
    %3 = vector.load %arg3[%c0_3, %c0_4] : memref<1x128xf32, #tpu.memory_space<vmem>>, vector<1x128xf32>
    %4 = vector.broadcast %3 : vector<1x128xf32> to vector<128x128xf32>
    %5 = arith.addf %2, %4 : vector<128x128xf32>
    %c0_5 = arith.constant 0 : index
    %c0_6 = arith.constant 0 : index
    %6 = vector.load %arg4[%c0_5, %c0_6] : memref<128x128xf32, #tpu.memory_space<vmem>>, vector<128x128xf32>
    tpu.vector_store %arg4[%c0_5, %c0_6], %5 {strides = array<i32>} : memref<128x128xf32, #tpu.memory_space<vmem>>, vector<128x128xf32>,
    return
  }
  func.func @transform_0(%arg0: i32) -> (i32, i32) {
    %c0_i32 = arith.constant 0 : i32
    %c0_i32_0 = arith.constant 0 : i32
    return %arg0, %c0_i32 : i32, i32
  }
  func.func @transform_1(%arg0: i32) -> (i32, i32) {
    %c0_i32 = arith.constant 0 : i32
    %c0_i32_0 = arith.constant 0 : i32
    %c0_i32_1 = arith.constant 0 : i32
    return %c0_i32, %c0_i32_0 : i32, i32
  }
  func.func @transform_2(%arg0: i32) -> (i32, i32) {
    %c0_i32 = arith.constant 0 : i32
    %c0_i32_0 = arith.constant 0 : i32
    %c0_i32_1 = arith.constant 0 : i32
    return %c0_i32, %c0_i32_0 : i32, i32
  }
  func.func @transform_3(%arg0: i32) -> (i32, i32) {
    %c0_i32 = arith.constant 0 : i32
    %c0_i32_0 = arith.constant 0 : i32
    return %arg0, %c0_i32 : i32, i32
  }
}

module attributes {stable_mosaic.version = 11 : i64} {
  func.func @_bilstm_dir_kernel(%arg0: i32, %arg1: i32, %arg2: memref<16x1xi32, #tpu.memory_space<vmem>>, %arg3: memref<8x16x256xbf16, #tpu.memory_space<vmem>>, %arg4: memref<1x256x512xbf16, #tpu.memory_space<vmem>>, %arg5: memref<1x128x512xbf16, #tpu.memory_space<vmem>>, %arg6: memref<1x1x512xf32, #tpu.memory_space<vmem>>, %arg7: memref<8x16x128xbf16, #tpu.memory_space<vmem>>, %arg8: memref<128x512xbf16, #tpu.memory_space<vmem>>) attributes {dimension_semantics = [#tpu.dimension_semantics<parallel>, #tpu.dimension_semantics<parallel>], iteration_bounds = array<i64: 1, 2>, scalar_prefetch = 0 : i64, scratch_operands = 1 : i64, tpu.core_type = #tpu.core_type<tc>, window_params = [{transform_indices = @transform_0, window_bounds = array<i64: 16, 1>}, {transform_indices = @transform_1, window_bounds = array<i64: 8, 16, 256>}, {transform_indices = @transform_2, window_bounds = array<i64: 1, 256, 512>}, {transform_indices = @transform_3, window_bounds = array<i64: 1, 128, 512>}, {transform_indices = @transform_4, window_bounds = array<i64: 1, 1, 512>}, {transform_indices = @transform_5, window_bounds = array<i64: 8, 16, 128>}]} {
    %c0_i32 = arith.constant 0 : i32
    %c1_i32 = arith.constant 1 : i32
    %0 = arith.muli %c0_i32, %c1_i32 : i32
    %c0_i32_0 = arith.constant 0 : i32
    %1 = arith.addi %c0_i32_0, %0 : i32
    %c8_i32 = arith.constant 8 : i32
    %2 = arith.muli %1, %c8_i32 : i32
    %3 = tpu.assume_multiple %2, 8 : i32
    %4 = arith.index_cast %3 : i32 to index
    %c0 = arith.constant 0 : index
    %c0_1 = arith.constant 0 : index
    %5 = vector.load %arg3[%4, %c0, %c0_1] : memref<8x16x256xbf16, #tpu.memory_space<vmem>>, vector<8x16x256xbf16>
    %6 = vector.shape_cast %5 : vector<8x16x256xbf16> to vector<128x256xbf16>
    %c0_2 = arith.constant 0 : index
    %c0_3 = arith.constant 0 : index
    %c0_4 = arith.constant 0 : index
    %7 = vector.load %arg4[%c0_2, %c0_3, %c0_4] : memref<1x256x512xbf16, #tpu.memory_space<vmem>>, vector<1x256x512xbf16>
    %8 = vector.shape_cast %7 : vector<1x256x512xbf16> to vector<256x512xbf16>
    %cst = arith.constant dense<0.000000e+00> : vector<128x512xf32>
    %9 = tpu.matmul %6, %8, %cst {dimension_numbers = #tpu.dot_dimension_numbers<[1], [0], [0], [1], [0, 0, 1, 1], [], []>} : vector<128x256xbf16>, vector<256x512xbf16>, vector<128x512xf32> -> vector<128x512xf32>
    %c0_5 = arith.constant 0 : index
    %c0_6 = arith.constant 0 : index
    %c0_7 = arith.constant 0 : index
    %10 = vector.load %arg6[%c0_5, %c0_6, %c0_7] : memref<1x1x512xf32, #tpu.memory_space<vmem>>, vector<1x1x512xf32>
    %11 = vector.shape_cast %10 : vector<1x1x512xf32> to vector<1x512xf32>
    %12 = vector.broadcast %11 : vector<1x512xf32> to vector<128x512xf32>
    %13 = arith.addf %9, %12 : vector<128x512xf32>
    %c16_i32 = arith.constant 16 : i32
    %14 = arith.muli %3, %c16_i32 : i32
    %15 = tpu.assume_multiple %14, 16 : i32
    %16 = arith.truncf %13 : vector<128x512xf32> to vector<128x512xbf16>
    %17 = arith.index_cast %15 : i32 to index
    %c0_8 = arith.constant 0 : index
    %18 = vector.load %arg8[%17, %c0_8] : memref<128x512xbf16, #tpu.memory_space<vmem>>, vector<128x512xbf16>
    tpu.vector_store %arg8[%17, %c0_8], %16 {strides = array<i32>} : memref<128x512xbf16, #tpu.memory_space<vmem>>, vector<128x512xbf16>,
    %c1_i32_9 = arith.constant 1 : i32
    %c0_10 = arith.constant 0 : index
    %c0_11 = arith.constant 0 : index
    %19 = vector.load %arg2[%c0_10, %c0_11] : memref<16x1xi32, #tpu.memory_space<vmem>>, vector<16x1xi32>
    %cst_12 = arith.constant 0.000000e+00 : f32
    %20 = vector.broadcast %cst_12 : f32 to vector<16x128xf32>
    %c0_i32_13 = arith.constant 0 : i32
    %c0_i32_14 = arith.constant 0 : i32
    %21 = arith.cmpi eq, %arg1, %c0_i32_14 : i32
    %c7_i32 = arith.constant 7 : i32
    %22 = arith.subi %c7_i32, %c0_i32_13 : i32
    %23 = arith.select %21, %c0_i32_13, %22 : i32
    %c16_i32_15 = arith.constant 16 : i32
    %24 = arith.muli %23, %c16_i32_15 : i32
    %25 = tpu.assume_multiple %24, 16 : i32
    %26 = arith.index_cast %25 : i32 to index
    %c0_16 = arith.constant 0 : index
    %27 = vector.load %arg8[%26, %c0_16] : memref<128x512xbf16, #tpu.memory_space<vmem>>, vector<16x512xbf16>
    %28 = arith.extf %27 : vector<16x512xbf16> to vector<16x512xf32>
    %29 = arith.truncf %20 : vector<16x128xf32> to vector<16x128xbf16>
    %c0_17 = arith.constant 0 : index
    %c0_18 = arith.constant 0 : index
    %c0_19 = arith.constant 0 : index
    %30 = vector.load %arg5[%c0_17, %c0_18, %c0_19] : memref<1x128x512xbf16, #tpu.memory_space<vmem>>, vector<1x128x512xbf16>
    %31 = vector.shape_cast %30 : vector<1x128x512xbf16> to vector<128x512xbf16>
    %cst_20 = arith.constant dense<0.000000e+00> : vector<16x512xf32>
    %32 = tpu.matmul %29, %31, %cst_20 {dimension_numbers = #tpu.dot_dimension_numbers<[1], [0], [0], [1], [0, 0, 1, 1], [], []>} : vector<16x128xbf16>, vector<128x512xbf16>, vector<16x512xf32> -> vector<16x512xf32>
    %33 = arith.addf %28, %32 : vector<16x512xf32>
    %34 = vector.extract_strided_slice %33 {offsets = [0, 0], sizes = [16, 128], strides = [1, 1]} : vector<16x512xf32> to vector<16x128xf32>
    %35 = arith.negf %34 : vector<16x128xf32>
    %36 = math.exp %35 : vector<16x128xf32>
    %cst_21 = arith.constant 1.000000e+00 : f32
    %37 = vector.broadcast %cst_21 : f32 to vector<16x128xf32>
    %38 = arith.addf %37, %36 : vector<16x128xf32>
    %39 = arith.divf %37, %38 : vector<16x128xf32>
    %40 = vector.extract_strided_slice %33 {offsets = [0, 128], sizes = [16, 128], strides = [1, 1]} : vector<16x512xf32> to vector<16x128xf32>
    %41 = arith.negf %40 : vector<16x128xf32>
    %42 = math.exp %41 : vector<16x128xf32>
    %cst_22 = arith.constant 1.000000e+00 : f32
    %43 = vector.broadcast %cst_22 : f32 to vector<16x128xf32>
    %44 = arith.addf %43, %42 : vector<16x128xf32>
    %45 = arith.divf %43, %44 : vector<16x128xf32>
    %46 = vector.extract_strided_slice %33 {offsets = [0, 256], sizes = [16, 128], strides = [1, 1]} : vector<16x512xf32> to vector<16x128xf32>
    %47 = math.tanh %46 : vector<16x128xf32>
    %48 = vector.extract_strided_slice %33 {offsets = [0, 384], sizes = [16, 128], strides = [1, 1]} : vector<16x512xf32> to vector<16x128xf32>
    %49 = arith.negf %48 : vector<16x128xf32>
    %50 = math.exp %49 : vector<16x128xf32>
    %cst_23 = arith.constant 1.000000e+00 : f32
    %51 = vector.broadcast %cst_23 : f32 to vector<16x128xf32>
    %52 = arith.addf %51, %50 : vector<16x128xf32>
    %53 = arith.divf %51, %52 : vector<16x128xf32>
    %54 = arith.mulf %45, %20 : vector<16x128xf32>
    %55 = arith.mulf %39, %47 : vector<16x128xf32>
    %56 = arith.addf %54, %55 : vector<16x128xf32>
    %57 = math.tanh %56 : vector<16x128xf32>
    %58 = arith.mulf %53, %57 : vector<16x128xf32>
    %59 = vector.broadcast %23 : i32 to vector<16x1xi32>
    %60 = arith.cmpi slt, %59, %19 : vector<16x1xi32>
    %61 = vector.shape_cast %60 : vector<16x1xi1> to vector<16x1xi1>
    %62 = vector.broadcast %61 : vector<16x1xi1> to vector<16x128xi1>
    %63 = arith.select %62, %58, %20 : vector<16x128xi1>, vector<16x128xf32>
    %64 = vector.shape_cast %60 : vector<16x1xi1> to vector<16x1xi1>
    %65 = vector.broadcast %64 : vector<16x1xi1> to vector<16x128xi1>
    %66 = arith.select %65, %56, %20 : vector<16x128xi1>, vector<16x128xf32>
    %cst_24 = arith.constant 0.000000e+00 : f32
    %67 = vector.shape_cast %60 : vector<16x1xi1> to vector<16x1xi1>
    %68 = vector.broadcast %67 : vector<16x1xi1> to vector<16x128xi1>
    %69 = vector.broadcast %cst_24 : f32 to vector<16x128xf32>
    %70 = arith.select %68, %58, %69 : vector<16x128xi1>, vector<16x128xf32>
    %71 = arith.truncf %70 : vector<16x128xf32> to vector<16x128xbf16>
    %72 = arith.index_cast %23 : i32 to index
    %c0_25 = arith.constant 0 : index
    %c0_26 = arith.constant 0 : index
    %73 = vector.load %arg7[%72, %c0_25, %c0_26] : memref<8x16x128xbf16, #tpu.memory_space<vmem>>, vector<1x16x128xbf16>
    %74 = vector.shape_cast %73 : vector<1x16x128xbf16> to vector<16x128xbf16>
    %75 = vector.shape_cast %71 : vector<16x128xbf16> to vector<1x16x128xbf16>
    tpu.vector_store %arg7[%72, %c0_25, %c0_26], %75 {strides = array<i32>} : memref<8x16x128xbf16, #tpu.memory_space<vmem>>, vector<1x16x128xbf16>,
    %c1_i32_27 = arith.constant 1 : i32
    %c0_i32_28 = arith.constant 0 : i32
    %76 = arith.cmpi eq, %arg1, %c0_i32_28 : i32
    %c7_i32_29 = arith.constant 7 : i32
    %77 = arith.subi %c7_i32_29, %c1_i32_27 : i32
    %78 = arith.select %76, %c1_i32_27, %77 : i32
    %c16_i32_30 = arith.constant 16 : i32
    %79 = arith.muli %78, %c16_i32_30 : i32
    %80 = tpu.assume_multiple %79, 16 : i32
    %81 = arith.index_cast %80 : i32 to index
    %c0_31 = arith.constant 0 : index
    %82 = vector.load %arg8[%81, %c0_31] : memref<128x512xbf16, #tpu.memory_space<vmem>>, vector<16x512xbf16>
    %83 = arith.extf %82 : vector<16x512xbf16> to vector<16x512xf32>
    %84 = arith.truncf %63 : vector<16x128xf32> to vector<16x128xbf16>
    %c0_32 = arith.constant 0 : index
    %c0_33 = arith.constant 0 : index
    %c0_34 = arith.constant 0 : index
    %85 = vector.load %arg5[%c0_32, %c0_33, %c0_34] : memref<1x128x512xbf16, #tpu.memory_space<vmem>>, vector<1x128x512xbf16>
    %86 = vector.shape_cast %85 : vector<1x128x512xbf16> to vector<128x512xbf16>
    %cst_35 = arith.constant dense<0.000000e+00> : vector<16x512xf32>
    %87 = tpu.matmul %84, %86, %cst_35 {dimension_numbers = #tpu.dot_dimension_numbers<[1], [0], [0], [1], [0, 0, 1, 1], [], []>} : vector<16x128xbf16>, vector<128x512xbf16>, vector<16x512xf32> -> vector<16x512xf32>
    %88 = arith.addf %83, %87 : vector<16x512xf32>
    %89 = vector.extract_strided_slice %88 {offsets = [0, 0], sizes = [16, 128], strides = [1, 1]} : vector<16x512xf32> to vector<16x128xf32>
    %90 = arith.negf %89 : vector<16x128xf32>
    %91 = math.exp %90 : vector<16x128xf32>
    %cst_36 = arith.constant 1.000000e+00 : f32
    %92 = vector.broadcast %cst_36 : f32 to vector<16x128xf32>
    %93 = arith.addf %92, %91 : vector<16x128xf32>
    %94 = arith.divf %92, %93 : vector<16x128xf32>
    %95 = vector.extract_strided_slice %88 {offsets = [0, 128], sizes = [16, 128], strides = [1, 1]} : vector<16x512xf32> to vector<16x128xf32>
    %96 = arith.negf %95 : vector<16x128xf32>
    %97 = math.exp %96 : vector<16x128xf32>
    %cst_37 = arith.constant 1.000000e+00 : f32
    %98 = vector.broadcast %cst_37 : f32 to vector<16x128xf32>
    %99 = arith.addf %98, %97 : vector<16x128xf32>
    %100 = arith.divf %98, %99 : vector<16x128xf32>
    %101 = vector.extract_strided_slice %88 {offsets = [0, 256], sizes = [16, 128], strides = [1, 1]} : vector<16x512xf32> to vector<16x128xf32>
    %102 = math.tanh %101 : vector<16x128xf32>
    %103 = vector.extract_strided_slice %88 {offsets = [0, 384], sizes = [16, 128], strides = [1, 1]} : vector<16x512xf32> to vector<16x128xf32>
    %104 = arith.negf %103 : vector<16x128xf32>
    %105 = math.exp %104 : vector<16x128xf32>
    %cst_38 = arith.constant 1.000000e+00 : f32
    %106 = vector.broadcast %cst_38 : f32 to vector<16x128xf32>
    %107 = arith.addf %106, %105 : vector<16x128xf32>
    %108 = arith.divf %106, %107 : vector<16x128xf32>
    %109 = arith.mulf %100, %66 : vector<16x128xf32>
    %110 = arith.mulf %94, %102 : vector<16x128xf32>
    %111 = arith.addf %109, %110 : vector<16x128xf32>
    %112 = math.tanh %111 : vector<16x128xf32>
    %113 = arith.mulf %108, %112 : vector<16x128xf32>
    %114 = vector.broadcast %78 : i32 to vector<16x1xi32>
    %115 = arith.cmpi slt, %114, %19 : vector<16x1xi32>
    %116 = vector.shape_cast %115 : vector<16x1xi1> to vector<16x1xi1>
    %117 = vector.broadcast %116 : vector<16x1xi1> to vector<16x128xi1>
    %118 = arith.select %117, %113, %63 : vector<16x128xi1>, vector<16x128xf32>
    %119 = vector.shape_cast %115 : vector<16x1xi1> to vector<16x1xi1>
    %120 = vector.broadcast %119 : vector<16x1xi1> to vector<16x128xi1>
    %121 = arith.select %120, %111, %66 : vector<16x128xi1>, vector<16x128xf32>
    %cst_39 = arith.constant 0.000000e+00 : f32
    %122 = vector.shape_cast %115 : vector<16x1xi1> to vector<16x1xi1>
    %123 = vector.broadcast %122 : vector<16x1xi1> to vector<16x128xi1>
    %124 = vector.broadcast %cst_39 : f32 to vector<16x128xf32>
    %125 = arith.select %123, %113, %124 : vector<16x128xi1>, vector<16x128xf32>
    %126 = arith.truncf %125 : vector<16x128xf32> to vector<16x128xbf16>
    %127 = arith.index_cast %78 : i32 to index
    %c0_40 = arith.constant 0 : index
    %c0_41 = arith.constant 0 : index
    %128 = vector.load %arg7[%127, %c0_40, %c0_41] : memref<8x16x128xbf16, #tpu.memory_space<vmem>>, vector<1x16x128xbf16>
    %129 = vector.shape_cast %128 : vector<1x16x128xbf16> to vector<16x128xbf16>
    %130 = vector.shape_cast %126 : vector<16x128xbf16> to vector<1x16x128xbf16>
    tpu.vector_store %arg7[%127, %c0_40, %c0_41], %130 {strides = array<i32>} : memref<8x16x128xbf16, #tpu.memory_space<vmem>>, vector<1x16x128xbf16>,
    %c2_i32 = arith.constant 2 : i32
    %c0_i32_42 = arith.constant 0 : i32
    %131 = arith.cmpi eq, %arg1, %c0_i32_42 : i32
    %c7_i32_43 = arith.constant 7 : i32
    %132 = arith.subi %c7_i32_43, %c2_i32 : i32
    %133 = arith.select %131, %c2_i32, %132 : i32
    %c16_i32_44 = arith.constant 16 : i32
    %134 = arith.muli %133, %c16_i32_44 : i32
    %135 = tpu.assume_multiple %134, 16 : i32
    %136 = arith.index_cast %135 : i32 to index
    %c0_45 = arith.constant 0 : index
    %137 = vector.load %arg8[%136, %c0_45] : memref<128x512xbf16, #tpu.memory_space<vmem>>, vector<16x512xbf16>
    %138 = arith.extf %137 : vector<16x512xbf16> to vector<16x512xf32>
    %139 = arith.truncf %118 : vector<16x128xf32> to vector<16x128xbf16>
    %c0_46 = arith.constant 0 : index
    %c0_47 = arith.constant 0 : index
    %c0_48 = arith.constant 0 : index
    %140 = vector.load %arg5[%c0_46, %c0_47, %c0_48] : memref<1x128x512xbf16, #tpu.memory_space<vmem>>, vector<1x128x512xbf16>
    %141 = vector.shape_cast %140 : vector<1x128x512xbf16> to vector<128x512xbf16>
    %cst_49 = arith.constant dense<0.000000e+00> : vector<16x512xf32>
    %142 = tpu.matmul %139, %141, %cst_49 {dimension_numbers = #tpu.dot_dimension_numbers<[1], [0], [0], [1], [0, 0, 1, 1], [], []>} : vector<16x128xbf16>, vector<128x512xbf16>, vector<16x512xf32> -> vector<16x512xf32>
    %143 = arith.addf %138, %142 : vector<16x512xf32>
    %144 = vector.extract_strided_slice %143 {offsets = [0, 0], sizes = [16, 128], strides = [1, 1]} : vector<16x512xf32> to vector<16x128xf32>
    %145 = arith.negf %144 : vector<16x128xf32>
    %146 = math.exp %145 : vector<16x128xf32>
    %cst_50 = arith.constant 1.000000e+00 : f32
    %147 = vector.broadcast %cst_50 : f32 to vector<16x128xf32>
    %148 = arith.addf %147, %146 : vector<16x128xf32>
    %149 = arith.divf %147, %148 : vector<16x128xf32>
    %150 = vector.extract_strided_slice %143 {offsets = [0, 128], sizes = [16, 128], strides = [1, 1]} : vector<16x512xf32> to vector<16x128xf32>
    %151 = arith.negf %150 : vector<16x128xf32>
    %152 = math.exp %151 : vector<16x128xf32>
    %cst_51 = arith.constant 1.000000e+00 : f32
    %153 = vector.broadcast %cst_51 : f32 to vector<16x128xf32>
    %154 = arith.addf %153, %152 : vector<16x128xf32>
    %155 = arith.divf %153, %154 : vector<16x128xf32>
    %156 = vector.extract_strided_slice %143 {offsets = [0, 256], sizes = [16, 128], strides = [1, 1]} : vector<16x512xf32> to vector<16x128xf32>
    %157 = math.tanh %156 : vector<16x128xf32>
    %158 = vector.extract_strided_slice %143 {offsets = [0, 384], sizes = [16, 128], strides = [1, 1]} : vector<16x512xf32> to vector<16x128xf32>
    %159 = arith.negf %158 : vector<16x128xf32>
    %160 = math.exp %159 : vector<16x128xf32>
    %cst_52 = arith.constant 1.000000e+00 : f32
    %161 = vector.broadcast %cst_52 : f32 to vector<16x128xf32>
    %162 = arith.addf %161, %160 : vector<16x128xf32>
    %163 = arith.divf %161, %162 : vector<16x128xf32>
    %164 = arith.mulf %155, %121 : vector<16x128xf32>
    %165 = arith.mulf %149, %157 : vector<16x128xf32>
    %166 = arith.addf %164, %165 : vector<16x128xf32>
    %167 = math.tanh %166 : vector<16x128xf32>
    %168 = arith.mulf %163, %167 : vector<16x128xf32>
    %169 = vector.broadcast %133 : i32 to vector<16x1xi32>
    %170 = arith.cmpi slt, %169, %19 : vector<16x1xi32>
    %171 = vector.shape_cast %170 : vector<16x1xi1> to vector<16x1xi1>
    %172 = vector.broadcast %171 : vector<16x1xi1> to vector<16x128xi1>
    %173 = arith.select %172, %168, %118 : vector<16x128xi1>, vector<16x128xf32>
    %174 = vector.shape_cast %170 : vector<16x1xi1> to vector<16x1xi1>
    %175 = vector.broadcast %174 : vector<16x1xi1> to vector<16x128xi1>
    %176 = arith.select %175, %166, %121 : vector<16x128xi1>, vector<16x128xf32>
    %cst_53 = arith.constant 0.000000e+00 : f32
    %177 = vector.shape_cast %170 : vector<16x1xi1> to vector<16x1xi1>
    %178 = vector.broadcast %177 : vector<16x1xi1> to vector<16x128xi1>
    %179 = vector.broadcast %cst_53 : f32 to vector<16x128xf32>
    %180 = arith.select %178, %168, %179 : vector<16x128xi1>, vector<16x128xf32>
    %181 = arith.truncf %180 : vector<16x128xf32> to vector<16x128xbf16>
    %182 = arith.index_cast %133 : i32 to index
    %c0_54 = arith.constant 0 : index
    %c0_55 = arith.constant 0 : index
    %183 = vector.load %arg7[%182, %c0_54, %c0_55] : memref<8x16x128xbf16, #tpu.memory_space<vmem>>, vector<1x16x128xbf16>
    %184 = vector.shape_cast %183 : vector<1x16x128xbf16> to vector<16x128xbf16>
    %185 = vector.shape_cast %181 : vector<16x128xbf16> to vector<1x16x128xbf16>
    tpu.vector_store %arg7[%182, %c0_54, %c0_55], %185 {strides = array<i32>} : memref<8x16x128xbf16, #tpu.memory_space<vmem>>, vector<1x16x128xbf16>,
    %c3_i32 = arith.constant 3 : i32
    %c0_i32_56 = arith.constant 0 : i32
    %186 = arith.cmpi eq, %arg1, %c0_i32_56 : i32
    %c7_i32_57 = arith.constant 7 : i32
    %187 = arith.subi %c7_i32_57, %c3_i32 : i32
    %188 = arith.select %186, %c3_i32, %187 : i32
    %c16_i32_58 = arith.constant 16 : i32
    %189 = arith.muli %188, %c16_i32_58 : i32
    %190 = tpu.assume_multiple %189, 16 : i32
    %191 = arith.index_cast %190 : i32 to index
    %c0_59 = arith.constant 0 : index
    %192 = vector.load %arg8[%191, %c0_59] : memref<128x512xbf16, #tpu.memory_space<vmem>>, vector<16x512xbf16>
    %193 = arith.extf %192 : vector<16x512xbf16> to vector<16x512xf32>
    %194 = arith.truncf %173 : vector<16x128xf32> to vector<16x128xbf16>
    %c0_60 = arith.constant 0 : index
    %c0_61 = arith.constant 0 : index
    %c0_62 = arith.constant 0 : index
    %195 = vector.load %arg5[%c0_60, %c0_61, %c0_62] : memref<1x128x512xbf16, #tpu.memory_space<vmem>>, vector<1x128x512xbf16>
    %196 = vector.shape_cast %195 : vector<1x128x512xbf16> to vector<128x512xbf16>
    %cst_63 = arith.constant dense<0.000000e+00> : vector<16x512xf32>
    %197 = tpu.matmul %194, %196, %cst_63 {dimension_numbers = #tpu.dot_dimension_numbers<[1], [0], [0], [1], [0, 0, 1, 1], [], []>} : vector<16x128xbf16>, vector<128x512xbf16>, vector<16x512xf32> -> vector<16x512xf32>
    %198 = arith.addf %193, %197 : vector<16x512xf32>
    %199 = vector.extract_strided_slice %198 {offsets = [0, 0], sizes = [16, 128], strides = [1, 1]} : vector<16x512xf32> to vector<16x128xf32>
    %200 = arith.negf %199 : vector<16x128xf32>
    %201 = math.exp %200 : vector<16x128xf32>
    %cst_64 = arith.constant 1.000000e+00 : f32
    %202 = vector.broadcast %cst_64 : f32 to vector<16x128xf32>
    %203 = arith.addf %202, %201 : vector<16x128xf32>
    %204 = arith.divf %202, %203 : vector<16x128xf32>
    %205 = vector.extract_strided_slice %198 {offsets = [0, 128], sizes = [16, 128], strides = [1, 1]} : vector<16x512xf32> to vector<16x128xf32>
    %206 = arith.negf %205 : vector<16x128xf32>
    %207 = math.exp %206 : vector<16x128xf32>
    %cst_65 = arith.constant 1.000000e+00 : f32
    %208 = vector.broadcast %cst_65 : f32 to vector<16x128xf32>
    %209 = arith.addf %208, %207 : vector<16x128xf32>
    %210 = arith.divf %208, %209 : vector<16x128xf32>
    %211 = vector.extract_strided_slice %198 {offsets = [0, 256], sizes = [16, 128], strides = [1, 1]} : vector<16x512xf32> to vector<16x128xf32>
    %212 = math.tanh %211 : vector<16x128xf32>
    %213 = vector.extract_strided_slice %198 {offsets = [0, 384], sizes = [16, 128], strides = [1, 1]} : vector<16x512xf32> to vector<16x128xf32>
    %214 = arith.negf %213 : vector<16x128xf32>
    %215 = math.exp %214 : vector<16x128xf32>
    %cst_66 = arith.constant 1.000000e+00 : f32
    %216 = vector.broadcast %cst_66 : f32 to vector<16x128xf32>
    %217 = arith.addf %216, %215 : vector<16x128xf32>
    %218 = arith.divf %216, %217 : vector<16x128xf32>
    %219 = arith.mulf %210, %176 : vector<16x128xf32>
    %220 = arith.mulf %204, %212 : vector<16x128xf32>
    %221 = arith.addf %219, %220 : vector<16x128xf32>
    %222 = math.tanh %221 : vector<16x128xf32>
    %223 = arith.mulf %218, %222 : vector<16x128xf32>
    %224 = vector.broadcast %188 : i32 to vector<16x1xi32>
    %225 = arith.cmpi slt, %224, %19 : vector<16x1xi32>
    %226 = vector.shape_cast %225 : vector<16x1xi1> to vector<16x1xi1>
    %227 = vector.broadcast %226 : vector<16x1xi1> to vector<16x128xi1>
    %228 = arith.select %227, %223, %173 : vector<16x128xi1>, vector<16x128xf32>
    %229 = vector.shape_cast %225 : vector<16x1xi1> to vector<16x1xi1>
    %230 = vector.broadcast %229 : vector<16x1xi1> to vector<16x128xi1>
    %231 = arith.select %230, %221, %176 : vector<16x128xi1>, vector<16x128xf32>
    %cst_67 = arith.constant 0.000000e+00 : f32
    %232 = vector.shape_cast %225 : vector<16x1xi1> to vector<16x1xi1>
    %233 = vector.broadcast %232 : vector<16x1xi1> to vector<16x128xi1>
    %234 = vector.broadcast %cst_67 : f32 to vector<16x128xf32>
    %235 = arith.select %233, %223, %234 : vector<16x128xi1>, vector<16x128xf32>
    %236 = arith.truncf %235 : vector<16x128xf32> to vector<16x128xbf16>
    %237 = arith.index_cast %188 : i32 to index
    %c0_68 = arith.constant 0 : index
    %c0_69 = arith.constant 0 : index
    %238 = vector.load %arg7[%237, %c0_68, %c0_69] : memref<8x16x128xbf16, #tpu.memory_space<vmem>>, vector<1x16x128xbf16>
    %239 = vector.shape_cast %238 : vector<1x16x128xbf16> to vector<16x128xbf16>
    %240 = vector.shape_cast %236 : vector<16x128xbf16> to vector<1x16x128xbf16>
    tpu.vector_store %arg7[%237, %c0_68, %c0_69], %240 {strides = array<i32>} : memref<8x16x128xbf16, #tpu.memory_space<vmem>>, vector<1x16x128xbf16>,
    %c4_i32 = arith.constant 4 : i32
    %c0_i32_70 = arith.constant 0 : i32
    %241 = arith.cmpi eq, %arg1, %c0_i32_70 : i32
    %c7_i32_71 = arith.constant 7 : i32
    %242 = arith.subi %c7_i32_71, %c4_i32 : i32
    %243 = arith.select %241, %c4_i32, %242 : i32
    %c16_i32_72 = arith.constant 16 : i32
    %244 = arith.muli %243, %c16_i32_72 : i32
    %245 = tpu.assume_multiple %244, 16 : i32
    %246 = arith.index_cast %245 : i32 to index
    %c0_73 = arith.constant 0 : index
    %247 = vector.load %arg8[%246, %c0_73] : memref<128x512xbf16, #tpu.memory_space<vmem>>, vector<16x512xbf16>
    %248 = arith.extf %247 : vector<16x512xbf16> to vector<16x512xf32>
    %249 = arith.truncf %228 : vector<16x128xf32> to vector<16x128xbf16>
    %c0_74 = arith.constant 0 : index
    %c0_75 = arith.constant 0 : index
    %c0_76 = arith.constant 0 : index
    %250 = vector.load %arg5[%c0_74, %c0_75, %c0_76] : memref<1x128x512xbf16, #tpu.memory_space<vmem>>, vector<1x128x512xbf16>
    %251 = vector.shape_cast %250 : vector<1x128x512xbf16> to vector<128x512xbf16>
    %cst_77 = arith.constant dense<0.000000e+00> : vector<16x512xf32>
    %252 = tpu.matmul %249, %251, %cst_77 {dimension_numbers = #tpu.dot_dimension_numbers<[1], [0], [0], [1], [0, 0, 1, 1], [], []>} : vector<16x128xbf16>, vector<128x512xbf16>, vector<16x512xf32> -> vector<16x512xf32>
    %253 = arith.addf %248, %252 : vector<16x512xf32>
    %254 = vector.extract_strided_slice %253 {offsets = [0, 0], sizes = [16, 128], strides = [1, 1]} : vector<16x512xf32> to vector<16x128xf32>
    %255 = arith.negf %254 : vector<16x128xf32>
    %256 = math.exp %255 : vector<16x128xf32>
    %cst_78 = arith.constant 1.000000e+00 : f32
    %257 = vector.broadcast %cst_78 : f32 to vector<16x128xf32>
    %258 = arith.addf %257, %256 : vector<16x128xf32>
    %259 = arith.divf %257, %258 : vector<16x128xf32>
    %260 = vector.extract_strided_slice %253 {offsets = [0, 128], sizes = [16, 128], strides = [1, 1]} : vector<16x512xf32> to vector<16x128xf32>
    %261 = arith.negf %260 : vector<16x128xf32>
    %262 = math.exp %261 : vector<16x128xf32>
    %cst_79 = arith.constant 1.000000e+00 : f32
    %263 = vector.broadcast %cst_79 : f32 to vector<16x128xf32>
    %264 = arith.addf %263, %262 : vector<16x128xf32>
    %265 = arith.divf %263, %264 : vector<16x128xf32>
    %266 = vector.extract_strided_slice %253 {offsets = [0, 256], sizes = [16, 128], strides = [1, 1]} : vector<16x512xf32> to vector<16x128xf32>
    %267 = math.tanh %266 : vector<16x128xf32>
    %268 = vector.extract_strided_slice %253 {offsets = [0, 384], sizes = [16, 128], strides = [1, 1]} : vector<16x512xf32> to vector<16x128xf32>
    %269 = arith.negf %268 : vector<16x128xf32>
    %270 = math.exp %269 : vector<16x128xf32>
    %cst_80 = arith.constant 1.000000e+00 : f32
    %271 = vector.broadcast %cst_80 : f32 to vector<16x128xf32>
    %272 = arith.addf %271, %270 : vector<16x128xf32>
    %273 = arith.divf %271, %272 : vector<16x128xf32>
    %274 = arith.mulf %265, %231 : vector<16x128xf32>
    %275 = arith.mulf %259, %267 : vector<16x128xf32>
    %276 = arith.addf %274, %275 : vector<16x128xf32>
    %277 = math.tanh %276 : vector<16x128xf32>
    %278 = arith.mulf %273, %277 : vector<16x128xf32>
    %279 = vector.broadcast %243 : i32 to vector<16x1xi32>
    %280 = arith.cmpi slt, %279, %19 : vector<16x1xi32>
    %281 = vector.shape_cast %280 : vector<16x1xi1> to vector<16x1xi1>
    %282 = vector.broadcast %281 : vector<16x1xi1> to vector<16x128xi1>
    %283 = arith.select %282, %278, %228 : vector<16x128xi1>, vector<16x128xf32>
    %284 = vector.shape_cast %280 : vector<16x1xi1> to vector<16x1xi1>
    %285 = vector.broadcast %284 : vector<16x1xi1> to vector<16x128xi1>
    %286 = arith.select %285, %276, %231 : vector<16x128xi1>, vector<16x128xf32>
    %cst_81 = arith.constant 0.000000e+00 : f32
    %287 = vector.shape_cast %280 : vector<16x1xi1> to vector<16x1xi1>
    %288 = vector.broadcast %287 : vector<16x1xi1> to vector<16x128xi1>
    %289 = vector.broadcast %cst_81 : f32 to vector<16x128xf32>
    %290 = arith.select %288, %278, %289 : vector<16x128xi1>, vector<16x128xf32>
    %291 = arith.truncf %290 : vector<16x128xf32> to vector<16x128xbf16>
    %292 = arith.index_cast %243 : i32 to index
    %c0_82 = arith.constant 0 : index
    %c0_83 = arith.constant 0 : index
    %293 = vector.load %arg7[%292, %c0_82, %c0_83] : memref<8x16x128xbf16, #tpu.memory_space<vmem>>, vector<1x16x128xbf16>
    %294 = vector.shape_cast %293 : vector<1x16x128xbf16> to vector<16x128xbf16>
    %295 = vector.shape_cast %291 : vector<16x128xbf16> to vector<1x16x128xbf16>
    tpu.vector_store %arg7[%292, %c0_82, %c0_83], %295 {strides = array<i32>} : memref<8x16x128xbf16, #tpu.memory_space<vmem>>, vector<1x16x128xbf16>,
    %c5_i32 = arith.constant 5 : i32
    %c0_i32_84 = arith.constant 0 : i32
    %296 = arith.cmpi eq, %arg1, %c0_i32_84 : i32
    %c7_i32_85 = arith.constant 7 : i32
    %297 = arith.subi %c7_i32_85, %c5_i32 : i32
    %298 = arith.select %296, %c5_i32, %297 : i32
    %c16_i32_86 = arith.constant 16 : i32
    %299 = arith.muli %298, %c16_i32_86 : i32
    %300 = tpu.assume_multiple %299, 16 : i32
    %301 = arith.index_cast %300 : i32 to index
    %c0_87 = arith.constant 0 : index
    %302 = vector.load %arg8[%301, %c0_87] : memref<128x512xbf16, #tpu.memory_space<vmem>>, vector<16x512xbf16>
    %303 = arith.extf %302 : vector<16x512xbf16> to vector<16x512xf32>
    %304 = arith.truncf %283 : vector<16x128xf32> to vector<16x128xbf16>
    %c0_88 = arith.constant 0 : index
    %c0_89 = arith.constant 0 : index
    %c0_90 = arith.constant 0 : index
    %305 = vector.load %arg5[%c0_88, %c0_89, %c0_90] : memref<1x128x512xbf16, #tpu.memory_space<vmem>>, vector<1x128x512xbf16>
    %306 = vector.shape_cast %305 : vector<1x128x512xbf16> to vector<128x512xbf16>
    %cst_91 = arith.constant dense<0.000000e+00> : vector<16x512xf32>
    %307 = tpu.matmul %304, %306, %cst_91 {dimension_numbers = #tpu.dot_dimension_numbers<[1], [0], [0], [1], [0, 0, 1, 1], [], []>} : vector<16x128xbf16>, vector<128x512xbf16>, vector<16x512xf32> -> vector<16x512xf32>
    %308 = arith.addf %303, %307 : vector<16x512xf32>
    %309 = vector.extract_strided_slice %308 {offsets = [0, 0], sizes = [16, 128], strides = [1, 1]} : vector<16x512xf32> to vector<16x128xf32>
    %310 = arith.negf %309 : vector<16x128xf32>
    %311 = math.exp %310 : vector<16x128xf32>
    %cst_92 = arith.constant 1.000000e+00 : f32
    %312 = vector.broadcast %cst_92 : f32 to vector<16x128xf32>
    %313 = arith.addf %312, %311 : vector<16x128xf32>
    %314 = arith.divf %312, %313 : vector<16x128xf32>
    %315 = vector.extract_strided_slice %308 {offsets = [0, 128], sizes = [16, 128], strides = [1, 1]} : vector<16x512xf32> to vector<16x128xf32>
    %316 = arith.negf %315 : vector<16x128xf32>
    %317 = math.exp %316 : vector<16x128xf32>
    %cst_93 = arith.constant 1.000000e+00 : f32
    %318 = vector.broadcast %cst_93 : f32 to vector<16x128xf32>
    %319 = arith.addf %318, %317 : vector<16x128xf32>
    %320 = arith.divf %318, %319 : vector<16x128xf32>
    %321 = vector.extract_strided_slice %308 {offsets = [0, 256], sizes = [16, 128], strides = [1, 1]} : vector<16x512xf32> to vector<16x128xf32>
    %322 = math.tanh %321 : vector<16x128xf32>
    %323 = vector.extract_strided_slice %308 {offsets = [0, 384], sizes = [16, 128], strides = [1, 1]} : vector<16x512xf32> to vector<16x128xf32>
    %324 = arith.negf %323 : vector<16x128xf32>
    %325 = math.exp %324 : vector<16x128xf32>
    %cst_94 = arith.constant 1.000000e+00 : f32
    %326 = vector.broadcast %cst_94 : f32 to vector<16x128xf32>
    %327 = arith.addf %326, %325 : vector<16x128xf32>
    %328 = arith.divf %326, %327 : vector<16x128xf32>
    %329 = arith.mulf %320, %286 : vector<16x128xf32>
    %330 = arith.mulf %314, %322 : vector<16x128xf32>
    %331 = arith.addf %329, %330 : vector<16x128xf32>
    %332 = math.tanh %331 : vector<16x128xf32>
    %333 = arith.mulf %328, %332 : vector<16x128xf32>
    %334 = vector.broadcast %298 : i32 to vector<16x1xi32>
    %335 = arith.cmpi slt, %334, %19 : vector<16x1xi32>
    %336 = vector.shape_cast %335 : vector<16x1xi1> to vector<16x1xi1>
    %337 = vector.broadcast %336 : vector<16x1xi1> to vector<16x128xi1>
    %338 = arith.select %337, %333, %283 : vector<16x128xi1>, vector<16x128xf32>
    %339 = vector.shape_cast %335 : vector<16x1xi1> to vector<16x1xi1>
    %340 = vector.broadcast %339 : vector<16x1xi1> to vector<16x128xi1>
    %341 = arith.select %340, %331, %286 : vector<16x128xi1>, vector<16x128xf32>
    %cst_95 = arith.constant 0.000000e+00 : f32
    %342 = vector.shape_cast %335 : vector<16x1xi1> to vector<16x1xi1>
    %343 = vector.broadcast %342 : vector<16x1xi1> to vector<16x128xi1>
    %344 = vector.broadcast %cst_95 : f32 to vector<16x128xf32>
    %345 = arith.select %343, %333, %344 : vector<16x128xi1>, vector<16x128xf32>
    %346 = arith.truncf %345 : vector<16x128xf32> to vector<16x128xbf16>
    %347 = arith.index_cast %298 : i32 to index
    %c0_96 = arith.constant 0 : index
    %c0_97 = arith.constant 0 : index
    %348 = vector.load %arg7[%347, %c0_96, %c0_97] : memref<8x16x128xbf16, #tpu.memory_space<vmem>>, vector<1x16x128xbf16>
    %349 = vector.shape_cast %348 : vector<1x16x128xbf16> to vector<16x128xbf16>
    %350 = vector.shape_cast %346 : vector<16x128xbf16> to vector<1x16x128xbf16>
    tpu.vector_store %arg7[%347, %c0_96, %c0_97], %350 {strides = array<i32>} : memref<8x16x128xbf16, #tpu.memory_space<vmem>>, vector<1x16x128xbf16>,
    %c6_i32 = arith.constant 6 : i32
    %c0_i32_98 = arith.constant 0 : i32
    %351 = arith.cmpi eq, %arg1, %c0_i32_98 : i32
    %c7_i32_99 = arith.constant 7 : i32
    %352 = arith.subi %c7_i32_99, %c6_i32 : i32
    %353 = arith.select %351, %c6_i32, %352 : i32
    %c16_i32_100 = arith.constant 16 : i32
    %354 = arith.muli %353, %c16_i32_100 : i32
    %355 = tpu.assume_multiple %354, 16 : i32
    %356 = arith.index_cast %355 : i32 to index
    %c0_101 = arith.constant 0 : index
    %357 = vector.load %arg8[%356, %c0_101] : memref<128x512xbf16, #tpu.memory_space<vmem>>, vector<16x512xbf16>
    %358 = arith.extf %357 : vector<16x512xbf16> to vector<16x512xf32>
    %359 = arith.truncf %338 : vector<16x128xf32> to vector<16x128xbf16>
    %c0_102 = arith.constant 0 : index
    %c0_103 = arith.constant 0 : index
    %c0_104 = arith.constant 0 : index
    %360 = vector.load %arg5[%c0_102, %c0_103, %c0_104] : memref<1x128x512xbf16, #tpu.memory_space<vmem>>, vector<1x128x512xbf16>
    %361 = vector.shape_cast %360 : vector<1x128x512xbf16> to vector<128x512xbf16>
    %cst_105 = arith.constant dense<0.000000e+00> : vector<16x512xf32>
    %362 = tpu.matmul %359, %361, %cst_105 {dimension_numbers = #tpu.dot_dimension_numbers<[1], [0], [0], [1], [0, 0, 1, 1], [], []>} : vector<16x128xbf16>, vector<128x512xbf16>, vector<16x512xf32> -> vector<16x512xf32>
    %363 = arith.addf %358, %362 : vector<16x512xf32>
    %364 = vector.extract_strided_slice %363 {offsets = [0, 0], sizes = [16, 128], strides = [1, 1]} : vector<16x512xf32> to vector<16x128xf32>
    %365 = arith.negf %364 : vector<16x128xf32>
    %366 = math.exp %365 : vector<16x128xf32>
    %cst_106 = arith.constant 1.000000e+00 : f32
    %367 = vector.broadcast %cst_106 : f32 to vector<16x128xf32>
    %368 = arith.addf %367, %366 : vector<16x128xf32>
    %369 = arith.divf %367, %368 : vector<16x128xf32>
    %370 = vector.extract_strided_slice %363 {offsets = [0, 128], sizes = [16, 128], strides = [1, 1]} : vector<16x512xf32> to vector<16x128xf32>
    %371 = arith.negf %370 : vector<16x128xf32>
    %372 = math.exp %371 : vector<16x128xf32>
    %cst_107 = arith.constant 1.000000e+00 : f32
    %373 = vector.broadcast %cst_107 : f32 to vector<16x128xf32>
    %374 = arith.addf %373, %372 : vector<16x128xf32>
    %375 = arith.divf %373, %374 : vector<16x128xf32>
    %376 = vector.extract_strided_slice %363 {offsets = [0, 256], sizes = [16, 128], strides = [1, 1]} : vector<16x512xf32> to vector<16x128xf32>
    %377 = math.tanh %376 : vector<16x128xf32>
    %378 = vector.extract_strided_slice %363 {offsets = [0, 384], sizes = [16, 128], strides = [1, 1]} : vector<16x512xf32> to vector<16x128xf32>
    %379 = arith.negf %378 : vector<16x128xf32>
    %380 = math.exp %379 : vector<16x128xf32>
    %cst_108 = arith.constant 1.000000e+00 : f32
    %381 = vector.broadcast %cst_108 : f32 to vector<16x128xf32>
    %382 = arith.addf %381, %380 : vector<16x128xf32>
    %383 = arith.divf %381, %382 : vector<16x128xf32>
    %384 = arith.mulf %375, %341 : vector<16x128xf32>
    %385 = arith.mulf %369, %377 : vector<16x128xf32>
    %386 = arith.addf %384, %385 : vector<16x128xf32>
    %387 = math.tanh %386 : vector<16x128xf32>
    %388 = arith.mulf %383, %387 : vector<16x128xf32>
    %389 = vector.broadcast %353 : i32 to vector<16x1xi32>
    %390 = arith.cmpi slt, %389, %19 : vector<16x1xi32>
    %391 = vector.shape_cast %390 : vector<16x1xi1> to vector<16x1xi1>
    %392 = vector.broadcast %391 : vector<16x1xi1> to vector<16x128xi1>
    %393 = arith.select %392, %388, %338 : vector<16x128xi1>, vector<16x128xf32>
    %394 = vector.shape_cast %390 : vector<16x1xi1> to vector<16x1xi1>
    %395 = vector.broadcast %394 : vector<16x1xi1> to vector<16x128xi1>
    %396 = arith.select %395, %386, %341 : vector<16x128xi1>, vector<16x128xf32>
    %cst_109 = arith.constant 0.000000e+00 : f32
    %397 = vector.shape_cast %390 : vector<16x1xi1> to vector<16x1xi1>
    %398 = vector.broadcast %397 : vector<16x1xi1> to vector<16x128xi1>
    %399 = vector.broadcast %cst_109 : f32 to vector<16x128xf32>
    %400 = arith.select %398, %388, %399 : vector<16x128xi1>, vector<16x128xf32>
    %401 = arith.truncf %400 : vector<16x128xf32> to vector<16x128xbf16>
    %402 = arith.index_cast %353 : i32 to index
    %c0_110 = arith.constant 0 : index
    %c0_111 = arith.constant 0 : index
    %403 = vector.load %arg7[%402, %c0_110, %c0_111] : memref<8x16x128xbf16, #tpu.memory_space<vmem>>, vector<1x16x128xbf16>
    %404 = vector.shape_cast %403 : vector<1x16x128xbf16> to vector<16x128xbf16>
    %405 = vector.shape_cast %401 : vector<16x128xbf16> to vector<1x16x128xbf16>
    tpu.vector_store %arg7[%402, %c0_110, %c0_111], %405 {strides = array<i32>} : memref<8x16x128xbf16, #tpu.memory_space<vmem>>, vector<1x16x128xbf16>,
    %c7_i32_112 = arith.constant 7 : i32
    %c0_i32_113 = arith.constant 0 : i32
    %406 = arith.cmpi eq, %arg1, %c0_i32_113 : i32
    %c7_i32_114 = arith.constant 7 : i32
    %407 = arith.subi %c7_i32_114, %c7_i32_112 : i32
    %408 = arith.select %406, %c7_i32_112, %407 : i32
    %c16_i32_115 = arith.constant 16 : i32
    %409 = arith.muli %408, %c16_i32_115 : i32
    %410 = tpu.assume_multiple %409, 16 : i32
    %411 = arith.index_cast %410 : i32 to index
    %c0_116 = arith.constant 0 : index
    %412 = vector.load %arg8[%411, %c0_116] : memref<128x512xbf16, #tpu.memory_space<vmem>>, vector<16x512xbf16>
    %413 = arith.extf %412 : vector<16x512xbf16> to vector<16x512xf32>
    %414 = arith.truncf %393 : vector<16x128xf32> to vector<16x128xbf16>
    %c0_117 = arith.constant 0 : index
    %c0_118 = arith.constant 0 : index
    %c0_119 = arith.constant 0 : index
    %415 = vector.load %arg5[%c0_117, %c0_118, %c0_119] : memref<1x128x512xbf16, #tpu.memory_space<vmem>>, vector<1x128x512xbf16>
    %416 = vector.shape_cast %415 : vector<1x128x512xbf16> to vector<128x512xbf16>
    %cst_120 = arith.constant dense<0.000000e+00> : vector<16x512xf32>
    %417 = tpu.matmul %414, %416, %cst_120 {dimension_numbers = #tpu.dot_dimension_numbers<[1], [0], [0], [1], [0, 0, 1, 1], [], []>} : vector<16x128xbf16>, vector<128x512xbf16>, vector<16x512xf32> -> vector<16x512xf32>
    %418 = arith.addf %413, %417 : vector<16x512xf32>
    %419 = vector.extract_strided_slice %418 {offsets = [0, 0], sizes = [16, 128], strides = [1, 1]} : vector<16x512xf32> to vector<16x128xf32>
    %420 = arith.negf %419 : vector<16x128xf32>
    %421 = math.exp %420 : vector<16x128xf32>
    %cst_121 = arith.constant 1.000000e+00 : f32
    %422 = vector.broadcast %cst_121 : f32 to vector<16x128xf32>
    %423 = arith.addf %422, %421 : vector<16x128xf32>
    %424 = arith.divf %422, %423 : vector<16x128xf32>
    %425 = vector.extract_strided_slice %418 {offsets = [0, 128], sizes = [16, 128], strides = [1, 1]} : vector<16x512xf32> to vector<16x128xf32>
    %426 = arith.negf %425 : vector<16x128xf32>
    %427 = math.exp %426 : vector<16x128xf32>
    %cst_122 = arith.constant 1.000000e+00 : f32
    %428 = vector.broadcast %cst_122 : f32 to vector<16x128xf32>
    %429 = arith.addf %428, %427 : vector<16x128xf32>
    %430 = arith.divf %428, %429 : vector<16x128xf32>
    %431 = vector.extract_strided_slice %418 {offsets = [0, 256], sizes = [16, 128], strides = [1, 1]} : vector<16x512xf32> to vector<16x128xf32>
    %432 = math.tanh %431 : vector<16x128xf32>
    %433 = vector.extract_strided_slice %418 {offsets = [0, 384], sizes = [16, 128], strides = [1, 1]} : vector<16x512xf32> to vector<16x128xf32>
    %434 = arith.negf %433 : vector<16x128xf32>
    %435 = math.exp %434 : vector<16x128xf32>
    %cst_123 = arith.constant 1.000000e+00 : f32
    %436 = vector.broadcast %cst_123 : f32 to vector<16x128xf32>
    %437 = arith.addf %436, %435 : vector<16x128xf32>
    %438 = arith.divf %436, %437 : vector<16x128xf32>
    %439 = arith.mulf %430, %396 : vector<16x128xf32>
    %440 = arith.mulf %424, %432 : vector<16x128xf32>
    %441 = arith.addf %439, %440 : vector<16x128xf32>
    %442 = math.tanh %441 : vector<16x128xf32>
    %443 = arith.mulf %438, %442 : vector<16x128xf32>
    %444 = vector.broadcast %408 : i32 to vector<16x1xi32>
    %445 = arith.cmpi slt, %444, %19 : vector<16x1xi32>
    %446 = vector.shape_cast %445 : vector<16x1xi1> to vector<16x1xi1>
    %447 = vector.broadcast %446 : vector<16x1xi1> to vector<16x128xi1>
    %448 = arith.select %447, %443, %393 : vector<16x128xi1>, vector<16x128xf32>
    %449 = vector.shape_cast %445 : vector<16x1xi1> to vector<16x1xi1>
    %450 = vector.broadcast %449 : vector<16x1xi1> to vector<16x128xi1>
    %451 = arith.select %450, %441, %396 : vector<16x128xi1>, vector<16x128xf32>
    %cst_124 = arith.constant 0.000000e+00 : f32
    %452 = vector.shape_cast %445 : vector<16x1xi1> to vector<16x1xi1>
    %453 = vector.broadcast %452 : vector<16x1xi1> to vector<16x128xi1>
    %454 = vector.broadcast %cst_124 : f32 to vector<16x128xf32>
    %455 = arith.select %453, %443, %454 : vector<16x128xi1>, vector<16x128xf32>
    %456 = arith.truncf %455 : vector<16x128xf32> to vector<16x128xbf16>
    %457 = arith.index_cast %408 : i32 to index
    %c0_125 = arith.constant 0 : index
    %c0_126 = arith.constant 0 : index
    %458 = vector.load %arg7[%457, %c0_125, %c0_126] : memref<8x16x128xbf16, #tpu.memory_space<vmem>>, vector<1x16x128xbf16>
    %459 = vector.shape_cast %458 : vector<1x16x128xbf16> to vector<16x128xbf16>
    %460 = vector.shape_cast %456 : vector<16x128xbf16> to vector<1x16x128xbf16>
    tpu.vector_store %arg7[%457, %c0_125, %c0_126], %460 {strides = array<i32>} : memref<8x16x128xbf16, #tpu.memory_space<vmem>>, vector<1x16x128xbf16>,
    %c8_i32_127 = arith.constant 8 : i32
    return
  }
  func.func @transform_0(%arg0: i32, %arg1: i32) -> (i32, i32) {
    %c0_i32 = arith.constant 0 : i32
    %c0_i32_0 = arith.constant 0 : i32
    return %arg0, %c0_i32 : i32, i32
  }
  func.func @transform_1(%arg0: i32, %arg1: i32) -> (i32, i32, i32) {
    %c0_i32 = arith.constant 0 : i32
    %c0_i32_0 = arith.constant 0 : i32
    %c0_i32_1 = arith.constant 0 : i32
    return %c0_i32, %arg0, %c0_i32_0 : i32, i32, i32
  }
  func.func @transform_2(%arg0: i32, %arg1: i32) -> (i32, i32, i32) {
    %c0_i32 = arith.constant 0 : i32
    %c0_i32_0 = arith.constant 0 : i32
    %c0_i32_1 = arith.constant 0 : i32
    return %arg1, %c0_i32, %c0_i32_0 : i32, i32, i32
  }
  func.func @transform_3(%arg0: i32, %arg1: i32) -> (i32, i32, i32) {
    %c0_i32 = arith.constant 0 : i32
    %c0_i32_0 = arith.constant 0 : i32
    %c0_i32_1 = arith.constant 0 : i32
    return %arg1, %c0_i32, %c0_i32_0 : i32, i32, i32
  }
  func.func @transform_4(%arg0: i32, %arg1: i32) -> (i32, i32, i32) {
    %c0_i32 = arith.constant 0 : i32
    %c0_i32_0 = arith.constant 0 : i32
    %c0_i32_1 = arith.constant 0 : i32
    return %arg1, %c0_i32, %c0_i32_0 : i32, i32, i32
  }
  func.func @transform_5(%arg0: i32, %arg1: i32) -> (i32, i32, i32) {
    %c0_i32 = arith.constant 0 : i32
    %c0_i32_0 = arith.constant 0 : i32
    return %c0_i32, %arg0, %arg1 : i32, i32, i32
  }
}

</mosaic_0001>

<bundles_post_ra>
// kernel: _lambda_.7
= control target key start
LH: loop header
LB: loop body
LE: loop exit
PB: predicated region body
PF: predicated region fallthrough
CT: control target
= control target key end

     0   :  { %8 = vsyncpa [#allocation3], 0  ;;  %s772_s0 = inlined_call_operand.hbm [shape: bf16[128,256], index: 0, kind: input, shape index: {}]   ;;  %s773_s1 = inlined_call_operand.hbm [shape: bf16[256,128], index: 1, kind: input, shape index: {}]   ;;  %s774_s2 = inlined_call_operand.hbm [shape: f32[1,128], index: 2, kind: input, shape index: {}]   ;;  %s775_s3 = inlined_call_operand.hbm [shape: f32[128,128], index: 3, kind: output, shape index: {}]  }
   0x1   :  { %9 = vsyncpa [#allocation6], 0 }
   0x2   :  { %10 = vsyncpa [#allocation4], 0  ;;  %s672_s12 = smov [#allocation5]   ;;  %s578_s16 = scalar_lea.hbm %s773_s1, 2048 }
   0x3   :  { %s28_s13 = sshll.u32 %s672_s12, 4  ;;  %p579_p0 = scmp.ne.s32.totalorder %s773_s1, %s578_s16  ;;  %s29_s13 = int_to_ptr.vmem [resolvable:$true] %s28_s13 }
   0x4   :  { %p582_p1 = scmp.lt.u32.totalorder %s578_s16, %s773_s1 }
   0x6   :  { %p584_p2 = pnand %p582_p1, %p579_p0 }
   0x8   :  { %587 = shalt.err (!%p584_p2)
}
   0x9   :  { %s588_s21 = scalar_lea.vmem %s29_s13, 2048  ;;  %p593_p4 = scmp.lt.s32.totalorder %s29_s13, %s29_s13 }
   0xa   :  { %p589_p3 = scmp.ne.s32.totalorder %s29_s13, %s588_s21  ;;  %p594_p5 = scmp.lt.s32.totalorder %s588_s21, %s588_s21 }
   0xc   :  { %p595_p6 = por %p594_p5, %p593_p4 }
   0xe   :  { %p596_p7 = pnand %p595_p6, %p589_p3 }
  0x10   :  { %599 = shalt.err (!%p596_p7)
}
  0x11   :  { %s673_s22 = smov 64   ;;  %s674_s23 = smov 4  }
  0x12   :  { %34 = dma.hbm_to_vmem [thread:$0]  %s773_s1, 2048, %s29_s13, [#allocation6], %s673_s22, %s673_s22, %s674_s23  }
  0x13   :  { %s675_s26 = smov [#allocation2]   ;;  %s600_s30 = scalar_lea.hbm %s772_s0, 2048 }
  0x14   :  { %s16_s27 = sshll.u32 %s675_s26, 4  ;;  %p601_p8 = scmp.ne.s32.totalorder %s772_s0, %s600_s30  ;;  %s17_s27 = int_to_ptr.vmem [resolvable:$true] %s16_s27 }
  0x15   :  { %p604_p9 = scmp.lt.u32.totalorder %s600_s30, %s772_s0 }
  0x17   :  { %p606_p10 = pnand %p604_p9, %p601_p8 }
  0x19   :  { %609 = shalt.err (!%p606_p10)
}
  0x1a   :  { %s610_s8 = scalar_lea.vmem %s17_s27, 2048  ;;  %p615_p12 = scmp.lt.s32.totalorder %s17_s27, %s17_s27 }
  0x1b   :  { %p611_p11 = scmp.ne.s32.totalorder %s17_s27, %s610_s8  ;;  %p616_p13 = scmp.lt.s32.totalorder %s610_s8, %s610_s8 }
  0x1d   :  { %p617_p0 = por %p616_p13, %p615_p12 }
  0x1f   :  { %p618_p1 = pnand %p617_p0, %p611_p11 }
  0x21   :  { %621 = shalt.err (!%p618_p1)
}
  0x22   :  { %s676_s1 = smov 128   ;;  %s677_s9 = smov 8  }
  0x23   :  { %22 = dma.hbm_to_vmem [thread:$0]  %s772_s0, 2048, %s17_s27, [#allocation3], %s676_s1, %s676_s1, %s677_s9  }
  0x24   :  { %s678_s12 = smov [#allocation7]   ;;  %s622_s16 = scalar_lea.hbm %s774_s2, 16 }
  0x25   :  { %s41_s13 = sshll.u32 %s678_s12, 4  ;;  %p623_p2 = scmp.ne.s32.totalorder %s774_s2, %s622_s16  ;;  %s42_s13 = int_to_ptr.vmem [resolvable:$true] %s41_s13 }
  0x26   :  { %p626_p3 = scmp.lt.u32.totalorder %s622_s16, %s774_s2 }
  0x28   :  { %p628_p4 = pnand %p626_p3, %p623_p2 }
  0x2a   :  { %631 = shalt.err (!%p628_p4)
}
  0x2b   :  { %s632_s21 = scalar_lea.vmem %s42_s13, 16  ;;  %s636_s0 = scalar_lea.vmem %s42_s13, 32 }
  0x2c   :  { %p633_p5 = scmp.ne.s32.totalorder %s42_s13, %s632_s21  ;;  %p637_p6 = scmp.lt.s32.totalorder %s42_s13, %s42_s13 }
  0x2d   :  { %p638_p7 = scmp.lt.s32.totalorder %s636_s0, %s632_s21 }
  0x2f   :  { %p639_p8 = por %p638_p7, %p637_p6 }
  0x31   :  { %p640_p9 = pnand %p639_p8, %p633_p5 }
  0x33   :  { %643 = shalt.err (!%p640_p9)
}
  0x34   :  { %44 = dma.hbm_to_vmem [thread:$0]  %s774_s2, 16, %s42_s13, [#allocation6]  }
  0x35   :  { %666 = dma.done.wait [#allocation3], 2048  }
  0x36   :  { %667 = vsyncadd [#allocation3], 4294965248 }
  0x37   :  { %668 = dma.done.wait [#allocation6], 2064  }
  0x38   :  { %669 = vsyncadd [#allocation6], 4294965232  ;;  %v538_v0 = vld [vmem:[#allocation5 + $0x40] sm:$0xff]   ;;  %v540_v2 = vld [vmem:[#allocation5 + $0x48] sm:$0xff]   ;;  %s679_s2 = smov [#allocation8]  }
  0x39   :  { %v539_v1 = vld [vmem:[#allocation5] sm:$0xff]   ;;  %450 = vmatprep.subr.bf16.mxu0 %v538_v0  ;;  %514 = vmatprep.subr.bf16.mxu1 %v538_v0  ;;  %v541_v3 = vld [vmem:[#allocation5 + $0x8] sm:$0xff]   ;;  %v542_v4 = vld [vmem:[#allocation5 + $0x50] sm:$0xff]   ;;  %s404_s24 = sshll.u32 %s679_s2, 4  ;;  %s405_s24 = int_to_ptr.vmem [resolvable:$true] %s404_s24 }
  0x3a   :  { %451 = vmatpush3.bf16.msra.mxu0 %v539_v1  ;;  %522 = vmatpush3.bf16.msra.mxu1 %v539_v1  ;;  %v543_v5 = vld [vmem:[#allocation5 + $0x10] sm:$0xff]   ;;  %v544_v6 = vld [vmem:[#allocation5 + $0x58] sm:$0xff]   ;;  %v546_v8 = vld [vmem:[#allocation5 + $0x60] sm:$0xff]   ;;  %s644_s25 = scalar_lea.vmem %s405_s24, 2048  ;;  %p649_p11 = scmp.lt.s32.totalorder %s405_s24, %s405_s24 }
  0x3b   :  { %452 = vmatprep.subr.bf16.mxu0 %v540_v2  ;;  %515 = vmatprep.subr.bf16.mxu1 %v540_v2  ;;  %v545_v7 = vld [vmem:[#allocation5 + $0x18] sm:$0xff]   ;;  %v547_v9 = vld [vmem:[#allocation5 + $0x20] sm:$0xff]   ;;  %v548_v10 = vld [vmem:[#allocation5 + $0x68] sm:$0xff]   ;;  %p645_p10 = scmp.ne.s32.totalorder %s405_s24, %s644_s25  ;;  %p650_p12 = scmp.lt.s32.totalorder %s644_s25, %s644_s25 }
  0x3c   :  { %v556_v11 = vld [vmem:[#allocation2 + $0x4] ss:$8 sps:$4 sm:$0xff]   ;;  %v550_v14 = vld [vmem:[#allocation5 + $0x70] sm:$0xff]   ;;  %v552_v16 = vld [vmem:[#allocation5 + $0x78] sm:$0xff]  }
  0x3d   :  { %v559_v12 = vld [vmem:[#allocation2 + $0x44] ss:$8 sps:$4 sm:$0xff]   ;;  %318 = vmatprep.mubr.bf16.mxu0 %v556_v11  ;;  %v551_v15 = vld [vmem:[#allocation5 + $0x30] sm:$0xff]   ;;  %v553_v17 = vld [vmem:[#allocation5 + $0x38] sm:$0xff]   ;;  %p651_p13 = por %p650_p12, %p649_p11 }
  0x3e   :  { %453 = vmatpush3.bf16.msra.mxu0 %v541_v3  ;;  %523 = vmatpush3.bf16.msra.mxu1 %v541_v3  ;;  %v549_v13 = vld [vmem:[#allocation5 + $0x28] sm:$0xff]   ;;  %v560_v20 = vld [vmem:[#allocation2 + $0x14] ss:$8 sps:$4 sm:$0xff]   ;;  %v564_v22 = vld [vmem:[#allocation2 + $0x10] ss:$8 sps:$4 sm:$0xff]  }
  0x3f   :  { %454 = vmatprep.subr.bf16.mxu0 %v542_v4  ;;  %516 = vmatprep.subr.bf16.mxu1 %v542_v4  ;;  %v554_v18 = vld [vmem:[#allocation2] ss:$8 sps:$4 sm:$0xff]   ;;  %v562_v21 = vld [vmem:[#allocation2 + $0x54] ss:$8 sps:$4 sm:$0xff]   ;;  %v565_v23 = vld [vmem:[#allocation2 + $0x50] ss:$8 sps:$4 sm:$0xff]   ;;  %p652_p0 = pnand %p651_p13, %p645_p10 }
  0x40   :  { %350 = vmatprep.mubr.bf16.mxu1 %v559_v12  ;;  %v557_v19 = vld [vmem:[#allocation2 + $0x40] ss:$8 sps:$4 sm:$0xff]   ;;  %v566_v24 = vld [vmem:[#allocation2 + $0x24] ss:$8 sps:$4 sm:$0xff]   ;;  %v572_v28 = vld [vmem:[#allocation2 + $0x34] ss:$8 sps:$4 sm:$0xff]  }
  0x41   :  { %v568_v25 = vld [vmem:[#allocation2 + $0x64] ss:$8 sps:$4 sm:$0xff]   ;;  %v570_v26 = vld [vmem:[#allocation2 + $0x20] ss:$8 sps:$4 sm:$0xff]   ;;  %v574_v29 = vld [vmem:[#allocation2 + $0x74] ss:$8 sps:$4 sm:$0xff]  }
  0x42   :  { %455 = vmatpush3.bf16.msra.mxu0 %v543_v5  ;;  %524 = vmatpush3.bf16.msra.mxu1 %v543_v5  ;;  %v571_v27 = vld [vmem:[#allocation2 + $0x60] ss:$8 sps:$4 sm:$0xff]   ;;  %v576_v30 = vld [vmem:[#allocation2 + $0x30] ss:$8 sps:$4 sm:$0xff]  }
  0x43   :  { %456 = vmatprep.subr.bf16.mxu0 %v544_v6  ;;  %517 = vmatprep.subr.bf16.mxu1 %v544_v6  ;;  %v577_v31 = vld [vmem:[#allocation2 + $0x70] ss:$8 sps:$4 sm:$0xff]   ;;  %v739_v34 = vld [vmem:[#allocation7] ss:$0 sm:$0xff] }
  0x46   :  { %457 = vmatpush3.bf16.msra.mxu0 %v545_v7  ;;  %525 = vmatpush3.bf16.msra.mxu1 %v545_v7 }
  0x47   :  { %458 = vmatprep.subr.bf16.mxu0 %v546_v8  ;;  %518 = vmatprep.subr.bf16.mxu1 %v546_v8 }
  0x4a   :  { %459 = vmatpush3.bf16.msra.mxu0 %v547_v9  ;;  %526 = vmatpush3.bf16.msra.mxu1 %v547_v9 }
  0x4b   :  { %460 = vmatprep.subr.bf16.mxu0 %v548_v10  ;;  %519 = vmatprep.subr.bf16.mxu1 %v548_v10 }
  0x4e   :  { %461 = vmatpush3.bf16.msra.mxu0 %v549_v13  ;;  %527 = vmatpush3.bf16.msra.mxu1 %v549_v13 }
  0x4f   :  { %462 = vmatprep.subr.bf16.mxu0 %v550_v14  ;;  %520 = vmatprep.subr.bf16.mxu1 %v550_v14 }
  0x52   :  { %463 = vmatpush3.bf16.msra.mxu0 %v551_v15  ;;  %528 = vmatpush3.bf16.msra.mxu1 %v551_v15 }
  0x53   :  { %464 = vmatprep.subr.bf16.mxu0 %v552_v16  ;;  %521 = vmatprep.subr.bf16.mxu1 %v552_v16 }
  0x56   :  { %465 = vmatpush3.bf16.msra.mxu0 %v553_v17  ;;  %529 = vmatpush3.bf16.msra.mxu1 %v553_v17 }
  0x59   :  { %319 = vmatmul.mubr.bf16.vlgmr.msra.gmra.mrb[0].mxu0 %v554_v18  ;;  %351 = vmatmul.mubr.bf16.vlgmr.msra.gmra.mrb[0].mxu1 %v557_v19 }
  0x5a   :  { %326 = vmatprep.mubr.bf16.mxu0 %v560_v20  ;;  %358 = vmatprep.mubr.bf16.mxu1 %v562_v21 }
  0x61   :  { %327 = vmatmul.mubr.bf16.gmra.mrb[4].mxu0 %v564_v22  ;;  %359 = vmatmul.mubr.bf16.gmra.mrb[4].mxu1 %v565_v23 }
  0x62   :  { %334 = vmatprep.mubr.bf16.mxu0 %v566_v24  ;;  %366 = vmatprep.mubr.bf16.mxu1 %v568_v25 }
  0x69   :  { %335 = vmatmul.mubr.bf16.gmra.mrb[8].mxu0 %v570_v26  ;;  %367 = vmatmul.mubr.bf16.gmra.mrb[8].mxu1 %v571_v27 }
  0x6a   :  { %342 = vmatprep.mubr.bf16.mxu0 %v572_v28  ;;  %374 = vmatprep.mubr.bf16.mxu1 %v574_v29 }
  0x71   :  { %343 = vmatmul.mubr.bf16.gmra.mrb[12].mxu0 %v576_v30  ;;  %375 = vmatmul.mubr.bf16.gmra.mrb[12].mxu1 %v577_v31 }
 0x12c   :  { %v466_v32 = vpop.f32.mrb[0].mxu0  ;;  %v490_v33 = vpop.f32.mrb[0].mxu1 }
 0x12d   :  { %v467_v35 = vpop.f32.mrb[1].mxu0  ;;  %v491_v36 = vpop.f32.mrb[1].mxu1 }
 0x12e   :  { %v468_v37 = vadd.f32 %v467_v35, %v466_v32  ;;  %v492_v38 = vadd.f32 %v491_v36, %v490_v33  ;;  %v469_v39 = vpop.f32.mrb[2].mxu0  ;;  %v493_v40 = vpop.f32.mrb[2].mxu1 }
 0x12f   :  { %v470_v41 = vpop.f32.mrb[3].mxu0  ;;  %v494_v42 = vpop.f32.mrb[3].mxu1 }
 0x130   :  { %v321_v43 = vadd.f32 %v468_v37, %v739_v34  ;;  %v353_v44 = vadd.f32 %v492_v38, %v739_v34  ;;  %v471_v45 = vadd.f32 %v470_v41, %v469_v39  ;;  %v495_v46 = vadd.f32 %v494_v42, %v493_v40 }
 0x132   :  { %383 = vst [vmem:[#allocation8] sm:$0xff] %v321_v43  ;;  %391 = vst [vmem:[#allocation8 + $0x40] sm:$0xff] %v353_v44  ;;  %v324_v47 = vadd.f32 %v471_v45, %v739_v34  ;;  %v356_v48 = vadd.f32 %v495_v46, %v739_v34 }
 0x134   :  { %384 = vst [vmem:[#allocation8 + $0x8] sm:$0xff] %v324_v47  ;;  %392 = vst [vmem:[#allocation8 + $0x48] sm:$0xff] %v356_v48  ;;  %v472_v49 = vpop.f32.mrb[4].mxu0  ;;  %v496_v50 = vpop.f32.mrb[4].mxu1 }
 0x135   :  { %v473_v51 = vpop.f32.mrb[5].mxu0  ;;  %v497_v52 = vpop.f32.mrb[5].mxu1 }
 0x136   :  { %v474_v53 = vadd.f32 %v473_v51, %v472_v49  ;;  %v498_v54 = vadd.f32 %v497_v52, %v496_v50  ;;  %v475_v55 = vpop.f32.mrb[6].mxu0  ;;  %v499_v56 = vpop.f32.mrb[6].mxu1 }
 0x137   :  { %v476_v57 = vpop.f32.mrb[7].mxu0  ;;  %v500_v58 = vpop.f32.mrb[7].mxu1 }
 0x138   :  { %v329_v59 = vadd.f32 %v474_v53, %v739_v34  ;;  %v361_v60 = vadd.f32 %v498_v54, %v739_v34  ;;  %v477_v61 = vadd.f32 %v476_v57, %v475_v55  ;;  %v501_v62 = vadd.f32 %v500_v58, %v499_v56 }
 0x13a   :  { %385 = vst [vmem:[#allocation8 + $0x10] sm:$0xff] %v329_v59  ;;  %393 = vst [vmem:[#allocation8 + $0x50] sm:$0xff] %v361_v60  ;;  %v332_v63 = vadd.f32 %v477_v61, %v739_v34  ;;  %v364_v0 = vadd.f32 %v501_v62, %v739_v34 }
 0x13c   :  { %386 = vst [vmem:[#allocation8 + $0x18] sm:$0xff] %v332_v63  ;;  %394 = vst [vmem:[#allocation8 + $0x58] sm:$0xff] %v364_v0  ;;  %v478_v1 = vpop.f32.mrb[8].mxu0  ;;  %v502_v2 = vpop.f32.mrb[8].mxu1 }
 0x13d   :  { %v479_v3 = vpop.f32.mrb[9].mxu0  ;;  %v503_v4 = vpop.f32.mrb[9].mxu1 }
 0x13e   :  { %v480_v5 = vadd.f32 %v479_v3, %v478_v1  ;;  %v504_v6 = vadd.f32 %v503_v4, %v502_v2  ;;  %v481_v7 = vpop.f32.mrb[10].mxu0  ;;  %v505_v8 = vpop.f32.mrb[10].mxu1 }
 0x13f   :  { %v482_v9 = vpop.f32.mrb[11].mxu0  ;;  %v506_v10 = vpop.f32.mrb[11].mxu1 }
 0x140   :  { %v337_v11 = vadd.f32 %v480_v5, %v739_v34  ;;  %v369_v12 = vadd.f32 %v504_v6, %v739_v34  ;;  %v483_v13 = vadd.f32 %v482_v9, %v481_v7  ;;  %v507_v14 = vadd.f32 %v506_v10, %v505_v8 }
 0x142   :  { %387 = vst [vmem:[#allocation8 + $0x20] sm:$0xff] %v337_v11  ;;  %395 = vst [vmem:[#allocation8 + $0x60] sm:$0xff] %v369_v12  ;;  %v340_v15 = vadd.f32 %v483_v13, %v739_v34  ;;  %v372_v16 = vadd.f32 %v507_v14, %v739_v34 }
 0x144   :  { %388 = vst [vmem:[#allocation8 + $0x28] sm:$0xff] %v340_v15  ;;  %396 = vst [vmem:[#allocation8 + $0x68] sm:$0xff] %v372_v16  ;;  %v484_v17 = vpop.f32.mrb[12].mxu0  ;;  %v508_v18 = vpop.f32.mrb[12].mxu1 }
 0x145   :  { %v485_v19 = vpop.f32.mrb[13].mxu0  ;;  %v509_v20 = vpop.f32.mrb[13].mxu1 }
 0x146   :  { %v486_v21 = vadd.f32 %v485_v19, %v484_v17  ;;  %v510_v22 = vadd.f32 %v509_v20, %v508_v18  ;;  %v487_v23 = vpop.f32.mrb[14].mxu0  ;;  %v511_v24 = vpop.f32.mrb[14].mxu1 }
 0x147   :  { %v488_v25 = vpop.f32.mrb[15].mxu0  ;;  %v512_v26 = vpop.f32.mrb[15].mxu1 }
 0x148   :  { %v345_v27 = vadd.f32 %v486_v21, %v739_v34  ;;  %v377_v28 = vadd.f32 %v510_v22, %v739_v34  ;;  %v489_v29 = vadd.f32 %v488_v25, %v487_v23  ;;  %v513_v30 = vadd.f32 %v512_v26, %v511_v24 }
 0x14a   :  { %389 = vst [vmem:[#allocation8 + $0x30] sm:$0xff] %v345_v27  ;;  %397 = vst [vmem:[#allocation8 + $0x70] sm:$0xff] %v377_v28  ;;  %v348_v31 = vadd.f32 %v489_v29, %v739_v34  ;;  %v380_v32 = vadd.f32 %v513_v30, %v739_v34 }
 0x14c   :  { %390 = vst [vmem:[#allocation8 + $0x38] sm:$0xff] %v348_v31  ;;  %398 = vst [vmem:[#allocation8 + $0x78] sm:$0xff] %v380_v32 }
 0x14d   :  { %655 = shalt.err (!%p652_p0)
}
 0x14e   :  { %s656_s28 = scalar_lea.hbm %s775_s3, 2048 }
 0x14f   :  { %p657_p1 = scmp.ne.s32.totalorder %s775_s3, %s656_s28  ;;  %p660_p2 = scmp.lt.u32.totalorder %s656_s28, %s775_s3 }
 0x151   :  { %p662_p3 = pnand %p660_p2, %p657_p1 }
 0x153   :  { %665 = shalt.err (!%p662_p3)
}
 0x154   :  { %410 = dma.vmem_to_hbm [thread:$0]  %s405_s24, 2048, %s775_s3, [#allocation4], %s676_s1, %s676_s1, %s677_s9  }
 0x155   :  { %670 = dma.done.wait [#allocation4], 2048  }
 0x156   :  { %671 = vsyncadd [#allocation4], 4294965248 }
 0x157   :  { %414 = vsyncpa [#allocation3], 1 }
 0x158   :  { %415 = vsyncpa [#allocation6], 1 }
 0x159   :  { %416 = vsyncpa [#allocation4], 1 }

// kernel: _lambda_.5
= control target key start
LH: loop header
LB: loop body
LE: loop exit
PB: predicated region body
PF: predicated region fallthrough
CT: control target
= control target key end

     0   :  { %s7220_s0 = inlined_call_operand.hbm [shape: s32[16,1], index: 0, kind: input, shape index: {}]   ;;  %s7221_s1 = inlined_call_operand.hbm [shape: bf16[8,16,256], index: 1, kind: input, shape index: {}]   ;;  %s7222_s2 = inlined_call_operand.hbm [shape: bf16[2,256,512], index: 2, kind: input, shape index: {}]   ;;  %s7223_s3 = inlined_call_operand.hbm [shape: bf16[2,128,512], index: 3, kind: input, shape index: {}]   ;;  %s7224_s4 = inlined_call_operand.hbm [shape: f32[2,1,512], index: 4, kind: input, shape index: {}]   ;;  %s7225_s5 = inlined_call_operand.hbm [shape: bf16[8,16,256], index: 5, kind: output, shape index: {}]  }
   0x1   :  { %7244 = sst [smem:[#allocation20_spill]] %s7220_s0 }
   0x2   :  { %7245 = sst [smem:[#allocation21_spill]] %s7222_s2 }
   0x3   :  { %7246 = sst [smem:[#allocation22_spill]] %s7225_s5 }
   0x4   :  { %10 = vsyncpa [#allocation4], 0 }
   0x5   :  { %11 = vsyncpa [#allocation7], 0 }
   0x6   :  { %12 = vsyncpa [#allocation5], 0 }
   0x7   :  { %14 = vsyncpa [#allocation5 + $0x1], 0  ;;  %s5909_s18 = smov 0   ;;  %s5911_s19 = smov 0  }
   0x8   :  { %s5913_s20 = smov 0   ;;  %s5915_s21 = smov 0  }
   0x9   :  { %s5917_s22 = smov 0   ;;  %s5919_s23 = smov 0  }
   0xa LB: > { %7247 = sst [smem:[#allocation16_spill]] %s5843_s18  ;;  %s5940_s24 = sadd.s32 4294967295, %s5863_s23   ;;  %s5863_s23 = sphi %s5919_s23, %s20_s23   ;;  %s5859_s22 = sphi %s5917_s22, %s7288_s22   ;;  %s5855_s21 = sphi %s5915_s21, %s7287_s21   ;;  %s5851_s20 = sphi %s5913_s20, %s7286_s20   ;;  %s5847_s19 = sphi %s5911_s19, %s7285_s19   ;;  %s5843_s18 = sphi %s5909_s18, %s7284_s18  }
   0xb   : > { %s4458_s25 = sadd.s32 4294967294, %s5863_s23   ;;  %p98_p0 = scmp.ne.s32.totalorder %s5851_s20, %s5847_s19 }
   0xc   : > { %p99_p1 = scmp.eq.s32.totalorder %s5863_s23, 0  ;;  %p104_p2 = scmp.ne.s32.totalorder %s5847_s19, %s5843_s18 }
   0xd   : > { %p7226_p3 = scmp.eq.s32.totalorder %s5940_s24, 0  ;;  %p182_p4 = scmp.eq.s32.totalorder %s5940_s24, 1 }
   0xe   : > { %p5951_p5 = por %p99_p1, %p98_p0  ;;  %p188_p6 = scmp.eq.s32.totalorder %s4458_s25, 1 }
   0xf   : > { %p5957_p7 = por %p7226_p3, %p104_p2  ;;  %p5961_p8 = por %p182_p4, %p98_p0 }
  0x10   : > { %p5965_p9 = por %p188_p6, %p104_p2  ;;  %p4459_p10 = scmp.ge.s32.totalorder %s5863_s23, 1 }
  0x11   : > { %s7249_s28 = scalar_select %p5957_p7, 1, 0 }
  0x12   : > { %s7250_s29 = scalar_select %p5961_p8, 1, 0 }
  0x13   : > { %s7252_s30 = scalar_select %p5965_p9, 1, 0 }
  0x14   : > { %7251 = sst [smem:[#allocation17_spill]] %s7250_s29  ;;  %p195_p11 = scmp.lt.s32.totalorder %s5863_s23, 3 }
  0x15   : > { %7253 = sst [smem:[#allocation18_spill]] %s7252_s30  ;;  %s5865_s7 = smov [#allocation3]  }
  0x16   : > { %p5971_p12 = pnand %p4459_p10, %p195_p11  ;;  %s210_s8 = sshll.u32 %s5865_s7, 4  ;;  %s5975_s8 = int_to_ptr.vmem [resolvable:$true] %s210_s8 }
  0x17   : > { %p5043_p1 = scmp.lt.s32.totalorder %s5863_s23, 2  ;;  %s29_s11 = sadd.s32 1, %s5859_s22 }
  0x18   : > { %s7254_s6 = scalar_select %p5971_p12, 1, 0 }
  0x19   : > { %p5020_p13 = pneg %p5971_p12  ;;  %p5989_p4 = pnand %p5043_p1, %p5951_p5 }
  0x1a   : > { %p5994_p6 = scmp.ge.s32.totalorder %s29_s11, 2  ;;  %s7258_s0 = sld [smem:[#allocation20_spill]] }
  0x1b   : > { %p5983_p2 = pnand %p5020_p13, %p7226_p3 }
  0x1c   : > { %s7256_s10 = scalar_select %p5989_p4, 1, 0 }
  0x1d   : > { %s7255_s9 = scalar_select %p5983_p2, 1, 0 }
  0x1e   : > { %p7235_p11 = pneg %p5983_p2 }
  0x20   : > { %s5627_s15 = scalar_lea.hbm %s7258_s0, 256 }
  0x21   : > { %p5628_p10 = scmp.ne.s32.totalorder %s7258_s0, %s5627_s15  ;;  %p5634_p1 = scmp.lt.u32.totalorder %s5627_s15, %s7258_s0 }
  0x23   : > { %p5630_p5 = pnand %p7235_p11, %p5628_p10 }
  0x25   : > { %p5631_p13 = pneg %p5630_p5 }
  0x27   : > { %p5636_p0 = pnand %p5634_p1, %p5631_p13 }
  0x29   : > { %5639 = shalt.err (!%p5636_p0)
}
  0x2a   : > { %s5640_s7 = scalar_lea.vmem %s5975_s8, 256  ;;  %p5648_p7 = scmp.lt.s32.totalorder %s5975_s8, %s5975_s8 }
  0x2b   : > { %p5641_p3 = scmp.ne.s32.totalorder %s5975_s8, %s5640_s7  ;;  %p5649_p10 = scmp.lt.s32.totalorder %s5640_s7, %s5640_s7 }
  0x2d   : > { %p5643_p9 = pnand %p5641_p3, %p7235_p11  ;;  %p5650_p5 = por %p5649_p10, %p5648_p7 }
  0x2f   : > { %p5644_p8 = pneg %p5643_p9 }
  0x31   : > { %p5651_p12 = pnand %p5650_p5, %p5644_p8 }
  0x33   : > { %5654 = shalt.err (!%p5651_p12)
}
  0x34   : > { %s7238_s13 = smov 128   ;;  %s7239_s14 = smov 8  }
  0x35   : > { %5023 = dma.hbm_to_vmem [thread:$0]  (!%p5983_p2), %s7258_s0, 256, %s5975_s8, [#allocation4], %s7238_s13, %s7238_s13, %s7239_s14  }
  0x36   : > { %s241_s17 = sand.u32 1, %s5863_s23   ;;  %s7290_s11 = smov (%p5994_p6, %s29_s11), 0 }
  0x37   : > { %7259 = sst [smem:[#allocation19_spill]] %s7290_s11  ;;  %s6034_s25 = sand.u32 1, %s5851_s20  }
  0x38   : > { %s88_s27 = ssub.s32 %s5859_s22, %s7290_s11  ;;  %s4463_s7 = sshll.u32 %s6034_s25, 9 }
  0x39   : > { %p89_p3 = scmp.eq.s32.totalorder %s88_s27, 0  ;;  %s4929_s26 = sshll.u32 %s5859_s22, 13 }
  0x3a   : > { %s245_s30 = scalar_lea.vmem [#allocation8], %s4463_s7  ;;  %s7260_s5 = sadd.s32 1, %s5851_s20 }
  0x3b   : > { %s252_s18 = sshll.u32 %s245_s30, 4  ;;  %s7261_s2 = sld [smem:[#allocation21_spill]]  ;;  %s6050_s18 = int_to_ptr.vmem [resolvable:$true] %s252_s18 }
  0x3c   : > { %s6043_s29 = scalar_select %p89_p3, %s5851_s20, %s7260_s5  }
  0x3d   : > { %s6052_s12 = scalar_lea.sflag [#allocation4], %s241_s17  ;;  %p6058_p8 = pneg %p5989_p4 }
  0x3f   : > { %s7262_s30 = scalar_select %p6058_p8, 1, 0 }
  0x41   : > { %s6048_s16 = scalar_lea.hbm %s7261_s2, %s4929_s26  ;;  %s5660_s7 = scalar_lea.hbm %s7261_s2, 16384 }
  0x42   : > { %s5655_s27 = scalar_lea.hbm %s6048_s16, 8192  ;;  %p5661_p0 = scmp.lt.u32.totalorder %s6048_s16, %s7261_s2 }
  0x43   : > { %p5656_p7 = scmp.ne.s32.totalorder %s6048_s16, %s5655_s27  ;;  %p5662_p6 = scmp.lt.u32.totalorder %s5660_s7, %s5655_s27 }
  0x44   : > { %p5664_p1 = scmp.lt.u32.totalorder %s5655_s27, %s6048_s16 }
  0x45   : > { %p5658_p9 = pnand %p6058_p8, %p5656_p7  ;;  %p5663_p13 = por %p5662_p6, %p5661_p0 }
  0x47   : > { %p5659_p12 = pneg %p5658_p9  ;;  %p5665_p10 = por %p5664_p1, %p5663_p13 }
  0x49   : > { %p5666_p5 = pnand %p5665_p10, %p5659_p12 }
  0x4b   : > { %5669 = shalt.err (!%p5666_p5)
}
  0x4c   : > { %s5670_s17 = scalar_lea.vmem %s6050_s18, 8192  ;;  %s5868_s5 = smov [#allocation8]  }
  0x4d   : > { %p5671_p3 = scmp.ne.s32.totalorder %s6050_s18, %s5670_s17  ;;  %s5675_s26 = sshll.u32 %s5868_s5, 4  ;;  %s5676_s26 = int_to_ptr.vmem [resolvable:$false] %s5675_s26 }
  0x4e   : > { %s5677_s15 = scalar_lea.vmem %s5676_s26, 16384  ;;  %p5678_p11 = scmp.lt.s32.totalorder %s6050_s18, %s5676_s26 }
  0x4f   : > { %p5673_p7 = pnand %p5671_p3, %p6058_p8  ;;  %p5679_p2 = scmp.lt.s32.totalorder %s5677_s15, %s5670_s17 }
  0x51   : > { %p5674_p9 = pneg %p5673_p7  ;;  %p5680_p0 = por %p5679_p2, %p5678_p11 }
  0x53   : > { %p5681_p6 = pnand %p5680_p0, %p5674_p9 }
  0x55   : > { %5684 = shalt.err (!%p5681_p6)
}
  0x56   : > { %s5869_s27 = smov 256   ;;  %s5870_s7 = smov 16  }
  0x57   : > { %5030 = dma.hbm_to_vmem [thread:$0]  (!%p5989_p4), %s6048_s16, 8192, %s6050_s18, %s6052_s12, %s5869_s27, %s5869_s27, %s5870_s7  }
  0x58   : > { %s4466_s8 = sshll.u32 %s6034_s25, 8  ;;  %s4930_s5 = sshll.u32 %s5859_s22, 12 }
  0x59   : > { %s6090_s15 = scalar_lea.hbm %s7223_s3, %s4930_s5  ;;  %s266_s13 = scalar_lea.vmem [#allocation9], %s4466_s8 }
  0x5a   : > { %s273_s14 = sshll.u32 %s266_s13, 4  ;;  %s5871_s0 = smov [#allocation6]   ;;  %s6092_s14 = int_to_ptr.vmem [resolvable:$true] %s273_s14 }
  0x5b   : > { %s6094_s2 = sshll.u32 %s5871_s0, 4  ;;  %s5685_s11 = scalar_lea.hbm %s6090_s15, 4096  ;;  %s228_s2 = int_to_ptr.vmem [resolvable:$true] %s6094_s2 }
  0x5c   : > { %p5686_p2 = scmp.ne.s32.totalorder %s6090_s15, %s5685_s11  ;;  %s5690_s5 = scalar_lea.hbm %s7223_s3, 8192 }
  0x5d   : > { %p5691_p13 = scmp.lt.u32.totalorder %s6090_s15, %s7223_s3  ;;  %p5692_p1 = scmp.lt.u32.totalorder %s5690_s5, %s5685_s11 }
  0x5e   : > { %p5688_p11 = pnand %p5686_p2, %p6058_p8  ;;  %p5694_p5 = scmp.lt.u32.totalorder %s5685_s11, %s6090_s15 }
  0x5f   : > { %p5693_p10 = por %p5692_p1, %p5691_p13 }
  0x60   : > { %p5689_p12 = pneg %p5688_p11 }
  0x61   : > { %p5695_p3 = por %p5694_p5, %p5693_p10 }
  0x63   : > { %p5696_p7 = pnand %p5695_p3, %p5689_p12 }
  0x65   : > { %5699 = shalt.err (!%p5696_p7)
}
  0x66   : > { %s5700_s0 = scalar_lea.vmem %s6092_s14, 4096  ;;  %s5872_s13 = smov [#allocation9]  }
  0x67   : > { %p5701_p9 = scmp.ne.s32.totalorder %s6092_s14, %s5700_s0  ;;  %s5705_s8 = sshll.u32 %s5872_s13, 4  ;;  %s5706_s8 = int_to_ptr.vmem [resolvable:$false] %s5705_s8 }
  0x68   : > { %s5707_s18 = scalar_lea.vmem %s5706_s8, 8192  ;;  %p5708_p2 = scmp.lt.s32.totalorder %s6092_s14, %s5706_s8 }
  0x69   : > { %p5703_p0 = pnand %p5701_p9, %p6058_p8  ;;  %p5709_p11 = scmp.lt.s32.totalorder %s5707_s18, %s5700_s0 }
  0x6b   : > { %p5704_p6 = pneg %p5703_p0  ;;  %p5710_p13 = por %p5709_p11, %p5708_p2 }
  0x6d   : > { %p5711_p1 = pnand %p5710_p13, %p5704_p6 }
  0x6f   : > { %5714 = shalt.err (!%p5711_p1)
}
  0x70   : > { %5033 = dma.hbm_to_vmem [thread:$0]  (!%p5989_p4), %s6090_s15, 4096, %s6092_s14, %s6052_s12, %s5869_s27, %s5869_s27, %s5870_s7  }
  0x71   : > { %s4469_s11 = sshll.u32 %s6034_s25, 2  ;;  %s5715_s17 = scalar_lea.hbm %s7221_s1, 2048 }
  0x72   : > { %p5716_p12 = scmp.ne.s32.totalorder %s7221_s1, %s5715_s17  ;;  %p7263_p10 = scmp.ne.s32.totalorder %s7255_s9, 0 }
  0x73   : > { %p5722_p9 = scmp.lt.u32.totalorder %s5715_s17, %s7221_s1 }
  0x74   : > { %p7264_p5 = pneg %p7263_p10 }
  0x76   : > { %p5718_p3 = pnand %p5716_p12, %p7264_p5 }
  0x78   : > { %p5719_p7 = pneg %p5718_p3 }
  0x7a   : > { %p5724_p0 = pnand %p5722_p9, %p5719_p7 }
  0x7c   : > { %5727 = shalt.err (!%p5724_p0)
}
  0x7d   : > { %s5728_s14 = scalar_lea.vmem %s228_s2, 2048  ;;  %p7265_p2 = pmov %p7264_p5 }
  0x7e   : > { %p5729_p6 = scmp.ne.s32.totalorder %s228_s2, %s5728_s14  ;;  %p5736_p1 = scmp.lt.s32.totalorder %s228_s2, %s228_s2 }
  0x7f   : > { %p5737_p4 = scmp.lt.s32.totalorder %s5728_s14, %s5728_s14 }
  0x80   : > { %p5731_p11 = pnand %p5729_p6, %p7265_p2 }
  0x81   : > { %p5738_p8 = por %p5737_p4, %p5736_p1 }
  0x82   : > { %p5732_p13 = pneg %p5731_p11 }
  0x84   : > { %p5739_p5 = pnand %p5738_p8, %p5732_p13 }
  0x86   : > { %5742 = shalt.err (!%p5739_p5)
}
  0x87   : > { %s7266_s25 = smov 8   ;;  %s7267_s27 = smov 128  }
  0x88   : > { %5026 = dma.hbm_to_vmem [thread:$0]  (!%p7263_p10), %s7221_s1, 2048, %s228_s2, [#allocation7], %s7267_s27, %s7267_s27, %s7266_s25  }
  0x89   : > { %s4931_s18 = sshll.u32 %s5859_s22, 6  ;;  %s287_s9 = scalar_lea.vmem [#allocation10], %s4469_s11 }
  0x8a   : > { %s6150_s17 = scalar_lea.hbm %s7224_s4, %s4931_s18  ;;  %s295_s26 = sshll.u32 %s287_s9, 4  ;;  %s296_s26 = int_to_ptr.vmem [resolvable:$true] %s295_s26 }
  0x8b   : > { %s5743_s0 = scalar_lea.hbm %s6150_s17, 64  ;;  %p7268_p8 = scmp.ne.s32.totalorder %s7262_s30, 0 }
  0x8c   : > { %p5744_p4 = scmp.ne.s32.totalorder %s6150_s17, %s5743_s0  ;;  %s5748_s8 = scalar_lea.hbm %s7224_s4, 128 }
  0x8d   : > { %p5749_p10 = scmp.lt.u32.totalorder %s6150_s17, %s7224_s4  ;;  %p5750_p7 = scmp.lt.u32.totalorder %s5748_s8, %s5743_s0 }
  0x8e   : > { %p5746_p12 = pnand %p5744_p4, %p7268_p8  ;;  %p5752_p0 = scmp.lt.u32.totalorder %s5743_s0, %s6150_s17 }
  0x8f   : > { %p5751_p9 = por %p5750_p7, %p5749_p10 }
  0x90   : > { %p5747_p3 = pneg %p5746_p12 }
  0x91   : > { %p5753_p6 = por %p5752_p0, %p5751_p9 }
  0x93   : > { %p5754_p2 = pnand %p5753_p6, %p5747_p3 }
  0x95   : > { %5757 = shalt.err (!%p5754_p2)
}
  0x96   : > { %s5758_s11 = scalar_lea.vmem %s296_s26, 64  ;;  %s5873_s27 = smov [#allocation10]  }
  0x97   : > { %p5759_p11 = scmp.ne.s32.totalorder %s296_s26, %s5758_s11  ;;  %s5763_s7 = sshll.u32 %s5873_s27, 4  ;;  %s5764_s7 = int_to_ptr.vmem [resolvable:$false] %s5763_s7 }
  0x98   : > { %s5765_s15 = scalar_lea.vmem %s5764_s7, 128  ;;  %p5766_p5 = scmp.lt.s32.totalorder %s296_s26, %s5764_s7 }
  0x99   : > { %p5761_p13 = pnand %p5759_p11, %p7268_p8  ;;  %p5767_p4 = scmp.lt.s32.totalorder %s5765_s15, %s5758_s11 }
  0x9b   : > { %p5762_p1 = pneg %p5761_p13  ;;  %p5768_p12 = por %p5767_p4, %p5766_p5 }
  0x9d   : > { %p5769_p7 = pnand %p5768_p12, %p5762_p1 }
  0x9f   : > { %5772 = shalt.err (!%p5769_p7)
}
  0xa0   : > { %p7269_p10 = scmp.ne.s32.totalorder %s7256_s10, 0  ;;  %p7270_p3 = scmp.ne.s32.totalorder %s7254_s6, 0 }
  0xa1   : > { %p7271_p8 = scmp.eq.s32.totalorder (!%p7270_p3), %s5940_s24, 0 }
  0xa2   : > { %5036 = dma.hbm_to_vmem [thread:$0]  (!%p7269_p10), %s6150_s17, 64, %s296_s26, %s6052_s12  }
  0xa3   : > { %304 = sbr.rel (%p7270_p3) target bundleno = 2444 (0x98c), region = 40 }
  0xaa   : > { %5826 = dma.done.wait (%p7271_p8), [#allocation4], 256   ;;  %p7272_p9 = pmov %p7271_p8 }
  0xab   : > { %p7273_p0 = pmov %p7271_p8 }
  0xac   : > { %5828 = vsyncadd (%p7272_p9), [#allocation4], 4294967040 }
  0xad   : > { %5830 = dma.done.wait (%p7273_p0), [#allocation7], 2048   ;;  %p7274_p6 = pmov %p7273_p0 }
  0xae   : > { %s314_s10 = sand.u32 1, %s5940_s24   ;;  %s6182_s12 = sand.u32 1, %s5847_s19  }
  0xaf   : > { %5832 = vsyncadd (%p7274_p6), [#allocation7], 4294965248  ;;  %s4475_s6 = sshll.u32 %s6182_s12, 9  ;;  %s315_s30 = scalar_lea.sflag [#allocation4], %s314_s10 }
  0xb0   : > { %s6185_s18 = scalar_lea.vmem [#allocation8], %s4475_s6  ;;  %p7275_p2 = scmp.ne.s32.totalorder %s7249_s28, 0 }
  0xb2   : > { %5834 = dma.done.wait (%p7275_p2), %s315_s30, 12352  }
  0xb3   : > { %5836 = vsyncadd (%p7275_p2), %s315_s30, 4294954944  ;;  %v5874_v0 = vmov 0   ;;  %v5107_v1 = vld [vmem:[%s6185_s18 + $0x4] ss:$16 sps:$4 sm:$0xff]   ;;  %v5109_v2 = vld [vmem:[%s6185_s18 + $0xc] ss:$16 sps:$4 sm:$0xff]  }
  0xb4   : > { %5105 = vset.pattern.permute.xlu0 %v5874_v0  ;;  %5106 = vset.pattern.permute.xlu1 %v5874_v0  ;;  %v5111_v3 = vld [vmem:[%s6185_s18] ss:$16 sps:$4 sm:$0xff]   ;;  %v5112_v4 = vld [vmem:[%s6185_s18 + $0x8] ss:$16 sps:$4 sm:$0xff]   ;;  %v5113_v5 = vld [vmem:[%s6185_s18 + $0x24] ss:$16 sps:$4 sm:$0xff]  }
  0xb5   : > { %882 = vmatprep.subr.bf16.mxu0 %v5107_v1  ;;  %995 = vmatprep.subr.bf16.mxu1 %v5109_v2  ;;  %v5115_v6 = vld [vmem:[%s6185_s18 + $0x2c] ss:$16 sps:$4 sm:$0xff]   ;;  %v5117_v7 = vld [vmem:[%s6185_s18 + $0x20] ss:$16 sps:$4 sm:$0xff]   ;;  %v5118_v8 = vld [vmem:[%s6185_s18 + $0x28] ss:$16 sps:$4 sm:$0xff]  }
  0xb6   : > { %883 = vmatpush1.bf16.msra.mxu0 %v5111_v3  ;;  %996 = vmatpush1.bf16.msra.mxu1 %v5112_v4  ;;  %v5119_v9 = vld [vmem:[%s6185_s18 + $0x44] ss:$16 sps:$4 sm:$0xff]   ;;  %v5121_v10 = vld [vmem:[%s6185_s18 + $0x4c] ss:$16 sps:$4 sm:$0xff]   ;;  %v5123_v11 = vld [vmem:[%s6185_s18 + $0x40] ss:$16 sps:$4 sm:$0xff]  }
  0xb7   : > { %884 = vmatprep.subr.bf16.mxu0 %v5113_v5  ;;  %997 = vmatprep.subr.bf16.mxu1 %v5115_v6  ;;  %v5124_v12 = vld [vmem:[%s6185_s18 + $0x48] ss:$16 sps:$4 sm:$0xff]   ;;  %v5125_v13 = vld [vmem:[%s6185_s18 + $0x64] ss:$16 sps:$4 sm:$0xff]   ;;  %v5127_v14 = vld [vmem:[%s6185_s18 + $0x6c] ss:$16 sps:$4 sm:$0xff]  }
  0xb8   : > { %v5129_v15 = vld [vmem:[%s6185_s18 + $0x60] ss:$16 sps:$4 sm:$0xff]   ;;  %v5130_v16 = vld [vmem:[%s6185_s18 + $0x68] ss:$16 sps:$4 sm:$0xff]   ;;  %v5131_v17 = vld [vmem:[%s6185_s18 + $0x84] ss:$16 sps:$4 sm:$0xff]  }
  0xb9   : > { %v5133_v18 = vld [vmem:[%s6185_s18 + $0x8c] ss:$16 sps:$4 sm:$0xff]   ;;  %v5135_v19 = vld [vmem:[%s6185_s18 + $0x80] ss:$16 sps:$4 sm:$0xff]   ;;  %v5136_v20 = vld [vmem:[%s6185_s18 + $0x88] ss:$16 sps:$4 sm:$0xff]  }
  0xba   : > { %885 = vmatpush1.bf16.msra.mxu0 %v5117_v7  ;;  %998 = vmatpush1.bf16.msra.mxu1 %v5118_v8  ;;  %v5137_v21 = vld [vmem:[%s6185_s18 + $0xa4] ss:$16 sps:$4 sm:$0xff]   ;;  %v5139_v22 = vld [vmem:[%s6185_s18 + $0xac] ss:$16 sps:$4 sm:$0xff]   ;;  %v5141_v23 = vld [vmem:[%s6185_s18 + $0xa0] ss:$16 sps:$4 sm:$0xff]  }
  0xbb   : > { %886 = vmatprep.subr.bf16.mxu0 %v5119_v9  ;;  %999 = vmatprep.subr.bf16.mxu1 %v5121_v10  ;;  %v5142_v24 = vld [vmem:[%s6185_s18 + $0xa8] ss:$16 sps:$4 sm:$0xff]   ;;  %v5143_v25 = vld [vmem:[%s6185_s18 + $0xc4] ss:$16 sps:$4 sm:$0xff]   ;;  %v5145_v26 = vld [vmem:[%s6185_s18 + $0xcc] ss:$16 sps:$4 sm:$0xff]  }
  0xbc   : > { %v5147_v27 = vld [vmem:[%s6185_s18 + $0xc0] ss:$16 sps:$4 sm:$0xff]   ;;  %v5148_v28 = vld [vmem:[%s6185_s18 + $0xc8] ss:$16 sps:$4 sm:$0xff]   ;;  %v5149_v29 = vld [vmem:[%s6185_s18 + $0xe4] ss:$16 sps:$4 sm:$0xff]  }
  0xbd   : > { %v5151_v30 = vld [vmem:[%s6185_s18 + $0xec] ss:$16 sps:$4 sm:$0xff]   ;;  %v5153_v31 = vld [vmem:[%s6185_s18 + $0xe0] ss:$16 sps:$4 sm:$0xff]   ;;  %v5154_v32 = vld [vmem:[%s6185_s18 + $0xe8] ss:$16 sps:$4 sm:$0xff]  }
  0xbe   : > { %887 = vmatpush1.bf16.msra.mxu0 %v5123_v11  ;;  %1000 = vmatpush1.bf16.msra.mxu1 %v5124_v12  ;;  %v5155_v33 = vld [vmem:[%s6185_s18 + $0x104] ss:$16 sps:$4 sm:$0xff]   ;;  %v5157_v34 = vld [vmem:[%s6185_s18 + $0x10c] ss:$16 sps:$4 sm:$0xff]   ;;  %v5159_v35 = vld [vmem:[%s6185_s18 + $0x100] ss:$16 sps:$4 sm:$0xff]  }
  0xbf   : > { %888 = vmatprep.subr.bf16.mxu0 %v5125_v13  ;;  %1001 = vmatprep.subr.bf16.mxu1 %v5127_v14  ;;  %v5160_v36 = vld [vmem:[%s6185_s18 + $0x108] ss:$16 sps:$4 sm:$0xff]   ;;  %v5161_v37 = vld [vmem:[%s6185_s18 + $0x124] ss:$16 sps:$4 sm:$0xff]   ;;  %v5163_v38 = vld [vmem:[%s6185_s18 + $0x12c] ss:$16 sps:$4 sm:$0xff]  }
  0xc0   : > { %v5165_v39 = vld [vmem:[%s6185_s18 + $0x120] ss:$16 sps:$4 sm:$0xff]   ;;  %v5166_v40 = vld [vmem:[%s6185_s18 + $0x128] ss:$16 sps:$4 sm:$0xff]   ;;  %v5167_v41 = vld [vmem:[%s6185_s18 + $0x144] ss:$16 sps:$4 sm:$0xff]  }
  0xc1   : > { %v5169_v42 = vld [vmem:[%s6185_s18 + $0x14c] ss:$16 sps:$4 sm:$0xff]   ;;  %v5171_v43 = vld [vmem:[%s6185_s18 + $0x140] ss:$16 sps:$4 sm:$0xff]   ;;  %v5172_v44 = vld [vmem:[%s6185_s18 + $0x148] ss:$16 sps:$4 sm:$0xff]  }
  0xc2   : > { %889 = vmatpush1.bf16.msra.mxu0 %v5129_v15  ;;  %1002 = vmatpush1.bf16.msra.mxu1 %v5130_v16  ;;  %v5173_v45 = vld [vmem:[%s6185_s18 + $0x164] ss:$16 sps:$4 sm:$0xff]   ;;  %s4476_s24 = sshll.u32 %s6182_s12, 8  ;;  %v5175_v46 = vld [vmem:[%s6185_s18 + $0x16c] ss:$16 sps:$4 sm:$0xff]   ;;  %p1180_p11 = scmp.eq.s32.totalorder %s5855_s21, 0 }
  0xc3   : > { %890 = vmatprep.subr.bf16.mxu0 %v5131_v17  ;;  %1003 = vmatprep.subr.bf16.mxu1 %v5133_v18  ;;  %v5177_v47 = vld [vmem:[%s6185_s18 + $0x160] ss:$16 sps:$4 sm:$0xff]   ;;  %v5178_v48 = vld [vmem:[%s6185_s18 + $0x168] ss:$16 sps:$4 sm:$0xff]   ;;  %v5205_v49 = vld [vmem:[#allocation6 + $0x4] ss:$8 sps:$4 sm:$0xff]  }
  0xc4   : > { %v5179_v50 = vld [vmem:[%s6185_s18 + $0x184] ss:$16 sps:$4 sm:$0xff]   ;;  %s6243_s28 = scalar_lea.vmem [#allocation9], %s4476_s24  ;;  %v5181_v51 = vld [vmem:[%s6185_s18 + $0x18c] ss:$16 sps:$4 sm:$0xff]   ;;  %914 = vmatprep.mubr.bf16.mxu0 %v5205_v49  ;;  %1027 = vmatprep.mubr.bf16.mxu1 %v5205_v49  ;;  %s4477_s2 = sshll.u32 %s6182_s12, 2 }
  0xc5   : > { %v5183_v52 = vld [vmem:[%s6185_s18 + $0x180] ss:$16 sps:$4 sm:$0xff]   ;;  %v5184_v53 = vld [vmem:[%s6185_s18 + $0x188] ss:$16 sps:$4 sm:$0xff]   ;;  %v5185_v54 = vld [vmem:[%s6185_s18 + $0x1a4] ss:$16 sps:$4 sm:$0xff]  }
  0xc6   : > { %891 = vmatpush1.bf16.msra.mxu0 %v5135_v19  ;;  %1004 = vmatpush1.bf16.msra.mxu1 %v5136_v20  ;;  %v5187_v55 = vld [vmem:[%s6185_s18 + $0x1ac] ss:$16 sps:$4 sm:$0xff]   ;;  %v5189_v56 = vld [vmem:[%s6185_s18 + $0x1a0] ss:$16 sps:$4 sm:$0xff]   ;;  %v5190_v57 = vld [vmem:[%s6185_s18 + $0x1a8] ss:$16 sps:$4 sm:$0xff]  }
  0xc7   : > { %892 = vmatprep.subr.bf16.mxu0 %v5137_v21  ;;  %1005 = vmatprep.subr.bf16.mxu1 %v5139_v22  ;;  %v5191_v58 = vld [vmem:[%s6185_s18 + $0x1c4] ss:$16 sps:$4 sm:$0xff]   ;;  %v5193_v59 = vld [vmem:[%s6185_s18 + $0x1cc] ss:$16 sps:$4 sm:$0xff]   ;;  %v5195_v60 = vld [vmem:[%s6185_s18 + $0x1c0] ss:$16 sps:$4 sm:$0xff]  }
  0xc8   : > { %v5196_v61 = vld [vmem:[%s6185_s18 + $0x1c8] ss:$16 sps:$4 sm:$0xff]   ;;  %v5197_v62 = vld [vmem:[%s6185_s18 + $0x1e4] ss:$16 sps:$4 sm:$0xff]   ;;  %v5199_v63 = vld [vmem:[%s6185_s18 + $0x1ec] ss:$16 sps:$4 sm:$0xff]  }
  0xc9   : > { %v5201_v1 = vld [vmem:[%s6185_s18 + $0x1e0] ss:$16 sps:$4 sm:$0xff]   ;;  %v5202_v2 = vld [vmem:[%s6185_s18 + $0x1e8] ss:$16 sps:$4 sm:$0xff]   ;;  %v6261_v3 = vld [vmem:[%s6243_s28 + $0x4] ss:$16 sps:$4 sm:$0xff]  }
  0xca   : > { %893 = vmatpush1.bf16.msra.mxu0 %v5141_v23  ;;  %1006 = vmatpush1.bf16.msra.mxu1 %v5142_v24  ;;  %v6264_v4 = vld [vmem:[%s6243_s28 + $0xc] ss:$16 sps:$4 sm:$0xff]   ;;  %v5203_v5 = vld [vmem:[#allocation6] ss:$8 sps:$4 sm:$0xff]   ;;  %v6272_v8 = vld [vmem:[%s6243_s28 + $0x24] ss:$16 sps:$4 sm:$0xff]  }
  0xcb   : > { %894 = vmatprep.subr.bf16.mxu0 %v5143_v25  ;;  %1007 = vmatprep.subr.bf16.mxu1 %v5145_v26  ;;  %v6267_v6 = vld [vmem:[%s6243_s28] ss:$16 sps:$4 sm:$0xff]   ;;  %v5209_v7 = vld [vmem:[#allocation6 + $0x14] ss:$8 sps:$4 sm:$0xff]   ;;  %v6276_v9 = vld [vmem:[%s6243_s28 + $0x8] ss:$16 sps:$4 sm:$0xff]  }
  0xcc   : > { %v6279_v10 = vld [vmem:[%s6243_s28 + $0x2c] ss:$16 sps:$4 sm:$0xff]   ;;  %v6283_v11 = vld [vmem:[%s6243_s28 + $0x20] ss:$16 sps:$4 sm:$0xff]   ;;  %s6287_s16 = scalar_select %p1180_p11, 0, 7 }
  0xcd   : > { %v6291_v12 = vld [vmem:[%s6243_s28 + $0x44] ss:$16 sps:$4 sm:$0xff]   ;;  %v6295_v13 = vld [vmem:[%s6243_s28 + $0x28] ss:$16 sps:$4 sm:$0xff]   ;;  %v6300_v16 = vld [vmem:[%s6243_s28 + $0x40] ss:$16 sps:$4 sm:$0xff]  }
  0xce   : > { %895 = vmatpush1.bf16.msra.mxu0 %v5147_v27  ;;  %1008 = vmatpush1.bf16.msra.mxu1 %v5148_v28  ;;  %v5211_v14 = vld [vmem:[#allocation6 + $0x10] ss:$8 sps:$4 sm:$0xff]   ;;  %v5215_v15 = vld [vmem:[#allocation6 + $0x24] ss:$8 sps:$4 sm:$0xff]   ;;  %v1534_v17 = vstv %s6287_s16  ;;  %v5217_v28 = vld [vmem:[#allocation6 + $0x20] ss:$8 sps:$4 sm:$0xff]  }
  0xcf   : > { %896 = vmatprep.subr.bf16.mxu0 %v5149_v29  ;;  %1009 = vmatprep.subr.bf16.mxu1 %v5151_v30  ;;  %v6305_v18 = vld [vmem:[%s6243_s28 + $0x4c] ss:$16 sps:$4 sm:$0xff]   ;;  %v6308_v19 = vld [vmem:[%s6243_s28 + $0x64] ss:$16 sps:$4 sm:$0xff]   ;;  %v6312_v20 = vld [vmem:[%s6243_s28 + $0x48] ss:$16 sps:$4 sm:$0xff]  }
  0xd0   : > { %v6314_v21 = vld [vmem:[#allocation3] sm:$0xff]  ;;  %v6320_v23 = vld [vmem:[%s6243_s28 + $0x6c] ss:$16 sps:$4 sm:$0xff]   ;;  %v6327_v25 = vld [vmem:[%s6243_s28 + $0x68] ss:$16 sps:$4 sm:$0xff]   ;;  %s336_s14 = scalar_lea.vmem [#allocation10], %s4477_s2 }
  0xd1   : > { %v6317_v22 = vld [vmem:[%s6243_s28 + $0x60] ss:$16 sps:$4 sm:$0xff]   ;;  %vm1535_vm0 = vcmp.lt.s32.totalorder %v1534_v17, %v6314_v21  ;;  %v6324_v24 = vld [vmem:[%s6243_s28 + $0x84] ss:$16 sps:$4 sm:$0xff]   ;;  %v6330_v27 = vld [vmem:[#allocation3 + $0x8] sm:$0xff]  ;;  %s4559_s25 = sshll.u32 %s6287_s16, 4 }
  0xd2   : > { %897 = vmatpush1.bf16.msra.mxu0 %v5153_v31  ;;  %1010 = vmatpush1.bf16.msra.mxu1 %v5154_v32  ;;  %v1537_v26 = vsel %vm1535_vm0, 1, %v5874_v0  ;;  %v5224_v29 = vld [vmem:[#allocation6 + $0x34] ss:$8 sps:$4 sm:$0xff]   ;;  %v6337_v30 = vld [vmem:[%s6243_s28 + $0x80] ss:$16 sps:$4 sm:$0xff]   ;;  %vm1536_vm1 = vcmp.lt.s32.totalorder %v1534_v17, %v6330_v27  ;;  %s1183_s11 = sshra.s32 %s4559_s25, 4 }
  0xd3   : > { %898 = vmatprep.subr.bf16.mxu0 %v5155_v33  ;;  %1011 = vmatprep.subr.bf16.mxu1 %v5157_v34  ;;  %v6341_v31 = vld [vmem:[%s6243_s28 + $0x8c] ss:$16 sps:$4 sm:$0xff]   ;;  %v6344_v32 = vld [vmem:[%s6243_s28 + $0xa4] ss:$16 sps:$4 sm:$0xff]   ;;  %v6347_v33 = vld [vmem:[%s6243_s28 + $0x88] ss:$16 sps:$4 sm:$0xff]  }
  0xd4   : > { %1540 = vperm.xlu0 %5105, %v1537_v26   ;;  %v6351_v34 = vld [vmem:[%s6243_s28 + $0xac] ss:$16 sps:$4 sm:$0xff]   ;;  %s6358_s5 = scalar_select %p1180_p11, 2, 5 }
  0xd5   : > { %s6390_s17 = scalar_select %p1180_p11, 3, 4 }
  0xd6   : > { %899 = vmatpush1.bf16.msra.mxu0 %v5159_v35  ;;  %1012 = vmatpush1.bf16.msra.mxu1 %v5160_v36  ;;  %v6361_v35 = vld [vmem:[%s6243_s28 + $0xa0] ss:$16 sps:$4 sm:$0xff]   ;;  %v6364_v36 = vld [vmem:[%s6243_s28 + $0xc4] ss:$16 sps:$4 sm:$0xff]   ;;  %s6411_s9 = scalar_select %p1180_p11, 4, 3 }
  0xd7   : > { %900 = vmatprep.subr.bf16.mxu0 %v5161_v37  ;;  %1013 = vmatprep.subr.bf16.mxu1 %v5163_v38  ;;  %v6367_v37 = vld [vmem:[%s6243_s28 + $0xa8] ss:$16 sps:$4 sm:$0xff]   ;;  %v1538_v38 = vsel %vm1536_vm1, 1, %v5874_v0  ;;  %s6424_s26 = scalar_select %p1180_p11, 5, 2 }
  0xd8   : > { %1543 = vperm.xlu0 %5105, %v1538_v38   ;;  %s6436_s0 = scalar_select %p1180_p11, 6, 1 }
  0xd9   : > { %s6446_s13 = scalar_select %p1180_p11, 7, 0 }
  0xda   : > { %901 = vmatpush1.bf16.msra.mxu0 %v5165_v39  ;;  %1014 = vmatpush1.bf16.msra.mxu1 %v5166_v40  ;;  %v5226_v39 = vld [vmem:[#allocation6 + $0x30] ss:$8 sps:$4 sm:$0xff]   ;;  %v5233_v40 = vld [vmem:[#allocation6 + $0x44] ss:$8 sps:$4 sm:$0xff]   ;;  %s6497_s8 = scalar_select %p1180_p11, 1, 6 }
  0xdb   : > { %902 = vmatprep.subr.bf16.mxu0 %v5167_v41  ;;  %1015 = vmatprep.subr.bf16.mxu1 %v5169_v42  ;;  %v2303_v41 = vstv %s6358_s5  ;;  %v6376_v42 = vld [vmem:[%s6243_s28 + $0xc0] ss:$16 sps:$4 sm:$0xff]   ;;  %s4932_s27 = sshll.u32 %s1183_s11, 5  ;;  %s4478_s15 = sshll.u32 %s6182_s12, 6 }
  0xdc   : > { %vm2304_vm2 = vcmp.lt.s32.totalorder %v2303_v41, %v6314_v21  ;;  %vm2305_vm10 = vcmp.lt.s32.totalorder %v2303_v41, %v6330_v27  ;;  %s1187_s7 = scalar_lea.vmem [#allocation2], %s4932_s27  ;;  %s4935_s10 = sshll.u32 %s6287_s16, 3 }
  0xdd   : > { %v2306_v49 = vsel %vm2304_vm2, 1, %v5874_v0  ;;  %s6619_s6 = scalar_lea.vmem [#allocation11], %s4478_s15  ;;  %s4604_s18 = sshll.u32 %s6497_s8, 4 }
  0xde   : > { %903 = vmatpush1.bf16.msra.mxu0 %v5171_v43  ;;  %1016 = vmatpush1.bf16.msra.mxu1 %v5172_v44  ;;  %v6380_v43 = vld [vmem:[%s6243_s28 + $0xcc] ss:$16 sps:$4 sm:$0xff]   ;;  %v6383_v44 = vld [vmem:[%s6243_s28 + $0xe4] ss:$16 sps:$4 sm:$0xff]   ;;  %s1561_s30 = scalar_lea.vmem %s6619_s6, %s4935_s10 [#allocation11]  ;;  %s1566_s24 = sshra.s32 %s4604_s18, 4 }
  0xdf   : > { %904 = vmatprep.subr.bf16.mxu0 %v5173_v45  ;;  %1017 = vmatprep.subr.bf16.mxu1 %v5175_v46  ;;  %v6386_v45 = vld [vmem:[%s6243_s28 + $0xc8] ss:$16 sps:$4 sm:$0xff]   ;;  %v6394_v46 = vld [vmem:[%s6243_s28 + $0xec] ss:$16 sps:$4 sm:$0xff]   ;;  %s4936_s16 = sshll.u32 %s1566_s24, 5  ;;  %s4943_s15 = sshll.u32 %s6358_s5, 3 }
  0xe0   : > { %2309 = vperm.xlu0 %5105, %v2306_v49   ;;  %s1570_s2 = scalar_lea.vmem [#allocation2], %s4936_s16  ;;  %s2332_s10 = scalar_lea.vmem %s6619_s6, %s4943_s15 [#allocation11] }
  0xe1   : > { %s4947_s16 = sshll.u32 %s6390_s17, 3 }
  0xe2   : > { %905 = vmatpush1.bf16.msra.mxu0 %v5177_v47  ;;  %1018 = vmatpush1.bf16.msra.mxu1 %v5178_v48  ;;  %v6402_v47 = vld [vmem:[%s6243_s28 + $0xe0] ss:$16 sps:$4 sm:$0xff]   ;;  %v6405_v48 = vld [vmem:[%s6243_s28 + $0xe8] ss:$16 sps:$4 sm:$0xff]  }
  0xe3   : > { %906 = vmatprep.subr.bf16.mxu0 %v5179_v50  ;;  %1019 = vmatprep.subr.bf16.mxu1 %v5181_v51  ;;  %v2689_v50 = vstv %s6390_s17  ;;  %v5235_v51 = vld [vmem:[#allocation6 + $0x40] ss:$8 sps:$4 sm:$0xff]  }
  0xe4   : > { %vm2690_vm3 = vcmp.lt.s32.totalorder %v2689_v50, %v6314_v21  ;;  %vm2691_vm11 = vcmp.lt.s32.totalorder %v2689_v50, %v6330_v27 }
  0xe6   : > { %907 = vmatpush1.bf16.msra.mxu0 %v5183_v52  ;;  %1020 = vmatpush1.bf16.msra.mxu1 %v5184_v53  ;;  %v5242_v52 = vld [vmem:[#allocation6 + $0x54] ss:$8 sps:$4 sm:$0xff]   ;;  %v3075_v53 = vstv %s6411_s9 }
  0xe7   : > { %908 = vmatprep.subr.bf16.mxu0 %v5185_v54  ;;  %1021 = vmatprep.subr.bf16.mxu1 %v5187_v55  ;;  %v2692_v54 = vsel %vm2690_vm3, 1, %v5874_v0  ;;  %vm3076_vm4 = vcmp.lt.s32.totalorder %v3075_v53, %v6314_v21  ;;  %v3461_v55 = vstv %s6424_s26  ;;  %vm3077_vm12 = vcmp.lt.s32.totalorder %v3075_v53, %v6330_v27 }
  0xe8   : > { %2695 = vperm.xlu0 %5105, %v2692_v54   ;;  %vm3462_vm5 = vcmp.lt.s32.totalorder %v3461_v55, %v6314_v21  ;;  %vm3463_vm13 = vcmp.lt.s32.totalorder %v3461_v55, %v6330_v27 }
  0xea   : > { %909 = vmatpush1.bf16.msra.mxu0 %v5189_v56  ;;  %1022 = vmatpush1.bf16.msra.mxu1 %v5190_v57  ;;  %v3078_v56 = vsel %vm3076_vm4, 1, %v5874_v0  ;;  %v5244_v57 = vld [vmem:[#allocation6 + $0x50] ss:$8 sps:$4 sm:$0xff]  }
  0xeb   : > { %910 = vmatprep.subr.bf16.mxu0 %v5191_v58  ;;  %1023 = vmatprep.subr.bf16.mxu1 %v5193_v59  ;;  %v5251_v58 = vld [vmem:[#allocation6 + $0x64] ss:$8 sps:$4 sm:$0xff]   ;;  %v3847_v59 = vstv %s6436_s0 }
  0xec   : > { %3081 = vperm.xlu0 %5105, %v3078_v56   ;;  %vm3848_vm6 = vcmp.lt.s32.totalorder %v3847_v59, %v6314_v21  ;;  %vm3849_vm14 = vcmp.lt.s32.totalorder %v3847_v59, %v6330_v27 }
  0xee   : > { %911 = vmatpush1.bf16.msra.mxu0 %v5195_v60  ;;  %1024 = vmatpush1.bf16.msra.mxu1 %v5196_v61  ;;  %v3464_v60 = vsel %vm3462_vm5, 1, %v5874_v0  ;;  %v4233_v61 = vstv %s6446_s13 }
  0xef   : > { %912 = vmatprep.subr.bf16.mxu0 %v5197_v62  ;;  %1025 = vmatprep.subr.bf16.mxu1 %v5199_v63  ;;  %v3850_v62 = vsel %vm3848_vm6, 1, %v5874_v0  ;;  %v5253_v63 = vld [vmem:[#allocation6 + $0x60] ss:$8 sps:$4 sm:$0xff]   ;;  %vm4234_vm7 = vcmp.lt.s32.totalorder %v4233_v61, %v6314_v21  ;;  %vm4235_vm15 = vcmp.lt.s32.totalorder %v4233_v61, %v6330_v27 }
  0xf0   : > { %3467 = vperm.xlu0 %5105, %v3464_v60  }
  0xf2   : > { %913 = vmatpush1.bf16.msra.mxu0 %v5201_v1  ;;  %1026 = vmatpush1.bf16.msra.mxu1 %v5202_v2  ;;  %v5260_v1 = vld [vmem:[#allocation6 + $0x74] ss:$8 sps:$4 sm:$0xff]   ;;  %v4236_v2 = vsel %vm4234_vm7, 1, %v5874_v0 }
  0xf3   : > { %1392 = vmatprep.subr.bf16.mxu0 %v6261_v3  ;;  %1435 = vmatprep.subr.bf16.mxu1 %v6264_v4 }
  0xf4   : > { %3853 = vperm.xlu0 %5105, %v3850_v62  }
  0xf5   : > { %915 = vmatmul.mubr.bf16.vlgmr.msra.gmra.mrb[0].mxu0 %v5203_v5  ;;  %1028 = vmatmul.mubr.bf16.vlgmr.msra.gmra.mrb[0].mxu1 %v5203_v5 }
  0xf6   : > { %1393 = vmatpush1.bf16.msra.mxu0 %v6267_v6  ;;  %924 = vmatprep.mubr.bf16.mxu0 %v5209_v7 }
  0xf7   : > { %1037 = vmatprep.mubr.bf16.mxu1 %v5209_v7  ;;  %1394 = vmatprep.subr.bf16.mxu0 %v6272_v8 }
  0xf8   : > { %1436 = vmatpush1.bf16.msra.mxu1 %v6276_v9  ;;  %4239 = vperm.xlu0 %5105, %v4236_v2  }
  0xf9   : > { %1437 = vmatprep.subr.bf16.mxu1 %v6279_v10 }
  0xfa   : > { %1395 = vmatpush1.bf16.msra.mxu0 %v6283_v11 }
  0xfb   : > { %1396 = vmatprep.subr.bf16.mxu0 %v6291_v12 }
  0xfc   : > { %1438 = vmatpush1.bf16.msra.mxu1 %v6295_v13 }
  0xfd   : > { %925 = vmatmul.mubr.bf16.gmra.mrb[4].mxu0 %v5211_v14  ;;  %1038 = vmatmul.mubr.bf16.gmra.mrb[4].mxu1 %v5211_v14 }
  0xfe   : > { %934 = vmatprep.mubr.bf16.mxu0 %v5215_v15  ;;  %1047 = vmatprep.mubr.bf16.mxu1 %v5215_v15 }
  0xff   : > { %1397 = vmatpush1.bf16.msra.mxu0 %v6300_v16  ;;  %1439 = vmatprep.subr.bf16.mxu1 %v6305_v18 }
 0x100   : > { %1398 = vmatprep.subr.bf16.mxu0 %v6308_v19  ;;  %1440 = vmatpush1.bf16.msra.mxu1 %v6312_v20 }
 0x101   : > { %1441 = vmatprep.subr.bf16.mxu1 %v6320_v23 }
 0x103   : > { %1399 = vmatpush1.bf16.msra.mxu0 %v6317_v22 }
 0x104   : > { %1400 = vmatprep.subr.bf16.mxu0 %v6324_v24  ;;  %1442 = vmatpush1.bf16.msra.mxu1 %v6327_v25 }
 0x105   : > { %935 = vmatmul.mubr.bf16.gmra.mrb[8].mxu0 %v5217_v28  ;;  %1048 = vmatmul.mubr.bf16.gmra.mrb[8].mxu1 %v5217_v28 }
 0x106   : > { %944 = vmatprep.mubr.bf16.mxu0 %v5224_v29  ;;  %1057 = vmatprep.mubr.bf16.mxu1 %v5224_v29 }
 0x107   : > { %1401 = vmatpush1.bf16.msra.mxu0 %v6337_v30  ;;  %1443 = vmatprep.subr.bf16.mxu1 %v6341_v31 }
 0x108   : > { %1402 = vmatprep.subr.bf16.mxu0 %v6344_v32  ;;  %1444 = vmatpush1.bf16.msra.mxu1 %v6347_v33 }
 0x109   : > { %1445 = vmatprep.subr.bf16.mxu1 %v6351_v34 }
 0x10b   : > { %1403 = vmatpush1.bf16.msra.mxu0 %v6361_v35 }
 0x10c   : > { %1404 = vmatprep.subr.bf16.mxu0 %v6364_v36  ;;  %1446 = vmatpush1.bf16.msra.mxu1 %v6367_v37 }
 0x10d   : > { %945 = vmatmul.mubr.bf16.gmra.mrb[12].mxu0 %v5226_v39  ;;  %1058 = vmatmul.mubr.bf16.gmra.mrb[12].mxu1 %v5226_v39 }
 0x10e   : > { %954 = vmatprep.mubr.bf16.mxu0 %v5233_v40  ;;  %1067 = vmatprep.mubr.bf16.mxu1 %v5233_v40 }
 0x10f   : > { %1405 = vmatpush1.bf16.msra.mxu0 %v6376_v42  ;;  %1447 = vmatprep.subr.bf16.mxu1 %v6380_v43 }
 0x110   : > { %1406 = vmatprep.subr.bf16.mxu0 %v6383_v44  ;;  %1448 = vmatpush1.bf16.msra.mxu1 %v6386_v45 }
 0x111   : > { %1449 = vmatprep.subr.bf16.mxu1 %v6394_v46 }
 0x113   : > { %1407 = vmatpush1.bf16.msra.mxu0 %v6402_v47 }
 0x114   : > { %1450 = vmatpush1.bf16.msra.mxu1 %v6405_v48  ;;  %1775 = vmatprep.subr.bf16.mxu0 %v6261_v3  ;;  %v5262_v3 = vld [vmem:[#allocation6 + $0x70] ss:$8 sps:$4 sm:$0xff]  }
 0x115   : > { %955 = vmatmul.mubr.bf16.gmra.mrb[16].mxu0 %v5235_v51  ;;  %1068 = vmatmul.mubr.bf16.gmra.mrb[16].mxu1 %v5235_v51 }
 0x116   : > { %964 = vmatprep.mubr.bf16.mxu0 %v5242_v52  ;;  %1077 = vmatprep.mubr.bf16.mxu1 %v5242_v52 }
 0x117   : > { %1818 = vmatprep.subr.bf16.mxu1 %v6264_v4  ;;  %v462_v4 = vlaneseq }
 0x119   : > { %v463_v5 = vshrl.u32 %v462_v4, 7  ;;  %v3465_v4 = vsel %vm3463_vm13, 1, %v5874_v0 }
 0x11b   : > { %v476_v7 = vsub.s32 3, %v463_v5 }
 0x11d   : > { %965 = vmatmul.mubr.bf16.gmra.mrb[20].mxu0 %v5244_v57  ;;  %1078 = vmatmul.mubr.bf16.gmra.mrb[20].mxu1 %v5244_v57 }
 0x11e   : > { %974 = vmatprep.mubr.bf16.mxu0 %v5251_v58  ;;  %1087 = vmatprep.mubr.bf16.mxu1 %v5251_v58  ;;  %v3079_v58 = vsel %vm3077_vm12, 1, %v5874_v0 }
 0x125   : > { %975 = vmatmul.mubr.bf16.gmra.mrb[24].mxu0 %v5253_v63  ;;  %1088 = vmatmul.mubr.bf16.gmra.mrb[24].mxu1 %v5253_v63 }
 0x126   : > { %984 = vmatprep.mubr.bf16.mxu0 %v5260_v1  ;;  %1097 = vmatprep.mubr.bf16.mxu1 %v5260_v1 }
 0x12d   : > { %985 = vmatmul.mubr.bf16.gmra.mrb[28].mxu0 %v5262_v3  ;;  %1098 = vmatmul.mubr.bf16.gmra.mrb[28].mxu1 %v5262_v3 }
 0x12e   : > { %1424 = vmatprep.mubr.bf16.mxu0 %v5874_v0  ;;  %1467 = vmatprep.mubr.bf16.mxu1 %v5874_v0 }
 0x135   : > { %1425 = vmatmul.mubr.bf16.vlgmr.msra.gmra.mrb[32].mxu0 %v5874_v0  ;;  %1468 = vmatmul.mubr.bf16.vlgmr.msra.gmra.mrb[32].mxu1 %v5874_v0 }
 0x136   : > { %1776 = vmatpush1.bf16.msra.mxu0 %v6267_v6  ;;  %1819 = vmatpush1.bf16.msra.mxu1 %v6276_v9  ;;  %v472_v6 = vsub.s32 2, %v463_v5  ;;  %v460_v9 = vld [vmem:[%s336_s14] sm:$0xf]  ;;  %s4939_s14 = sshll.u32 %s6497_s8, 3 }
 0x137   : > { %1777 = vmatprep.subr.bf16.mxu0 %v6272_v8  ;;  %1820 = vmatprep.subr.bf16.mxu1 %v6279_v10  ;;  %v464_v8 = vsub.s32 0, %v463_v5  ;;  %v468_v10 = vsub.s32 1, %v463_v5  ;;  %s1946_s25 = scalar_lea.vmem %s6619_s6, %s4939_s14 [#allocation11] }
 0x138   : > { %1807 = vmatprep.mubr.bf16.mxu0 %v5874_v0  ;;  %1850 = vmatprep.mubr.bf16.mxu1 %v5874_v0 }
 0x139   : > { %v6507_v15 = vrot.slane %v460_v9, %v464_v8  ;;  %v6509_v17 = vrot.slane %v460_v9, %v468_v10 }
 0x13a   : > { %1778 = vmatpush1.bf16.msra.mxu0 %v6283_v11  ;;  %1821 = vmatpush1.bf16.msra.mxu1 %v6295_v13  ;;  %v1917_v11 = vstv %s6497_s8  ;;  %v6504_v13 = vrot.slane %v460_v9, %v476_v7  ;;  %s4655_s8 = sshll.u32 %s6358_s5, 4  ;;  %s4700_s5 = sshll.u32 %s6390_s17, 4 }
 0x13b   : > { %1779 = vmatprep.subr.bf16.mxu0 %v6291_v12  ;;  %1822 = vmatprep.subr.bf16.mxu1 %v6305_v18  ;;  %v6500_v12 = vrot.slane %v460_v9, %v472_v6  ;;  %vm1918_vm8 = vcmp.lt.s32.totalorder %v1917_v11, %v6314_v21  ;;  %vm1919_vm9 = vcmp.lt.s32.totalorder %v1917_v11, %v6330_v27  ;;  %s1951_s11 = sshra.s32 %s4655_s8, 4  ;;  %s4745_s17 = sshll.u32 %s6411_s9, 4 }
 0x13c   : > { %v1920_v14 = vsel %vm1918_vm8, 1, %v5874_v0  ;;  %s4940_s27 = sshll.u32 %s1951_s11, 5  ;;  %s2723_s14 = sshra.s32 %s4745_s17, 4 }
 0x13d   : > { %1923 = vperm.xlu1 %5106, %v1920_v14   ;;  %s4880_s17 = sshll.u32 %s6446_s13, 4 }
 0x13e   : > { %1780 = vmatpush1.bf16.msra.mxu0 %v6300_v16  ;;  %1823 = vmatpush1.bf16.msra.mxu1 %v6312_v20 }
 0x13f   : > { %1781 = vmatprep.subr.bf16.mxu0 %v6308_v19  ;;  %1824 = vmatprep.subr.bf16.mxu1 %v6320_v23  ;;  %v1921_v19 = vsel %vm1919_vm9, 1, %v5874_v0 }
 0x141   : > { %1926 = vperm.xlu1 %5106, %v1921_v19  }
 0x142   : > { %1782 = vmatpush1.bf16.msra.mxu0 %v6317_v22  ;;  %1825 = vmatpush1.bf16.msra.mxu1 %v6327_v25 }
 0x143   : > { %1783 = vmatprep.subr.bf16.mxu0 %v6324_v24  ;;  %1826 = vmatprep.subr.bf16.mxu1 %v6341_v31 }
 0x146   : > { %1784 = vmatpush1.bf16.msra.mxu0 %v6337_v30  ;;  %1827 = vmatpush1.bf16.msra.mxu1 %v6347_v33 }
 0x147   : > { %1785 = vmatprep.subr.bf16.mxu0 %v6344_v32  ;;  %1828 = vmatprep.subr.bf16.mxu1 %v6351_v34 }
 0x14a   : > { %1786 = vmatpush1.bf16.msra.mxu0 %v6361_v35  ;;  %1829 = vmatpush1.bf16.msra.mxu1 %v6367_v37  ;;  %v2307_v35 = vsel %vm2305_vm10, 1, %v5874_v0 }
 0x14b   : > { %1787 = vmatprep.subr.bf16.mxu0 %v6364_v36  ;;  %1830 = vmatprep.subr.bf16.mxu1 %v6380_v43 }
 0x14c   : > { %2312 = vperm.xlu1 %5106, %v2307_v35  }
 0x14e   : > { %1788 = vmatpush1.bf16.msra.mxu0 %v6376_v42  ;;  %1831 = vmatpush1.bf16.msra.mxu1 %v6386_v45  ;;  %v2693_v42 = vsel %vm2691_vm11, 1, %v5874_v0 }
 0x14f   : > { %1789 = vmatprep.subr.bf16.mxu0 %v6383_v44  ;;  %1832 = vmatprep.subr.bf16.mxu1 %v6394_v46 }
 0x150   : > { %2698 = vperm.xlu1 %5106, %v2693_v42  }
 0x152   : > { %1790 = vmatpush1.bf16.msra.mxu0 %v6402_v47  ;;  %1833 = vmatpush1.bf16.msra.mxu1 %v6405_v48 }
 0x154   : > { %3084 = vperm.xlu1 %5106, %v3079_v58  }
 0x158   : > { %3470 = vperm.xlu1 %5106, %v3465_v4  }
 0x1c8   : > { %v916_v16 = vpop.f32.mrb[0].mxu0  ;;  %v1029_v18 = vpop.f32.mrb[0].mxu1 }
 0x1c9   : > { %v918_v20 = vpop.f32.mrb[1].mxu0  ;;  %v1030_v22 = vadd.f32 %v1029_v18, %v6500_v12  ;;  %v1031_v23 = vpop.f32.mrb[1].mxu1  ;;  %v917_v26 = vadd.f32 %v916_v16, %v6507_v15 }
 0x1ca   : > { %v920_v21 = vpop.f32.mrb[2].mxu0  ;;  %v1032_v24 = vadd.f32 %v1031_v23, %v6504_v13  ;;  %v1033_v25 = vpop.f32.mrb[2].mxu1  ;;  %v919_v32 = vadd.f32 %v918_v20, %v6509_v17 }
 0x1cb   : > { %v921_v28 = vadd.f32 %v920_v21, %v6507_v15  ;;  %v922_v29 = vpop.f32.mrb[3].mxu0  ;;  %v1034_v30 = vadd.f32 %v1033_v25, %v6500_v12  ;;  %v1035_v31 = vpop.f32.mrb[3].mxu1 }
 0x1cc   : > { %v923_v33 = vadd.f32 %v922_v29, %v6509_v17  ;;  %v1036_v34 = vadd.f32 %v1035_v31, %v6504_v13  ;;  %v4237_v29 = vsel %vm4235_vm15, 1, %v5874_v0 }
 0x1cd   : > { %v1109_v36 = vpack.c.bf16 %v921_v28, %v917_v26  ;;  %v1111_v37 = vpack.c.bf16 %v1034_v30, %v1030_v22  ;;  %v3851_v22 = vsel %vm3849_vm14, 1, %v5874_v0 }
 0x1ce   : > { %v1110_v38 = vpack.c.bf16 %v923_v33, %v919_v32  ;;  %v1112_v39 = vpack.c.bf16 %v1036_v34, %v1032_v24  ;;  %3856 = vperm.xlu1 %5106, %v3851_v22  }
 0x1cf   : > { %1146 = vst [vmem:[#allocation2] sm:$0xff] %v1109_v36  ;;  %1148 = vst [vmem:[#allocation2 + $0x10] sm:$0xff] %v1111_v37 }
 0x1d0   : > { %1147 = vst [vmem:[#allocation2 + $0x8] sm:$0xff] %v1110_v38  ;;  %v926_v40 = vpop.f32.mrb[4].mxu0  ;;  %1149 = vst [vmem:[#allocation2 + $0x18] sm:$0xff] %v1112_v39  ;;  %v1039_v41 = vpop.f32.mrb[4].mxu1 }
 0x1d1   : > { %v928_v43 = vpop.f32.mrb[5].mxu0  ;;  %v1040_v44 = vadd.f32 %v1039_v41, %v6500_v12  ;;  %v1041_v45 = vpop.f32.mrb[5].mxu1  ;;  %v927_v49 = vadd.f32 %v926_v40, %v6507_v15 }
 0x1d2   : > { %v930_v46 = vpop.f32.mrb[6].mxu0  ;;  %v1042_v47 = vadd.f32 %v1041_v45, %v6504_v13  ;;  %v1043_v48 = vpop.f32.mrb[6].mxu1  ;;  %v929_v56 = vadd.f32 %v928_v43, %v6509_v17  ;;  %4242 = vperm.xlu1 %5106, %v4237_v29  }
 0x1d3   : > { %v931_v50 = vadd.f32 %v930_v46, %v6507_v15  ;;  %v932_v51 = vpop.f32.mrb[7].mxu0  ;;  %v1044_v52 = vadd.f32 %v1043_v48, %v6500_v12  ;;  %v1045_v54 = vpop.f32.mrb[7].mxu1 }
 0x1d4   : > { %v933_v57 = vadd.f32 %v932_v51, %v6509_v17  ;;  %v1046_v53 = vadd.f32 %v1045_v54, %v6504_v13 }
 0x1d5   : > { %v1113_v60 = vpack.c.bf16 %v931_v50, %v927_v49  ;;  %v1115_v62 = vpack.c.bf16 %v1044_v52, %v1040_v44 }
 0x1d6   : > { %v1114_v63 = vpack.c.bf16 %v933_v57, %v929_v56  ;;  %v1116_v1 = vpack.c.bf16 %v1046_v53, %v1042_v47 }
 0x1d7   : > { %1150 = vst [vmem:[#allocation2 + $0x20] sm:$0xff] %v1113_v60  ;;  %1152 = vst [vmem:[#allocation2 + $0x30] sm:$0xff] %v1115_v62 }
 0x1d8   : > { %1151 = vst [vmem:[#allocation2 + $0x28] sm:$0xff] %v1114_v63  ;;  %v936_v2 = vpop.f32.mrb[8].mxu0  ;;  %1153 = vst [vmem:[#allocation2 + $0x38] sm:$0xff] %v1116_v1  ;;  %v1049_v3 = vpop.f32.mrb[8].mxu1 }
 0x1d9   : > { %v938_v5 = vpop.f32.mrb[9].mxu0  ;;  %v1050_v6 = vadd.f32 %v1049_v3, %v6500_v12  ;;  %v1051_v7 = vpop.f32.mrb[9].mxu1  ;;  %v937_v10 = vadd.f32 %v936_v2, %v6507_v15 }
 0x1da   : > { %v940_v55 = vpop.f32.mrb[10].mxu0  ;;  %v1052_v8 = vadd.f32 %v1051_v7, %v6504_v13  ;;  %v1053_v9 = vpop.f32.mrb[10].mxu1  ;;  %v939_v19 = vadd.f32 %v938_v5, %v6509_v17 }
 0x1db   : > { %v941_v11 = vadd.f32 %v940_v55, %v6507_v15  ;;  %v942_v14 = vpop.f32.mrb[11].mxu0  ;;  %v1054_v16 = vadd.f32 %v1053_v9, %v6500_v12  ;;  %v1055_v18 = vpop.f32.mrb[11].mxu1 }
 0x1dc   : > { %v943_v20 = vadd.f32 %v942_v14, %v6509_v17  ;;  %v1056_v59 = vadd.f32 %v1055_v18, %v6504_v13 }
 0x1dd   : > { %v1117_v23 = vpack.c.bf16 %v941_v11, %v937_v10  ;;  %v1119_v21 = vpack.c.bf16 %v1054_v16, %v1050_v6 }
 0x1de   : > { %v1118_v24 = vpack.c.bf16 %v943_v20, %v939_v19  ;;  %v1120_v25 = vpack.c.bf16 %v1056_v59, %v1052_v8 }
 0x1df   : > { %1154 = vst [vmem:[#allocation2 + $0x40] sm:$0xff] %v1117_v23  ;;  %1156 = vst [vmem:[#allocation2 + $0x50] sm:$0xff] %v1119_v21 }
 0x1e0   : > { %1155 = vst [vmem:[#allocation2 + $0x48] sm:$0xff] %v1118_v24  ;;  %v946_v26 = vpop.f32.mrb[12].mxu0  ;;  %1157 = vst [vmem:[#allocation2 + $0x58] sm:$0xff] %v1120_v25  ;;  %v1059_v28 = vpop.f32.mrb[12].mxu1 }
 0x1e1   : > { %v948_v30 = vpop.f32.mrb[13].mxu0  ;;  %v1060_v31 = vadd.f32 %v1059_v28, %v6500_v12  ;;  %v1061_v32 = vpop.f32.mrb[13].mxu1  ;;  %v947_v27 = vadd.f32 %v946_v26, %v6507_v15 }
 0x1e2   : > { %v950_v33 = vpop.f32.mrb[14].mxu0  ;;  %v1062_v34 = vadd.f32 %v1061_v32, %v6504_v13  ;;  %v1063_v35 = vpop.f32.mrb[14].mxu1  ;;  %v949_v39 = vadd.f32 %v948_v30, %v6509_v17 }
 0x1e3   : > { %v951_v61 = vadd.f32 %v950_v33, %v6507_v15  ;;  %v952_v36 = vpop.f32.mrb[15].mxu0  ;;  %v1064_v37 = vadd.f32 %v1063_v35, %v6500_v12  ;;  %v1065_v38 = vpop.f32.mrb[15].mxu1 }
 0x1e4   : > { %v953_v40 = vadd.f32 %v952_v36, %v6509_v17  ;;  %v1066_v41 = vadd.f32 %v1065_v38, %v6504_v13 }
 0x1e5   : > { %v1121_v42 = vpack.c.bf16 %v951_v61, %v947_v27  ;;  %v1123_v43 = vpack.c.bf16 %v1064_v37, %v1060_v31 }
 0x1e6   : > { %v1122_v44 = vpack.c.bf16 %v953_v40, %v949_v39  ;;  %v1124_v45 = vpack.c.bf16 %v1066_v41, %v1062_v34 }
 0x1e7   : > { %1158 = vst [vmem:[#allocation2 + $0x60] sm:$0xff] %v1121_v42  ;;  %1160 = vst [vmem:[#allocation2 + $0x70] sm:$0xff] %v1123_v43 }
 0x1e8   : > { %1159 = vst [vmem:[#allocation2 + $0x68] sm:$0xff] %v1122_v44  ;;  %v956_v46 = vpop.f32.mrb[16].mxu0  ;;  %1161 = vst [vmem:[#allocation2 + $0x78] sm:$0xff] %v1124_v45  ;;  %v1069_v47 = vpop.f32.mrb[16].mxu1 }
 0x1e9   : > { %v958_v48 = vpop.f32.mrb[17].mxu0  ;;  %v1070_v49 = vadd.f32 %v1069_v47, %v6500_v12  ;;  %v1071_v50 = vpop.f32.mrb[17].mxu1  ;;  %v957_v56 = vadd.f32 %v956_v46, %v6507_v15 }
 0x1ea   : > { %v960_v51 = vpop.f32.mrb[18].mxu0  ;;  %v1072_v52 = vadd.f32 %v1071_v50, %v6504_v13  ;;  %v1073_v54 = vpop.f32.mrb[18].mxu1  ;;  %v959_v62 = vadd.f32 %v958_v48, %v6509_v17 }
 0x1eb   : > { %v961_v57 = vadd.f32 %v960_v51, %v6507_v15  ;;  %v962_v53 = vpop.f32.mrb[19].mxu0  ;;  %v1074_v58 = vadd.f32 %v1073_v54, %v6500_v12  ;;  %v1075_v60 = vpop.f32.mrb[19].mxu1 }
 0x1ec   : > { %v963_v63 = vadd.f32 %v962_v53, %v6509_v17  ;;  %v1076_v1 = vadd.f32 %v1075_v60, %v6504_v13 }
 0x1ed   : > { %v1125_v2 = vpack.c.bf16 %v961_v57, %v957_v56  ;;  %v1127_v3 = vpack.c.bf16 %v1074_v58, %v1070_v49 }
 0x1ee   : > { %v1126_v4 = vpack.c.bf16 %v963_v63, %v959_v62  ;;  %v1128_v5 = vpack.c.bf16 %v1076_v1, %v1072_v52 }
 0x1ef   : > { %1162 = vst [vmem:[#allocation2 + $0x80] sm:$0xff] %v1125_v2  ;;  %1164 = vst [vmem:[#allocation2 + $0x90] sm:$0xff] %v1127_v3 }
 0x1f0   : > { %1163 = vst [vmem:[#allocation2 + $0x88] sm:$0xff] %v1126_v4  ;;  %1165 = vst [vmem:[#allocation2 + $0x98] sm:$0xff] %v1128_v5  ;;  %v966_v6 = vpop.f32.mrb[20].mxu0  ;;  %v1079_v7 = vpop.f32.mrb[20].mxu1 }
 0x1f1   : > { %v1080_v55 = vadd.f32 %v1079_v7, %v6500_v12  ;;  %v968_v8 = vpop.f32.mrb[21].mxu0  ;;  %v1081_v9 = vpop.f32.mrb[21].mxu1  ;;  %v967_v16 = vadd.f32 %v966_v6, %v6507_v15 }
 0x1f2   : > { %v1082_v10 = vadd.f32 %v1081_v9, %v6504_v13  ;;  %v970_v11 = vpop.f32.mrb[22].mxu0  ;;  %v1083_v14 = vpop.f32.mrb[22].mxu1  ;;  %v969_v22 = vadd.f32 %v968_v8, %v6509_v17 }
 0x1f3   : > { %v971_v18 = vadd.f32 %v970_v11, %v6507_v15  ;;  %v1084_v19 = vadd.f32 %v1083_v14, %v6500_v12  ;;  %v972_v20 = vpop.f32.mrb[23].mxu0  ;;  %v1085_v59 = vpop.f32.mrb[23].mxu1 }
 0x1f4   : > { %v973_v23 = vadd.f32 %v972_v20, %v6509_v17  ;;  %v1086_v21 = vadd.f32 %v1085_v59, %v6504_v13 }
 0x1f5   : > { %v1129_v24 = vpack.c.bf16 %v971_v18, %v967_v16  ;;  %v1131_v25 = vpack.c.bf16 %v1084_v19, %v1080_v55 }
 0x1f6   : > { %v1130_v26 = vpack.c.bf16 %v973_v23, %v969_v22  ;;  %v1132_v28 = vpack.c.bf16 %v1086_v21, %v1082_v10 }
 0x1f7   : > { %1166 = vst [vmem:[#allocation2 + $0xa0] sm:$0xff] %v1129_v24  ;;  %1168 = vst [vmem:[#allocation2 + $0xb0] sm:$0xff] %v1131_v25 }
 0x1f8   : > { %1167 = vst [vmem:[#allocation2 + $0xa8] sm:$0xff] %v1130_v26  ;;  %1169 = vst [vmem:[#allocation2 + $0xb8] sm:$0xff] %v1132_v28  ;;  %v976_v29 = vpop.f32.mrb[24].mxu0  ;;  %v1089_v30 = vpop.f32.mrb[24].mxu1 }
 0x1f9   : > { %v1090_v31 = vadd.f32 %v1089_v30, %v6500_v12  ;;  %v978_v32 = vpop.f32.mrb[25].mxu0  ;;  %v1091_v33 = vpop.f32.mrb[25].mxu1  ;;  %v977_v61 = vadd.f32 %v976_v29, %v6507_v15 }
 0x1fa   : > { %v1092_v34 = vadd.f32 %v1091_v33, %v6504_v13  ;;  %v980_v35 = vpop.f32.mrb[26].mxu0  ;;  %v1093_v27 = vpop.f32.mrb[26].mxu1  ;;  %v979_v40 = vadd.f32 %v978_v32, %v6509_v17 }
 0x1fb   : > { %v981_v36 = vadd.f32 %v980_v35, %v6507_v15  ;;  %v1094_v37 = vadd.f32 %v1093_v27, %v6500_v12  ;;  %v982_v38 = vpop.f32.mrb[27].mxu0  ;;  %v1095_v39 = vpop.f32.mrb[27].mxu1 }
 0x1fc   : > { %v983_v41 = vadd.f32 %v982_v38, %v6509_v17  ;;  %v1096_v42 = vadd.f32 %v1095_v39, %v6504_v13 }
 0x1fd   : > { %v1133_v43 = vpack.c.bf16 %v981_v36, %v977_v61  ;;  %v1135_v44 = vpack.c.bf16 %v1094_v37, %v1090_v31 }
 0x1fe   : > { %v1134_v45 = vpack.c.bf16 %v983_v41, %v979_v40  ;;  %v1136_v46 = vpack.c.bf16 %v1096_v42, %v1092_v34 }
 0x1ff   : > { %1170 = vst [vmem:[#allocation2 + $0xc0] sm:$0xff] %v1133_v43  ;;  %1172 = vst [vmem:[#allocation2 + $0xd0] sm:$0xff] %v1135_v44 }
 0x200   : > { %1171 = vst [vmem:[#allocation2 + $0xc8] sm:$0xff] %v1134_v45  ;;  %1173 = vst [vmem:[#allocation2 + $0xd8] sm:$0xff] %v1136_v46  ;;  %v986_v47 = vpop.f32.mrb[28].mxu0  ;;  %v1099_v48 = vpop.f32.mrb[28].mxu1 }
 0x201   : > { %v1100_v49 = vadd.f32 %v1099_v48, %v6500_v12  ;;  %v988_v50 = vpop.f32.mrb[29].mxu0  ;;  %v1101_v51 = vpop.f32.mrb[29].mxu1  ;;  %v987_v57 = vadd.f32 %v986_v47, %v6507_v15 }
 0x202   : > { %v1102_v52 = vadd.f32 %v1101_v51, %v6504_v13  ;;  %v990_v54 = vpop.f32.mrb[30].mxu0  ;;  %v1103_v56 = vpop.f32.mrb[30].mxu1  ;;  %v989_v63 = vadd.f32 %v988_v50, %v6509_v17 }
 0x203   : > { %v991_v53 = vadd.f32 %v990_v54, %v6507_v15  ;;  %v1104_v58 = vadd.f32 %v1103_v56, %v6500_v12  ;;  %v992_v60 = vpop.f32.mrb[31].mxu0  ;;  %v1105_v62 = vpop.f32.mrb[31].mxu1 }
 0x204   : > { %v993_v1 = vadd.f32 %v992_v60, %v6509_v17  ;;  %v1106_v2 = vadd.f32 %v1105_v62, %v6504_v13 }
 0x205   : > { %v1137_v3 = vpack.c.bf16 %v991_v53, %v987_v57  ;;  %v1139_v4 = vpack.c.bf16 %v1104_v58, %v1100_v49 }
 0x206   : > { %v1138_v5 = vpack.c.bf16 %v993_v1, %v989_v63  ;;  %v1140_v6 = vpack.c.bf16 %v1106_v2, %v1102_v52  ;;  %v6607_v2 = vpop.permute.xlu0 %1540 }
 0x207   : > { %1174 = vst [vmem:[#allocation2 + $0xe0] sm:$0xff] %v1137_v3  ;;  %1176 = vst [vmem:[#allocation2 + $0xf0] sm:$0xff] %v1139_v4  ;;  %vm1545_vm0 = vcmp.eq.s32.totalorder %v6607_v2, 1 }
 0x208   : > { %1175 = vst [vmem:[#allocation2 + $0xe8] sm:$0xff] %v1138_v5  ;;  %1177 = vst [vmem:[#allocation2 + $0xf8] sm:$0xff] %v1140_v6  ;;  %v1426_v15 = vpop.f32.mrb[32].mxu0  ;;  %v1469_v12 = vpop.f32.mrb[32].mxu1 }
 0x209   : > { %v1428_v7 = vpop.f32.mrb[33].mxu0  ;;  %v1471_v55 = vpop.f32.mrb[33].mxu1 }
 0x20a   : > { %v1430_v8 = vpop.f32.mrb[34].mxu0  ;;  %v1473_v9 = vpop.f32.mrb[34].mxu1 }
 0x20b   : > { %v1432_v10 = vpop.f32.mrb[35].mxu0  ;;  %v1475_v17 = vpop.f32.mrb[35].mxu1 }
 0x20f   : > { %v1188_v13 = vld [vmem:[%s1187_s7] sm:$0xff]  ;;  %v1189_v14 = vld [vmem:[%s1187_s7 + $0x8] sm:$0xff]  ;;  %v1191_v22 = vld [vmem:[%s1187_s7 + $0x18] sm:$0xff] }
 0x210   : > { %v1192_v11 = vunpack.c.l.bf16 %v1188_v13  ;;  %v1196_v16 = vunpack.c.h.bf16 %v1188_v13  ;;  %v1193_v18 = vunpack.c.l.bf16 %v1189_v14  ;;  %v1197_v19 = vunpack.c.h.bf16 %v1189_v14  ;;  %v1190_v26 = vld [vmem:[%s1187_s7 + $0x10] sm:$0xff]  ;;  %v6638_v13 = vld [vmem:[%s6243_s28 + $0xc] ss:$16 sps:$4 sm:$0xff]   ;;  %v6644_v14 = vld [vmem:[%s6243_s28 + $0x8] ss:$16 sps:$4 sm:$0xff]   ;;  %s1955_s7 = scalar_lea.vmem [#allocation2], %s4940_s27 }
 0x211   : > { %v1195_v30 = vunpack.c.l.bf16 %v1191_v22  ;;  %v1199_v31 = vunpack.c.h.bf16 %v1191_v22  ;;  %v1194_v32 = vunpack.c.l.bf16 %v1190_v26  ;;  %v1198_v33 = vunpack.c.h.bf16 %v1190_v26  ;;  %2204 = vmatprep.subr.bf16.mxu1 %v6638_v13  ;;  %v6670_v22 = vld [vmem:[%s6243_s28 + $0x4c] ss:$16 sps:$4 sm:$0xff]   ;;  %v6689_v26 = vld [vmem:[%s6243_s28 + $0x60] ss:$16 sps:$4 sm:$0xff]  }
 0x212   : > { %v1478_v20 = vadd.f32 %v1426_v15, %v1192_v11  ;;  %v1482_v59 = vadd.f32 %v1430_v8, %v1196_v16  ;;  %v1479_v23 = vadd.f32 %v1428_v7, %v1193_v18  ;;  %v1483_v21 = vadd.f32 %v1432_v10, %v1197_v19  ;;  %v6616_v7 = vpop.permute.xlu0 %1543  ;;  %v6641_v11 = vld [vmem:[%s6243_s28] ss:$16 sps:$4 sm:$0xff]   ;;  %v6651_v16 = vld [vmem:[%s6243_s28 + $0x24] ss:$16 sps:$4 sm:$0xff]   ;;  %v6654_v18 = vld [vmem:[%s6243_s28 + $0x2c] ss:$16 sps:$4 sm:$0xff]  }
 0x213   : > { %v1481_v34 = vadd.f32 %v1471_v55, %v1195_v30  ;;  %v1485_v35 = vadd.f32 %v1475_v17, %v1199_v31  ;;  %v1480_v27 = vadd.f32 %v1469_v12, %v1194_v32  ;;  %v1484_v61 = vadd.f32 %v1473_v9, %v1198_v33  ;;  %v6635_v17 = vld [vmem:[%s6243_s28 + $0x4] ss:$16 sps:$4 sm:$0xff]   ;;  %v6657_v19 = vld [vmem:[%s6243_s28 + $0x20] ss:$16 sps:$4 sm:$0xff]   ;;  %v6702_v30 = vld [vmem:[%s6243_s28 + $0x8c] ss:$16 sps:$4 sm:$0xff]  }
 0x214   : > { %v4594_v24 = vmul.f32 -1.442695, %v1478_v20  ;;  %v4595_v25 = vmul.f32 -1.442695, %v1482_v59  ;;  %v4596_v28 = vmul.f32 -1.442695, %v1479_v23  ;;  %2161 = vmatprep.subr.bf16.mxu0 %v6635_v17 }
 0x215   : > { %v4597_v29 = vmul.f32 -1.442695, %v1483_v21  ;;  %v4598_v36 = vmul.f32 -1.442695, %v1481_v34  ;;  %v4599_v37 = vmul.f32 -1.442695, %v1485_v35 }
 0x216   : > { %5371 = vpow2.f32 %v4594_v24  ;;  %vm1546_vm1 = vcmp.eq.s32.totalorder %v6616_v7, 1  ;;  %v6660_v20 = vld [vmem:[%s6243_s28 + $0x28] ss:$16 sps:$4 sm:$0xff]   ;;  %v6667_v59 = vld [vmem:[%s6243_s28 + $0x44] ss:$16 sps:$4 sm:$0xff]  }
 0x217   : > { %5373 = vpow2.f32 %v4596_v28  ;;  %vm4639_vm2 = vmpackc.low %vm1546_vm1, %vm1545_vm0  ;;  %v6673_v23 = vld [vmem:[%s6243_s28 + $0x40] ss:$16 sps:$4 sm:$0xff]   ;;  %v6676_v21 = vld [vmem:[%s6243_s28 + $0x48] ss:$16 sps:$4 sm:$0xff]  }
 0x218   : > { %5375 = vpow2.f32 %v4595_v25  ;;  %v6683_v24 = vld [vmem:[%s6243_s28 + $0x64] ss:$16 sps:$4 sm:$0xff]   ;;  %v6686_v25 = vld [vmem:[%s6243_s28 + $0x6c] ss:$16 sps:$4 sm:$0xff]   ;;  %v6692_v28 = vld [vmem:[%s6243_s28 + $0x68] ss:$16 sps:$4 sm:$0xff]  }
 0x219   : > { %5377 = vpow2.f32 %v4597_v29  ;;  %v6699_v29 = vld [vmem:[%s6243_s28 + $0x84] ss:$16 sps:$4 sm:$0xff]   ;;  %v6705_v31 = vld [vmem:[%s6243_s28 + $0x80] ss:$16 sps:$4 sm:$0xff]   ;;  %v6708_v32 = vld [vmem:[%s6243_s28 + $0x88] ss:$16 sps:$4 sm:$0xff]  }
 0x21a   : > { %5379 = vtanh.f32 %v1480_v27  ;;  %v6715_v33 = vld [vmem:[%s6243_s28 + $0xa4] ss:$16 sps:$4 sm:$0xff]   ;;  %v6718_v34 = vld [vmem:[%s6243_s28 + $0xac] ss:$16 sps:$4 sm:$0xff]   ;;  %v6721_v35 = vld [vmem:[%s6243_s28 + $0xa0] ss:$16 sps:$4 sm:$0xff]  }
 0x21b   : > { %5381 = vtanh.f32 %v1484_v61  ;;  %v6724_v27 = vld [vmem:[%s6243_s28 + $0xa8] ss:$16 sps:$4 sm:$0xff]   ;;  %v6731_v61 = vld [vmem:[%s6243_s28 + $0xc4] ss:$16 sps:$4 sm:$0xff]  }
 0x21c   : > { %5383 = vpow2.f32 %v4598_v36  ;;  %v6734_v36 = vld [vmem:[%s6243_s28 + $0xcc] ss:$16 sps:$4 sm:$0xff]  }
 0x21d   : > { %5385 = vpow2.f32 %v4599_v37  ;;  %v6737_v37 = vld [vmem:[%s6243_s28 + $0xc0] ss:$16 sps:$4 sm:$0xff]  }
 0x220   : > { %v5372_v38 = vpop.eup %5371 }
 0x221   : > { %v5374_v39 = vpop.eup %5373  ;;  %v1492_v40 = vadd.f32 1.0, %v5372_v38  ;;  %v6740_v38 = vld [vmem:[%s6243_s28 + $0xc8] ss:$16 sps:$4 sm:$0xff]  }
 0x222   : > { %v5376_v41 = vpop.eup %5375  ;;  %v1504_v42 = vadd.f32 1.0, %v5374_v39  ;;  %v6747_v39 = vld [vmem:[%s6243_s28 + $0xe4] ss:$16 sps:$4 sm:$0xff]  }
 0x223   : > { %v5378_v43 = vpop.eup %5377  ;;  %5387 = vrcp.f32 %v1492_v40  ;;  %v1493_v44 = vadd.f32 1.0, %v5376_v41  ;;  %v6750_v40 = vld [vmem:[%s6243_s28 + $0xec] ss:$16 sps:$4 sm:$0xff]   ;;  %v6753_v41 = vld [vmem:[%s6243_s28 + $0xe0] ss:$16 sps:$4 sm:$0xff]  }
 0x224   : > { %5389 = vrcp.f32 %v1504_v42  ;;  %v1505_v45 = vadd.f32 1.0, %v5378_v43  ;;  %v5380_v46 = vpop.eup %5379  ;;  %v6756_v42 = vld [vmem:[%s6243_s28 + $0xe8] ss:$16 sps:$4 sm:$0xff]   ;;  %v1571_v43 = vld [vmem:[%s1570_s2] sm:$0xff] }
 0x225   : > { %5391 = vrcp.f32 %v1493_v44  ;;  %v5382_v47 = vpop.eup %5381  ;;  %v1572_v44 = vld [vmem:[%s1570_s2 + $0x8] sm:$0xff] }
 0x226   : > { %5393 = vrcp.f32 %v1505_v45  ;;  %v5384_v48 = vpop.eup %5383  ;;  %v1575_v45 = vunpack.c.l.bf16 %v1571_v43 }
 0x227   : > { %v5386_v49 = vpop.eup %5385  ;;  %v1518_v52 = vadd.f32 1.0, %v5384_v48  ;;  %v1576_v48 = vunpack.c.l.bf16 %v1572_v44 }
 0x228   : > { %v1519_v58 = vadd.f32 1.0, %v5386_v49 }
 0x229   : > { %5395 = vrcp.f32 %v1518_v52  ;;  %v1579_v52 = vunpack.c.h.bf16 %v1571_v43 }
 0x22d   : > { %v5388_v50 = vpop.eup %5387 }
 0x22e   : > { %v5390_v51 = vpop.eup %5389  ;;  %v1526_v54 = vmul.f32 %v5388_v50, %v5380_v46 }
 0x22f   : > { %v5392_v56 = vpop.eup %5391  ;;  %v1524_v57 = vmul.f32 0.0, %v5390_v51 }
 0x230   : > { %v5394_v53 = vpop.eup %5393  ;;  %v1527_v60 = vmul.f32 %v5392_v56, %v5382_v47 }
 0x231   : > { %v6601_v62 = vadd.f32 %v1526_v54, %v1524_v57  ;;  %v1525_v63 = vmul.f32 0.0, %v5394_v53  ;;  %v1580_v53 = vunpack.c.h.bf16 %v1572_v44 }
 0x233   : > { %5397 = vtanh.f32 %v6601_v62  ;;  %v6604_v1 = vadd.f32 %v1527_v60, %v1525_v63  ;;  %v5396_v3 = vpop.eup %5395  ;;  %v1574_v60 = vld [vmem:[%s1570_s2 + $0x18] sm:$0xff] }
 0x234   : > { %5399 = vrcp.f32 %v1519_v58 }
 0x235   : > { %5401 = vtanh.f32 %v6604_v1 }
 0x23d   : > { %v5398_v4 = vpop.eup %5397 }
 0x23e   : > { %v5400_v5 = vpop.eup %5399  ;;  %v1532_v6 = vmul.f32 %v5398_v4, %v5396_v3 }
 0x23f   : > { %v5402_v15 = vpop.eup %5401 }
 0x240   : > { %v6614_v12 = vsel %vm1545_vm0, %v1532_v6, 0.0  ;;  %v1533_v55 = vmul.f32 %v5402_v15, %v5400_v5 }
 0x242   : > { %v6624_v8 = vsel %vm1546_vm1, %v1533_v55, 0.0  ;;  %v4640_v9 = vpack.c.bf16 %v1533_v55, %v1532_v6  ;;  %v1573_v55 = vld [vmem:[%s1570_s2 + $0x10] sm:$0xff]  ;;  %s2718_s2 = scalar_lea.vmem %s6619_s6, %s4947_s16 [#allocation11]  ;;  %s4959_s16 = sshll.u32 %s6436_s0, 3 }
 0x243   : > { %v4967_v10 = vpack.c.bf16 %v6624_v8, %v6614_v12  ;;  %v1577_v43 = vunpack.c.l.bf16 %v1573_v55  ;;  %v1581_v44 = vunpack.c.h.bf16 %v1573_v55 }
 0x244   : > { %4641 = vmatmul.mubr.msk.bf16.vlgmr.msra.gmra.mrb[36].mxu0 %vm4639_vm2, %v4640_v9  ;;  %4644 = vmatmul.mubr.msk.bf16.vlgmr.msra.gmra.mrb[36].mxu1 %vm4639_vm2, %v4640_v9  ;;  %v1578_v9 = vunpack.c.l.bf16 %v1574_v60 }
 0x245   : > { %4968 = vst [vmem:[%s1561_s30] sm:$0xff] %v4967_v10   ;;  %2193 = vmatprep.mubr.bf16.mxu0 %v5874_v0  ;;  %2236 = vmatprep.mubr.bf16.mxu1 %v5874_v0  ;;  %s2337_s30 = sshra.s32 %s4700_s5, 4 }
 0x246   : > { %2162 = vmatpush1.bf16.msra.mxu0 %v6641_v11  ;;  %2205 = vmatpush1.bf16.msra.mxu1 %v6644_v14  ;;  %s4944_s18 = sshll.u32 %s2337_s30, 5 }
 0x247   : > { %2163 = vmatprep.subr.bf16.mxu0 %v6651_v16  ;;  %2206 = vmatprep.subr.bf16.mxu1 %v6654_v18  ;;  %s2341_s24 = scalar_lea.vmem [#allocation2], %s4944_s18 }
 0x24a   : > { %2164 = vmatpush1.bf16.msra.mxu0 %v6657_v19  ;;  %2207 = vmatpush1.bf16.msra.mxu1 %v6660_v20 }
 0x24b   : > { %2165 = vmatprep.subr.bf16.mxu0 %v6667_v59  ;;  %2208 = vmatprep.subr.bf16.mxu1 %v6670_v22 }
 0x24e   : > { %2166 = vmatpush1.bf16.msra.mxu0 %v6673_v23  ;;  %2209 = vmatpush1.bf16.msra.mxu1 %v6676_v21 }
 0x24f   : > { %2167 = vmatprep.subr.bf16.mxu0 %v6683_v24  ;;  %2210 = vmatprep.subr.bf16.mxu1 %v6686_v25 }
 0x252   : > { %2168 = vmatpush1.bf16.msra.mxu0 %v6689_v26  ;;  %2211 = vmatpush1.bf16.msra.mxu1 %v6692_v28 }
 0x253   : > { %2169 = vmatprep.subr.bf16.mxu0 %v6699_v29  ;;  %2212 = vmatprep.subr.bf16.mxu1 %v6702_v30 }
 0x256   : > { %2170 = vmatpush1.bf16.msra.mxu0 %v6705_v31  ;;  %2213 = vmatpush1.bf16.msra.mxu1 %v6708_v32 }
 0x257   : > { %2171 = vmatprep.subr.bf16.mxu0 %v6715_v33  ;;  %2214 = vmatprep.subr.bf16.mxu1 %v6718_v34 }
 0x25a   : > { %2172 = vmatpush1.bf16.msra.mxu0 %v6721_v35  ;;  %2215 = vmatpush1.bf16.msra.mxu1 %v6724_v27 }
 0x25b   : > { %2173 = vmatprep.subr.bf16.mxu0 %v6731_v61  ;;  %2216 = vmatprep.subr.bf16.mxu1 %v6734_v36 }
 0x25e   : > { %2174 = vmatpush1.bf16.msra.mxu0 %v6737_v37  ;;  %2217 = vmatpush1.bf16.msra.mxu1 %v6740_v38 }
 0x25f   : > { %2175 = vmatprep.subr.bf16.mxu0 %v6747_v39  ;;  %2218 = vmatprep.subr.bf16.mxu1 %v6750_v40 }
 0x262   : > { %2176 = vmatpush1.bf16.msra.mxu0 %v6753_v41  ;;  %2219 = vmatpush1.bf16.msra.mxu1 %v6756_v42 }
 0x263   : > { %2547 = vmatprep.subr.bf16.mxu0 %v6635_v17  ;;  %2590 = vmatprep.subr.bf16.mxu1 %v6638_v13 }
 0x317   : > { %v1809_v46 = vpop.f32.mrb[36].mxu0  ;;  %v1852_v47 = vpop.f32.mrb[36].mxu1 }
 0x318   : > { %v1861_v49 = vadd.f32 %v1809_v46, %v1575_v45  ;;  %v1811_v50 = vpop.f32.mrb[37].mxu0  ;;  %v1854_v51 = vpop.f32.mrb[37].mxu1  ;;  %v1582_v46 = vunpack.c.h.bf16 %v1574_v60 }
 0x319   : > { %v1862_v54 = vadd.f32 %v1811_v50, %v1576_v48  ;;  %v1813_v56 = vpop.f32.mrb[38].mxu0  ;;  %v1856_v57 = vpop.f32.mrb[38].mxu1  ;;  %v1864_v45 = vadd.f32 %v1854_v51, %v1578_v9  ;;  %v1863_v48 = vadd.f32 %v1852_v47, %v1577_v43  ;;  %v1549_v9 = vsel %vm1545_vm0, %v6601_v62, 0.0 }
 0x31a   : > { %v4645_v58 = vmul.f32 -1.442695, %v1861_v49  ;;  %v1865_v63 = vadd.f32 %v1813_v56, %v1579_v52  ;;  %v1815_v3 = vpop.f32.mrb[39].mxu0  ;;  %v1858_v4 = vpop.f32.mrb[39].mxu1  ;;  %v1867_v52 = vadd.f32 %v1856_v57, %v1581_v44 }
 0x31b   : > { %v4647_v5 = vmul.f32 -1.442695, %v1862_v54  ;;  %v1866_v6 = vadd.f32 %v1815_v3, %v1580_v53  ;;  %v4649_v49 = vmul.f32 -1.442695, %v1864_v45  ;;  %v1868_v50 = vadd.f32 %v1858_v4, %v1582_v46 }
 0x31c   : > { %5403 = vpow2.f32 %v4645_v58  ;;  %v4646_v15 = vmul.f32 -1.442695, %v1865_v63 }
 0x31d   : > { %5405 = vpow2.f32 %v4647_v5  ;;  %v4648_v10 = vmul.f32 -1.442695, %v1866_v6  ;;  %v4650_v58 = vmul.f32 -1.442695, %v1868_v50 }
 0x31e   : > { %5407 = vpow2.f32 %v4646_v15  ;;  %v1924_v15 = vpop.permute.xlu1 %1923 }
 0x31f   : > { %5409 = vpow2.f32 %v4648_v10  ;;  %vm1928_vm3 = vcmp.eq.s32.totalorder %v1924_v15, 1 }
 0x320   : > { %5411 = vtanh.f32 %v1863_v48 }
 0x321   : > { %5413 = vpow2.f32 %v4649_v49 }
 0x322   : > { %5415 = vtanh.f32 %v1867_v52  ;;  %v1550_v52 = vsel %vm1546_vm1, %v6604_v1, 0.0  ;;  %v1927_v62 = vpop.permute.xlu1 %1926 }
 0x323   : > { %vm1929_vm4 = vcmp.eq.s32.totalorder %v1927_v62, 1 }
 0x326   : > { %v5404_v56 = vpop.eup %5403 }
 0x327   : > { %v5406_v54 = vpop.eup %5405  ;;  %v1875_v53 = vadd.f32 1.0, %v5404_v56 }
 0x328   : > { %v1887_v63 = vadd.f32 1.0, %v5406_v54  ;;  %v5408_v3 = vpop.eup %5407 }
 0x329   : > { %5417 = vrcp.f32 %v1875_v53  ;;  %v1876_v51 = vadd.f32 1.0, %v5408_v3  ;;  %v5410_v5 = vpop.eup %5409 }
 0x32a   : > { %5419 = vrcp.f32 %v1887_v63  ;;  %v1888_v47 = vadd.f32 1.0, %v5410_v5  ;;  %v5412_v60 = vpop.eup %5411 }
 0x32b   : > { %5421 = vpow2.f32 %v4650_v58  ;;  %v5414_v4 = vpop.eup %5413 }
 0x32c   : > { %5423 = vrcp.f32 %v1876_v51  ;;  %v5416_v57 = vpop.eup %5415  ;;  %v1901_v10 = vadd.f32 1.0, %v5414_v4 }
 0x32d   : > { %5425 = vrcp.f32 %v1888_v47 }
 0x32e   : > { %5427 = vrcp.f32 %v1901_v10 }
 0x333   : > { %v5418_v6 = vpop.eup %5417 }
 0x334   : > { %v5420_v55 = vpop.eup %5419  ;;  %v1909_v45 = vmul.f32 %v5418_v6, %v5412_v60 }
 0x335   : > { %v5422_v43 = vpop.eup %5421  ;;  %v1907_v46 = vmul.f32 %v5420_v55, %v1549_v9 }
 0x336   : > { %v5424_v48 = vpop.eup %5423  ;;  %v1902_v56 = vadd.f32 1.0, %v5422_v43 }
 0x337   : > { %v1911_v44 = vadd.f32 %v1909_v45, %v1907_v46  ;;  %v1910_v49 = vmul.f32 %v5424_v48, %v5416_v57  ;;  %v5426_v50 = vpop.eup %5425 }
 0x338   : > { %v1908_v54 = vmul.f32 %v5426_v50, %v1550_v52  ;;  %v5428_v63 = vpop.eup %5427 }
 0x339   : > { %5429 = vtanh.f32 %v1911_v44  ;;  %v6772_v2 = vsel %vm1928_vm3, %v1911_v44, %v1549_v9 }
 0x33a   : > { %v1912_v53 = vadd.f32 %v1910_v49, %v1908_v54  ;;  %5431 = vrcp.f32 %v1902_v56 }
 0x33c   : > { %5433 = vtanh.f32 %v1912_v53  ;;  %v6775_v58 = vsel %vm1929_vm4, %v1912_v53, %v1550_v52 }
 0x343   : > { %v5430_v7 = vpop.eup %5429 }
 0x344   : > { %v1915_v1 = vmul.f32 %v5430_v7, %v5428_v63  ;;  %v5432_v3 = vpop.eup %5431 }
 0x346   : > { %v5434_v51 = vpop.eup %5433  ;;  %v6780_v47 = vsel %vm1928_vm3, %v1915_v1, %v6614_v12  ;;  %v1934_v60 = vsel %vm1928_vm3, %v1915_v1, 0.0  ;;  %v1956_v12 = vld [vmem:[%s1955_s7] sm:$0xff] }
 0x347   : > { %v1916_v5 = vmul.f32 %v5434_v51, %v5432_v3  ;;  %v1960_v15 = vunpack.c.l.bf16 %v1956_v12  ;;  %v1964_v44 = vunpack.c.h.bf16 %v1956_v12  ;;  %v1958_v3 = vld [vmem:[%s1955_s7 + $0x10] sm:$0xff] }
 0x348   : > { %v1966_v12 = vunpack.c.h.bf16 %v1958_v3 }
 0x349   : > { %v6786_v4 = vsel %vm1929_vm4, %v1916_v5, %v6624_v8  ;;  %v1935_v57 = vsel %vm1929_vm4, %v1916_v5, 0.0  ;;  %v1957_v8 = vld [vmem:[%s1955_s7 + $0x8] sm:$0xff] }
 0x34a   : > { %v4972_v6 = vpack.c.bf16 %v1935_v57, %v1934_v60  ;;  %v1968_v55 = vpack.c.bf16 %v6786_v4, %v6780_v47  ;;  %v1961_v45 = vunpack.c.l.bf16 %v1957_v8  ;;  %v1962_v57 = vunpack.c.l.bf16 %v1958_v3 }
 0x34c   : > { %4973 = vst [vmem:[%s1946_s25] sm:$0xff] %v4972_v6   ;;  %2194 = vmatmul.mubr.bf16.vlgmr.msra.gmra.mrb[40].mxu0 %v1968_v55  ;;  %2237 = vmatmul.mubr.bf16.vlgmr.msra.gmra.mrb[40].mxu1 %v1968_v55  ;;  %s4948_s25 = sshll.u32 %s2723_s14, 5  ;;  %s3881_s14 = sshra.s32 %s4880_s17, 4 }
 0x34d   : > { %2548 = vmatpush1.bf16.msra.mxu0 %v6641_v11  ;;  %2591 = vmatpush1.bf16.msra.mxu1 %v6644_v14  ;;  %s2727_s8 = scalar_lea.vmem [#allocation2], %s4948_s25  ;;  %s4960_s25 = sshll.u32 %s3881_s14, 5 }
 0x34e   : > { %2549 = vmatprep.subr.bf16.mxu0 %v6651_v16  ;;  %2592 = vmatprep.subr.bf16.mxu1 %v6654_v18 }
 0x34f   : > { %2579 = vmatprep.mubr.bf16.mxu0 %v5874_v0  ;;  %2622 = vmatprep.mubr.bf16.mxu1 %v5874_v0 }
 0x351   : > { %2550 = vmatpush1.bf16.msra.mxu0 %v6657_v19  ;;  %2593 = vmatpush1.bf16.msra.mxu1 %v6660_v20 }
 0x352   : > { %2551 = vmatprep.subr.bf16.mxu0 %v6667_v59  ;;  %2594 = vmatprep.subr.bf16.mxu1 %v6670_v22 }
 0x355   : > { %2552 = vmatpush1.bf16.msra.mxu0 %v6673_v23  ;;  %2595 = vmatpush1.bf16.msra.mxu1 %v6676_v21 }
 0x356   : > { %2553 = vmatprep.subr.bf16.mxu0 %v6683_v24  ;;  %2596 = vmatprep.subr.bf16.mxu1 %v6686_v25 }
 0x359   : > { %2554 = vmatpush1.bf16.msra.mxu0 %v6689_v26  ;;  %2597 = vmatpush1.bf16.msra.mxu1 %v6692_v28 }
 0x35a   : > { %2555 = vmatprep.subr.bf16.mxu0 %v6699_v29  ;;  %2598 = vmatprep.subr.bf16.mxu1 %v6702_v30 }
 0x35d   : > { %2556 = vmatpush1.bf16.msra.mxu0 %v6705_v31  ;;  %2599 = vmatpush1.bf16.msra.mxu1 %v6708_v32 }
 0x35e   : > { %2557 = vmatprep.subr.bf16.mxu0 %v6715_v33  ;;  %2600 = vmatprep.subr.bf16.mxu1 %v6718_v34 }
 0x361   : > { %2558 = vmatpush1.bf16.msra.mxu0 %v6721_v35  ;;  %2601 = vmatpush1.bf16.msra.mxu1 %v6724_v27 }
 0x362   : > { %2559 = vmatprep.subr.bf16.mxu0 %v6731_v61  ;;  %2602 = vmatprep.subr.bf16.mxu1 %v6734_v36 }
 0x365   : > { %2560 = vmatpush1.bf16.msra.mxu0 %v6737_v37  ;;  %2603 = vmatpush1.bf16.msra.mxu1 %v6740_v38 }
 0x366   : > { %2561 = vmatprep.subr.bf16.mxu0 %v6747_v39  ;;  %2604 = vmatprep.subr.bf16.mxu1 %v6750_v40 }
 0x369   : > { %2562 = vmatpush1.bf16.msra.mxu0 %v6753_v41  ;;  %2605 = vmatpush1.bf16.msra.mxu1 %v6756_v42 }
 0x36a   : > { %2933 = vmatprep.subr.bf16.mxu0 %v6635_v17  ;;  %2976 = vmatprep.subr.bf16.mxu1 %v6638_v13  ;;  %v1965_v17 = vunpack.c.h.bf16 %v1957_v8  ;;  %v1959_v13 = vld [vmem:[%s1955_s7 + $0x18] sm:$0xff] }
 0x36b   : > { %v1963_v51 = vunpack.c.l.bf16 %v1959_v13  ;;  %v1967_v6 = vunpack.c.h.bf16 %v1959_v13 }
 0x41f   : > { %v2195_v9 = vpop.f32.mrb[40].mxu0  ;;  %v2238_v10 = vpop.f32.mrb[40].mxu1 }
 0x420   : > { %v2247_v43 = vadd.f32 %v2195_v9, %v1960_v15  ;;  %v2197_v46 = vpop.f32.mrb[41].mxu0  ;;  %v2240_v48 = vpop.f32.mrb[41].mxu1  ;;  %v2249_v55 = vadd.f32 %v2238_v10, %v1962_v57 }
 0x421   : > { %v2248_v49 = vadd.f32 %v2197_v46, %v1961_v45  ;;  %v2199_v50 = vpop.f32.mrb[42].mxu0  ;;  %v2242_v52 = vpop.f32.mrb[42].mxu1  ;;  %v2250_v60 = vadd.f32 %v2240_v48, %v1963_v51 }
 0x422   : > { %v4690_v56 = vmul.f32 -1.442695, %v2247_v43  ;;  %v2251_v62 = vadd.f32 %v2199_v50, %v1964_v44  ;;  %v2201_v54 = vpop.f32.mrb[43].mxu0  ;;  %v2244_v53 = vpop.f32.mrb[43].mxu1  ;;  %v2253_v9 = vadd.f32 %v2242_v52, %v1966_v12 }
 0x423   : > { %v4692_v63 = vmul.f32 -1.442695, %v2248_v49  ;;  %v2252_v7 = vadd.f32 %v2201_v54, %v1965_v17  ;;  %v4694_v8 = vmul.f32 -1.442695, %v2250_v60  ;;  %v2254_v15 = vadd.f32 %v2244_v53, %v1967_v6  ;;  %v2310_v51 = vpop.permute.xlu0 %2309 }
 0x424   : > { %5435 = vpow2.f32 %v4690_v56  ;;  %v4691_v1 = vmul.f32 -1.442695, %v2251_v62  ;;  %vm2314_vm5 = vcmp.eq.s32.totalorder %v2310_v51, 1 }
 0x425   : > { %5437 = vpow2.f32 %v4692_v63  ;;  %v4693_v5 = vmul.f32 -1.442695, %v2252_v7  ;;  %v4695_v44 = vmul.f32 -1.442695, %v2254_v15 }
 0x426   : > { %5439 = vpow2.f32 %v4691_v1 }
 0x427   : > { %5441 = vpow2.f32 %v4693_v5 }
 0x428   : > { %5443 = vtanh.f32 %v2249_v55 }
 0x429   : > { %5445 = vpow2.f32 %v4694_v8  ;;  %v2313_v8 = vpop.permute.xlu1 %2312 }
 0x42a   : > { %5447 = vtanh.f32 %v2253_v9  ;;  %vm2315_vm6 = vcmp.eq.s32.totalorder %v2313_v8, 1 }
 0x42e   : > { %v5436_v45 = vpop.eup %5435 }
 0x42f   : > { %v5438_v43 = vpop.eup %5437  ;;  %v2261_v46 = vadd.f32 1.0, %v5436_v45 }
 0x430   : > { %v2273_v49 = vadd.f32 1.0, %v5438_v43  ;;  %v5440_v50 = vpop.eup %5439 }
 0x431   : > { %5449 = vrcp.f32 %v2261_v46  ;;  %v2262_v48 = vadd.f32 1.0, %v5440_v50  ;;  %v5442_v17 = vpop.eup %5441 }
 0x432   : > { %5451 = vrcp.f32 %v2273_v49  ;;  %v2274_v10 = vadd.f32 1.0, %v5442_v17  ;;  %v5444_v56 = vpop.eup %5443 }
 0x433   : > { %5453 = vpow2.f32 %v4695_v44  ;;  %v5446_v13 = vpop.eup %5445 }
 0x434   : > { %5455 = vrcp.f32 %v2262_v48  ;;  %v5448_v52 = vpop.eup %5447  ;;  %v2287_v63 = vadd.f32 1.0, %v5446_v13 }
 0x435   : > { %5457 = vrcp.f32 %v2274_v10 }
 0x436   : > { %5459 = vrcp.f32 %v2287_v63 }
 0x43b   : > { %v5450_v62 = vpop.eup %5449 }
 0x43c   : > { %v5452_v54 = vpop.eup %5451  ;;  %v2295_v53 = vmul.f32 %v5450_v62, %v5444_v56 }
 0x43d   : > { %v5454_v7 = vpop.eup %5453  ;;  %v2293_v1 = vmul.f32 %v5452_v54, %v6772_v2 }
 0x43e   : > { %v5456_v3 = vpop.eup %5455  ;;  %v2288_v6 = vadd.f32 1.0, %v5454_v7 }
 0x43f   : > { %v2297_v5 = vadd.f32 %v2295_v53, %v2293_v1  ;;  %v2296_v60 = vmul.f32 %v5456_v3, %v5448_v52  ;;  %v5458_v57 = vpop.eup %5457 }
 0x440   : > { %v2294_v55 = vmul.f32 %v5458_v57, %v6775_v58  ;;  %v5460_v45 = vpop.eup %5459 }
 0x441   : > { %5461 = vtanh.f32 %v2297_v5  ;;  %v6830_v12 = vsel %vm2314_vm5, %v2297_v5, %v6772_v2 }
 0x442   : > { %v2298_v15 = vadd.f32 %v2296_v60, %v2294_v55  ;;  %5463 = vrcp.f32 %v2288_v6 }
 0x444   : > { %5465 = vtanh.f32 %v2298_v15  ;;  %v6833_v9 = vsel %vm2315_vm6, %v2298_v15, %v6775_v58 }
 0x44b   : > { %v5462_v43 = vpop.eup %5461 }
 0x44c   : > { %v2301_v46 = vmul.f32 %v5462_v43, %v5460_v45  ;;  %v5464_v44 = vpop.eup %5463 }
 0x44e   : > { %v5466_v49 = vpop.eup %5465  ;;  %v6839_v2 = vsel %vm2314_vm5, %v2301_v46, %v6780_v47  ;;  %v2320_v17 = vsel %vm2314_vm5, %v2301_v46, 0.0 }
 0x44f   : > { %v2302_v50 = vmul.f32 %v5466_v49, %v5464_v44  ;;  %v2696_v44 = vpop.permute.xlu0 %2695 }
 0x450   : > { %vm2700_vm7 = vcmp.eq.s32.totalorder %v2696_v44, 1 }
 0x451   : > { %v6842_v48 = vsel %vm2315_vm6, %v2302_v50, %v6786_v4  ;;  %v2321_v10 = vsel %vm2315_vm6, %v2302_v50, 0.0 }
 0x452   : > { %v4977_v58 = vpack.c.bf16 %v2321_v10, %v2320_v17  ;;  %v2354_v56 = vpack.c.bf16 %v6842_v48, %v6839_v2 }
 0x454   : > { %4978 = vst [vmem:[%s2332_s10] sm:$0xff] %v4977_v58   ;;  %2580 = vmatmul.mubr.bf16.vlgmr.msra.gmra.mrb[44].mxu0 %v2354_v56  ;;  %2623 = vmatmul.mubr.bf16.vlgmr.msra.gmra.mrb[44].mxu1 %v2354_v56  ;;  %s4955_s10 = sshll.u32 %s6424_s26, 3 }
 0x455   : > { %2934 = vmatpush1.bf16.msra.mxu0 %v6641_v11  ;;  %2977 = vmatpush1.bf16.msra.mxu1 %v6644_v14  ;;  %v2342_v11 = vld [vmem:[%s2341_s24] sm:$0xff]  ;;  %v2343_v14 = vld [vmem:[%s2341_s24 + $0x8] sm:$0xff]  ;;  %s3490_s5 = scalar_lea.vmem %s6619_s6, %s4955_s10 [#allocation11]  ;;  %s7277_s10 = sld [smem:[#allocation22_spill]] }
 0x456   : > { %2935 = vmatprep.subr.bf16.mxu0 %v6651_v16  ;;  %2978 = vmatprep.subr.bf16.mxu1 %v6654_v18  ;;  %v2346_v16 = vunpack.c.l.bf16 %v2342_v11 }
 0x457   : > { %2965 = vmatprep.mubr.bf16.mxu0 %v5874_v0  ;;  %3008 = vmatprep.mubr.bf16.mxu1 %v5874_v0 }
 0x459   : > { %2936 = vmatpush1.bf16.msra.mxu0 %v6657_v19  ;;  %2979 = vmatpush1.bf16.msra.mxu1 %v6660_v20  ;;  %v2347_v20 = vunpack.c.l.bf16 %v2343_v14 }
 0x45a   : > { %2937 = vmatprep.subr.bf16.mxu0 %v6667_v59  ;;  %2980 = vmatprep.subr.bf16.mxu1 %v6670_v22 }
 0x45d   : > { %2938 = vmatpush1.bf16.msra.mxu0 %v6673_v23  ;;  %2981 = vmatpush1.bf16.msra.mxu1 %v6676_v21  ;;  %v2350_v21 = vunpack.c.h.bf16 %v2342_v11  ;;  %v2699_v11 = vpop.permute.xlu1 %2698 }
 0x45e   : > { %2939 = vmatprep.subr.bf16.mxu0 %v6683_v24  ;;  %2982 = vmatprep.subr.bf16.mxu1 %v6686_v25  ;;  %vm2701_vm8 = vcmp.eq.s32.totalorder %v2699_v11, 1  ;;  %v2731_v11 = vld [vmem:[%s2727_s8 + $0x18] sm:$0xff] }
 0x461   : > { %2940 = vmatpush1.bf16.msra.mxu0 %v6689_v26  ;;  %2983 = vmatpush1.bf16.msra.mxu1 %v6692_v28  ;;  %v2351_v28 = vunpack.c.h.bf16 %v2343_v14 }
 0x462   : > { %2941 = vmatprep.subr.bf16.mxu0 %v6699_v29  ;;  %2984 = vmatprep.subr.bf16.mxu1 %v6702_v30  ;;  %v2345_v30 = vld [vmem:[%s2341_s24 + $0x18] sm:$0xff] }
 0x465   : > { %2942 = vmatpush1.bf16.msra.mxu0 %v6705_v31  ;;  %2985 = vmatpush1.bf16.msra.mxu1 %v6708_v32 }
 0x466   : > { %2943 = vmatprep.subr.bf16.mxu0 %v6715_v33  ;;  %2986 = vmatprep.subr.bf16.mxu1 %v6718_v34 }
 0x469   : > { %2944 = vmatpush1.bf16.msra.mxu0 %v6721_v35  ;;  %2987 = vmatpush1.bf16.msra.mxu1 %v6724_v27 }
 0x46a   : > { %2945 = vmatprep.subr.bf16.mxu0 %v6731_v61  ;;  %2988 = vmatprep.subr.bf16.mxu1 %v6734_v36  ;;  %v2344_v61 = vld [vmem:[%s2341_s24 + $0x10] sm:$0xff]  ;;  %v2349_v36 = vunpack.c.l.bf16 %v2345_v30 }
 0x46d   : > { %2946 = vmatpush1.bf16.msra.mxu0 %v6737_v37  ;;  %2989 = vmatpush1.bf16.msra.mxu1 %v6740_v38 }
 0x46e   : > { %2947 = vmatprep.subr.bf16.mxu0 %v6747_v39  ;;  %2990 = vmatprep.subr.bf16.mxu1 %v6750_v40  ;;  %v2348_v39 = vunpack.c.l.bf16 %v2344_v61  ;;  %v2353_v40 = vunpack.c.h.bf16 %v2345_v30  ;;  %v6920_v30 = vld [vmem:[%s6243_s28 + $0x24] ss:$16 sps:$4 sm:$0xff]  }
 0x471   : > { %2948 = vmatpush1.bf16.msra.mxu0 %v6753_v41  ;;  %2991 = vmatpush1.bf16.msra.mxu1 %v6756_v42  ;;  %v2352_v42 = vunpack.c.h.bf16 %v2344_v61  ;;  %v6945_v61 = vld [vmem:[%s6243_s28 + $0x48] ss:$16 sps:$4 sm:$0xff]  }
 0x527   : > { %v2581_v18 = vpop.f32.mrb[44].mxu0  ;;  %v2624_v19 = vpop.f32.mrb[44].mxu1 }
 0x528   : > { %v2633_v59 = vadd.f32 %v2581_v18, %v2346_v16  ;;  %v2583_v22 = vpop.f32.mrb[45].mxu0  ;;  %v2626_v23 = vpop.f32.mrb[45].mxu1  ;;  %v2635_v41 = vadd.f32 %v2624_v19, %v2348_v39  ;;  %v6961_v39 = vld [vmem:[%s6243_s28 + $0x68] ss:$16 sps:$4 sm:$0xff]  }
 0x529   : > { %v2634_v24 = vadd.f32 %v2583_v22, %v2347_v20  ;;  %v2585_v25 = vpop.f32.mrb[46].mxu0  ;;  %v2628_v26 = vpop.f32.mrb[46].mxu1  ;;  %v2636_v38 = vadd.f32 %v2626_v23, %v2349_v36  ;;  %v6952_v36 = vld [vmem:[%s6243_s28 + $0x64] ss:$16 sps:$4 sm:$0xff]  }
 0x52a   : > { %v4735_v29 = vmul.f32 -1.442695, %v2633_v59  ;;  %v2637_v31 = vadd.f32 %v2585_v25, %v2350_v21  ;;  %v2587_v32 = vpop.f32.mrb[47].mxu0  ;;  %v2630_v33 = vpop.f32.mrb[47].mxu1  ;;  %v2639_v13 = vadd.f32 %v2628_v26, %v2352_v42  ;;  %v6974_v42 = vld [vmem:[%s6243_s28 + $0x88] ss:$16 sps:$4 sm:$0xff]  }
 0x52b   : > { %v4737_v34 = vmul.f32 -1.442695, %v2634_v24  ;;  %v2638_v35 = vadd.f32 %v2587_v32, %v2351_v28  ;;  %v4739_v47 = vmul.f32 -1.442695, %v2636_v38  ;;  %v2640_v4 = vadd.f32 %v2630_v33, %v2353_v40  ;;  %v6910_v28 = vld [vmem:[%s6243_s28] ss:$16 sps:$4 sm:$0xff]  }
 0x52c   : > { %5467 = vpow2.f32 %v4735_v29  ;;  %v4736_v27 = vmul.f32 -1.442695, %v2637_v31  ;;  %v6913_v29 = vld [vmem:[%s6243_s28 + $0x8] ss:$16 sps:$4 sm:$0xff]   ;;  %v6923_v31 = vld [vmem:[%s6243_s28 + $0x2c] ss:$16 sps:$4 sm:$0xff]  }
 0x52d   : > { %5469 = vpow2.f32 %v4737_v34  ;;  %v4738_v37 = vmul.f32 -1.442695, %v2638_v35  ;;  %v4740_v53 = vmul.f32 -1.442695, %v2640_v4  ;;  %v6926_v32 = vld [vmem:[%s6243_s28 + $0x20] ss:$16 sps:$4 sm:$0xff]  }
 0x52e   : > { %5471 = vpow2.f32 %v4736_v27  ;;  %v6929_v33 = vld [vmem:[%s6243_s28 + $0x28] ss:$16 sps:$4 sm:$0xff]   ;;  %v6936_v34 = vld [vmem:[%s6243_s28 + $0x44] ss:$16 sps:$4 sm:$0xff]   ;;  %v6939_v35 = vld [vmem:[%s6243_s28 + $0x4c] ss:$16 sps:$4 sm:$0xff]  }
 0x52f   : > { %5473 = vpow2.f32 %v4738_v37  ;;  %v6942_v27 = vld [vmem:[%s6243_s28 + $0x40] ss:$16 sps:$4 sm:$0xff]   ;;  %v6955_v37 = vld [vmem:[%s6243_s28 + $0x6c] ss:$16 sps:$4 sm:$0xff]   ;;  %v6980_v4 = vld [vmem:[%s6243_s28 + $0xa4] ss:$16 sps:$4 sm:$0xff]  }
 0x530   : > { %5475 = vtanh.f32 %v2635_v41  ;;  %v6958_v38 = vld [vmem:[%s6243_s28 + $0x60] ss:$16 sps:$4 sm:$0xff]   ;;  %v6971_v41 = vld [vmem:[%s6243_s28 + $0x84] ss:$16 sps:$4 sm:$0xff]  }
 0x531   : > { %5477 = vpow2.f32 %v4739_v47  ;;  %v6968_v40 = vld [vmem:[%s6243_s28 + $0x80] ss:$16 sps:$4 sm:$0xff]   ;;  %v6977_v47 = vld [vmem:[%s6243_s28 + $0x8c] ss:$16 sps:$4 sm:$0xff]  }
 0x532   : > { %5479 = vtanh.f32 %v2639_v13  ;;  %v6984_v13 = vld [vmem:[%s6243_s28 + $0xac] ss:$16 sps:$4 sm:$0xff]  }
 0x536   : > { %v5468_v52 = vpop.eup %5467 }
 0x537   : > { %v5470_v62 = vpop.eup %5469  ;;  %v2647_v54 = vadd.f32 1.0, %v5468_v52  ;;  %v6989_v52 = vld [vmem:[%s6243_s28 + $0xa0] ss:$16 sps:$4 sm:$0xff]  }
 0x538   : > { %v2659_v63 = vadd.f32 1.0, %v5470_v62  ;;  %v5472_v7 = vpop.eup %5471  ;;  %v6994_v62 = vld [vmem:[%s6243_s28 + $0xa8] ss:$16 sps:$4 sm:$0xff]  }
 0x539   : > { %5481 = vrcp.f32 %v2647_v54  ;;  %v2648_v1 = vadd.f32 1.0, %v5472_v7  ;;  %v5474_v3 = vpop.eup %5473  ;;  %v6997_v54 = vld [vmem:[%s6243_s28 + $0xc4] ss:$16 sps:$4 sm:$0xff]   ;;  %v7010_v7 = vld [vmem:[%s6243_s28 + $0xc8] ss:$16 sps:$4 sm:$0xff]  }
 0x53a   : > { %5483 = vrcp.f32 %v2659_v63  ;;  %v2660_v51 = vadd.f32 1.0, %v5474_v3  ;;  %v5476_v5 = vpop.eup %5475  ;;  %v7005_v63 = vld [vmem:[%s6243_s28 + $0xc0] ss:$16 sps:$4 sm:$0xff]   ;;  %v7017_v3 = vld [vmem:[%s6243_s28 + $0xec] ss:$16 sps:$4 sm:$0xff]  }
 0x53b   : > { %5485 = vpow2.f32 %v4740_v53  ;;  %v5478_v60 = vpop.eup %5477  ;;  %v7001_v53 = vld [vmem:[%s6243_s28 + $0xcc] ss:$16 sps:$4 sm:$0xff]  }
 0x53c   : > { %5487 = vrcp.f32 %v2648_v1  ;;  %v5480_v57 = vpop.eup %5479  ;;  %v2673_v15 = vadd.f32 1.0, %v5478_v60  ;;  %v7013_v1 = vld [vmem:[%s6243_s28 + $0xe4] ss:$16 sps:$4 sm:$0xff]  }
 0x53d   : > { %5489 = vrcp.f32 %v2660_v51  ;;  %v7021_v51 = vld [vmem:[%s6243_s28 + $0xe0] ss:$16 sps:$4 sm:$0xff]  }
 0x53e   : > { %5491 = vrcp.f32 %v2673_v15  ;;  %v2728_v60 = vld [vmem:[%s2727_s8] sm:$0xff] }
 0x53f   : > { %v2736_v44 = vunpack.c.h.bf16 %v2728_v60 }
 0x543   : > { %v5482_v6 = vpop.eup %5481 }
 0x544   : > { %v5484_v55 = vpop.eup %5483  ;;  %v2681_v8 = vmul.f32 %v5482_v6, %v5476_v5  ;;  %v7026_v5 = vld [vmem:[%s6243_s28 + $0xe8] ss:$16 sps:$4 sm:$0xff]   ;;  %v2732_v6 = vunpack.c.l.bf16 %v2728_v60  ;;  %v2739_v60 = vunpack.c.h.bf16 %v2731_v11 }
 0x545   : > { %v5486_v45 = vpop.eup %5485  ;;  %v2679_v43 = vmul.f32 %v5484_v55, %v6830_v12 }
 0x546   : > { %v5488_v46 = vpop.eup %5487  ;;  %v2674_v10 = vadd.f32 1.0, %v5486_v45 }
 0x547   : > { %v2683_v49 = vadd.f32 %v2681_v8, %v2679_v43  ;;  %v2682_v50 = vmul.f32 %v5488_v46, %v5480_v57  ;;  %v5490_v17 = vpop.eup %5489  ;;  %v2729_v57 = vld [vmem:[%s2727_s8 + $0x8] sm:$0xff] }
 0x548   : > { %v2680_v58 = vmul.f32 %v5490_v17, %v6833_v9  ;;  %v5492_v18 = vpop.eup %5491  ;;  %v2733_v15 = vunpack.c.l.bf16 %v2729_v57 }
 0x549   : > { %5493 = vtanh.f32 %v2683_v49  ;;  %v6884_v56 = vsel %vm2700_vm7, %v2683_v49, %v6830_v12 }
 0x54a   : > { %v2684_v14 = vadd.f32 %v2682_v50, %v2680_v58  ;;  %5495 = vrcp.f32 %v2674_v10  ;;  %v2737_v10 = vunpack.c.h.bf16 %v2729_v57 }
 0x54c   : > { %5497 = vtanh.f32 %v2684_v14  ;;  %v6887_v16 = vsel %vm2701_vm8, %v2684_v14, %v6833_v9 }
 0x553   : > { %v5494_v19 = vpop.eup %5493 }
 0x554   : > { %v2687_v20 = vmul.f32 %v5494_v19, %v5492_v18  ;;  %v5496_v59 = vpop.eup %5495 }
 0x556   : > { %v5498_v22 = vpop.eup %5497  ;;  %v6893_v12 = vsel %vm2700_vm7, %v2687_v20, %v6839_v2  ;;  %v2706_v9 = vsel %vm2700_vm7, %v2687_v20, 0.0  ;;  %v6904_v2 = vld [vmem:[%s6243_s28 + $0x4] ss:$16 sps:$4 sm:$0xff]  }
 0x557   : > { %v2688_v23 = vmul.f32 %v5498_v22, %v5496_v59  ;;  %3319 = vmatprep.subr.bf16.mxu0 %v6904_v2 }
 0x559   : > { %v6896_v21 = vsel %vm2701_vm8, %v2688_v23, %v6842_v48  ;;  %v2707_v24 = vsel %vm2701_vm8, %v2688_v23, 0.0  ;;  %v6907_v48 = vld [vmem:[%s6243_s28 + $0xc] ss:$16 sps:$4 sm:$0xff]   ;;  %v2730_v23 = vld [vmem:[%s2727_s8 + $0x10] sm:$0xff]  ;;  %s4951_s28 = sshll.u32 %s6411_s9, 3  ;;  %s4790_s9 = sshll.u32 %s6424_s26, 4 }
 0x55a   : > { %v4982_v25 = vpack.c.bf16 %v2707_v24, %v2706_v9  ;;  %v2740_v26 = vpack.c.bf16 %v6896_v21, %v6893_v12  ;;  %3362 = vmatprep.subr.bf16.mxu1 %v6907_v48  ;;  %v2735_v9 = vunpack.c.l.bf16 %v2731_v11  ;;  %v2738_v57 = vunpack.c.h.bf16 %v2730_v23  ;;  %s3104_s11 = scalar_lea.vmem %s6619_s6, %s4951_s28 [#allocation11]  ;;  %s3109_s27 = sshra.s32 %s4790_s9, 4 }
 0x55b   : > { %s4952_s7 = sshll.u32 %s3109_s27, 5  ;;  %s4835_s26 = sshll.u32 %s6436_s0, 4 }
 0x55c   : > { %4983 = vst [vmem:[%s2718_s2] sm:$0xff] %v4982_v25   ;;  %2966 = vmatmul.mubr.bf16.vlgmr.msra.gmra.mrb[48].mxu0 %v2740_v26  ;;  %3009 = vmatmul.mubr.bf16.vlgmr.msra.gmra.mrb[48].mxu1 %v2740_v26  ;;  %v2734_v26 = vunpack.c.l.bf16 %v2730_v23  ;;  %s3113_s15 = scalar_lea.vmem [#allocation2], %s4952_s7  ;;  %s3495_s30 = sshra.s32 %s4835_s26, 4 }
 0x55d   : > { %3351 = vmatprep.mubr.bf16.mxu0 %v5874_v0  ;;  %3394 = vmatprep.mubr.bf16.mxu1 %v5874_v0  ;;  %s4956_s18 = sshll.u32 %s3495_s30, 5  ;;  %s3876_s2 = scalar_lea.vmem %s6619_s6, %s4959_s16 [#allocation11] }
 0x55e   : > { %3320 = vmatpush1.bf16.msra.mxu0 %v6910_v28  ;;  %3363 = vmatpush1.bf16.msra.mxu1 %v6913_v29  ;;  %s3499_s24 = scalar_lea.vmem [#allocation2], %s4956_s18  ;;  %s3885_s8 = scalar_lea.vmem [#allocation2], %s4960_s25 }
 0x55f   : > { %3321 = vmatprep.subr.bf16.mxu0 %v6920_v30  ;;  %3364 = vmatprep.subr.bf16.mxu1 %v6923_v31  ;;  %s4963_s0 = sshll.u32 %s6446_s13, 3  ;;  %s4926_s28 = sshll.u32 %s5855_s21, 6 }
 0x560   : > { %s4277_s9 = sshll.u32 %s6619_s6, 4  ;;  %s4258_s27 = scalar_lea.vmem %s6619_s6, %s4963_s0 [#allocation11]  ;;  %s7171_s9 = int_to_ptr.vmem [resolvable:$true] %s4277_s9 }
 0x561   : > { %s4262_s21 = scalar_lea.sflag [#allocation5], %s6182_s12  ;;  %s5773_s13 = scalar_lea.vmem %s7171_s9, 1024 }
 0x562   : > { %3322 = vmatpush1.bf16.msra.mxu0 %v6926_v32  ;;  %3365 = vmatpush1.bf16.msra.mxu1 %v6929_v33  ;;  %p5774_p13 = scmp.ne.s32.totalorder %s7171_s9, %s5773_s13  ;;  %s5875_s6 = smov [#allocation11]  }
 0x563   : > { %3323 = vmatprep.subr.bf16.mxu0 %v6936_v34  ;;  %3366 = vmatprep.subr.bf16.mxu1 %v6939_v35  ;;  %s5777_s26 = sshll.u32 %s5875_s6, 4  ;;  %s5778_s26 = int_to_ptr.vmem [resolvable:$false] %s5777_s26 }
 0x564   : > { %s5779_s30 = scalar_lea.vmem %s5778_s26, 2048  ;;  %p5780_p12 = scmp.lt.s32.totalorder %s7171_s9, %s5778_s26 }
 0x565   : > { %p5781_p7 = scmp.lt.s32.totalorder %s5779_s30, %s5773_s13 }
 0x566   : > { %3324 = vmatpush1.bf16.msra.mxu0 %v6942_v27  ;;  %3367 = vmatpush1.bf16.msra.mxu1 %v6945_v61 }
 0x567   : > { %3325 = vmatprep.subr.bf16.mxu0 %v6952_v36  ;;  %3368 = vmatprep.subr.bf16.mxu1 %v6955_v37  ;;  %p5782_p10 = por %p5781_p7, %p5780_p12 }
 0x56a   : > { %3326 = vmatpush1.bf16.msra.mxu0 %v6958_v38  ;;  %3369 = vmatpush1.bf16.msra.mxu1 %v6961_v39 }
 0x56b   : > { %3327 = vmatprep.subr.bf16.mxu0 %v6971_v41  ;;  %3370 = vmatprep.subr.bf16.mxu1 %v6977_v47 }
 0x56e   : > { %3328 = vmatpush1.bf16.msra.mxu0 %v6968_v40  ;;  %3371 = vmatpush1.bf16.msra.mxu1 %v6974_v42 }
 0x56f   : > { %3329 = vmatprep.subr.bf16.mxu0 %v6980_v4  ;;  %3372 = vmatprep.subr.bf16.mxu1 %v6984_v13 }
 0x572   : > { %3330 = vmatpush1.bf16.msra.mxu0 %v6989_v52  ;;  %3373 = vmatpush1.bf16.msra.mxu1 %v6994_v62 }
 0x573   : > { %3331 = vmatprep.subr.bf16.mxu0 %v6997_v54  ;;  %3374 = vmatprep.subr.bf16.mxu1 %v7001_v53 }
 0x576   : > { %3332 = vmatpush1.bf16.msra.mxu0 %v7005_v63  ;;  %3375 = vmatpush1.bf16.msra.mxu1 %v7010_v7 }
 0x577   : > { %3333 = vmatprep.subr.bf16.mxu0 %v7013_v1  ;;  %3376 = vmatprep.subr.bf16.mxu1 %v7017_v3 }
 0x57a   : > { %3334 = vmatpush1.bf16.msra.mxu0 %v7021_v51  ;;  %3377 = vmatpush1.bf16.msra.mxu1 %v7026_v5 }
 0x57b   : > { %3705 = vmatprep.subr.bf16.mxu0 %v6904_v2  ;;  %3748 = vmatprep.subr.bf16.mxu1 %v6907_v48 }
 0x62f   : > { %v2967_v55 = vpop.f32.mrb[48].mxu0  ;;  %v3010_v8 = vpop.f32.mrb[48].mxu1 }
 0x630   : > { %v3019_v45 = vadd.f32 %v2967_v55, %v2732_v6  ;;  %v2969_v43 = vpop.f32.mrb[49].mxu0  ;;  %v3012_v46 = vpop.f32.mrb[49].mxu1  ;;  %v3021_v6 = vadd.f32 %v3010_v8, %v2734_v26 }
 0x631   : > { %v3020_v49 = vadd.f32 %v2969_v43, %v2733_v15  ;;  %v2971_v50 = vpop.f32.mrb[50].mxu0  ;;  %v3014_v17 = vpop.f32.mrb[50].mxu1  ;;  %v3022_v25 = vadd.f32 %v3012_v46, %v2735_v9 }
 0x632   : > { %v4780_v58 = vmul.f32 -1.442695, %v3019_v45  ;;  %v3023_v14 = vadd.f32 %v2971_v50, %v2736_v44  ;;  %v2973_v18 = vpop.f32.mrb[51].mxu0  ;;  %v3016_v19 = vpop.f32.mrb[51].mxu1  ;;  %v3025_v45 = vadd.f32 %v3014_v17, %v2738_v57 }
 0x633   : > { %v4782_v20 = vmul.f32 -1.442695, %v3020_v49  ;;  %v3024_v59 = vadd.f32 %v2973_v18, %v2737_v10  ;;  %v4784_v55 = vmul.f32 -1.442695, %v3022_v25  ;;  %v3026_v15 = vadd.f32 %v3016_v19, %v2739_v60  ;;  %v3082_v25 = vpop.permute.xlu0 %3081 }
 0x634   : > { %5499 = vpow2.f32 %v4780_v58  ;;  %v4781_v22 = vmul.f32 -1.442695, %v3023_v14  ;;  %vm3086_vm9 = vcmp.eq.s32.totalorder %v3082_v25, 1 }
 0x635   : > { %5501 = vpow2.f32 %v4782_v20  ;;  %v4783_v24 = vmul.f32 -1.442695, %v3024_v59  ;;  %v4785_v50 = vmul.f32 -1.442695, %v3026_v15 }
 0x636   : > { %5503 = vpow2.f32 %v4781_v22 }
 0x637   : > { %5505 = vpow2.f32 %v4783_v24 }
 0x638   : > { %5507 = vtanh.f32 %v3021_v6 }
 0x639   : > { %5509 = vpow2.f32 %v4784_v55 }
 0x63a   : > { %5511 = vtanh.f32 %v3025_v45  ;;  %v3085_v45 = vpop.permute.xlu1 %3084 }
 0x63b   : > { %vm3087_vm10 = vcmp.eq.s32.totalorder %v3085_v45, 1 }
 0x63e   : > { %v5500_v43 = vpop.eup %5499 }
 0x63f   : > { %v5502_v44 = vpop.eup %5501  ;;  %v3033_v49 = vadd.f32 1.0, %v5500_v43 }
 0x640   : > { %v3045_v10 = vadd.f32 1.0, %v5502_v44  ;;  %v5504_v58 = vpop.eup %5503 }
 0x641   : > { %5513 = vrcp.f32 %v3033_v49  ;;  %v3034_v46 = vadd.f32 1.0, %v5504_v58  ;;  %v5506_v14 = vpop.eup %5505 }
 0x642   : > { %5515 = vrcp.f32 %v3045_v10  ;;  %v3046_v8 = vadd.f32 1.0, %v5506_v14  ;;  %v5508_v11 = vpop.eup %5507 }
 0x643   : > { %5517 = vpow2.f32 %v4785_v50  ;;  %v5510_v18 = vpop.eup %5509 }
 0x644   : > { %5519 = vrcp.f32 %v3034_v46  ;;  %v5512_v17 = vpop.eup %5511  ;;  %v3059_v22 = vadd.f32 1.0, %v5510_v18 }
 0x645   : > { %5521 = vrcp.f32 %v3046_v8 }
 0x646   : > { %5523 = vrcp.f32 %v3059_v22 }
 0x64b   : > { %v5514_v19 = vpop.eup %5513 }
 0x64c   : > { %v5516_v20 = vpop.eup %5515  ;;  %v3067_v59 = vmul.f32 %v5514_v19, %v5508_v11 }
 0x64d   : > { %v5518_v23 = vpop.eup %5517  ;;  %v3065_v9 = vmul.f32 %v5516_v20, %v6884_v56 }
 0x64e   : > { %v5520_v24 = vpop.eup %5519  ;;  %v3060_v57 = vadd.f32 1.0, %v5518_v23 }
 0x64f   : > { %v3069_v26 = vadd.f32 %v3067_v59, %v3065_v9  ;;  %v3068_v60 = vmul.f32 %v5520_v24, %v5512_v17  ;;  %v5522_v6 = vpop.eup %5521 }
 0x650   : > { %v3066_v55 = vmul.f32 %v5522_v6, %v6887_v16  ;;  %v5524_v49 = vpop.eup %5523 }
 0x651   : > { %5525 = vtanh.f32 %v3069_v26  ;;  %v7038_v15 = vsel %vm3086_vm9, %v3069_v26, %v6884_v56 }
 0x652   : > { %v3070_v43 = vadd.f32 %v3068_v60, %v3066_v55  ;;  %5527 = vrcp.f32 %v3060_v57 }
 0x654   : > { %5529 = vtanh.f32 %v3070_v43  ;;  %v7041_v44 = vsel %vm3087_vm10, %v3070_v43, %v6887_v16 }
 0x65b   : > { %v5526_v50 = vpop.eup %5525 }
 0x65c   : > { %v3073_v10 = vmul.f32 %v5526_v50, %v5524_v49  ;;  %v5528_v58 = vpop.eup %5527 }
 0x65e   : > { %v5530_v46 = vpop.eup %5529  ;;  %v7047_v56 = vsel %vm3086_vm9, %v3073_v10, %v6893_v12  ;;  %v3092_v11 = vsel %vm3086_vm9, %v3073_v10, 0.0  ;;  %v3114_v12 = vld [vmem:[%s3113_s15] sm:$0xff] }
 0x65f   : > { %v3074_v14 = vmul.f32 %v5530_v46, %v5528_v58  ;;  %v3118_v19 = vunpack.c.l.bf16 %v3114_v12  ;;  %v3122_v25 = vunpack.c.h.bf16 %v3114_v12  ;;  %v3116_v58 = vld [vmem:[%s3113_s15 + $0x10] sm:$0xff] }
 0x660   : > { %v3124_v12 = vunpack.c.h.bf16 %v3116_v58 }
 0x661   : > { %v7050_v8 = vsel %vm3087_vm10, %v3074_v14, %v6896_v21  ;;  %v3093_v18 = vsel %vm3087_vm10, %v3074_v14, 0.0  ;;  %v3115_v21 = vld [vmem:[%s3113_s15 + $0x8] sm:$0xff] }
 0x662   : > { %v4987_v16 = vpack.c.bf16 %v3093_v18, %v3092_v11  ;;  %v3126_v17 = vpack.c.bf16 %v7050_v8, %v7047_v56  ;;  %v3119_v22 = vunpack.c.l.bf16 %v3115_v21  ;;  %v3120_v18 = vunpack.c.l.bf16 %v3116_v58 }
 0x664   : > { %4988 = vst [vmem:[%s3104_s11] sm:$0xff] %v4987_v16   ;;  %3352 = vmatmul.mubr.bf16.vlgmr.msra.gmra.mrb[52].mxu0 %v3126_v17  ;;  %3395 = vmatmul.mubr.bf16.vlgmr.msra.gmra.mrb[52].mxu1 %v3126_v17  ;;  %s7276_s11 = sld [smem:[#allocation17_spill]] }
 0x665   : > { %3706 = vmatpush1.bf16.msra.mxu0 %v6910_v28  ;;  %3749 = vmatpush1.bf16.msra.mxu1 %v6913_v29 }
 0x666   : > { %3707 = vmatprep.subr.bf16.mxu0 %v6920_v30  ;;  %3750 = vmatprep.subr.bf16.mxu1 %v6923_v31 }
 0x667   : > { %3737 = vmatprep.mubr.bf16.mxu0 %v5874_v0  ;;  %3780 = vmatprep.mubr.bf16.mxu1 %v5874_v0 }
 0x669   : > { %3708 = vmatpush1.bf16.msra.mxu0 %v6926_v32  ;;  %3751 = vmatpush1.bf16.msra.mxu1 %v6929_v33 }
 0x66a   : > { %3709 = vmatprep.subr.bf16.mxu0 %v6936_v34  ;;  %3752 = vmatprep.subr.bf16.mxu1 %v6939_v35  ;;  %p7278_p1 = scmp.ne.s32.totalorder %s7276_s11, 0 }
 0x66c   : > { %p5775_p5 = pnand %p5774_p13, %p7278_p1 }
 0x66d   : > { %3710 = vmatpush1.bf16.msra.mxu0 %v6942_v27  ;;  %3753 = vmatpush1.bf16.msra.mxu1 %v6945_v61 }
 0x66e   : > { %3711 = vmatprep.subr.bf16.mxu0 %v6952_v36  ;;  %3754 = vmatprep.subr.bf16.mxu1 %v6955_v37  ;;  %p5776_p4 = pneg %p5775_p5 }
 0x670   : > { %p5783_p3 = pnand %p5782_p10, %p5776_p4 }
 0x671   : > { %3712 = vmatpush1.bf16.msra.mxu0 %v6958_v38  ;;  %3755 = vmatpush1.bf16.msra.mxu1 %v6961_v39 }
 0x672   : > { %3713 = vmatprep.subr.bf16.mxu0 %v6971_v41  ;;  %3756 = vmatprep.subr.bf16.mxu1 %v6977_v47 }
 0x675   : > { %3714 = vmatpush1.bf16.msra.mxu0 %v6968_v40  ;;  %3757 = vmatpush1.bf16.msra.mxu1 %v6974_v42 }
 0x676   : > { %3715 = vmatprep.subr.bf16.mxu0 %v6980_v4  ;;  %3758 = vmatprep.subr.bf16.mxu1 %v6984_v13 }
 0x679   : > { %3716 = vmatpush1.bf16.msra.mxu0 %v6989_v52  ;;  %3759 = vmatpush1.bf16.msra.mxu1 %v6994_v62 }
 0x67a   : > { %3717 = vmatprep.subr.bf16.mxu0 %v6997_v54  ;;  %3760 = vmatprep.subr.bf16.mxu1 %v7001_v53 }
 0x67d   : > { %3718 = vmatpush1.bf16.msra.mxu0 %v7005_v63  ;;  %3761 = vmatpush1.bf16.msra.mxu1 %v7010_v7 }
 0x67e   : > { %3719 = vmatprep.subr.bf16.mxu0 %v7013_v1  ;;  %3762 = vmatprep.subr.bf16.mxu1 %v7017_v3 }
 0x681   : > { %3720 = vmatpush1.bf16.msra.mxu0 %v7021_v51  ;;  %3763 = vmatpush1.bf16.msra.mxu1 %v7026_v5 }
 0x682   : > { %4091 = vmatprep.subr.bf16.mxu0 %v6904_v2  ;;  %4134 = vmatprep.subr.bf16.mxu1 %v6907_v48  ;;  %v3123_v2 = vunpack.c.h.bf16 %v3115_v21  ;;  %v3117_v48 = vld [vmem:[%s3113_s15 + $0x18] sm:$0xff] }
 0x683   : > { %v3121_v46 = vunpack.c.l.bf16 %v3117_v48  ;;  %v3125_v16 = vunpack.c.h.bf16 %v3117_v48 }
 0x737   : > { %v3353_v20 = vpop.f32.mrb[52].mxu0  ;;  %v3396_v59 = vpop.f32.mrb[52].mxu1 }
 0x738   : > { %v3405_v23 = vadd.f32 %v3353_v20, %v3118_v19  ;;  %v3355_v9 = vpop.f32.mrb[53].mxu0  ;;  %v3398_v24 = vpop.f32.mrb[53].mxu1  ;;  %v3407_v17 = vadd.f32 %v3396_v59, %v3120_v18 }
 0x739   : > { %v3406_v26 = vadd.f32 %v3355_v9, %v3119_v22  ;;  %v3357_v60 = vpop.f32.mrb[54].mxu0  ;;  %v3400_v6 = vpop.f32.mrb[54].mxu1  ;;  %v3408_v11 = vadd.f32 %v3398_v24, %v3121_v46 }
 0x73a   : > { %v4825_v57 = vmul.f32 -1.442695, %v3405_v23  ;;  %v3409_v55 = vadd.f32 %v3357_v60, %v3122_v25  ;;  %v3359_v45 = vpop.f32.mrb[55].mxu0  ;;  %v3402_v43 = vpop.f32.mrb[55].mxu1  ;;  %v3411_v20 = vadd.f32 %v3400_v6, %v3124_v12 }
 0x73b   : > { %v4827_v49 = vmul.f32 -1.442695, %v3406_v26  ;;  %v3410_v50 = vadd.f32 %v3359_v45, %v3123_v2  ;;  %v4829_v21 = vmul.f32 -1.442695, %v3408_v11  ;;  %v3412_v19 = vadd.f32 %v3402_v43, %v3125_v16  ;;  %v3468_v46 = vpop.permute.xlu0 %3467 }
 0x73c   : > { %5531 = vpow2.f32 %v4825_v57  ;;  %v4826_v10 = vmul.f32 -1.442695, %v3409_v55  ;;  %vm3472_vm11 = vcmp.eq.s32.totalorder %v3468_v46, 1 }
 0x73d   : > { %5533 = vpow2.f32 %v4827_v49  ;;  %v4828_v14 = vmul.f32 -1.442695, %v3410_v50  ;;  %v4830_v25 = vmul.f32 -1.442695, %v3412_v19 }
 0x73e   : > { %5535 = vpow2.f32 %v4826_v10 }
 0x73f   : > { %5537 = vpow2.f32 %v4828_v14 }
 0x740   : > { %5539 = vtanh.f32 %v3407_v17 }
 0x741   : > { %5541 = vpow2.f32 %v4829_v21  ;;  %v3471_v21 = vpop.permute.xlu1 %3470 }
 0x742   : > { %5543 = vtanh.f32 %v3411_v20  ;;  %vm3473_vm12 = vcmp.eq.s32.totalorder %v3471_v21, 1 }
 0x746   : > { %v5532_v22 = vpop.eup %5531 }
 0x747   : > { %v5534_v23 = vpop.eup %5533  ;;  %v3419_v9 = vadd.f32 1.0, %v5532_v22 }
 0x748   : > { %v3431_v26 = vadd.f32 1.0, %v5534_v23  ;;  %v5536_v60 = vpop.eup %5535 }
 0x749   : > { %5545 = vrcp.f32 %v3419_v9  ;;  %v3420_v24 = vadd.f32 1.0, %v5536_v60  ;;  %v5538_v2 = vpop.eup %5537 }
 0x74a   : > { %5547 = vrcp.f32 %v3431_v26  ;;  %v3432_v59 = vadd.f32 1.0, %v5538_v2  ;;  %v5540_v57 = vpop.eup %5539 }
 0x74b   : > { %5549 = vpow2.f32 %v4830_v25  ;;  %v5542_v48 = vpop.eup %5541 }
 0x74c   : > { %5551 = vrcp.f32 %v3420_v24  ;;  %v5544_v6 = vpop.eup %5543  ;;  %v3445_v49 = vadd.f32 1.0, %v5542_v48 }
 0x74d   : > { %5553 = vrcp.f32 %v3432_v59 }
 0x74e   : > { %5555 = vrcp.f32 %v3445_v49 }
 0x753   : > { %v5546_v55 = vpop.eup %5545 }
 0x754   : > { %v5548_v45 = vpop.eup %5547  ;;  %v3453_v43 = vmul.f32 %v5546_v55, %v5540_v57 }
 0x755   : > { %v5550_v50 = vpop.eup %5549  ;;  %v3451_v10 = vmul.f32 %v5548_v45, %v7038_v15 }
 0x756   : > { %v5552_v58 = vpop.eup %5551  ;;  %v3446_v16 = vadd.f32 1.0, %v5550_v50 }
 0x757   : > { %v3455_v14 = vadd.f32 %v3453_v43, %v3451_v10  ;;  %v3454_v11 = vmul.f32 %v5552_v58, %v5544_v6  ;;  %v5554_v18 = vpop.eup %5553 }
 0x758   : > { %v3452_v17 = vmul.f32 %v5554_v18, %v7041_v44  ;;  %v5556_v22 = vpop.eup %5555 }
 0x759   : > { %5557 = vtanh.f32 %v3455_v14  ;;  %v7094_v12 = vsel %vm3472_vm11, %v3455_v14, %v7038_v15 }
 0x75a   : > { %v3456_v19 = vadd.f32 %v3454_v11, %v3452_v17  ;;  %5559 = vrcp.f32 %v3446_v16 }
 0x75c   : > { %5561 = vtanh.f32 %v3456_v19  ;;  %v7097_v20 = vsel %vm3473_vm12, %v3456_v19, %v7041_v44 }
 0x763   : > { %v5558_v23 = vpop.eup %5557 }
 0x764   : > { %v3459_v9 = vmul.f32 %v5558_v23, %v5556_v22  ;;  %v5560_v25 = vpop.eup %5559 }
 0x766   : > { %v5562_v26 = vpop.eup %5561  ;;  %v7103_v15 = vsel %vm3472_vm11, %v3459_v9, %v7047_v56  ;;  %v3478_v2 = vsel %vm3472_vm11, %v3459_v9, 0.0  ;;  %v3854_v9 = vpop.permute.xlu0 %3853 }
 0x767   : > { %v3460_v60 = vmul.f32 %v5562_v26, %v5560_v25  ;;  %vm3858_vm13 = vcmp.eq.s32.totalorder %v3854_v9, 1 }
 0x769   : > { %v7106_v24 = vsel %vm3473_vm12, %v3460_v60, %v7050_v8  ;;  %v3479_v59 = vsel %vm3473_vm12, %v3460_v60, 0.0 }
 0x76a   : > { %v4992_v44 = vpack.c.bf16 %v3479_v59, %v3478_v2  ;;  %v3512_v57 = vpack.c.bf16 %v7106_v24, %v7103_v15 }
 0x76c   : > { %4993 = vst [vmem:[%s3490_s5] sm:$0xff] %v4992_v44   ;;  %3738 = vmatmul.mubr.bf16.vlgmr.msra.gmra.mrb[56].mxu0 %v3512_v57  ;;  %3781 = vmatmul.mubr.bf16.vlgmr.msra.gmra.mrb[56].mxu1 %v3512_v57  ;;  %v3857_v57 = vpop.permute.xlu1 %3856  ;;  %s7169_s5 = scalar_lea.hbm %s7277_s10, %s4926_s28 }
 0x76d   : > { %4092 = vmatpush1.bf16.msra.mxu0 %v6910_v28  ;;  %4135 = vmatpush1.bf16.msra.mxu1 %v6913_v29  ;;  %v3501_v28 = vld [vmem:[%s3499_s24 + $0x8] sm:$0xff]  ;;  %vm3859_vm14 = vcmp.eq.s32.totalorder %v3857_v57, 1 }
 0x76e   : > { %4093 = vmatprep.subr.bf16.mxu0 %v6920_v30  ;;  %4136 = vmatprep.subr.bf16.mxu1 %v6923_v31 }
 0x76f   : > { %4123 = vmatprep.mubr.bf16.mxu0 %v5874_v0  ;;  %4166 = vmatprep.mubr.bf16.mxu1 %v5874_v0  ;;  %v3500_v0 = vld [vmem:[%s3499_s24] sm:$0xff] }
 0x770   : > { %v3504_v29 = vunpack.c.l.bf16 %v3500_v0 }
 0x771   : > { %4094 = vmatpush1.bf16.msra.mxu0 %v6926_v32  ;;  %4137 = vmatpush1.bf16.msra.mxu1 %v6929_v33  ;;  %v3505_v32 = vunpack.c.l.bf16 %v3501_v28 }
 0x772   : > { %4095 = vmatprep.subr.bf16.mxu0 %v6936_v34  ;;  %4138 = vmatprep.subr.bf16.mxu1 %v6939_v35 }
 0x775   : > { %4096 = vmatpush1.bf16.msra.mxu0 %v6942_v27  ;;  %4139 = vmatpush1.bf16.msra.mxu1 %v6945_v61  ;;  %v3508_v27 = vunpack.c.h.bf16 %v3500_v0 }
 0x776   : > { %4097 = vmatprep.subr.bf16.mxu0 %v6952_v36  ;;  %4140 = vmatprep.subr.bf16.mxu1 %v6955_v37 }
 0x779   : > { %4098 = vmatpush1.bf16.msra.mxu0 %v6958_v38  ;;  %4141 = vmatpush1.bf16.msra.mxu1 %v6961_v39  ;;  %v3509_v38 = vunpack.c.h.bf16 %v3501_v28 }
 0x77a   : > { %4099 = vmatprep.subr.bf16.mxu0 %v6971_v41  ;;  %4142 = vmatprep.subr.bf16.mxu1 %v6977_v47 }
 0x77d   : > { %4100 = vmatpush1.bf16.msra.mxu0 %v6968_v40  ;;  %4143 = vmatpush1.bf16.msra.mxu1 %v6974_v42  ;;  %v3503_v40 = vld [vmem:[%s3499_s24 + $0x18] sm:$0xff] }
 0x77e   : > { %4101 = vmatprep.subr.bf16.mxu0 %v6980_v4  ;;  %4144 = vmatprep.subr.bf16.mxu1 %v6984_v13 }
 0x781   : > { %4102 = vmatpush1.bf16.msra.mxu0 %v6989_v52  ;;  %4145 = vmatpush1.bf16.msra.mxu1 %v6994_v62  ;;  %v3502_v62 = vld [vmem:[%s3499_s24 + $0x10] sm:$0xff] }
 0x782   : > { %4103 = vmatprep.subr.bf16.mxu0 %v6997_v54  ;;  %4146 = vmatprep.subr.bf16.mxu1 %v7001_v53  ;;  %v3507_v54 = vunpack.c.l.bf16 %v3503_v40 }
 0x785   : > { %4104 = vmatpush1.bf16.msra.mxu0 %v7005_v63  ;;  %4147 = vmatpush1.bf16.msra.mxu1 %v7010_v7  ;;  %v3506_v7 = vunpack.c.l.bf16 %v3502_v62 }
 0x786   : > { %4105 = vmatprep.subr.bf16.mxu0 %v7013_v1  ;;  %4148 = vmatprep.subr.bf16.mxu1 %v7017_v3  ;;  %v3511_v1 = vunpack.c.h.bf16 %v3503_v40 }
 0x789   : > { %4106 = vmatpush1.bf16.msra.mxu0 %v7021_v51  ;;  %4149 = vmatpush1.bf16.msra.mxu1 %v7026_v5  ;;  %v3510_v51 = vunpack.c.h.bf16 %v3502_v62 }
 0x83f   : > { %v3739_v30 = vpop.f32.mrb[56].mxu0  ;;  %v3782_v31 = vpop.f32.mrb[56].mxu1 }
 0x840   : > { %v3791_v33 = vadd.f32 %v3739_v30, %v3504_v29  ;;  %v3741_v34 = vpop.f32.mrb[57].mxu0  ;;  %v3784_v35 = vpop.f32.mrb[57].mxu1  ;;  %v3793_v3 = vadd.f32 %v3782_v31, %v3506_v7 }
 0x841   : > { %v3792_v61 = vadd.f32 %v3741_v34, %v3505_v32  ;;  %v3743_v36 = vpop.f32.mrb[58].mxu0  ;;  %v3786_v37 = vpop.f32.mrb[58].mxu1  ;;  %v3794_v63 = vadd.f32 %v3784_v35, %v3507_v54 }
 0x842   : > { %v4870_v39 = vmul.f32 -1.442695, %v3791_v33  ;;  %v3795_v41 = vadd.f32 %v3743_v36, %v3508_v27  ;;  %v3745_v42 = vpop.f32.mrb[59].mxu0  ;;  %v3788_v47 = vpop.f32.mrb[59].mxu1  ;;  %v3797_v8 = vadd.f32 %v3786_v37, %v3510_v51  ;;  %v3886_v37 = vld [vmem:[%s3885_s8] sm:$0xff] }
 0x843   : > { %v4872_v4 = vmul.f32 -1.442695, %v3792_v61  ;;  %v3796_v13 = vadd.f32 %v3745_v42, %v3509_v38  ;;  %v4874_v5 = vmul.f32 -1.442695, %v3794_v63  ;;  %v3798_v56 = vadd.f32 %v3788_v47, %v3511_v1  ;;  %v3887_v38 = vld [vmem:[%s3885_s8 + $0x8] sm:$0xff]  ;;  %v3889_v63 = vld [vmem:[%s3885_s8 + $0x18] sm:$0xff] }
 0x844   : > { %5563 = vpow2.f32 %v4870_v39  ;;  %v4871_v52 = vmul.f32 -1.442695, %v3795_v41  ;;  %v3890_v39 = vunpack.c.l.bf16 %v3886_v37  ;;  %v3895_v54 = vunpack.c.h.bf16 %v3887_v38 }
 0x845   : > { %5565 = vpow2.f32 %v4872_v4  ;;  %v4873_v53 = vmul.f32 -1.442695, %v3796_v13  ;;  %v4875_v45 = vmul.f32 -1.442695, %v3798_v56  ;;  %v3894_v4 = vunpack.c.h.bf16 %v3886_v37  ;;  %v4243_v37 = vpop.permute.xlu1 %4242 }
 0x846   : > { %5567 = vpow2.f32 %v4871_v52  ;;  %vm4245_vm0 = vcmp.eq.s32.totalorder %v4243_v37, 1 }
 0x847   : > { %5569 = vpow2.f32 %v4873_v53 }
 0x848   : > { %5571 = vtanh.f32 %v3793_v3 }
 0x849   : > { %5573 = vpow2.f32 %v4874_v5 }
 0x84a   : > { %5575 = vtanh.f32 %v3797_v8  ;;  %v3888_v8 = vld [vmem:[%s3885_s8 + $0x10] sm:$0xff] }
 0x84e   : > { %v5564_v48 = vpop.eup %5563 }
 0x84f   : > { %v5566_v6 = vpop.eup %5565  ;;  %v3805_v55 = vadd.f32 1.0, %v5564_v48  ;;  %v3893_v48 = vunpack.c.l.bf16 %v3889_v63 }
 0x850   : > { %v3817_v43 = vadd.f32 1.0, %v5566_v6  ;;  %v5568_v49 = vpop.eup %5567 }
 0x851   : > { %5577 = vrcp.f32 %v3805_v55  ;;  %v3806_v50 = vadd.f32 1.0, %v5568_v49  ;;  %v5570_v10 = vpop.eup %5569 }
 0x852   : > { %5579 = vrcp.f32 %v3817_v43  ;;  %v3818_v58 = vadd.f32 1.0, %v5570_v10  ;;  %v5572_v46 = vpop.eup %5571  ;;  %v3897_v43 = vunpack.c.h.bf16 %v3889_v63 }
 0x853   : > { %5581 = vpow2.f32 %v4875_v45  ;;  %v5574_v14 = vpop.eup %5573  ;;  %v3892_v45 = vunpack.c.l.bf16 %v3888_v8 }
 0x854   : > { %5583 = vrcp.f32 %v3806_v50  ;;  %v5576_v11 = vpop.eup %5575  ;;  %v3831_v21 = vadd.f32 1.0, %v5574_v14  ;;  %v3896_v50 = vunpack.c.h.bf16 %v3888_v8 }
 0x855   : > { %5585 = vrcp.f32 %v3818_v58 }
 0x856   : > { %5587 = vrcp.f32 %v3831_v21 }
 0x85b   : > { %v5578_v18 = vpop.eup %5577 }
 0x85c   : > { %v5580_v16 = vpop.eup %5579  ;;  %v3839_v17 = vmul.f32 %v5578_v18, %v5572_v46 }
 0x85d   : > { %v5582_v19 = vpop.eup %5581  ;;  %v3837_v22 = vmul.f32 %v5580_v16, %v7094_v12 }
 0x85e   : > { %v5584_v23 = vpop.eup %5583  ;;  %v3832_v2 = vadd.f32 1.0, %v5582_v19 }
 0x85f   : > { %v3841_v25 = vadd.f32 %v3839_v17, %v3837_v22  ;;  %v3840_v26 = vmul.f32 %v5584_v23, %v5576_v11  ;;  %v5586_v60 = vpop.eup %5585 }
 0x860   : > { %v3838_v59 = vmul.f32 %v5586_v60, %v7097_v20  ;;  %v5588_v29 = vpop.eup %5587 }
 0x861   : > { %5589 = vtanh.f32 %v3841_v25  ;;  %v7148_v44 = vsel %vm3858_vm13, %v3841_v25, %v7094_v12 }
 0x862   : > { %v3842_v0 = vadd.f32 %v3840_v26, %v3838_v59  ;;  %5591 = vrcp.f32 %v3832_v2 }
 0x864   : > { %5593 = vtanh.f32 %v3842_v0  ;;  %v7151_v28 = vsel %vm3859_vm14, %v3842_v0, %v7097_v20 }
 0x86b   : > { %v5590_v30 = vpop.eup %5589 }
 0x86c   : > { %v3845_v31 = vmul.f32 %v5590_v30, %v5588_v29  ;;  %v5592_v32 = vpop.eup %5591 }
 0x86e   : > { %v5594_v33 = vpop.eup %5593  ;;  %v3860_v12 = vsel %vm3858_vm13, %v3845_v31, %v7103_v15  ;;  %v3864_v27 = vsel %vm3858_vm13, %v3845_v31, 0.0  ;;  %v3891_v15 = vunpack.c.l.bf16 %v3887_v38 }
 0x86f   : > { %v3846_v34 = vmul.f32 %v5594_v33, %v5592_v32 }
 0x871   : > { %v3861_v35 = vsel %vm3859_vm14, %v3846_v34, %v7106_v24  ;;  %v3865_v61 = vsel %vm3859_vm14, %v3846_v34, 0.0 }
 0x872   : > { %v4997_v36 = vpack.c.bf16 %v3865_v61, %v3864_v27  ;;  %v3898_v20 = vpack.c.bf16 %v3861_v35, %v3860_v12 }
 0x874   : > { %4998 = vst [vmem:[%s3876_s2] sm:$0xff] %v4997_v36   ;;  %4124 = vmatmul.mubr.bf16.vlgmr.msra.gmra.mrb[60].mxu0 %v3898_v20  ;;  %4167 = vmatmul.mubr.bf16.vlgmr.msra.gmra.mrb[60].mxu1 %v3898_v20  ;;  %v4240_v20 = vpop.permute.xlu0 %4239 }
 0x875   : > { %vm4244_vm15 = vcmp.eq.s32.totalorder %v4240_v20, 1 }
 0x947   : > { %v4125_v40 = vpop.f32.mrb[60].mxu0  ;;  %v4168_v41 = vpop.f32.mrb[60].mxu1 }
 0x948   : > { %v4177_v42 = vadd.f32 %v4125_v40, %v3890_v39  ;;  %v4127_v24 = vpop.f32.mrb[61].mxu0  ;;  %v4170_v47 = vpop.f32.mrb[61].mxu1  ;;  %v4179_v49 = vadd.f32 %v4168_v41, %v3892_v45 }
 0x949   : > { %v4178_v13 = vadd.f32 %v4127_v24, %v3891_v15  ;;  %v4129_v52 = vpop.f32.mrb[62].mxu0  ;;  %v4172_v62 = vpop.f32.mrb[62].mxu1  ;;  %v4180_v55 = vadd.f32 %v4170_v47, %v3893_v48 }
 0x94a   : > { %v4915_v53 = vmul.f32 -1.442695, %v4177_v42  ;;  %v4181_v7 = vadd.f32 %v4129_v52, %v3894_v4  ;;  %v4131_v1 = vpop.f32.mrb[63].mxu0  ;;  %v4174_v3 = vpop.f32.mrb[63].mxu1  ;;  %v4183_v46 = vadd.f32 %v4172_v62, %v3896_v50 }
 0x94b   : > { %v4917_v51 = vmul.f32 -1.442695, %v4178_v13  ;;  %v4182_v5 = vadd.f32 %v4131_v1, %v3895_v54  ;;  %v4919_v10 = vmul.f32 -1.442695, %v4180_v55  ;;  %v4184_v58 = vadd.f32 %v4174_v3, %v3897_v43 }
 0x94c   : > { %5595 = vpow2.f32 %v4915_v53  ;;  %v4916_v56 = vmul.f32 -1.442695, %v4181_v7 }
 0x94d   : > { %5597 = vpow2.f32 %v4917_v51  ;;  %v4918_v6 = vmul.f32 -1.442695, %v4182_v5  ;;  %v4920_v16 = vmul.f32 -1.442695, %v4184_v58 }
 0x94e   : > { %5599 = vpow2.f32 %v4916_v56 }
 0x94f   : > { %5601 = vpow2.f32 %v4918_v6 }
 0x950   : > { %5603 = vtanh.f32 %v4179_v49 }
 0x951   : > { %5605 = vpow2.f32 %v4919_v10 }
 0x952   : > { %5607 = vtanh.f32 %v4183_v46 }
 0x956   : > { %v5596_v14 = vpop.eup %5595 }
 0x957   : > { %v5598_v11 = vpop.eup %5597  ;;  %v4191_v18 = vadd.f32 1.0, %v5596_v14 }
 0x958   : > { %v4203_v17 = vadd.f32 1.0, %v5598_v11  ;;  %v5600_v21 = vpop.eup %5599 }
 0x959   : > { %5609 = vrcp.f32 %v4191_v18  ;;  %v4192_v19 = vadd.f32 1.0, %v5600_v21  ;;  %v5602_v22 = vpop.eup %5601 }
 0x95a   : > { %5611 = vrcp.f32 %v4203_v17  ;;  %v4204_v23 = vadd.f32 1.0, %v5602_v22  ;;  %v5604_v9 = vpop.eup %5603 }
 0x95b   : > { %5613 = vpow2.f32 %v4920_v16  ;;  %v5606_v25 = vpop.eup %5605 }
 0x95c   : > { %5615 = vrcp.f32 %v4192_v19  ;;  %v5608_v26 = vpop.eup %5607  ;;  %v4217_v57 = vadd.f32 1.0, %v5606_v25 }
 0x95d   : > { %5617 = vrcp.f32 %v4204_v23 }
 0x95e   : > { %5619 = vrcp.f32 %v4217_v57 }
 0x963   : > { %v5610_v60 = vpop.eup %5609 }
 0x964   : > { %v5612_v2 = vpop.eup %5611  ;;  %v4225_v59 = vmul.f32 %v5610_v60, %v5604_v9 }
 0x965   : > { %v5614_v0 = vpop.eup %5613  ;;  %v4223_v29 = vmul.f32 %v5612_v2, %v7148_v44 }
 0x966   : > { %v5616_v30 = vpop.eup %5615  ;;  %v4218_v34 = vadd.f32 1.0, %v5614_v0 }
 0x967   : > { %v4227_v31 = vadd.f32 %v4225_v59, %v4223_v29  ;;  %v4226_v32 = vmul.f32 %v5616_v30, %v5608_v26  ;;  %v5618_v33 = vpop.eup %5617 }
 0x968   : > { %v4224_v12 = vmul.f32 %v5618_v33, %v7151_v28  ;;  %v5620_v27 = vpop.eup %5619 }
 0x969   : > { %5621 = vtanh.f32 %v4227_v31 }
 0x96a   : > { %v4228_v35 = vadd.f32 %v4226_v32, %v4224_v12  ;;  %5623 = vrcp.f32 %v4218_v34 }
 0x96c   : > { %5625 = vtanh.f32 %v4228_v35 }
 0x973   : > { %v5622_v61 = vpop.eup %5621 }
 0x974   : > { %v4231_v36 = vmul.f32 %v5622_v61, %v5620_v27  ;;  %v5624_v44 = vpop.eup %5623 }
 0x976   : > { %v5626_v38 = vpop.eup %5625  ;;  %v4246_v28 = vsel %vm4244_vm15, %v4231_v36, 0.0 }
 0x977   : > { %v4232_v39 = vmul.f32 %v5626_v38, %v5624_v44 }
 0x979   : > { %v4247_v40 = vsel %vm4245_vm0, %v4232_v39, 0.0 }
 0x97a   : > { %v5002_v41 = vpack.c.bf16 %v4247_v40, %v4246_v28 }
 0x97c   : > { %5003 = vst [vmem:[%s4258_s27] sm:$0xff] %v5002_v41  }
 0x97d   : > { %5786 = shalt.err (!%p5783_p3)
}
 0x97e   : > { %s5787_s18 = scalar_lea.hbm %s7169_s5, 1024  ;;  %s5791_s2 = scalar_lea.hbm %s7277_s10, 2048 }
 0x97f   : > { %p5788_p8 = scmp.ne.s32.totalorder %s7169_s5, %s5787_s18  ;;  %p5792_p6 = scmp.lt.u32.totalorder %s7169_s5, %s7277_s10 }
 0x980   : > { %p5793_p2 = scmp.lt.u32.totalorder %s5791_s2, %s5787_s18  ;;  %p5795_p13 = scmp.lt.u32.totalorder %s5787_s18, %s7169_s5 }
 0x981   : > { %p5789_p9 = pnand %p5788_p8, %p7278_p1 }
 0x982   : > { %p5794_p11 = por %p5793_p2, %p5792_p6 }
 0x983   : > { %p5790_p0 = pneg %p5789_p9 }
 0x984   : > { %p5796_p5 = por %p5795_p13, %p5794_p11 }
 0x986   : > { %p5797_p4 = pnand %p5796_p5, %p5790_p0 }
 0x988   : > { %5800 = shalt.err (!%p5797_p4)
}
 0x989   : > { %s5876_s25 = smov 64   ;;  %s5877_s8 = smov 128  }
 0x98a   : > { %s5878_s0 = smov 4  }
 0x98b   : > { %5018 = dma.vmem_to_hbm [thread:$0]  (%p7278_p1), %s7171_s9, 1024, %s7169_s5, %s4262_s21, %s5876_s25, %s5877_s8, %s5878_s0  }
 0x98c PF: > { %s7279_s28 = sld [smem:[#allocation16_spill]]  ;;  %s7280_s27 = sld [smem:[#allocation18_spill]] }
 0x98d   : > { %p7282_p7 = scmp.ge.s32.totalorder %s5863_s23, 2 }
 0x992   : > { %s4292_s7 = sand.u32 1, %s7279_s28   ;;  %p7281_p12 = scmp.ne.s32.totalorder %s7280_s27, 0 }
 0x993   : > { %s4293_s15 = scalar_lea.sflag [#allocation5], %s4292_s7 }
 0x994   : > { %p5038_p10 = pnand %p7282_p7, %p7281_p12 }
 0x996   : > { %5838 = dma.done.wait (!%p5038_p10), %s4293_s15, 1024  }
 0x997   : > { %5840 = vsyncadd (!%p5038_p10), %s4293_s15, 4294966272  ;;  %s20_s23 = sadd.s32 1, %s5863_s23   ;;  %s7283_s12 = sld [smem:[#allocation19_spill]] }
 0x998   : > { %p17_p3 = scmp.ge.s32.totalorder %s20_s23, 4   ;;  %s7284_s18 = smov %s5847_s19 }
 0x999   : > { %s7285_s19 = smov %s5851_s20  ;;  %s7286_s20 = smov %s6043_s29 }
 0x99a   : > { %s7287_s21 = smov %s5859_s22  ;;  %19 = sbr.rel (!%p17_p3) target bundleno = 10 (0xa), region = 134 }
 0x99d   : > { %s7288_s22 = smov %s7283_s12 }
 0x9a1   :  { %4298 = vsyncpa [#allocation4], 1 }
 0x9a2   :  { %4300 = vsyncpa [#allocation4 + $0x1], 1 }
 0x9a3   :  { %4301 = vsyncpa [#allocation7], 1 }
 0x9a4   :  { %4302 = vsyncpa [#allocation5], 1 }
 0x9a5   :  { %4304 = vsyncpa [#allocation5 + $0x1], 1 }

// kernel: _lambda_.4
= control target key start
LH: loop header
LB: loop body
LE: loop exit
PB: predicated region body
PF: predicated region fallthrough
CT: control target
= control target key end

     0   :  { %s6882_s0 = inlined_call_operand.hbm [shape: s32[16,1], index: 0, kind: input, shape index: {}]   ;;  %s6883_s1 = inlined_call_operand.hbm [shape: bf16[8,16,128], index: 1, kind: input, shape index: {}]   ;;  %s6884_s2 = inlined_call_operand.hbm [shape: bf16[2,128,512], index: 2, kind: input, shape index: {}]   ;;  %s6885_s3 = inlined_call_operand.hbm [shape: bf16[2,128,512], index: 3, kind: input, shape index: {}]   ;;  %s6886_s4 = inlined_call_operand.hbm [shape: f32[2,1,512], index: 4, kind: input, shape index: {}]   ;;  %s6887_s5 = inlined_call_operand.hbm [shape: bf16[8,16,256], index: 5, kind: output, shape index: {}]  }
   0x1   :  { %6904 = sst [smem:[#allocation19_spill]] %s6882_s0 }
   0x2   :  { %6905 = sst [smem:[#allocation20_spill]] %s6884_s2 }
   0x3   :  { %6906 = sst [smem:[#allocation21_spill]] %s6887_s5 }
   0x4   :  { %10 = vsyncpa [#allocation4], 0 }
   0x5   :  { %11 = vsyncpa [#allocation7], 0 }
   0x6   :  { %12 = vsyncpa [#allocation5], 0 }
   0x7   :  { %14 = vsyncpa [#allocation5 + $0x1], 0  ;;  %s5584_s18 = smov 0   ;;  %s5586_s19 = smov 0  }
   0x8   :  { %s5588_s20 = smov 0   ;;  %s5590_s21 = smov 0  }
   0x9   :  { %s5592_s22 = smov 0   ;;  %s5594_s23 = smov 0  }
   0xa LB: > { %6907 = sst [smem:[#allocation16_spill]] %s5516_s18  ;;  %s5615_s24 = sadd.s32 4294967295, %s5536_s23   ;;  %s5536_s23 = sphi %s5594_s23, %s20_s23   ;;  %s5532_s22 = sphi %s5592_s22, %s6945_s22   ;;  %s5528_s21 = sphi %s5590_s21, %s6944_s21   ;;  %s5524_s20 = sphi %s5588_s20, %s6943_s20   ;;  %s5520_s19 = sphi %s5586_s19, %s6942_s19   ;;  %s5516_s18 = sphi %s5584_s18, %s6941_s18  }
   0xb   : > { %s4233_s25 = sadd.s32 4294967294, %s5536_s23   ;;  %p98_p0 = scmp.ne.s32.totalorder %s5524_s20, %s5520_s19 }
   0xc   : > { %p99_p1 = scmp.eq.s32.totalorder %s5536_s23, 0  ;;  %p104_p2 = scmp.ne.s32.totalorder %s5520_s19, %s5516_s18 }
   0xd   : > { %p6888_p3 = scmp.eq.s32.totalorder %s5615_s24, 0  ;;  %p182_p4 = scmp.eq.s32.totalorder %s5615_s24, 1 }
   0xe   : > { %p5626_p5 = por %p99_p1, %p98_p0  ;;  %p188_p6 = scmp.eq.s32.totalorder %s4233_s25, 1 }
   0xf   : > { %p5632_p7 = por %p6888_p3, %p104_p2  ;;  %p5636_p8 = por %p182_p4, %p98_p0 }
  0x10   : > { %p5640_p9 = por %p188_p6, %p104_p2  ;;  %p4234_p10 = scmp.ge.s32.totalorder %s5536_s23, 1 }
  0x11   : > { %s6909_s28 = scalar_select %p5632_p7, 1, 0 }
  0x12   : > { %s6910_s29 = scalar_select %p5636_p8, 1, 0 }
  0x13   : > { %s6912_s30 = scalar_select %p5640_p9, 1, 0 }
  0x14   : > { %6911 = sst [smem:[#allocation17_spill]] %s6910_s29  ;;  %p195_p11 = scmp.lt.s32.totalorder %s5536_s23, 3 }
  0x15   : > { %6913 = sst [smem:[#allocation18_spill]] %s6912_s30  ;;  %s5538_s7 = smov [#allocation3]  }
  0x16   : > { %p5646_p12 = pnand %p4234_p10, %p195_p11  ;;  %s210_s8 = sshll.u32 %s5538_s7, 4  ;;  %s5650_s8 = int_to_ptr.vmem [resolvable:$true] %s210_s8 }
  0x17   : > { %p4778_p1 = scmp.lt.s32.totalorder %s5536_s23, 2  ;;  %s29_s11 = sadd.s32 1, %s5532_s22 }
  0x18   : > { %s6914_s6 = scalar_select %p5646_p12, 1, 0 }
  0x19   : > { %p4755_p13 = pneg %p5646_p12  ;;  %p5664_p4 = pnand %p4778_p1, %p5626_p5 }
  0x1a   : > { %p5669_p6 = scmp.ge.s32.totalorder %s29_s11, 2  ;;  %s6918_s0 = sld [smem:[#allocation19_spill]] }
  0x1b   : > { %p5658_p2 = pnand %p4755_p13, %p6888_p3 }
  0x1c   : > { %s6916_s10 = scalar_select %p5664_p4, 1, 0 }
  0x1d   : > { %s6915_s9 = scalar_select %p5658_p2, 1, 0 }
  0x1e   : > { %p6897_p11 = pneg %p5658_p2 }
  0x20   : > { %s5300_s15 = scalar_lea.hbm %s6918_s0, 256 }
  0x21   : > { %p5301_p10 = scmp.ne.s32.totalorder %s6918_s0, %s5300_s15  ;;  %p5307_p1 = scmp.lt.u32.totalorder %s5300_s15, %s6918_s0 }
  0x23   : > { %p5303_p5 = pnand %p6897_p11, %p5301_p10 }
  0x25   : > { %p5304_p13 = pneg %p5303_p5 }
  0x27   : > { %p5309_p0 = pnand %p5307_p1, %p5304_p13 }
  0x29   : > { %5312 = shalt.err (!%p5309_p0)
}
  0x2a   : > { %s5313_s7 = scalar_lea.vmem %s5650_s8, 256  ;;  %p5321_p7 = scmp.lt.s32.totalorder %s5650_s8, %s5650_s8 }
  0x2b   : > { %p5314_p3 = scmp.ne.s32.totalorder %s5650_s8, %s5313_s7  ;;  %p5322_p10 = scmp.lt.s32.totalorder %s5313_s7, %s5313_s7 }
  0x2d   : > { %p5316_p9 = pnand %p5314_p3, %p6897_p11  ;;  %p5323_p5 = por %p5322_p10, %p5321_p7 }
  0x2f   : > { %p5317_p8 = pneg %p5316_p9 }
  0x31   : > { %p5324_p12 = pnand %p5323_p5, %p5317_p8 }
  0x33   : > { %5327 = shalt.err (!%p5324_p12)
}
  0x34   : > { %s5539_s13 = smov 128   ;;  %s5540_s14 = smov 8  }
  0x35   : > { %4758 = dma.hbm_to_vmem [thread:$0]  (!%p5658_p2), %s6918_s0, 256, %s5650_s8, [#allocation4], %s5539_s13, %s5539_s13, %s5540_s14  }
  0x36   : > { %s240_s17 = sand.u32 1, %s5536_s23   ;;  %s6947_s11 = smov (%p5669_p6, %s29_s11), 0 }
  0x37   : > { %s6900_s25 = sand.u32 1, %s5524_s20   ;;  %s88_s27 = ssub.s32 %s5532_s22, %s6947_s11 }
  0x38   : > { %s5710_s7 = sshll.u32 %s6900_s25, 8  ;;  %p89_p3 = scmp.eq.s32.totalorder %s88_s27, 0 }
  0x39   : > { %s4664_s26 = sshll.u32 %s5532_s22, 12  ;;  %s244_s30 = scalar_lea.vmem [#allocation8], %s5710_s7 }
  0x3a   : > { %s251_s18 = sshll.u32 %s244_s30, 4  ;;  %s6919_s5 = sadd.s32 1, %s5524_s20  ;;  %s5726_s18 = int_to_ptr.vmem [resolvable:$true] %s251_s18 }
  0x3b   : > { %s5717_s29 = scalar_select %p89_p3, %s5524_s20, %s6919_s5  }
  0x3c   : > { %s6920_s2 = sld [smem:[#allocation20_spill]]  ;;  %s5728_s14 = scalar_lea.sflag [#allocation4], %s240_s17 }
  0x3d   : > { %p5734_p8 = pneg %p5664_p4 }
  0x3f   : > { %s6921_s5 = scalar_select %p5734_p8, 1, 0 }
  0x42   : > { %s5724_s12 = scalar_lea.hbm %s6920_s2, %s4664_s26  ;;  %s5333_s27 = scalar_lea.hbm %s6920_s2, 8192 }
  0x43   : > { %s5328_s15 = scalar_lea.hbm %s5724_s12, 4096  ;;  %p5334_p0 = scmp.lt.u32.totalorder %s5724_s12, %s6920_s2 }
  0x44   : > { %p5329_p7 = scmp.ne.s32.totalorder %s5724_s12, %s5328_s15  ;;  %p5335_p6 = scmp.lt.u32.totalorder %s5333_s27, %s5328_s15 }
  0x45   : > { %p5337_p1 = scmp.lt.u32.totalorder %s5328_s15, %s5724_s12 }
  0x46   : > { %p5331_p9 = pnand %p5734_p8, %p5329_p7  ;;  %p5336_p13 = por %p5335_p6, %p5334_p0 }
  0x48   : > { %p5332_p12 = pneg %p5331_p9  ;;  %p5338_p10 = por %p5337_p1, %p5336_p13 }
  0x4a   : > { %p5339_p5 = pnand %p5338_p10, %p5332_p12 }
  0x4c   : > { %5342 = shalt.err (!%p5339_p5)
}
  0x4d   : > { %s5343_s17 = scalar_lea.vmem %s5726_s18, 4096  ;;  %s5541_s30 = smov [#allocation8]  }
  0x4e   : > { %p5344_p3 = scmp.ne.s32.totalorder %s5726_s18, %s5343_s17  ;;  %s5348_s16 = sshll.u32 %s5541_s30, 4  ;;  %s5349_s16 = int_to_ptr.vmem [resolvable:$false] %s5348_s16 }
  0x4f   : > { %s5350_s8 = scalar_lea.vmem %s5349_s16, 8192  ;;  %p5351_p11 = scmp.lt.s32.totalorder %s5726_s18, %s5349_s16 }
  0x50   : > { %p5346_p7 = pnand %p5344_p3, %p5734_p8  ;;  %p5352_p2 = scmp.lt.s32.totalorder %s5350_s8, %s5343_s17 }
  0x52   : > { %p5347_p9 = pneg %p5346_p7  ;;  %p5353_p0 = por %p5352_p2, %p5351_p11 }
  0x54   : > { %p5354_p6 = pnand %p5353_p0, %p5347_p9 }
  0x56   : > { %5357 = shalt.err (!%p5354_p6)
}
  0x57   : > { %s5542_s15 = smov 256   ;;  %s5543_s27 = smov 16  }
  0x58   : > { %4765 = dma.hbm_to_vmem [thread:$0]  (!%p5664_p4), %s5724_s12, 4096, %s5726_s18, %s5728_s14, %s5542_s15, %s5542_s15, %s5543_s27  }
  0x59   : > { %s5766_s30 = scalar_lea.hbm %s6885_s3, %s4664_s26  ;;  %s265_s16 = scalar_lea.vmem [#allocation9], %s5710_s7 }
  0x5a   : > { %s272_s8 = sshll.u32 %s265_s16, 4  ;;  %s5544_s25 = smov [#allocation6]   ;;  %s5769_s8 = int_to_ptr.vmem [resolvable:$true] %s272_s8 }
  0x5b   : > { %s5771_s0 = sshll.u32 %s5544_s25, 4  ;;  %s5358_s2 = scalar_lea.hbm %s5766_s30, 4096  ;;  %s227_s0 = int_to_ptr.vmem [resolvable:$true] %s5771_s0 }
  0x5c   : > { %p5359_p2 = scmp.ne.s32.totalorder %s5766_s30, %s5358_s2  ;;  %s5363_s26 = scalar_lea.hbm %s6885_s3, 8192 }
  0x5d   : > { %p5364_p13 = scmp.lt.u32.totalorder %s5766_s30, %s6885_s3  ;;  %p5365_p1 = scmp.lt.u32.totalorder %s5363_s26, %s5358_s2 }
  0x5e   : > { %p5361_p11 = pnand %p5359_p2, %p5734_p8  ;;  %p5367_p5 = scmp.lt.u32.totalorder %s5358_s2, %s5766_s30 }
  0x5f   : > { %p5366_p10 = por %p5365_p1, %p5364_p13 }
  0x60   : > { %p5362_p12 = pneg %p5361_p11 }
  0x61   : > { %p5368_p3 = por %p5367_p5, %p5366_p10 }
  0x63   : > { %p5369_p7 = pnand %p5368_p3, %p5362_p12 }
  0x65   : > { %5372 = shalt.err (!%p5369_p7)
}
  0x66   : > { %s5373_s25 = scalar_lea.vmem %s5769_s8, 4096  ;;  %s5545_s7 = smov [#allocation9]  }
  0x67   : > { %p5374_p9 = scmp.ne.s32.totalorder %s5769_s8, %s5373_s25  ;;  %s5378_s16 = sshll.u32 %s5545_s7, 4  ;;  %s5379_s16 = int_to_ptr.vmem [resolvable:$false] %s5378_s16 }
  0x68   : > { %s5380_s18 = scalar_lea.vmem %s5379_s16, 8192  ;;  %p5381_p2 = scmp.lt.s32.totalorder %s5769_s8, %s5379_s16 }
  0x69   : > { %p5376_p0 = pnand %p5374_p9, %p5734_p8  ;;  %p5382_p11 = scmp.lt.s32.totalorder %s5380_s18, %s5373_s25 }
  0x6b   : > { %p5377_p6 = pneg %p5376_p0  ;;  %p5383_p13 = por %p5382_p11, %p5381_p2 }
  0x6d   : > { %p5384_p1 = pnand %p5383_p13, %p5377_p6 }
  0x6f   : > { %5387 = shalt.err (!%p5384_p1)
}
  0x70   : > { %4768 = dma.hbm_to_vmem [thread:$0]  (!%p5664_p4), %s5766_s30, 4096, %s5769_s8, %s5728_s14, %s5542_s15, %s5542_s15, %s5543_s27  }
  0x71   : > { %s6922_s2 = sand.u32 1, %s5524_s20   ;;  %s5388_s17 = scalar_lea.hbm %s6883_s1, 1024 }
  0x72   : > { %s4244_s12 = sshll.u32 %s6922_s2, 2  ;;  %p5389_p12 = scmp.ne.s32.totalorder %s6883_s1, %s5388_s17 }
  0x73   : > { %p6923_p10 = scmp.ne.s32.totalorder %s6915_s9, 0  ;;  %p5395_p9 = scmp.lt.u32.totalorder %s5388_s17, %s6883_s1 }
  0x75   : > { %p6924_p5 = pneg %p6923_p10 }
  0x77   : > { %p5391_p3 = pnand %p5389_p12, %p6924_p5 }
  0x79   : > { %p5392_p7 = pneg %p5391_p3 }
  0x7b   : > { %p5397_p0 = pnand %p5395_p9, %p5392_p7 }
  0x7d   : > { %5400 = shalt.err (!%p5397_p0)
}
  0x7e   : > { %s5401_s15 = scalar_lea.vmem %s227_s0, 1024  ;;  %p6925_p2 = pmov %p6924_p5 }
  0x7f   : > { %p5402_p6 = scmp.ne.s32.totalorder %s227_s0, %s5401_s15  ;;  %p5409_p1 = scmp.lt.s32.totalorder %s227_s0, %s227_s0 }
  0x80   : > { %p5410_p4 = scmp.lt.s32.totalorder %s5401_s15, %s5401_s15 }
  0x81   : > { %p5404_p11 = pnand %p5402_p6, %p6925_p2 }
  0x82   : > { %p5411_p8 = por %p5410_p4, %p5409_p1 }
  0x83   : > { %p5405_p13 = pneg %p5404_p11 }
  0x85   : > { %p5412_p5 = pnand %p5411_p8, %p5405_p13 }
  0x87   : > { %5415 = shalt.err (!%p5412_p5)
}
  0x88   : > { %s5546_s27 = smov 64   ;;  %s5547_s30 = smov 4  }
  0x89   : > { %4761 = dma.hbm_to_vmem [thread:$0]  (!%p6923_p10), %s6883_s1, 1024, %s227_s0, [#allocation7], %s5546_s27, %s5546_s27, %s5547_s30  }
  0x8a   : > { %s4666_s26 = sshll.u32 %s5532_s22, 6  ;;  %s286_s7 = scalar_lea.vmem [#allocation10], %s4244_s12 }
  0x8b   : > { %s5825_s25 = scalar_lea.hbm %s6886_s4, %s4666_s26  ;;  %s294_s16 = sshll.u32 %s286_s7, 4  ;;  %s295_s16 = int_to_ptr.vmem [resolvable:$true] %s294_s16 }
  0x8c   : > { %s5416_s18 = scalar_lea.hbm %s5825_s25, 64  ;;  %p6926_p8 = scmp.ne.s32.totalorder %s6921_s5, 0 }
  0x8d   : > { %p5417_p4 = scmp.ne.s32.totalorder %s5825_s25, %s5416_s18  ;;  %s5421_s15 = scalar_lea.hbm %s6886_s4, 128 }
  0x8e   : > { %p5422_p10 = scmp.lt.u32.totalorder %s5825_s25, %s6886_s4  ;;  %p5423_p7 = scmp.lt.u32.totalorder %s5421_s15, %s5416_s18 }
  0x8f   : > { %p5419_p12 = pnand %p5417_p4, %p6926_p8  ;;  %p5425_p0 = scmp.lt.u32.totalorder %s5416_s18, %s5825_s25 }
  0x90   : > { %p5424_p9 = por %p5423_p7, %p5422_p10 }
  0x91   : > { %p5420_p3 = pneg %p5419_p12 }
  0x92   : > { %p5426_p6 = por %p5425_p0, %p5424_p9 }
  0x94   : > { %p5427_p2 = pnand %p5426_p6, %p5420_p3 }
  0x96   : > { %5430 = shalt.err (!%p5427_p2)
}
  0x97   : > { %s5431_s12 = scalar_lea.vmem %s295_s16, 64  ;;  %s5548_s8 = smov [#allocation10]  }
  0x98   : > { %p5432_p11 = scmp.ne.s32.totalorder %s295_s16, %s5431_s12  ;;  %s5436_s2 = sshll.u32 %s5548_s8, 4  ;;  %s5437_s2 = int_to_ptr.vmem [resolvable:$false] %s5436_s2 }
  0x99   : > { %s5438_s26 = scalar_lea.vmem %s5437_s2, 128  ;;  %p5439_p5 = scmp.lt.s32.totalorder %s295_s16, %s5437_s2 }
  0x9a   : > { %p5434_p13 = pnand %p5432_p11, %p6926_p8  ;;  %p5440_p4 = scmp.lt.s32.totalorder %s5438_s26, %s5431_s12 }
  0x9c   : > { %p5435_p1 = pneg %p5434_p13  ;;  %p5441_p12 = por %p5440_p4, %p5439_p5 }
  0x9e   : > { %p5442_p7 = pnand %p5441_p12, %p5435_p1 }
  0xa0   : > { %5445 = shalt.err (!%p5442_p7)
}
  0xa1   : > { %p6927_p10 = scmp.ne.s32.totalorder %s6916_s10, 0  ;;  %p6928_p3 = scmp.ne.s32.totalorder %s6914_s6, 0 }
  0xa2   : > { %p6929_p8 = scmp.eq.s32.totalorder (!%p6928_p3), %s5615_s24, 0 }
  0xa3   : > { %4771 = dma.hbm_to_vmem [thread:$0]  (!%p6927_p10), %s5825_s25, 64, %s295_s16, %s5728_s14  }
  0xa4   : > { %303 = sbr.rel (%p6928_p3) target bundleno = 2414 (0x96e), region = 40 }
  0xab   : > { %5499 = dma.done.wait (%p6929_p8), [#allocation4], 256   ;;  %p6930_p9 = pmov %p6929_p8 }
  0xac   : > { %p6931_p0 = pmov %p6929_p8 }
  0xad   : > { %5501 = vsyncadd (%p6930_p9), [#allocation4], 4294967040 }
  0xae   : > { %5503 = dma.done.wait (%p6931_p0), [#allocation7], 1024   ;;  %p6932_p6 = pmov %p6931_p0 }
  0xaf   : > { %s313_s10 = sand.u32 1, %s5615_s24   ;;  %s5857_s14 = sand.u32 1, %s5520_s19  }
  0xb0   : > { %5505 = vsyncadd (%p6932_p6), [#allocation7], 4294966272  ;;  %s4250_s6 = sshll.u32 %s5857_s14, 8  ;;  %s314_s5 = scalar_lea.sflag [#allocation4], %s313_s10 }
  0xb1   : > { %s5862_s13 = scalar_lea.vmem [#allocation8], %s4250_s6  ;;  %p6933_p2 = scmp.ne.s32.totalorder %s6909_s28, 0 }
  0xb3   : > { %5507 = dma.done.wait (%p6933_p2), %s314_s5, 8256  }
  0xb4   : > { %5509 = vsyncadd (%p6933_p2), %s314_s5, 4294959040  ;;  %v5549_v0 = vmov 0   ;;  %v4844_v1 = vld [vmem:[%s5862_s13 + $0x4] ss:$16 sps:$4 sm:$0xff]   ;;  %v4846_v2 = vld [vmem:[%s5862_s13 + $0xc] ss:$16 sps:$4 sm:$0xff]  }
  0xb5   : > { %689 = vmatprep.mubr.bf16.mxu0 %v5549_v0  ;;  %802 = vmatprep.mubr.bf16.mxu1 %v5549_v0  ;;  %v4848_v3 = vld [vmem:[%s5862_s13] ss:$16 sps:$4 sm:$0xff]   ;;  %v4849_v4 = vld [vmem:[%s5862_s13 + $0x8] ss:$16 sps:$4 sm:$0xff]   ;;  %v4850_v5 = vld [vmem:[%s5862_s13 + $0x24] ss:$16 sps:$4 sm:$0xff]  }
  0xb6   : > { %4842 = vset.pattern.permute.xlu0 %v5549_v0  ;;  %4843 = vset.pattern.permute.xlu1 %v5549_v0  ;;  %v4852_v6 = vld [vmem:[%s5862_s13 + $0x2c] ss:$16 sps:$4 sm:$0xff]   ;;  %v4854_v7 = vld [vmem:[%s5862_s13 + $0x20] ss:$16 sps:$4 sm:$0xff]   ;;  %v4855_v8 = vld [vmem:[%s5862_s13 + $0x28] ss:$16 sps:$4 sm:$0xff]  }
  0xb7   : > { %657 = vmatprep.subr.bf16.mxu0 %v4844_v1  ;;  %770 = vmatprep.subr.bf16.mxu1 %v4846_v2  ;;  %v4856_v9 = vld [vmem:[%s5862_s13 + $0x44] ss:$16 sps:$4 sm:$0xff]   ;;  %v4858_v10 = vld [vmem:[%s5862_s13 + $0x4c] ss:$16 sps:$4 sm:$0xff]   ;;  %v4860_v11 = vld [vmem:[%s5862_s13 + $0x40] ss:$16 sps:$4 sm:$0xff]  }
  0xb8   : > { %658 = vmatpush1.bf16.msra.mxu0 %v4848_v3  ;;  %771 = vmatpush1.bf16.msra.mxu1 %v4849_v4  ;;  %v4861_v12 = vld [vmem:[%s5862_s13 + $0x48] ss:$16 sps:$4 sm:$0xff]   ;;  %v4862_v13 = vld [vmem:[%s5862_s13 + $0x64] ss:$16 sps:$4 sm:$0xff]   ;;  %v4864_v14 = vld [vmem:[%s5862_s13 + $0x6c] ss:$16 sps:$4 sm:$0xff]  }
  0xb9   : > { %659 = vmatprep.subr.bf16.mxu0 %v4850_v5  ;;  %772 = vmatprep.subr.bf16.mxu1 %v4852_v6  ;;  %v4866_v15 = vld [vmem:[%s5862_s13 + $0x60] ss:$16 sps:$4 sm:$0xff]   ;;  %v4867_v16 = vld [vmem:[%s5862_s13 + $0x68] ss:$16 sps:$4 sm:$0xff]   ;;  %v4868_v17 = vld [vmem:[%s5862_s13 + $0x84] ss:$16 sps:$4 sm:$0xff]  }
  0xba   : > { %v4870_v18 = vld [vmem:[%s5862_s13 + $0x8c] ss:$16 sps:$4 sm:$0xff]   ;;  %v4872_v19 = vld [vmem:[%s5862_s13 + $0x80] ss:$16 sps:$4 sm:$0xff]   ;;  %v4873_v20 = vld [vmem:[%s5862_s13 + $0x88] ss:$16 sps:$4 sm:$0xff]  }
  0xbb   : > { %v4874_v21 = vld [vmem:[%s5862_s13 + $0xa4] ss:$16 sps:$4 sm:$0xff]   ;;  %v4876_v22 = vld [vmem:[%s5862_s13 + $0xac] ss:$16 sps:$4 sm:$0xff]   ;;  %v4878_v23 = vld [vmem:[%s5862_s13 + $0xa0] ss:$16 sps:$4 sm:$0xff]  }
  0xbc   : > { %660 = vmatpush1.bf16.msra.mxu0 %v4854_v7  ;;  %773 = vmatpush1.bf16.msra.mxu1 %v4855_v8  ;;  %v4879_v24 = vld [vmem:[%s5862_s13 + $0xa8] ss:$16 sps:$4 sm:$0xff]   ;;  %v4880_v25 = vld [vmem:[%s5862_s13 + $0xc4] ss:$16 sps:$4 sm:$0xff]   ;;  %v4882_v26 = vld [vmem:[%s5862_s13 + $0xcc] ss:$16 sps:$4 sm:$0xff]  }
  0xbd   : > { %661 = vmatprep.subr.bf16.mxu0 %v4856_v9  ;;  %774 = vmatprep.subr.bf16.mxu1 %v4858_v10  ;;  %s5900_s24 = scalar_lea.vmem [#allocation9], %s4250_s6  ;;  %v4884_v27 = vld [vmem:[%s5862_s13 + $0xc0] ss:$16 sps:$4 sm:$0xff]   ;;  %v4885_v28 = vld [vmem:[%s5862_s13 + $0xc8] ss:$16 sps:$4 sm:$0xff]   ;;  %p955_p11 = scmp.eq.s32.totalorder %s5528_s21, 0 }
  0xbe   : > { %v4886_v29 = vld [vmem:[%s5862_s13 + $0xe4] ss:$16 sps:$4 sm:$0xff]   ;;  %v4888_v30 = vld [vmem:[%s5862_s13 + $0xec] ss:$16 sps:$4 sm:$0xff]   ;;  %v4890_v31 = vld [vmem:[%s5862_s13 + $0xe0] ss:$16 sps:$4 sm:$0xff]  }
  0xbf   : > { %v4891_v32 = vld [vmem:[%s5862_s13 + $0xe8] ss:$16 sps:$4 sm:$0xff]   ;;  %v5909_v33 = vld [vmem:[%s5900_s24 + $0x4] ss:$16 sps:$4 sm:$0xff]   ;;  %v5912_v34 = vld [vmem:[%s5900_s24 + $0xc] ss:$16 sps:$4 sm:$0xff]  }
  0xc0   : > { %662 = vmatpush1.bf16.msra.mxu0 %v4860_v11  ;;  %775 = vmatpush1.bf16.msra.mxu1 %v4861_v12  ;;  %v4892_v35 = vld [vmem:[#allocation6] sm:$0xff]   ;;  %v5923_v38 = vld [vmem:[%s5900_s24 + $0x8] ss:$16 sps:$4 sm:$0xff]   ;;  %v5926_v39 = vld [vmem:[%s5900_s24 + $0x2c] ss:$16 sps:$4 sm:$0xff]   ;;  %s4252_s0 = sshll.u32 %s5857_s14, 2 }
  0xc1   : > { %663 = vmatprep.subr.bf16.mxu0 %v4862_v13  ;;  %776 = vmatprep.subr.bf16.mxu1 %v4864_v14  ;;  %v5915_v36 = vld [vmem:[%s5900_s24] ss:$16 sps:$4 sm:$0xff]   ;;  %v5919_v37 = vld [vmem:[%s5900_s24 + $0x24] ss:$16 sps:$4 sm:$0xff]   ;;  %v5940_v42 = vld [vmem:[%s5900_s24 + $0x28] ss:$16 sps:$4 sm:$0xff]  }
  0xc2   : > { %v5931_v40 = vld [vmem:[%s5900_s24 + $0x20] ss:$16 sps:$4 sm:$0xff]   ;;  %v5936_v41 = vld [vmem:[%s5900_s24 + $0x44] ss:$16 sps:$4 sm:$0xff]   ;;  %v4896_v43 = vld [vmem:[#allocation6 + $0x8] sm:$0xff]   ;;  %s335_s27 = scalar_lea.vmem [#allocation10], %s4252_s0 }
  0xc3   : > { %v5945_v44 = vld [vmem:[%s5900_s24 + $0x40] ss:$16 sps:$4 sm:$0xff]   ;;  %v5950_v45 = vld [vmem:[%s5900_s24 + $0x4c] ss:$16 sps:$4 sm:$0xff]   ;;  %v5953_v46 = vld [vmem:[%s5900_s24 + $0x64] ss:$16 sps:$4 sm:$0xff]  }
  0xc4   : > { %664 = vmatpush1.bf16.msra.mxu0 %v4866_v15  ;;  %777 = vmatpush1.bf16.msra.mxu1 %v4867_v16  ;;  %v5957_v47 = vld [vmem:[%s5900_s24 + $0x48] ss:$16 sps:$4 sm:$0xff]   ;;  %v5960_v48 = vld [vmem:[%s5900_s24 + $0x6c] ss:$16 sps:$4 sm:$0xff]   ;;  %s5966_s28 = scalar_select %p955_p11, 0, 7 }
  0xc5   : > { %665 = vmatprep.subr.bf16.mxu0 %v4868_v17  ;;  %778 = vmatprep.subr.bf16.mxu1 %v4870_v18  ;;  %v5970_v49 = vld [vmem:[%s5900_s24 + $0x60] ss:$16 sps:$4 sm:$0xff]   ;;  %v5975_v50 = vld [vmem:[%s5900_s24 + $0x84] ss:$16 sps:$4 sm:$0xff]   ;;  %v5979_v51 = vld [vmem:[%s5900_s24 + $0x68] ss:$16 sps:$4 sm:$0xff]  }
  0xc6   : > { %v4900_v52 = vld [vmem:[#allocation6 + $0x10] sm:$0xff]   ;;  %v1309_v54 = vstv %s5966_s28  ;;  %v5988_v55 = vld [vmem:[%s5900_s24 + $0x8c] ss:$16 sps:$4 sm:$0xff]   ;;  %v5996_v57 = vld [vmem:[%s5900_s24 + $0x88] ss:$16 sps:$4 sm:$0xff]   ;;  %s4294_s30 = sshll.u32 %s5966_s28, 4 }
  0xc7   : > { %v5983_v53 = vld [vmem:[%s5900_s24 + $0x80] ss:$16 sps:$4 sm:$0xff]   ;;  %v5992_v56 = vld [vmem:[%s5900_s24 + $0xa4] ss:$16 sps:$4 sm:$0xff]   ;;  %v6004_v60 = vld [vmem:[%s5900_s24 + $0xac] ss:$16 sps:$4 sm:$0xff]  }
  0xc8   : > { %666 = vmatpush1.bf16.msra.mxu0 %v4872_v19  ;;  %779 = vmatpush1.bf16.msra.mxu1 %v4873_v20  ;;  %v5998_v58 = vld [vmem:[#allocation3] sm:$0xff]  ;;  %v6013_v62 = vld [vmem:[%s5900_s24 + $0xa8] ss:$16 sps:$4 sm:$0xff]   ;;  %v6027_v4 = vld [vmem:[%s5900_s24 + $0xcc] ss:$16 sps:$4 sm:$0xff]   ;;  %s958_s12 = sshra.s32 %s4294_s30, 4 }
  0xc9   : > { %667 = vmatprep.subr.bf16.mxu0 %v4874_v21  ;;  %780 = vmatprep.subr.bf16.mxu1 %v4876_v22  ;;  %v6001_v59 = vld [vmem:[%s5900_s24 + $0xa0] ss:$16 sps:$4 sm:$0xff]   ;;  %vm1310_vm0 = vcmp.lt.s32.totalorder %v1309_v54, %v5998_v58  ;;  %v6010_v61 = vld [vmem:[%s5900_s24 + $0xc4] ss:$16 sps:$4 sm:$0xff]   ;;  %v6016_v1 = vld [vmem:[#allocation3 + $0x8] sm:$0xff]  ;;  %s4667_s8 = sshll.u32 %s958_s12, 5 }
  0xca   : > { %v1312_v63 = vsel %vm1310_vm0, 1, %v5549_v0  ;;  %v4907_v2 = vld [vmem:[#allocation6 + $0x18] sm:$0xff]   ;;  %v6023_v3 = vld [vmem:[%s5900_s24 + $0xc0] ss:$16 sps:$4 sm:$0xff]   ;;  %v6030_v5 = vld [vmem:[%s5900_s24 + $0xe4] ss:$16 sps:$4 sm:$0xff]   ;;  %vm1311_vm1 = vcmp.lt.s32.totalorder %v1309_v54, %v6016_v1 }
  0xcb   : > { %1315 = vperm.xlu0 %4842, %v1312_v63   ;;  %v6033_v6 = vld [vmem:[%s5900_s24 + $0xc8] ss:$16 sps:$4 sm:$0xff]   ;;  %s6037_s17 = scalar_select %p955_p11, 2, 5  ;;  %v6041_v7 = vld [vmem:[%s5900_s24 + $0xec] ss:$16 sps:$4 sm:$0xff]  }
  0xcc   : > { %668 = vmatpush1.bf16.msra.mxu0 %v4878_v23  ;;  %781 = vmatpush1.bf16.msra.mxu1 %v4879_v24  ;;  %v6047_v8 = vld [vmem:[%s5900_s24 + $0xe0] ss:$16 sps:$4 sm:$0xff]   ;;  %v6052_v9 = vld [vmem:[%s5900_s24 + $0xe8] ss:$16 sps:$4 sm:$0xff]   ;;  %v1313_v10 = vsel %vm1311_vm1, 1, %v5549_v0  ;;  %s962_s2 = scalar_lea.vmem [#allocation2], %s4667_s8 }
  0xcd   : > { %669 = vmatprep.subr.bf16.mxu0 %v4880_v25  ;;  %782 = vmatprep.subr.bf16.mxu1 %v4882_v26  ;;  %v2078_v11 = vstv %s6037_s17  ;;  %s6058_s25 = scalar_select %p955_p11, 3, 4  ;;  %v4914_v12 = vld [vmem:[#allocation6 + $0x20] sm:$0xff]   ;;  %v4921_v16 = vld [vmem:[#allocation6 + $0x28] sm:$0xff]   ;;  %v4928_v22 = vld [vmem:[#allocation6 + $0x30] sm:$0xff]  }
  0xce   : > { %vm2079_vm2 = vcmp.lt.s32.totalorder %v2078_v11, %v5998_v58  ;;  %s6071_s7 = scalar_select %p955_p11, 4, 3  ;;  %v4935_v26 = vld [vmem:[#allocation6 + $0x38] sm:$0xff]   ;;  %vm2080_vm10 = vcmp.lt.s32.totalorder %v2078_v11, %v6016_v1 }
  0xcf   : > { %1318 = vperm.xlu0 %4842, %v1313_v10   ;;  %v2464_v13 = vstv %s6058_s25  ;;  %v2081_v14 = vsel %vm2079_vm2, 1, %v5549_v0  ;;  %s6085_s16 = scalar_select %p955_p11, 5, 2 }
  0xd0   : > { %670 = vmatpush1.bf16.msra.mxu0 %v4884_v27  ;;  %783 = vmatpush1.bf16.msra.mxu1 %v4885_v28  ;;  %vm2465_vm3 = vcmp.lt.s32.totalorder %v2464_v13, %v5998_v58  ;;  %v2850_v15 = vstv %s6071_s7  ;;  %s6095_s18 = scalar_select %p955_p11, 6, 1  ;;  %v429_v27 = vlaneseq  ;;  %vm2466_vm11 = vcmp.lt.s32.totalorder %v2464_v13, %v6016_v1 }
  0xd1   : > { %671 = vmatprep.subr.bf16.mxu0 %v4886_v29  ;;  %784 = vmatprep.subr.bf16.mxu1 %v4888_v30  ;;  %v2467_v17 = vsel %vm2465_vm3, 1, %v5549_v0  ;;  %vm2851_vm4 = vcmp.lt.s32.totalorder %v2850_v15, %v5998_v58  ;;  %v3236_v18 = vstv %s6085_s16  ;;  %s6106_s9 = scalar_select %p955_p11, 7, 0  ;;  %vm2852_vm12 = vcmp.lt.s32.totalorder %v2850_v15, %v6016_v1 }
  0xd2   : > { %v2853_v19 = vsel %vm2851_vm4, 1, %v5549_v0  ;;  %vm3237_vm5 = vcmp.lt.s32.totalorder %v3236_v18, %v5998_v58  ;;  %v3622_v20 = vstv %s6095_s18  ;;  %v430_v28 = vshrl.u32 %v429_v27, 7  ;;  %s6159_s15 = scalar_select %p955_p11, 1, 6 }
  0xd3   : > { %2084 = vperm.xlu0 %4842, %v2081_v14   ;;  %v3239_v21 = vsel %vm3237_vm5, 1, %v5549_v0  ;;  %vm3623_vm6 = vcmp.lt.s32.totalorder %v3622_v20, %v5998_v58  ;;  %v4008_v23 = vstv %s6106_s9  ;;  %vm3238_vm13 = vcmp.lt.s32.totalorder %v3236_v18, %v6016_v1  ;;  %s4253_s26 = sshll.u32 %s5857_s14, 6  ;;  %s4670_s10 = sshll.u32 %s5966_s28, 3 }
  0xd4   : > { %672 = vmatpush1.bf16.msra.mxu0 %v4890_v31  ;;  %785 = vmatpush1.bf16.msra.mxu1 %v4891_v32  ;;  %v3625_v24 = vsel %vm3623_vm6, 1, %v5549_v0  ;;  %vm4009_vm7 = vcmp.lt.s32.totalorder %v4008_v23, %v5998_v58  ;;  %v439_v29 = vsub.s32 2, %v430_v28  ;;  %v443_v30 = vsub.s32 3, %v430_v28  ;;  %v427_v32 = vld [vmem:[%s335_s27] sm:$0xf]  ;;  %s6281_s6 = scalar_lea.vmem [#allocation11], %s4253_s26 }
  0xd5   : > { %1167 = vmatprep.subr.bf16.mxu0 %v5909_v33  ;;  %1210 = vmatprep.subr.bf16.mxu1 %v5912_v34  ;;  %v4011_v25 = vsel %vm4009_vm7, 1, %v5549_v0  ;;  %v431_v31 = vsub.s32 0, %v430_v28  ;;  %v3240_v27 = vsel %vm3238_vm13, 1, %v5549_v0  ;;  %vm3624_vm14 = vcmp.lt.s32.totalorder %v3622_v20, %v6016_v1  ;;  %s1336_s5 = scalar_lea.vmem %s6281_s6, %s4670_s10 [#allocation11]  ;;  %s4339_s13 = sshll.u32 %s6159_s15, 4 }
  0xd6   : > { %vm4010_vm15 = vcmp.lt.s32.totalorder %v4008_v23, %v6016_v1  ;;  %s1341_s28 = sshra.s32 %s4339_s13, 4  ;;  %s4674_s30 = sshll.u32 %s6159_s15, 3 }
  0xd7   : > { %690 = vmatmul.mubr.bf16.vlgmr.msra.gmra.mrb[0].mxu0 %v4892_v35  ;;  %803 = vmatmul.mubr.bf16.vlgmr.msra.gmra.mrb[0].mxu1 %v4892_v35  ;;  %v6162_v35 = vrot.slane %v427_v32, %v439_v29  ;;  %s4671_s0 = sshll.u32 %s1341_s28, 5  ;;  %s1721_s12 = scalar_lea.vmem %s6281_s6, %s4674_s30 [#allocation11] }
  0xd8   : > { %1168 = vmatpush1.bf16.msra.mxu0 %v5915_v36  ;;  %699 = vmatprep.mubr.bf16.mxu0 %v5549_v0  ;;  %s1345_s27 = scalar_lea.vmem [#allocation2], %s4671_s0  ;;  %s4678_s10 = sshll.u32 %s6037_s17, 3 }
  0xd9   : > { %812 = vmatprep.mubr.bf16.mxu1 %v5549_v0  ;;  %1169 = vmatprep.subr.bf16.mxu0 %v5919_v37 }
  0xda   : > { %1211 = vmatpush1.bf16.msra.mxu1 %v5923_v38  ;;  %2470 = vperm.xlu0 %4842, %v2467_v17   ;;  %v2854_v17 = vsel %vm2852_vm12, 1, %v5549_v0 }
  0xdb   : > { %1212 = vmatprep.subr.bf16.mxu1 %v5926_v39 }
  0xdc   : > { %1170 = vmatpush1.bf16.msra.mxu0 %v5931_v40 }
  0xdd   : > { %1171 = vmatprep.subr.bf16.mxu0 %v5936_v41 }
  0xde   : > { %1213 = vmatpush1.bf16.msra.mxu1 %v5940_v42  ;;  %2856 = vperm.xlu0 %4842, %v2853_v19  }
  0xdf   : > { %700 = vmatmul.mubr.bf16.gmra.mrb[4].mxu0 %v4896_v43  ;;  %813 = vmatmul.mubr.bf16.gmra.mrb[4].mxu1 %v4896_v43 }
  0xe0   : > { %709 = vmatprep.mubr.bf16.mxu0 %v5549_v0  ;;  %822 = vmatprep.mubr.bf16.mxu1 %v5549_v0 }
  0xe1   : > { %1172 = vmatpush1.bf16.msra.mxu0 %v5945_v44  ;;  %1214 = vmatprep.subr.bf16.mxu1 %v5950_v45 }
  0xe2   : > { %1173 = vmatprep.subr.bf16.mxu0 %v5953_v46  ;;  %1215 = vmatpush1.bf16.msra.mxu1 %v5957_v47 }
  0xe3   : > { %1216 = vmatprep.subr.bf16.mxu1 %v5960_v48  ;;  %3242 = vperm.xlu0 %4842, %v3239_v21  }
  0xe5   : > { %1174 = vmatpush1.bf16.msra.mxu0 %v5970_v49 }
  0xe6   : > { %1175 = vmatprep.subr.bf16.mxu0 %v5975_v50  ;;  %1217 = vmatpush1.bf16.msra.mxu1 %v5979_v51 }
  0xe7   : > { %710 = vmatmul.mubr.bf16.gmra.mrb[8].mxu0 %v4900_v52  ;;  %823 = vmatmul.mubr.bf16.gmra.mrb[8].mxu1 %v4900_v52 }
  0xe8   : > { %719 = vmatprep.mubr.bf16.mxu0 %v5549_v0  ;;  %832 = vmatprep.mubr.bf16.mxu1 %v5549_v0 }
  0xe9   : > { %1176 = vmatpush1.bf16.msra.mxu0 %v5983_v53  ;;  %1218 = vmatprep.subr.bf16.mxu1 %v5988_v55 }
  0xea   : > { %1177 = vmatprep.subr.bf16.mxu0 %v5992_v56  ;;  %1219 = vmatpush1.bf16.msra.mxu1 %v5996_v57 }
  0xeb   : > { %1220 = vmatprep.subr.bf16.mxu1 %v6004_v60  ;;  %3628 = vperm.xlu0 %4842, %v3625_v24  }
  0xed   : > { %1178 = vmatpush1.bf16.msra.mxu0 %v6001_v59 }
  0xee   : > { %1179 = vmatprep.subr.bf16.mxu0 %v6010_v61  ;;  %1221 = vmatpush1.bf16.msra.mxu1 %v6013_v62 }
  0xef   : > { %720 = vmatmul.mubr.bf16.gmra.mrb[12].mxu0 %v4907_v2  ;;  %833 = vmatmul.mubr.bf16.gmra.mrb[12].mxu1 %v4907_v2  ;;  %v2468_v2 = vsel %vm2466_vm11, 1, %v5549_v0 }
  0xf0   : > { %729 = vmatprep.mubr.bf16.mxu0 %v5549_v0  ;;  %842 = vmatprep.mubr.bf16.mxu1 %v5549_v0 }
  0xf1   : > { %1180 = vmatpush1.bf16.msra.mxu0 %v6023_v3  ;;  %1222 = vmatprep.subr.bf16.mxu1 %v6027_v4 }
  0xf2   : > { %1181 = vmatprep.subr.bf16.mxu0 %v6030_v5  ;;  %1223 = vmatpush1.bf16.msra.mxu1 %v6033_v6 }
  0xf3   : > { %1224 = vmatprep.subr.bf16.mxu1 %v6041_v7  ;;  %4014 = vperm.xlu0 %4842, %v4011_v25  }
  0xf5   : > { %1182 = vmatpush1.bf16.msra.mxu0 %v6047_v8 }
  0xf6   : > { %1225 = vmatpush1.bf16.msra.mxu1 %v6052_v9  ;;  %1550 = vmatprep.subr.bf16.mxu0 %v5909_v33  ;;  %v435_v33 = vsub.s32 1, %v430_v28 }
  0xf7   : > { %730 = vmatmul.mubr.bf16.gmra.mrb[16].mxu0 %v4914_v12  ;;  %843 = vmatmul.mubr.bf16.gmra.mrb[16].mxu1 %v4914_v12 }
  0xf8   : > { %739 = vmatprep.mubr.bf16.mxu0 %v5549_v0  ;;  %852 = vmatprep.mubr.bf16.mxu1 %v5549_v0 }
  0xf9   : > { %1593 = vmatprep.subr.bf16.mxu1 %v5912_v34  ;;  %v1692_v34 = vstv %s6159_s15  ;;  %s4390_s15 = sshll.u32 %s6037_s17, 4  ;;  %s4435_s17 = sshll.u32 %s6058_s25, 4 }
  0xfa   : > { %vm1693_vm8 = vcmp.lt.s32.totalorder %v1692_v34, %v5998_v58  ;;  %vm1694_vm9 = vcmp.lt.s32.totalorder %v1692_v34, %v6016_v1  ;;  %s1726_s8 = sshra.s32 %s4390_s15, 4  ;;  %s2112_s13 = sshra.s32 %s4435_s17, 4 }
  0xfb   : > { %s4679_s28 = sshll.u32 %s2112_s13, 5  ;;  %s4690_s17 = sshll.u32 %s6085_s16, 3 }
  0xfc   : > { %s2116_s0 = scalar_lea.vmem [#allocation2], %s4679_s28  ;;  %s3265_s13 = scalar_lea.vmem %s6281_s6, %s4690_s17 [#allocation11] }
  0xff   : > { %740 = vmatmul.mubr.bf16.gmra.mrb[20].mxu0 %v4921_v16  ;;  %853 = vmatmul.mubr.bf16.gmra.mrb[20].mxu1 %v4921_v16 }
 0x100   : > { %749 = vmatprep.mubr.bf16.mxu0 %v5549_v0  ;;  %862 = vmatprep.mubr.bf16.mxu1 %v5549_v0 }
 0x107   : > { %750 = vmatmul.mubr.bf16.gmra.mrb[24].mxu0 %v4928_v22  ;;  %863 = vmatmul.mubr.bf16.gmra.mrb[24].mxu1 %v4928_v22 }
 0x108   : > { %759 = vmatprep.mubr.bf16.mxu0 %v5549_v0  ;;  %872 = vmatprep.mubr.bf16.mxu1 %v5549_v0 }
 0x10f   : > { %760 = vmatmul.mubr.bf16.gmra.mrb[28].mxu0 %v4935_v26  ;;  %873 = vmatmul.mubr.bf16.gmra.mrb[28].mxu1 %v4935_v26 }
 0x110   : > { %1199 = vmatprep.mubr.bf16.mxu0 %v5549_v0  ;;  %1242 = vmatprep.mubr.bf16.mxu1 %v5549_v0 }
 0x117   : > { %1200 = vmatmul.mubr.bf16.vlgmr.msra.gmra.mrb[32].mxu0 %v5549_v0  ;;  %1243 = vmatmul.mubr.bf16.vlgmr.msra.gmra.mrb[32].mxu1 %v5549_v0 }
 0x118   : > { %1551 = vmatpush1.bf16.msra.mxu0 %v5915_v36  ;;  %1594 = vmatpush1.bf16.msra.mxu1 %v5923_v38  ;;  %v6166_v36 = vrot.slane %v427_v32, %v443_v30  ;;  %v6169_v38 = vrot.slane %v427_v32, %v431_v31 }
 0x119   : > { %1552 = vmatprep.subr.bf16.mxu0 %v5919_v37  ;;  %1595 = vmatprep.subr.bf16.mxu1 %v5926_v39  ;;  %v1695_v37 = vsel %vm1693_vm8, 1, %v5549_v0 }
 0x11a   : > { %1582 = vmatprep.mubr.bf16.mxu0 %v5549_v0  ;;  %1625 = vmatprep.mubr.bf16.mxu1 %v5549_v0 }
 0x11b   : > { %1698 = vperm.xlu1 %4843, %v1695_v37  }
 0x11c   : > { %1553 = vmatpush1.bf16.msra.mxu0 %v5931_v40  ;;  %1596 = vmatpush1.bf16.msra.mxu1 %v5940_v42  ;;  %v6171_v40 = vrot.slane %v427_v32, %v435_v33  ;;  %v1696_v42 = vsel %vm1694_vm9, 1, %v5549_v0 }
 0x11d   : > { %1554 = vmatprep.subr.bf16.mxu0 %v5936_v41  ;;  %1597 = vmatprep.subr.bf16.mxu1 %v5950_v45 }
 0x11f   : > { %1701 = vperm.xlu1 %4843, %v1696_v42  }
 0x120   : > { %1555 = vmatpush1.bf16.msra.mxu0 %v5945_v44  ;;  %1598 = vmatpush1.bf16.msra.mxu1 %v5957_v47 }
 0x121   : > { %1556 = vmatprep.subr.bf16.mxu0 %v5953_v46  ;;  %1599 = vmatprep.subr.bf16.mxu1 %v5960_v48 }
 0x124   : > { %1557 = vmatpush1.bf16.msra.mxu0 %v5970_v49  ;;  %1600 = vmatpush1.bf16.msra.mxu1 %v5979_v51 }
 0x125   : > { %1558 = vmatprep.subr.bf16.mxu0 %v5975_v50  ;;  %1601 = vmatprep.subr.bf16.mxu1 %v5988_v55 }
 0x128   : > { %1559 = vmatpush1.bf16.msra.mxu0 %v5983_v53  ;;  %1602 = vmatpush1.bf16.msra.mxu1 %v5996_v57  ;;  %v2082_v57 = vsel %vm2080_vm10, 1, %v5549_v0 }
 0x129   : > { %1560 = vmatprep.subr.bf16.mxu0 %v5992_v56  ;;  %1603 = vmatprep.subr.bf16.mxu1 %v6004_v60 }
 0x12a   : > { %2087 = vperm.xlu1 %4843, %v2082_v57  }
 0x12c   : > { %1561 = vmatpush1.bf16.msra.mxu0 %v6001_v59  ;;  %1604 = vmatpush1.bf16.msra.mxu1 %v6013_v62 }
 0x12d   : > { %1562 = vmatprep.subr.bf16.mxu0 %v6010_v61  ;;  %1605 = vmatprep.subr.bf16.mxu1 %v6027_v4 }
 0x12e   : > { %2473 = vperm.xlu1 %4843, %v2468_v2  }
 0x130   : > { %1563 = vmatpush1.bf16.msra.mxu0 %v6023_v3  ;;  %1606 = vmatpush1.bf16.msra.mxu1 %v6033_v6 }
 0x131   : > { %1564 = vmatprep.subr.bf16.mxu0 %v6030_v5  ;;  %1607 = vmatprep.subr.bf16.mxu1 %v6041_v7 }
 0x132   : > { %2859 = vperm.xlu1 %4843, %v2854_v17  }
 0x134   : > { %1565 = vmatpush1.bf16.msra.mxu0 %v6047_v8  ;;  %1608 = vmatpush1.bf16.msra.mxu1 %v6052_v9 }
 0x136   : > { %3245 = vperm.xlu1 %4843, %v3240_v27  }
 0x1aa   : > { %v691_v39 = vpop.f32.mrb[0].mxu0  ;;  %v804_v41 = vpop.f32.mrb[0].mxu1 }
 0x1ab   : > { %v693_v43 = vpop.f32.mrb[1].mxu0  ;;  %v805_v44 = vadd.f32 %v804_v41, %v6162_v35  ;;  %v806_v45 = vpop.f32.mrb[1].mxu1  ;;  %v692_v49 = vadd.f32 %v691_v39, %v6169_v38 }
 0x1ac   : > { %v695_v46 = vpop.f32.mrb[2].mxu0  ;;  %v807_v47 = vadd.f32 %v806_v45, %v6166_v36  ;;  %v808_v48 = vpop.f32.mrb[2].mxu1  ;;  %v694_v54 = vadd.f32 %v693_v43, %v6171_v40 }
 0x1ad   : > { %v696_v50 = vadd.f32 %v695_v46, %v6169_v38  ;;  %v697_v51 = vpop.f32.mrb[3].mxu0  ;;  %v809_v52 = vadd.f32 %v808_v48, %v6162_v35  ;;  %v810_v53 = vpop.f32.mrb[3].mxu1 }
 0x1ae   : > { %v698_v55 = vadd.f32 %v697_v51, %v6171_v40  ;;  %v811_v56 = vadd.f32 %v810_v53, %v6166_v36  ;;  %v4012_v51 = vsel %vm4010_vm15, 1, %v5549_v0 }
 0x1af   : > { %v884_v58 = vpack.c.bf16 %v696_v50, %v692_v49  ;;  %v886_v59 = vpack.c.bf16 %v809_v52, %v805_v44  ;;  %v3626_v44 = vsel %vm3624_vm14, 1, %v5549_v0 }
 0x1b0   : > { %v885_v60 = vpack.c.bf16 %v698_v55, %v694_v54  ;;  %v887_v61 = vpack.c.bf16 %v811_v56, %v807_v47  ;;  %3631 = vperm.xlu1 %4843, %v3626_v44  }
 0x1b1   : > { %921 = vst [vmem:[#allocation2] sm:$0xff] %v884_v58  ;;  %923 = vst [vmem:[#allocation2 + $0x10] sm:$0xff] %v886_v59 }
 0x1b2   : > { %922 = vst [vmem:[#allocation2 + $0x8] sm:$0xff] %v885_v60  ;;  %v701_v62 = vpop.f32.mrb[4].mxu0  ;;  %924 = vst [vmem:[#allocation2 + $0x18] sm:$0xff] %v887_v61  ;;  %v814_v63 = vpop.f32.mrb[4].mxu1 }
 0x1b3   : > { %v703_v3 = vpop.f32.mrb[5].mxu0  ;;  %v815_v4 = vadd.f32 %v814_v63, %v6162_v35  ;;  %v816_v5 = vpop.f32.mrb[5].mxu1  ;;  %v702_v9 = vadd.f32 %v701_v62, %v6169_v38 }
 0x1b4   : > { %v705_v6 = vpop.f32.mrb[6].mxu0  ;;  %v817_v7 = vadd.f32 %v816_v5, %v6166_v36  ;;  %v818_v8 = vpop.f32.mrb[6].mxu1  ;;  %v704_v14 = vadd.f32 %v703_v3, %v6171_v40  ;;  %4017 = vperm.xlu1 %4843, %v4012_v51  }
 0x1b5   : > { %v706_v10 = vadd.f32 %v705_v6, %v6169_v38  ;;  %v707_v11 = vpop.f32.mrb[7].mxu0  ;;  %v819_v12 = vadd.f32 %v818_v8, %v6162_v35  ;;  %v820_v13 = vpop.f32.mrb[7].mxu1 }
 0x1b6   : > { %v708_v16 = vadd.f32 %v707_v11, %v6171_v40  ;;  %v821_v15 = vadd.f32 %v820_v13, %v6166_v36 }
 0x1b7   : > { %v888_v19 = vpack.c.bf16 %v706_v10, %v702_v9  ;;  %v890_v21 = vpack.c.bf16 %v819_v12, %v815_v4 }
 0x1b8   : > { %v889_v22 = vpack.c.bf16 %v708_v16, %v704_v14  ;;  %v891_v24 = vpack.c.bf16 %v821_v15, %v817_v7 }
 0x1b9   : > { %925 = vst [vmem:[#allocation2 + $0x20] sm:$0xff] %v888_v19  ;;  %927 = vst [vmem:[#allocation2 + $0x30] sm:$0xff] %v890_v21 }
 0x1ba   : > { %926 = vst [vmem:[#allocation2 + $0x28] sm:$0xff] %v889_v22  ;;  %v711_v25 = vpop.f32.mrb[8].mxu0  ;;  %928 = vst [vmem:[#allocation2 + $0x38] sm:$0xff] %v891_v24  ;;  %v824_v26 = vpop.f32.mrb[8].mxu1 }
 0x1bb   : > { %v713_v28 = vpop.f32.mrb[9].mxu0  ;;  %v825_v29 = vadd.f32 %v824_v26, %v6162_v35  ;;  %v826_v30 = vpop.f32.mrb[9].mxu1  ;;  %v712_v33 = vadd.f32 %v711_v25, %v6169_v38 }
 0x1bc   : > { %v715_v18 = vpop.f32.mrb[10].mxu0  ;;  %v827_v31 = vadd.f32 %v826_v30, %v6166_v36  ;;  %v828_v32 = vpop.f32.mrb[10].mxu1  ;;  %v714_v42 = vadd.f32 %v713_v28, %v6171_v40 }
 0x1bd   : > { %v716_v34 = vadd.f32 %v715_v18, %v6169_v38  ;;  %v717_v37 = vpop.f32.mrb[11].mxu0  ;;  %v829_v39 = vadd.f32 %v828_v32, %v6162_v35  ;;  %v830_v41 = vpop.f32.mrb[11].mxu1 }
 0x1be   : > { %v718_v43 = vadd.f32 %v717_v37, %v6171_v40  ;;  %v831_v20 = vadd.f32 %v830_v41, %v6166_v36 }
 0x1bf   : > { %v892_v45 = vpack.c.bf16 %v716_v34, %v712_v33  ;;  %v894_v46 = vpack.c.bf16 %v829_v39, %v825_v29 }
 0x1c0   : > { %v893_v47 = vpack.c.bf16 %v718_v43, %v714_v42  ;;  %v895_v48 = vpack.c.bf16 %v831_v20, %v827_v31 }
 0x1c1   : > { %929 = vst [vmem:[#allocation2 + $0x40] sm:$0xff] %v892_v45  ;;  %931 = vst [vmem:[#allocation2 + $0x50] sm:$0xff] %v894_v46 }
 0x1c2   : > { %930 = vst [vmem:[#allocation2 + $0x48] sm:$0xff] %v893_v47  ;;  %v721_v49 = vpop.f32.mrb[12].mxu0  ;;  %932 = vst [vmem:[#allocation2 + $0x58] sm:$0xff] %v895_v48  ;;  %v834_v50 = vpop.f32.mrb[12].mxu1 }
 0x1c3   : > { %v723_v52 = vpop.f32.mrb[13].mxu0  ;;  %v835_v53 = vadd.f32 %v834_v50, %v6162_v35  ;;  %v836_v54 = vpop.f32.mrb[13].mxu1  ;;  %v722_v1 = vadd.f32 %v721_v49, %v6169_v38 }
 0x1c4   : > { %v725_v55 = vpop.f32.mrb[14].mxu0  ;;  %v837_v56 = vadd.f32 %v836_v54, %v6166_v36  ;;  %v838_v57 = vpop.f32.mrb[14].mxu1  ;;  %v724_v61 = vadd.f32 %v723_v52, %v6171_v40 }
 0x1c5   : > { %v726_v23 = vadd.f32 %v725_v55, %v6169_v38  ;;  %v727_v58 = vpop.f32.mrb[15].mxu0  ;;  %v839_v59 = vadd.f32 %v838_v57, %v6162_v35  ;;  %v840_v60 = vpop.f32.mrb[15].mxu1 }
 0x1c6   : > { %v728_v62 = vadd.f32 %v727_v58, %v6171_v40  ;;  %v841_v63 = vadd.f32 %v840_v60, %v6166_v36 }
 0x1c7   : > { %v896_v2 = vpack.c.bf16 %v726_v23, %v722_v1  ;;  %v898_v3 = vpack.c.bf16 %v839_v59, %v835_v53 }
 0x1c8   : > { %v897_v4 = vpack.c.bf16 %v728_v62, %v724_v61  ;;  %v899_v5 = vpack.c.bf16 %v841_v63, %v837_v56 }
 0x1c9   : > { %933 = vst [vmem:[#allocation2 + $0x60] sm:$0xff] %v896_v2  ;;  %935 = vst [vmem:[#allocation2 + $0x70] sm:$0xff] %v898_v3 }
 0x1ca   : > { %934 = vst [vmem:[#allocation2 + $0x68] sm:$0xff] %v897_v4  ;;  %v731_v6 = vpop.f32.mrb[16].mxu0  ;;  %936 = vst [vmem:[#allocation2 + $0x78] sm:$0xff] %v899_v5  ;;  %v844_v7 = vpop.f32.mrb[16].mxu1 }
 0x1cb   : > { %v733_v8 = vpop.f32.mrb[17].mxu0  ;;  %v845_v9 = vadd.f32 %v844_v7, %v6162_v35  ;;  %v846_v10 = vpop.f32.mrb[17].mxu1  ;;  %v732_v14 = vadd.f32 %v731_v6, %v6169_v38 }
 0x1cc   : > { %v735_v11 = vpop.f32.mrb[18].mxu0  ;;  %v847_v12 = vadd.f32 %v846_v10, %v6166_v36  ;;  %v848_v13 = vpop.f32.mrb[18].mxu1  ;;  %v734_v21 = vadd.f32 %v733_v8, %v6171_v40 }
 0x1cd   : > { %v736_v16 = vadd.f32 %v735_v11, %v6169_v38  ;;  %v737_v15 = vpop.f32.mrb[19].mxu0  ;;  %v849_v17 = vadd.f32 %v848_v13, %v6162_v35  ;;  %v850_v19 = vpop.f32.mrb[19].mxu1 }
 0x1ce   : > { %v738_v22 = vadd.f32 %v737_v15, %v6171_v40  ;;  %v851_v24 = vadd.f32 %v850_v19, %v6166_v36 }
 0x1cf   : > { %v900_v25 = vpack.c.bf16 %v736_v16, %v732_v14  ;;  %v902_v26 = vpack.c.bf16 %v849_v17, %v845_v9 }
 0x1d0   : > { %v901_v27 = vpack.c.bf16 %v738_v22, %v734_v21  ;;  %v903_v28 = vpack.c.bf16 %v851_v24, %v847_v12 }
 0x1d1   : > { %937 = vst [vmem:[#allocation2 + $0x80] sm:$0xff] %v900_v25  ;;  %939 = vst [vmem:[#allocation2 + $0x90] sm:$0xff] %v902_v26 }
 0x1d2   : > { %938 = vst [vmem:[#allocation2 + $0x88] sm:$0xff] %v901_v27  ;;  %940 = vst [vmem:[#allocation2 + $0x98] sm:$0xff] %v903_v28  ;;  %v741_v29 = vpop.f32.mrb[20].mxu0  ;;  %v854_v30 = vpop.f32.mrb[20].mxu1 }
 0x1d3   : > { %v855_v18 = vadd.f32 %v854_v30, %v6162_v35  ;;  %v743_v31 = vpop.f32.mrb[21].mxu0  ;;  %v856_v32 = vpop.f32.mrb[21].mxu1  ;;  %v742_v39 = vadd.f32 %v741_v29, %v6169_v38 }
 0x1d4   : > { %v857_v33 = vadd.f32 %v856_v32, %v6166_v36  ;;  %v745_v34 = vpop.f32.mrb[22].mxu0  ;;  %v858_v37 = vpop.f32.mrb[22].mxu1  ;;  %v744_v44 = vadd.f32 %v743_v31, %v6171_v40 }
 0x1d5   : > { %v746_v41 = vadd.f32 %v745_v34, %v6169_v38  ;;  %v859_v42 = vadd.f32 %v858_v37, %v6162_v35  ;;  %v747_v43 = vpop.f32.mrb[23].mxu0  ;;  %v860_v20 = vpop.f32.mrb[23].mxu1 }
 0x1d6   : > { %v748_v45 = vadd.f32 %v747_v43, %v6171_v40  ;;  %v861_v46 = vadd.f32 %v860_v20, %v6166_v36 }
 0x1d7   : > { %v904_v47 = vpack.c.bf16 %v746_v41, %v742_v39  ;;  %v906_v48 = vpack.c.bf16 %v859_v42, %v855_v18 }
 0x1d8   : > { %v905_v49 = vpack.c.bf16 %v748_v45, %v744_v44  ;;  %v907_v50 = vpack.c.bf16 %v861_v46, %v857_v33 }
 0x1d9   : > { %941 = vst [vmem:[#allocation2 + $0xa0] sm:$0xff] %v904_v47  ;;  %943 = vst [vmem:[#allocation2 + $0xb0] sm:$0xff] %v906_v48 }
 0x1da   : > { %942 = vst [vmem:[#allocation2 + $0xa8] sm:$0xff] %v905_v49  ;;  %944 = vst [vmem:[#allocation2 + $0xb8] sm:$0xff] %v907_v50  ;;  %v751_v51 = vpop.f32.mrb[24].mxu0  ;;  %v864_v52 = vpop.f32.mrb[24].mxu1 }
 0x1db   : > { %v865_v53 = vadd.f32 %v864_v52, %v6162_v35  ;;  %v753_v54 = vpop.f32.mrb[25].mxu0  ;;  %v866_v55 = vpop.f32.mrb[25].mxu1  ;;  %v752_v23 = vadd.f32 %v751_v51, %v6169_v38 }
 0x1dc   : > { %v867_v56 = vadd.f32 %v866_v55, %v6166_v36  ;;  %v755_v57 = vpop.f32.mrb[26].mxu0  ;;  %v868_v1 = vpop.f32.mrb[26].mxu1  ;;  %v754_v62 = vadd.f32 %v753_v54, %v6171_v40 }
 0x1dd   : > { %v756_v58 = vadd.f32 %v755_v57, %v6169_v38  ;;  %v869_v59 = vadd.f32 %v868_v1, %v6162_v35  ;;  %v757_v60 = vpop.f32.mrb[27].mxu0  ;;  %v870_v61 = vpop.f32.mrb[27].mxu1 }
 0x1de   : > { %v758_v63 = vadd.f32 %v757_v60, %v6171_v40  ;;  %v871_v2 = vadd.f32 %v870_v61, %v6166_v36 }
 0x1df   : > { %v908_v3 = vpack.c.bf16 %v756_v58, %v752_v23  ;;  %v910_v4 = vpack.c.bf16 %v869_v59, %v865_v53 }
 0x1e0   : > { %v909_v5 = vpack.c.bf16 %v758_v63, %v754_v62  ;;  %v911_v6 = vpack.c.bf16 %v871_v2, %v867_v56 }
 0x1e1   : > { %945 = vst [vmem:[#allocation2 + $0xc0] sm:$0xff] %v908_v3  ;;  %947 = vst [vmem:[#allocation2 + $0xd0] sm:$0xff] %v910_v4 }
 0x1e2   : > { %946 = vst [vmem:[#allocation2 + $0xc8] sm:$0xff] %v909_v5  ;;  %948 = vst [vmem:[#allocation2 + $0xd8] sm:$0xff] %v911_v6  ;;  %v761_v7 = vpop.f32.mrb[28].mxu0  ;;  %v874_v8 = vpop.f32.mrb[28].mxu1 }
 0x1e3   : > { %v875_v9 = vadd.f32 %v874_v8, %v6162_v35  ;;  %v763_v10 = vpop.f32.mrb[29].mxu0  ;;  %v876_v11 = vpop.f32.mrb[29].mxu1  ;;  %v762_v16 = vadd.f32 %v761_v7, %v6169_v38 }
 0x1e4   : > { %v877_v12 = vadd.f32 %v876_v11, %v6166_v36  ;;  %v765_v13 = vpop.f32.mrb[30].mxu0  ;;  %v878_v14 = vpop.f32.mrb[30].mxu1  ;;  %v764_v22 = vadd.f32 %v763_v10, %v6171_v40 }
 0x1e5   : > { %v766_v15 = vadd.f32 %v765_v13, %v6169_v38  ;;  %v879_v17 = vadd.f32 %v878_v14, %v6162_v35  ;;  %v767_v19 = vpop.f32.mrb[31].mxu0  ;;  %v880_v21 = vpop.f32.mrb[31].mxu1 }
 0x1e6   : > { %v768_v24 = vadd.f32 %v767_v19, %v6171_v40  ;;  %v881_v25 = vadd.f32 %v880_v21, %v6166_v36 }
 0x1e7   : > { %v912_v26 = vpack.c.bf16 %v766_v15, %v762_v16  ;;  %v914_v27 = vpack.c.bf16 %v879_v17, %v875_v9 }
 0x1e8   : > { %v913_v28 = vpack.c.bf16 %v768_v24, %v764_v22  ;;  %v915_v29 = vpack.c.bf16 %v881_v25, %v877_v12  ;;  %v6269_v25 = vpop.permute.xlu0 %1315 }
 0x1e9   : > { %949 = vst [vmem:[#allocation2 + $0xe0] sm:$0xff] %v912_v26  ;;  %951 = vst [vmem:[#allocation2 + $0xf0] sm:$0xff] %v914_v27  ;;  %vm1320_vm0 = vcmp.eq.s32.totalorder %v6269_v25, 1 }
 0x1ea   : > { %950 = vst [vmem:[#allocation2 + $0xe8] sm:$0xff] %v913_v28  ;;  %952 = vst [vmem:[#allocation2 + $0xf8] sm:$0xff] %v915_v29  ;;  %v1201_v38 = vpop.f32.mrb[32].mxu0  ;;  %v1244_v35 = vpop.f32.mrb[32].mxu1 }
 0x1eb   : > { %v1203_v30 = vpop.f32.mrb[33].mxu0  ;;  %v1246_v18 = vpop.f32.mrb[33].mxu1 }
 0x1ec   : > { %v1205_v31 = vpop.f32.mrb[34].mxu0  ;;  %v1248_v32 = vpop.f32.mrb[34].mxu1 }
 0x1ed   : > { %v1207_v33 = vpop.f32.mrb[35].mxu0  ;;  %v1250_v40 = vpop.f32.mrb[35].mxu1 }
 0x1f1   : > { %v963_v36 = vld [vmem:[%s962_s2] sm:$0xff]  ;;  %v964_v37 = vld [vmem:[%s962_s2 + $0x8] sm:$0xff]  ;;  %v966_v44 = vld [vmem:[%s962_s2 + $0x18] sm:$0xff] }
 0x1f2   : > { %v967_v34 = vunpack.c.l.bf16 %v963_v36  ;;  %v971_v39 = vunpack.c.h.bf16 %v963_v36  ;;  %v968_v41 = vunpack.c.l.bf16 %v964_v37  ;;  %v972_v42 = vunpack.c.h.bf16 %v964_v37  ;;  %v965_v49 = vld [vmem:[%s962_s2 + $0x10] sm:$0xff]  ;;  %v6300_v36 = vld [vmem:[%s5900_s24 + $0xc] ss:$16 sps:$4 sm:$0xff]   ;;  %v6306_v37 = vld [vmem:[%s5900_s24 + $0x8] ss:$16 sps:$4 sm:$0xff]   ;;  %s4675_s2 = sshll.u32 %s1726_s8, 5 }
 0x1f3   : > { %v970_v52 = vunpack.c.l.bf16 %v966_v44  ;;  %v974_v53 = vunpack.c.h.bf16 %v966_v44  ;;  %v969_v54 = vunpack.c.l.bf16 %v965_v49  ;;  %v973_v55 = vunpack.c.h.bf16 %v965_v49  ;;  %1979 = vmatprep.subr.bf16.mxu1 %v6300_v36  ;;  %v6332_v44 = vld [vmem:[%s5900_s24 + $0x4c] ss:$16 sps:$4 sm:$0xff]   ;;  %v6351_v49 = vld [vmem:[%s5900_s24 + $0x60] ss:$16 sps:$4 sm:$0xff]   ;;  %s1730_s26 = scalar_lea.vmem [#allocation2], %s4675_s2 }
 0x1f4   : > { %v1253_v43 = vadd.f32 %v1201_v38, %v967_v34  ;;  %v1257_v20 = vadd.f32 %v1205_v31, %v971_v39  ;;  %v1254_v45 = vadd.f32 %v1203_v30, %v968_v41  ;;  %v1258_v46 = vadd.f32 %v1207_v33, %v972_v42  ;;  %v6278_v30 = vpop.permute.xlu0 %1318  ;;  %v6303_v34 = vld [vmem:[%s5900_s24] ss:$16 sps:$4 sm:$0xff]   ;;  %v6313_v39 = vld [vmem:[%s5900_s24 + $0x24] ss:$16 sps:$4 sm:$0xff]   ;;  %v6316_v41 = vld [vmem:[%s5900_s24 + $0x2c] ss:$16 sps:$4 sm:$0xff]  }
 0x1f5   : > { %v1256_v56 = vadd.f32 %v1246_v18, %v970_v52  ;;  %v1260_v57 = vadd.f32 %v1250_v40, %v974_v53  ;;  %v1255_v1 = vadd.f32 %v1244_v35, %v969_v54  ;;  %v1259_v23 = vadd.f32 %v1248_v32, %v973_v55  ;;  %v6297_v40 = vld [vmem:[%s5900_s24 + $0x4] ss:$16 sps:$4 sm:$0xff]   ;;  %v6319_v42 = vld [vmem:[%s5900_s24 + $0x20] ss:$16 sps:$4 sm:$0xff]   ;;  %v6364_v52 = vld [vmem:[%s5900_s24 + $0x8c] ss:$16 sps:$4 sm:$0xff]  }
 0x1f6   : > { %v4329_v47 = vmul.f32 -1.442695, %v1253_v43  ;;  %v4330_v48 = vmul.f32 -1.442695, %v1257_v20  ;;  %v4331_v50 = vmul.f32 -1.442695, %v1254_v45  ;;  %1936 = vmatprep.subr.bf16.mxu0 %v6297_v40 }
 0x1f7   : > { %v4332_v51 = vmul.f32 -1.442695, %v1258_v46  ;;  %v4333_v58 = vmul.f32 -1.442695, %v1256_v56  ;;  %v4334_v59 = vmul.f32 -1.442695, %v1260_v57 }
 0x1f8   : > { %5044 = vpow2.f32 %v4329_v47  ;;  %vm1321_vm1 = vcmp.eq.s32.totalorder %v6278_v30, 1  ;;  %v6322_v43 = vld [vmem:[%s5900_s24 + $0x28] ss:$16 sps:$4 sm:$0xff]   ;;  %v6329_v20 = vld [vmem:[%s5900_s24 + $0x44] ss:$16 sps:$4 sm:$0xff]  }
 0x1f9   : > { %5046 = vpow2.f32 %v4331_v50  ;;  %vm4374_vm2 = vmpackc.low %vm1321_vm1, %vm1320_vm0  ;;  %v6335_v45 = vld [vmem:[%s5900_s24 + $0x40] ss:$16 sps:$4 sm:$0xff]   ;;  %v6338_v46 = vld [vmem:[%s5900_s24 + $0x48] ss:$16 sps:$4 sm:$0xff]  }
 0x1fa   : > { %5048 = vpow2.f32 %v4330_v48  ;;  %v6345_v47 = vld [vmem:[%s5900_s24 + $0x64] ss:$16 sps:$4 sm:$0xff]   ;;  %v6348_v48 = vld [vmem:[%s5900_s24 + $0x6c] ss:$16 sps:$4 sm:$0xff]   ;;  %v6354_v50 = vld [vmem:[%s5900_s24 + $0x68] ss:$16 sps:$4 sm:$0xff]  }
 0x1fb   : > { %5050 = vpow2.f32 %v4332_v51  ;;  %v6361_v51 = vld [vmem:[%s5900_s24 + $0x84] ss:$16 sps:$4 sm:$0xff]   ;;  %v6367_v53 = vld [vmem:[%s5900_s24 + $0x80] ss:$16 sps:$4 sm:$0xff]   ;;  %v6370_v54 = vld [vmem:[%s5900_s24 + $0x88] ss:$16 sps:$4 sm:$0xff]  }
 0x1fc   : > { %5052 = vtanh.f32 %v1255_v1  ;;  %v6377_v55 = vld [vmem:[%s5900_s24 + $0xa4] ss:$16 sps:$4 sm:$0xff]   ;;  %v6380_v56 = vld [vmem:[%s5900_s24 + $0xac] ss:$16 sps:$4 sm:$0xff]   ;;  %v6383_v57 = vld [vmem:[%s5900_s24 + $0xa0] ss:$16 sps:$4 sm:$0xff]  }
 0x1fd   : > { %5054 = vtanh.f32 %v1259_v23  ;;  %v6386_v1 = vld [vmem:[%s5900_s24 + $0xa8] ss:$16 sps:$4 sm:$0xff]   ;;  %v6393_v23 = vld [vmem:[%s5900_s24 + $0xc4] ss:$16 sps:$4 sm:$0xff]  }
 0x1fe   : > { %5056 = vpow2.f32 %v4333_v58  ;;  %v6396_v58 = vld [vmem:[%s5900_s24 + $0xcc] ss:$16 sps:$4 sm:$0xff]  }
 0x1ff   : > { %5058 = vpow2.f32 %v4334_v59  ;;  %v6399_v59 = vld [vmem:[%s5900_s24 + $0xc0] ss:$16 sps:$4 sm:$0xff]  }
 0x202   : > { %v5045_v60 = vpop.eup %5044 }
 0x203   : > { %v5047_v61 = vpop.eup %5046  ;;  %v1267_v62 = vadd.f32 1.0, %v5045_v60  ;;  %v6402_v60 = vld [vmem:[%s5900_s24 + $0xc8] ss:$16 sps:$4 sm:$0xff]  }
 0x204   : > { %v5049_v63 = vpop.eup %5048  ;;  %v1279_v2 = vadd.f32 1.0, %v5047_v61  ;;  %v6409_v61 = vld [vmem:[%s5900_s24 + $0xe4] ss:$16 sps:$4 sm:$0xff]  }
 0x205   : > { %v5051_v3 = vpop.eup %5050  ;;  %5060 = vrcp.f32 %v1267_v62  ;;  %v1268_v4 = vadd.f32 1.0, %v5049_v63  ;;  %v6412_v62 = vld [vmem:[%s5900_s24 + $0xec] ss:$16 sps:$4 sm:$0xff]   ;;  %v6415_v63 = vld [vmem:[%s5900_s24 + $0xe0] ss:$16 sps:$4 sm:$0xff]  }
 0x206   : > { %5062 = vrcp.f32 %v1279_v2  ;;  %v1280_v5 = vadd.f32 1.0, %v5051_v3  ;;  %v5053_v6 = vpop.eup %5052  ;;  %v6418_v2 = vld [vmem:[%s5900_s24 + $0xe8] ss:$16 sps:$4 sm:$0xff]   ;;  %v1346_v3 = vld [vmem:[%s1345_s27] sm:$0xff] }
 0x207   : > { %5064 = vrcp.f32 %v1268_v4  ;;  %v5055_v7 = vpop.eup %5054  ;;  %v1347_v4 = vld [vmem:[%s1345_s27 + $0x8] sm:$0xff] }
 0x208   : > { %5066 = vrcp.f32 %v1280_v5  ;;  %v5057_v8 = vpop.eup %5056  ;;  %v1350_v5 = vunpack.c.l.bf16 %v1346_v3 }
 0x209   : > { %v5059_v9 = vpop.eup %5058  ;;  %v1293_v12 = vadd.f32 1.0, %v5057_v8  ;;  %v1351_v8 = vunpack.c.l.bf16 %v1347_v4 }
 0x20a   : > { %v1294_v17 = vadd.f32 1.0, %v5059_v9 }
 0x20b   : > { %5068 = vrcp.f32 %v1293_v12  ;;  %v1354_v12 = vunpack.c.h.bf16 %v1346_v3 }
 0x20f   : > { %v5061_v10 = vpop.eup %5060 }
 0x210   : > { %v5063_v11 = vpop.eup %5062  ;;  %v1301_v13 = vmul.f32 %v5061_v10, %v5053_v6 }
 0x211   : > { %v5065_v14 = vpop.eup %5064  ;;  %v1299_v16 = vmul.f32 0.0, %v5063_v11 }
 0x212   : > { %v5067_v15 = vpop.eup %5066  ;;  %v1302_v19 = vmul.f32 %v5065_v14, %v5055_v7 }
 0x213   : > { %v6263_v21 = vadd.f32 %v1301_v13, %v1299_v16  ;;  %v1300_v22 = vmul.f32 0.0, %v5067_v15  ;;  %v1355_v15 = vunpack.c.h.bf16 %v1347_v4 }
 0x215   : > { %5070 = vtanh.f32 %v6263_v21  ;;  %v6266_v24 = vadd.f32 %v1302_v19, %v1300_v22  ;;  %v5069_v26 = vpop.eup %5068  ;;  %v1349_v19 = vld [vmem:[%s1345_s27 + $0x18] sm:$0xff] }
 0x216   : > { %5072 = vrcp.f32 %v1294_v17 }
 0x217   : > { %5074 = vtanh.f32 %v6266_v24 }
 0x21f   : > { %v5071_v27 = vpop.eup %5070 }
 0x220   : > { %v5073_v28 = vpop.eup %5072  ;;  %v1307_v29 = vmul.f32 %v5071_v27, %v5069_v26 }
 0x221   : > { %v5075_v38 = vpop.eup %5074 }
 0x222   : > { %v6276_v35 = vsel %vm1320_vm0, %v1307_v29, 0.0  ;;  %v1308_v18 = vmul.f32 %v5075_v38, %v5073_v28 }
 0x224   : > { %v6286_v31 = vsel %vm1321_vm1, %v1308_v18, 0.0  ;;  %v4375_v32 = vpack.c.bf16 %v1308_v18, %v1307_v29  ;;  %v1348_v18 = vld [vmem:[%s1345_s27 + $0x10] sm:$0xff]  ;;  %s4682_s27 = sshll.u32 %s6058_s25, 3  ;;  %s4480_s25 = sshll.u32 %s6071_s7, 4 }
 0x225   : > { %v4702_v33 = vpack.c.bf16 %v6286_v31, %v6276_v35  ;;  %v1352_v3 = vunpack.c.l.bf16 %v1348_v18  ;;  %v1356_v4 = vunpack.c.h.bf16 %v1348_v18  ;;  %s2493_s30 = scalar_lea.vmem %s6281_s6, %s4682_s27 [#allocation11] }
 0x226   : > { %4376 = vmatmul.mubr.msk.bf16.vlgmr.msra.gmra.mrb[36].mxu0 %vm4374_vm2, %v4375_v32  ;;  %4379 = vmatmul.mubr.msk.bf16.vlgmr.msra.gmra.mrb[36].mxu1 %vm4374_vm2, %v4375_v32  ;;  %v1353_v32 = vunpack.c.l.bf16 %v1349_v19 }
 0x227   : > { %4703 = vst [vmem:[%s1336_s5] sm:$0xff] %v4702_v33   ;;  %1968 = vmatprep.mubr.bf16.mxu0 %v5549_v0  ;;  %2011 = vmatprep.mubr.bf16.mxu1 %v5549_v0  ;;  %s2107_s5 = scalar_lea.vmem %s6281_s6, %s4678_s10 [#allocation11] }
 0x228   : > { %1937 = vmatpush1.bf16.msra.mxu0 %v6303_v34  ;;  %1980 = vmatpush1.bf16.msra.mxu1 %v6306_v37 }
 0x229   : > { %1938 = vmatprep.subr.bf16.mxu0 %v6313_v39  ;;  %1981 = vmatprep.subr.bf16.mxu1 %v6316_v41 }
 0x22c   : > { %1939 = vmatpush1.bf16.msra.mxu0 %v6319_v42  ;;  %1982 = vmatpush1.bf16.msra.mxu1 %v6322_v43 }
 0x22d   : > { %1940 = vmatprep.subr.bf16.mxu0 %v6329_v20  ;;  %1983 = vmatprep.subr.bf16.mxu1 %v6332_v44 }
 0x230   : > { %1941 = vmatpush1.bf16.msra.mxu0 %v6335_v45  ;;  %1984 = vmatpush1.bf16.msra.mxu1 %v6338_v46 }
 0x231   : > { %1942 = vmatprep.subr.bf16.mxu0 %v6345_v47  ;;  %1985 = vmatprep.subr.bf16.mxu1 %v6348_v48 }
 0x234   : > { %1943 = vmatpush1.bf16.msra.mxu0 %v6351_v49  ;;  %1986 = vmatpush1.bf16.msra.mxu1 %v6354_v50 }
 0x235   : > { %1944 = vmatprep.subr.bf16.mxu0 %v6361_v51  ;;  %1987 = vmatprep.subr.bf16.mxu1 %v6364_v52 }
 0x238   : > { %1945 = vmatpush1.bf16.msra.mxu0 %v6367_v53  ;;  %1988 = vmatpush1.bf16.msra.mxu1 %v6370_v54 }
 0x239   : > { %1946 = vmatprep.subr.bf16.mxu0 %v6377_v55  ;;  %1989 = vmatprep.subr.bf16.mxu1 %v6380_v56 }
 0x23c   : > { %1947 = vmatpush1.bf16.msra.mxu0 %v6383_v57  ;;  %1990 = vmatpush1.bf16.msra.mxu1 %v6386_v1 }
 0x23d   : > { %1948 = vmatprep.subr.bf16.mxu0 %v6393_v23  ;;  %1991 = vmatprep.subr.bf16.mxu1 %v6396_v58 }
 0x240   : > { %1949 = vmatpush1.bf16.msra.mxu0 %v6399_v59  ;;  %1992 = vmatpush1.bf16.msra.mxu1 %v6402_v60 }
 0x241   : > { %1950 = vmatprep.subr.bf16.mxu0 %v6409_v61  ;;  %1993 = vmatprep.subr.bf16.mxu1 %v6412_v62 }
 0x244   : > { %1951 = vmatpush1.bf16.msra.mxu0 %v6415_v63  ;;  %1994 = vmatpush1.bf16.msra.mxu1 %v6418_v2 }
 0x245   : > { %2322 = vmatprep.subr.bf16.mxu0 %v6297_v40  ;;  %2365 = vmatprep.subr.bf16.mxu1 %v6300_v36 }
 0x2f9   : > { %v1584_v6 = vpop.f32.mrb[36].mxu0  ;;  %v1627_v7 = vpop.f32.mrb[36].mxu1 }
 0x2fa   : > { %v1636_v9 = vadd.f32 %v1584_v6, %v1350_v5  ;;  %v1586_v10 = vpop.f32.mrb[37].mxu0  ;;  %v1629_v11 = vpop.f32.mrb[37].mxu1  ;;  %v1357_v6 = vunpack.c.h.bf16 %v1349_v19 }
 0x2fb   : > { %v1637_v13 = vadd.f32 %v1586_v10, %v1351_v8  ;;  %v1588_v14 = vpop.f32.mrb[38].mxu0  ;;  %v1631_v16 = vpop.f32.mrb[38].mxu1  ;;  %v1639_v5 = vadd.f32 %v1629_v11, %v1353_v32  ;;  %v1638_v8 = vadd.f32 %v1627_v7, %v1352_v3  ;;  %v1324_v32 = vsel %vm1320_vm0, %v6263_v21, 0.0 }
 0x2fc   : > { %v4380_v17 = vmul.f32 -1.442695, %v1636_v9  ;;  %v1640_v22 = vadd.f32 %v1588_v14, %v1354_v12  ;;  %v1590_v26 = vpop.f32.mrb[39].mxu0  ;;  %v1633_v27 = vpop.f32.mrb[39].mxu1  ;;  %v1642_v12 = vadd.f32 %v1631_v16, %v1356_v4 }
 0x2fd   : > { %v4382_v28 = vmul.f32 -1.442695, %v1637_v13  ;;  %v1641_v29 = vadd.f32 %v1590_v26, %v1355_v15  ;;  %v4384_v9 = vmul.f32 -1.442695, %v1639_v5  ;;  %v1643_v10 = vadd.f32 %v1633_v27, %v1357_v6 }
 0x2fe   : > { %5076 = vpow2.f32 %v4380_v17  ;;  %v4381_v38 = vmul.f32 -1.442695, %v1640_v22 }
 0x2ff   : > { %5078 = vpow2.f32 %v4382_v28  ;;  %v4383_v33 = vmul.f32 -1.442695, %v1641_v29  ;;  %v4385_v17 = vmul.f32 -1.442695, %v1643_v10 }
 0x300   : > { %5080 = vpow2.f32 %v4381_v38  ;;  %v1699_v38 = vpop.permute.xlu1 %1698 }
 0x301   : > { %5082 = vpow2.f32 %v4383_v33  ;;  %vm1703_vm3 = vcmp.eq.s32.totalorder %v1699_v38, 1 }
 0x302   : > { %5084 = vtanh.f32 %v1638_v8 }
 0x303   : > { %5086 = vpow2.f32 %v4384_v9 }
 0x304   : > { %5088 = vtanh.f32 %v1642_v12  ;;  %v1325_v12 = vsel %vm1321_vm1, %v6266_v24, 0.0  ;;  %v1702_v21 = vpop.permute.xlu1 %1701 }
 0x305   : > { %vm1704_vm4 = vcmp.eq.s32.totalorder %v1702_v21, 1 }
 0x308   : > { %v5077_v14 = vpop.eup %5076 }
 0x309   : > { %v5079_v13 = vpop.eup %5078  ;;  %v1650_v15 = vadd.f32 1.0, %v5077_v14 }
 0x30a   : > { %v1662_v22 = vadd.f32 1.0, %v5079_v13  ;;  %v5081_v26 = vpop.eup %5080 }
 0x30b   : > { %5090 = vrcp.f32 %v1650_v15  ;;  %v1651_v11 = vadd.f32 1.0, %v5081_v26  ;;  %v5083_v28 = vpop.eup %5082 }
 0x30c   : > { %5092 = vrcp.f32 %v1662_v22  ;;  %v1663_v7 = vadd.f32 1.0, %v5083_v28  ;;  %v5085_v19 = vpop.eup %5084 }
 0x30d   : > { %5094 = vpow2.f32 %v4385_v17  ;;  %v5087_v27 = vpop.eup %5086 }
 0x30e   : > { %5096 = vrcp.f32 %v1651_v11  ;;  %v5089_v16 = vpop.eup %5088  ;;  %v1676_v33 = vadd.f32 1.0, %v5087_v27 }
 0x30f   : > { %5098 = vrcp.f32 %v1663_v7 }
 0x310   : > { %5100 = vrcp.f32 %v1676_v33 }
 0x315   : > { %v5091_v29 = vpop.eup %5090 }
 0x316   : > { %v5093_v18 = vpop.eup %5092  ;;  %v1684_v5 = vmul.f32 %v5091_v29, %v5085_v19 }
 0x317   : > { %v5095_v3 = vpop.eup %5094  ;;  %v1682_v6 = vmul.f32 %v5093_v18, %v1324_v32 }
 0x318   : > { %v5097_v8 = vpop.eup %5096  ;;  %v1677_v14 = vadd.f32 1.0, %v5095_v3 }
 0x319   : > { %v1686_v4 = vadd.f32 %v1684_v5, %v1682_v6  ;;  %v1685_v9 = vmul.f32 %v5097_v8, %v5089_v16  ;;  %v5099_v10 = vpop.eup %5098 }
 0x31a   : > { %v1683_v13 = vmul.f32 %v5099_v10, %v1325_v12  ;;  %v5101_v22 = vpop.eup %5100 }
 0x31b   : > { %5102 = vtanh.f32 %v1686_v4  ;;  %v6434_v25 = vsel %vm1703_vm3, %v1686_v4, %v1324_v32 }
 0x31c   : > { %v1687_v15 = vadd.f32 %v1685_v9, %v1683_v13  ;;  %5104 = vrcp.f32 %v1677_v14 }
 0x31e   : > { %5106 = vtanh.f32 %v1687_v15  ;;  %v6437_v17 = vsel %vm1704_vm4, %v1687_v15, %v1325_v12 }
 0x325   : > { %v5103_v30 = vpop.eup %5102 }
 0x326   : > { %v1690_v24 = vmul.f32 %v5103_v30, %v5101_v22  ;;  %v5105_v26 = vpop.eup %5104 }
 0x328   : > { %v5107_v11 = vpop.eup %5106  ;;  %v6442_v7 = vsel %vm1703_vm3, %v1690_v24, %v6276_v35  ;;  %v1709_v19 = vsel %vm1703_vm3, %v1690_v24, 0.0  ;;  %v1731_v35 = vld [vmem:[%s1730_s26] sm:$0xff] }
 0x329   : > { %v1691_v28 = vmul.f32 %v5107_v11, %v5105_v26  ;;  %v1735_v38 = vunpack.c.l.bf16 %v1731_v35  ;;  %v1739_v4 = vunpack.c.h.bf16 %v1731_v35  ;;  %v1733_v26 = vld [vmem:[%s1730_s26 + $0x10] sm:$0xff] }
 0x32a   : > { %v1741_v35 = vunpack.c.h.bf16 %v1733_v26 }
 0x32b   : > { %v6448_v27 = vsel %vm1704_vm4, %v1691_v28, %v6286_v31  ;;  %v1710_v16 = vsel %vm1704_vm4, %v1691_v28, 0.0  ;;  %v1732_v31 = vld [vmem:[%s1730_s26 + $0x8] sm:$0xff] }
 0x32c   : > { %v4707_v29 = vpack.c.bf16 %v1710_v16, %v1709_v19  ;;  %v1743_v18 = vpack.c.bf16 %v6448_v27, %v6442_v7  ;;  %v1736_v5 = vunpack.c.l.bf16 %v1732_v31  ;;  %v1737_v16 = vunpack.c.l.bf16 %v1733_v26 }
 0x32e   : > { %4708 = vst [vmem:[%s1721_s12] sm:$0xff] %v4707_v29   ;;  %1969 = vmatmul.mubr.bf16.vlgmr.msra.gmra.mrb[40].mxu0 %v1743_v18  ;;  %2012 = vmatmul.mubr.bf16.vlgmr.msra.gmra.mrb[40].mxu1 %v1743_v18  ;;  %s2498_s12 = sshra.s32 %s4480_s25, 4 }
 0x32f   : > { %2323 = vmatpush1.bf16.msra.mxu0 %v6303_v34  ;;  %2366 = vmatpush1.bf16.msra.mxu1 %v6306_v37  ;;  %s4683_s15 = sshll.u32 %s2498_s12, 5  ;;  %s4615_s12 = sshll.u32 %s6106_s9, 4 }
 0x330   : > { %2324 = vmatprep.subr.bf16.mxu0 %v6313_v39  ;;  %2367 = vmatprep.subr.bf16.mxu1 %v6316_v41  ;;  %s2502_s8 = scalar_lea.vmem [#allocation2], %s4683_s15  ;;  %s3656_s15 = sshra.s32 %s4615_s12, 4 }
 0x331   : > { %2354 = vmatprep.mubr.bf16.mxu0 %v5549_v0  ;;  %2397 = vmatprep.mubr.bf16.mxu1 %v5549_v0 }
 0x333   : > { %2325 = vmatpush1.bf16.msra.mxu0 %v6319_v42  ;;  %2368 = vmatpush1.bf16.msra.mxu1 %v6322_v43 }
 0x334   : > { %2326 = vmatprep.subr.bf16.mxu0 %v6329_v20  ;;  %2369 = vmatprep.subr.bf16.mxu1 %v6332_v44 }
 0x337   : > { %2327 = vmatpush1.bf16.msra.mxu0 %v6335_v45  ;;  %2370 = vmatpush1.bf16.msra.mxu1 %v6338_v46 }
 0x338   : > { %2328 = vmatprep.subr.bf16.mxu0 %v6345_v47  ;;  %2371 = vmatprep.subr.bf16.mxu1 %v6348_v48 }
 0x33b   : > { %2329 = vmatpush1.bf16.msra.mxu0 %v6351_v49  ;;  %2372 = vmatpush1.bf16.msra.mxu1 %v6354_v50 }
 0x33c   : > { %2330 = vmatprep.subr.bf16.mxu0 %v6361_v51  ;;  %2373 = vmatprep.subr.bf16.mxu1 %v6364_v52 }
 0x33f   : > { %2331 = vmatpush1.bf16.msra.mxu0 %v6367_v53  ;;  %2374 = vmatpush1.bf16.msra.mxu1 %v6370_v54 }
 0x340   : > { %2332 = vmatprep.subr.bf16.mxu0 %v6377_v55  ;;  %2375 = vmatprep.subr.bf16.mxu1 %v6380_v56 }
 0x343   : > { %2333 = vmatpush1.bf16.msra.mxu0 %v6383_v57  ;;  %2376 = vmatpush1.bf16.msra.mxu1 %v6386_v1 }
 0x344   : > { %2334 = vmatprep.subr.bf16.mxu0 %v6393_v23  ;;  %2377 = vmatprep.subr.bf16.mxu1 %v6396_v58 }
 0x347   : > { %2335 = vmatpush1.bf16.msra.mxu0 %v6399_v59  ;;  %2378 = vmatpush1.bf16.msra.mxu1 %v6402_v60 }
 0x348   : > { %2336 = vmatprep.subr.bf16.mxu0 %v6409_v61  ;;  %2379 = vmatprep.subr.bf16.mxu1 %v6412_v62 }
 0x34b   : > { %2337 = vmatpush1.bf16.msra.mxu0 %v6415_v63  ;;  %2380 = vmatpush1.bf16.msra.mxu1 %v6418_v2 }
 0x34c   : > { %2708 = vmatprep.subr.bf16.mxu0 %v6297_v40  ;;  %2751 = vmatprep.subr.bf16.mxu1 %v6300_v36  ;;  %v1740_v40 = vunpack.c.h.bf16 %v1732_v31  ;;  %v1734_v36 = vld [vmem:[%s1730_s26 + $0x18] sm:$0xff] }
 0x34d   : > { %v1738_v11 = vunpack.c.l.bf16 %v1734_v36  ;;  %v1742_v29 = vunpack.c.h.bf16 %v1734_v36 }
 0x401   : > { %v1970_v32 = vpop.f32.mrb[40].mxu0  ;;  %v2013_v33 = vpop.f32.mrb[40].mxu1 }
 0x402   : > { %v2022_v3 = vadd.f32 %v1970_v32, %v1735_v38  ;;  %v1972_v6 = vpop.f32.mrb[41].mxu0  ;;  %v2015_v8 = vpop.f32.mrb[41].mxu1  ;;  %v2024_v18 = vadd.f32 %v2013_v33, %v1737_v16 }
 0x403   : > { %v2023_v9 = vadd.f32 %v1972_v6, %v1736_v5  ;;  %v1974_v10 = vpop.f32.mrb[42].mxu0  ;;  %v2017_v12 = vpop.f32.mrb[42].mxu1  ;;  %v2025_v19 = vadd.f32 %v2015_v8, %v1738_v11 }
 0x404   : > { %v4425_v14 = vmul.f32 -1.442695, %v2022_v3  ;;  %v2026_v21 = vadd.f32 %v1974_v10, %v1739_v4  ;;  %v1976_v13 = vpop.f32.mrb[43].mxu0  ;;  %v2019_v15 = vpop.f32.mrb[43].mxu1  ;;  %v2028_v32 = vadd.f32 %v2017_v12, %v1741_v35 }
 0x405   : > { %v4427_v22 = vmul.f32 -1.442695, %v2023_v9  ;;  %v2027_v30 = vadd.f32 %v1976_v13, %v1740_v40  ;;  %v4429_v31 = vmul.f32 -1.442695, %v2025_v19  ;;  %v2029_v38 = vadd.f32 %v2019_v15, %v1742_v29  ;;  %v2085_v11 = vpop.permute.xlu0 %2084 }
 0x406   : > { %5108 = vpow2.f32 %v4425_v14  ;;  %v4426_v24 = vmul.f32 -1.442695, %v2026_v21  ;;  %vm2089_vm5 = vcmp.eq.s32.totalorder %v2085_v11, 1 }
 0x407   : > { %5110 = vpow2.f32 %v4427_v22  ;;  %v4428_v28 = vmul.f32 -1.442695, %v2027_v30  ;;  %v4430_v4 = vmul.f32 -1.442695, %v2029_v38 }
 0x408   : > { %5112 = vpow2.f32 %v4426_v24 }
 0x409   : > { %5114 = vpow2.f32 %v4428_v28 }
 0x40a   : > { %5116 = vtanh.f32 %v2024_v18 }
 0x40b   : > { %5118 = vpow2.f32 %v4429_v31  ;;  %v2088_v31 = vpop.permute.xlu1 %2087 }
 0x40c   : > { %5120 = vtanh.f32 %v2028_v32  ;;  %vm2090_vm6 = vcmp.eq.s32.totalorder %v2088_v31, 1 }
 0x410   : > { %v5109_v5 = vpop.eup %5108 }
 0x411   : > { %v5111_v3 = vpop.eup %5110  ;;  %v2036_v6 = vadd.f32 1.0, %v5109_v5 }
 0x412   : > { %v2048_v9 = vadd.f32 1.0, %v5111_v3  ;;  %v5113_v10 = vpop.eup %5112 }
 0x413   : > { %5122 = vrcp.f32 %v2036_v6  ;;  %v2037_v8 = vadd.f32 1.0, %v5113_v10  ;;  %v5115_v40 = vpop.eup %5114 }
 0x414   : > { %5124 = vrcp.f32 %v2048_v9  ;;  %v2049_v33 = vadd.f32 1.0, %v5115_v40  ;;  %v5117_v14 = vpop.eup %5116 }
 0x415   : > { %5126 = vpow2.f32 %v4430_v4  ;;  %v5119_v36 = vpop.eup %5118 }
 0x416   : > { %5128 = vrcp.f32 %v2037_v8  ;;  %v5121_v12 = vpop.eup %5120  ;;  %v2062_v22 = vadd.f32 1.0, %v5119_v36 }
 0x417   : > { %5130 = vrcp.f32 %v2049_v33 }
 0x418   : > { %5132 = vrcp.f32 %v2062_v22 }
 0x41d   : > { %v5123_v21 = vpop.eup %5122 }
 0x41e   : > { %v5125_v13 = vpop.eup %5124  ;;  %v2070_v15 = vmul.f32 %v5123_v21, %v5117_v14 }
 0x41f   : > { %v5127_v30 = vpop.eup %5126  ;;  %v2068_v24 = vmul.f32 %v5125_v13, %v6434_v25 }
 0x420   : > { %v5129_v26 = vpop.eup %5128  ;;  %v2063_v29 = vadd.f32 1.0, %v5127_v30 }
 0x421   : > { %v2072_v28 = vadd.f32 %v2070_v15, %v2068_v24  ;;  %v2071_v19 = vmul.f32 %v5129_v26, %v5121_v12  ;;  %v5131_v16 = vpop.eup %5130 }
 0x422   : > { %v2069_v18 = vmul.f32 %v5131_v16, %v6437_v17  ;;  %v5133_v5 = vpop.eup %5132 }
 0x423   : > { %5134 = vtanh.f32 %v2072_v28  ;;  %v6492_v35 = vsel %vm2089_vm5, %v2072_v28, %v6434_v25 }
 0x424   : > { %v2073_v38 = vadd.f32 %v2071_v19, %v2069_v18  ;;  %5136 = vrcp.f32 %v2063_v29 }
 0x426   : > { %5138 = vtanh.f32 %v2073_v38  ;;  %v6495_v32 = vsel %vm2090_vm6, %v2073_v38, %v6437_v17 }
 0x42d   : > { %v5135_v3 = vpop.eup %5134 }
 0x42e   : > { %v2076_v6 = vmul.f32 %v5135_v3, %v5133_v5  ;;  %v5137_v4 = vpop.eup %5136 }
 0x430   : > { %v5139_v9 = vpop.eup %5138  ;;  %v6501_v25 = vsel %vm2089_vm5, %v2076_v6, %v6442_v7  ;;  %v2095_v40 = vsel %vm2089_vm5, %v2076_v6, 0.0 }
 0x431   : > { %v2077_v10 = vmul.f32 %v5139_v9, %v5137_v4  ;;  %v2471_v4 = vpop.permute.xlu0 %2470 }
 0x432   : > { %vm2475_vm7 = vcmp.eq.s32.totalorder %v2471_v4, 1 }
 0x433   : > { %v6504_v8 = vsel %vm2090_vm6, %v2077_v10, %v6448_v27  ;;  %v2096_v33 = vsel %vm2090_vm6, %v2077_v10, 0.0 }
 0x434   : > { %v4712_v17 = vpack.c.bf16 %v2096_v33, %v2095_v40  ;;  %v2129_v14 = vpack.c.bf16 %v6504_v8, %v6501_v25 }
 0x436   : > { %4713 = vst [vmem:[%s2107_s5] sm:$0xff] %v4712_v17   ;;  %2355 = vmatmul.mubr.bf16.vlgmr.msra.gmra.mrb[44].mxu0 %v2129_v14  ;;  %2398 = vmatmul.mubr.bf16.vlgmr.msra.gmra.mrb[44].mxu1 %v2129_v14 }
 0x437   : > { %2709 = vmatpush1.bf16.msra.mxu0 %v6303_v34  ;;  %2752 = vmatpush1.bf16.msra.mxu1 %v6306_v37  ;;  %v2117_v34 = vld [vmem:[%s2116_s0] sm:$0xff]  ;;  %v2118_v37 = vld [vmem:[%s2116_s0 + $0x8] sm:$0xff] }
 0x438   : > { %2710 = vmatprep.subr.bf16.mxu0 %v6313_v39  ;;  %2753 = vmatprep.subr.bf16.mxu1 %v6316_v41  ;;  %v2121_v39 = vunpack.c.l.bf16 %v2117_v34 }
 0x439   : > { %2740 = vmatprep.mubr.bf16.mxu0 %v5549_v0  ;;  %2783 = vmatprep.mubr.bf16.mxu1 %v5549_v0 }
 0x43b   : > { %2711 = vmatpush1.bf16.msra.mxu0 %v6319_v42  ;;  %2754 = vmatpush1.bf16.msra.mxu1 %v6322_v43  ;;  %v2122_v43 = vunpack.c.l.bf16 %v2118_v37 }
 0x43c   : > { %2712 = vmatprep.subr.bf16.mxu0 %v6329_v20  ;;  %2755 = vmatprep.subr.bf16.mxu1 %v6332_v44 }
 0x43f   : > { %2713 = vmatpush1.bf16.msra.mxu0 %v6335_v45  ;;  %2756 = vmatpush1.bf16.msra.mxu1 %v6338_v46  ;;  %v2125_v46 = vunpack.c.h.bf16 %v2117_v34  ;;  %v2474_v34 = vpop.permute.xlu1 %2473 }
 0x440   : > { %2714 = vmatprep.subr.bf16.mxu0 %v6345_v47  ;;  %2757 = vmatprep.subr.bf16.mxu1 %v6348_v48  ;;  %vm2476_vm8 = vcmp.eq.s32.totalorder %v2474_v34, 1  ;;  %v2506_v34 = vld [vmem:[%s2502_s8 + $0x18] sm:$0xff] }
 0x443   : > { %2715 = vmatpush1.bf16.msra.mxu0 %v6351_v49  ;;  %2758 = vmatpush1.bf16.msra.mxu1 %v6354_v50  ;;  %v2126_v50 = vunpack.c.h.bf16 %v2118_v37 }
 0x444   : > { %2716 = vmatprep.subr.bf16.mxu0 %v6361_v51  ;;  %2759 = vmatprep.subr.bf16.mxu1 %v6364_v52  ;;  %v2120_v52 = vld [vmem:[%s2116_s0 + $0x18] sm:$0xff] }
 0x447   : > { %2717 = vmatpush1.bf16.msra.mxu0 %v6367_v53  ;;  %2760 = vmatpush1.bf16.msra.mxu1 %v6370_v54 }
 0x448   : > { %2718 = vmatprep.subr.bf16.mxu0 %v6377_v55  ;;  %2761 = vmatprep.subr.bf16.mxu1 %v6380_v56 }
 0x44b   : > { %2719 = vmatpush1.bf16.msra.mxu0 %v6383_v57  ;;  %2762 = vmatpush1.bf16.msra.mxu1 %v6386_v1 }
 0x44c   : > { %2720 = vmatprep.subr.bf16.mxu0 %v6393_v23  ;;  %2763 = vmatprep.subr.bf16.mxu1 %v6396_v58  ;;  %v2119_v23 = vld [vmem:[%s2116_s0 + $0x10] sm:$0xff]  ;;  %v2124_v58 = vunpack.c.l.bf16 %v2120_v52 }
 0x44f   : > { %2721 = vmatpush1.bf16.msra.mxu0 %v6399_v59  ;;  %2764 = vmatpush1.bf16.msra.mxu1 %v6402_v60 }
 0x450   : > { %2722 = vmatprep.subr.bf16.mxu0 %v6409_v61  ;;  %2765 = vmatprep.subr.bf16.mxu1 %v6412_v62  ;;  %v2123_v61 = vunpack.c.l.bf16 %v2119_v23  ;;  %v2128_v62 = vunpack.c.h.bf16 %v2120_v52  ;;  %v6582_v52 = vld [vmem:[%s5900_s24 + $0x24] ss:$16 sps:$4 sm:$0xff]  }
 0x453   : > { %2723 = vmatpush1.bf16.msra.mxu0 %v6415_v63  ;;  %2766 = vmatpush1.bf16.msra.mxu1 %v6418_v2  ;;  %v2127_v2 = vunpack.c.h.bf16 %v2119_v23  ;;  %v6607_v23 = vld [vmem:[%s5900_s24 + $0x48] ss:$16 sps:$4 sm:$0xff]  }
 0x509   : > { %v2356_v41 = vpop.f32.mrb[44].mxu0  ;;  %v2399_v42 = vpop.f32.mrb[44].mxu1 }
 0x50a   : > { %v2408_v20 = vadd.f32 %v2356_v41, %v2121_v39  ;;  %v2358_v44 = vpop.f32.mrb[45].mxu0  ;;  %v2401_v45 = vpop.f32.mrb[45].mxu1  ;;  %v2410_v63 = vadd.f32 %v2399_v42, %v2123_v61  ;;  %v6623_v61 = vld [vmem:[%s5900_s24 + $0x68] ss:$16 sps:$4 sm:$0xff]  }
 0x50b   : > { %v2409_v47 = vadd.f32 %v2358_v44, %v2122_v43  ;;  %v2360_v48 = vpop.f32.mrb[46].mxu0  ;;  %v2403_v49 = vpop.f32.mrb[46].mxu1  ;;  %v2411_v60 = vadd.f32 %v2401_v45, %v2124_v58  ;;  %v6614_v58 = vld [vmem:[%s5900_s24 + $0x64] ss:$16 sps:$4 sm:$0xff]  }
 0x50c   : > { %v4470_v51 = vmul.f32 -1.442695, %v2408_v20  ;;  %v2412_v53 = vadd.f32 %v2360_v48, %v2125_v46  ;;  %v2362_v54 = vpop.f32.mrb[47].mxu0  ;;  %v2405_v55 = vpop.f32.mrb[47].mxu1  ;;  %v2414_v36 = vadd.f32 %v2403_v49, %v2127_v2  ;;  %v6636_v2 = vld [vmem:[%s5900_s24 + $0x88] ss:$16 sps:$4 sm:$0xff]  }
 0x50d   : > { %v4472_v56 = vmul.f32 -1.442695, %v2409_v47  ;;  %v2413_v57 = vadd.f32 %v2362_v54, %v2126_v50  ;;  %v4474_v7 = vmul.f32 -1.442695, %v2411_v60  ;;  %v2415_v27 = vadd.f32 %v2405_v55, %v2128_v62  ;;  %v6572_v50 = vld [vmem:[%s5900_s24] ss:$16 sps:$4 sm:$0xff]  }
 0x50e   : > { %5140 = vpow2.f32 %v4470_v51  ;;  %v4471_v1 = vmul.f32 -1.442695, %v2412_v53  ;;  %v6575_v51 = vld [vmem:[%s5900_s24 + $0x8] ss:$16 sps:$4 sm:$0xff]   ;;  %v6585_v53 = vld [vmem:[%s5900_s24 + $0x2c] ss:$16 sps:$4 sm:$0xff]  }
 0x50f   : > { %5142 = vpow2.f32 %v4472_v56  ;;  %v4473_v59 = vmul.f32 -1.442695, %v2413_v57  ;;  %v4475_v15 = vmul.f32 -1.442695, %v2415_v27  ;;  %v6588_v54 = vld [vmem:[%s5900_s24 + $0x20] ss:$16 sps:$4 sm:$0xff]  }
 0x510   : > { %5144 = vpow2.f32 %v4471_v1  ;;  %v6591_v55 = vld [vmem:[%s5900_s24 + $0x28] ss:$16 sps:$4 sm:$0xff]   ;;  %v6598_v56 = vld [vmem:[%s5900_s24 + $0x44] ss:$16 sps:$4 sm:$0xff]   ;;  %v6601_v57 = vld [vmem:[%s5900_s24 + $0x4c] ss:$16 sps:$4 sm:$0xff]  }
 0x511   : > { %5146 = vpow2.f32 %v4473_v59  ;;  %v6604_v1 = vld [vmem:[%s5900_s24 + $0x40] ss:$16 sps:$4 sm:$0xff]   ;;  %v6617_v59 = vld [vmem:[%s5900_s24 + $0x6c] ss:$16 sps:$4 sm:$0xff]   ;;  %v6642_v27 = vld [vmem:[%s5900_s24 + $0xa4] ss:$16 sps:$4 sm:$0xff]  }
 0x512   : > { %5148 = vtanh.f32 %v2410_v63  ;;  %v6620_v60 = vld [vmem:[%s5900_s24 + $0x60] ss:$16 sps:$4 sm:$0xff]   ;;  %v6633_v63 = vld [vmem:[%s5900_s24 + $0x84] ss:$16 sps:$4 sm:$0xff]  }
 0x513   : > { %5150 = vpow2.f32 %v4474_v7  ;;  %v6630_v62 = vld [vmem:[%s5900_s24 + $0x80] ss:$16 sps:$4 sm:$0xff]   ;;  %v6639_v7 = vld [vmem:[%s5900_s24 + $0x8c] ss:$16 sps:$4 sm:$0xff]  }
 0x514   : > { %5152 = vtanh.f32 %v2414_v36  ;;  %v6646_v36 = vld [vmem:[%s5900_s24 + $0xac] ss:$16 sps:$4 sm:$0xff]  }
 0x518   : > { %v5141_v12 = vpop.eup %5140 }
 0x519   : > { %v5143_v21 = vpop.eup %5142  ;;  %v2422_v13 = vadd.f32 1.0, %v5141_v12  ;;  %v6651_v12 = vld [vmem:[%s5900_s24 + $0xa0] ss:$16 sps:$4 sm:$0xff]  }
 0x51a   : > { %v2434_v22 = vadd.f32 1.0, %v5143_v21  ;;  %v5145_v30 = vpop.eup %5144  ;;  %v6656_v21 = vld [vmem:[%s5900_s24 + $0xa8] ss:$16 sps:$4 sm:$0xff]  }
 0x51b   : > { %5154 = vrcp.f32 %v2422_v13  ;;  %v2423_v24 = vadd.f32 1.0, %v5145_v30  ;;  %v5147_v26 = vpop.eup %5146  ;;  %v6659_v13 = vld [vmem:[%s5900_s24 + $0xc4] ss:$16 sps:$4 sm:$0xff]   ;;  %v6672_v30 = vld [vmem:[%s5900_s24 + $0xc8] ss:$16 sps:$4 sm:$0xff]  }
 0x51c   : > { %5156 = vrcp.f32 %v2434_v22  ;;  %v2435_v11 = vadd.f32 1.0, %v5147_v26  ;;  %v5149_v28 = vpop.eup %5148  ;;  %v6667_v22 = vld [vmem:[%s5900_s24 + $0xc0] ss:$16 sps:$4 sm:$0xff]   ;;  %v6679_v26 = vld [vmem:[%s5900_s24 + $0xec] ss:$16 sps:$4 sm:$0xff]  }
 0x51d   : > { %5158 = vpow2.f32 %v4475_v15  ;;  %v5151_v19 = vpop.eup %5150  ;;  %v6663_v15 = vld [vmem:[%s5900_s24 + $0xcc] ss:$16 sps:$4 sm:$0xff]  }
 0x51e   : > { %5160 = vrcp.f32 %v2423_v24  ;;  %v5153_v16 = vpop.eup %5152  ;;  %v2448_v38 = vadd.f32 1.0, %v5151_v19  ;;  %v6675_v24 = vld [vmem:[%s5900_s24 + $0xe4] ss:$16 sps:$4 sm:$0xff]  }
 0x51f   : > { %5162 = vrcp.f32 %v2435_v11  ;;  %v6683_v11 = vld [vmem:[%s5900_s24 + $0xe0] ss:$16 sps:$4 sm:$0xff]  }
 0x520   : > { %5164 = vrcp.f32 %v2448_v38  ;;  %v2503_v19 = vld [vmem:[%s2502_s8] sm:$0xff] }
 0x521   : > { %v2511_v4 = vunpack.c.h.bf16 %v2503_v19 }
 0x525   : > { %v5155_v29 = vpop.eup %5154 }
 0x526   : > { %v5157_v18 = vpop.eup %5156  ;;  %v2456_v31 = vmul.f32 %v5155_v29, %v5149_v28  ;;  %v6688_v28 = vld [vmem:[%s5900_s24 + $0xe8] ss:$16 sps:$4 sm:$0xff]   ;;  %v2507_v29 = vunpack.c.l.bf16 %v2503_v19  ;;  %v2514_v19 = vunpack.c.h.bf16 %v2506_v34 }
 0x527   : > { %v5159_v5 = vpop.eup %5158  ;;  %v2454_v3 = vmul.f32 %v5157_v18, %v6492_v35 }
 0x528   : > { %v5161_v6 = vpop.eup %5160  ;;  %v2449_v33 = vadd.f32 1.0, %v5159_v5 }
 0x529   : > { %v2458_v9 = vadd.f32 %v2456_v31, %v2454_v3  ;;  %v2457_v10 = vmul.f32 %v5161_v6, %v5153_v16  ;;  %v5163_v40 = vpop.eup %5162  ;;  %v2504_v16 = vld [vmem:[%s2502_s8 + $0x8] sm:$0xff] }
 0x52a   : > { %v2455_v17 = vmul.f32 %v5163_v40, %v6495_v32  ;;  %v5165_v41 = vpop.eup %5164  ;;  %v2508_v38 = vunpack.c.l.bf16 %v2504_v16 }
 0x52b   : > { %5166 = vtanh.f32 %v2458_v9  ;;  %v6546_v14 = vsel %vm2475_vm7, %v2458_v9, %v6492_v35 }
 0x52c   : > { %v2459_v37 = vadd.f32 %v2457_v10, %v2455_v17  ;;  %5168 = vrcp.f32 %v2449_v33  ;;  %v2512_v33 = vunpack.c.h.bf16 %v2504_v16 }
 0x52e   : > { %5170 = vtanh.f32 %v2459_v37  ;;  %v6549_v39 = vsel %vm2476_vm8, %v2459_v37, %v6495_v32 }
 0x535   : > { %v5167_v42 = vpop.eup %5166 }
 0x536   : > { %v2462_v43 = vmul.f32 %v5167_v42, %v5165_v41  ;;  %v5169_v20 = vpop.eup %5168 }
 0x538   : > { %v5171_v44 = vpop.eup %5170  ;;  %v6555_v35 = vsel %vm2475_vm7, %v2462_v43, %v6501_v25  ;;  %v2481_v32 = vsel %vm2475_vm7, %v2462_v43, 0.0  ;;  %v6566_v25 = vld [vmem:[%s5900_s24 + $0x4] ss:$16 sps:$4 sm:$0xff]  }
 0x539   : > { %v2463_v45 = vmul.f32 %v5171_v44, %v5169_v20  ;;  %3094 = vmatprep.subr.bf16.mxu0 %v6566_v25 }
 0x53b   : > { %v6558_v46 = vsel %vm2476_vm8, %v2463_v45, %v6504_v8  ;;  %v2482_v47 = vsel %vm2476_vm8, %v2463_v45, 0.0  ;;  %v6569_v8 = vld [vmem:[%s5900_s24 + $0xc] ss:$16 sps:$4 sm:$0xff]   ;;  %v2505_v45 = vld [vmem:[%s2502_s8 + $0x10] sm:$0xff]  ;;  %s4686_s24 = sshll.u32 %s6071_s7, 3  ;;  %s4525_s7 = sshll.u32 %s6085_s16, 4 }
 0x53c   : > { %v4717_v48 = vpack.c.bf16 %v2482_v47, %v2481_v32  ;;  %v2515_v49 = vpack.c.bf16 %v6558_v46, %v6555_v35  ;;  %3137 = vmatprep.subr.bf16.mxu1 %v6569_v8  ;;  %v2510_v32 = vunpack.c.l.bf16 %v2506_v34  ;;  %v2513_v16 = vunpack.c.h.bf16 %v2505_v45  ;;  %s2879_s2 = scalar_lea.vmem %s6281_s6, %s4686_s24 [#allocation11]  ;;  %s2884_s26 = sshra.s32 %s4525_s7, 4 }
 0x53d   : > { %s4687_s10 = sshll.u32 %s2884_s26, 5  ;;  %s4570_s16 = sshll.u32 %s6095_s18, 4 }
 0x53e   : > { %4718 = vst [vmem:[%s2493_s30] sm:$0xff] %v4717_v48   ;;  %2741 = vmatmul.mubr.bf16.vlgmr.msra.gmra.mrb[48].mxu0 %v2515_v49  ;;  %2784 = vmatmul.mubr.bf16.vlgmr.msra.gmra.mrb[48].mxu1 %v2515_v49  ;;  %v2509_v49 = vunpack.c.l.bf16 %v2505_v45  ;;  %s2888_s5 = scalar_lea.vmem [#allocation2], %s4687_s10  ;;  %s3270_s28 = sshra.s32 %s4570_s16, 4 }
 0x53f   : > { %3126 = vmatprep.mubr.bf16.mxu0 %v5549_v0  ;;  %3169 = vmatprep.mubr.bf16.mxu1 %v5549_v0  ;;  %s4691_s0 = sshll.u32 %s3270_s28, 5  ;;  %s4694_s30 = sshll.u32 %s6095_s18, 3 }
 0x540   : > { %3095 = vmatpush1.bf16.msra.mxu0 %v6572_v50  ;;  %3138 = vmatpush1.bf16.msra.mxu1 %v6575_v51  ;;  %s3274_s27 = scalar_lea.vmem [#allocation2], %s4691_s0  ;;  %s3651_s25 = scalar_lea.vmem %s6281_s6, %s4694_s30 [#allocation11] }
 0x541   : > { %3096 = vmatprep.subr.bf16.mxu0 %v6582_v52  ;;  %3139 = vmatprep.subr.bf16.mxu1 %v6585_v53  ;;  %s4695_s8 = sshll.u32 %s3656_s15, 5  ;;  %s4698_s18 = sshll.u32 %s6106_s9, 3 }
 0x542   : > { %s3660_s24 = scalar_lea.vmem [#allocation2], %s4695_s8  ;;  %s6934_s7 = sld [smem:[#allocation17_spill]] }
 0x543   : > { %s4052_s26 = sshll.u32 %s6281_s6, 4  ;;  %s4033_s10 = scalar_lea.vmem %s6281_s6, %s4698_s18 [#allocation11]  ;;  %s6833_s26 = int_to_ptr.vmem [resolvable:$true] %s4052_s26 }
 0x544   : > { %3097 = vmatpush1.bf16.msra.mxu0 %v6588_v54  ;;  %3140 = vmatpush1.bf16.msra.mxu1 %v6591_v55  ;;  %s5446_s9 = scalar_lea.vmem %s6833_s26, 1024  ;;  %s5550_s6 = smov [#allocation11]  }
 0x545   : > { %3098 = vmatprep.subr.bf16.mxu0 %v6598_v56  ;;  %3141 = vmatprep.subr.bf16.mxu1 %v6601_v57  ;;  %p5447_p13 = scmp.ne.s32.totalorder %s6833_s26, %s5446_s9  ;;  %s5450_s28 = sshll.u32 %s5550_s6, 4  ;;  %s5451_s28 = int_to_ptr.vmem [resolvable:$false] %s5450_s28 }
 0x546   : > { %s5452_s0 = scalar_lea.vmem %s5451_s28, 2048  ;;  %p5453_p12 = scmp.lt.s32.totalorder %s6833_s26, %s5451_s28 }
 0x547   : > { %p5454_p7 = scmp.lt.s32.totalorder %s5452_s0, %s5446_s9 }
 0x548   : > { %3099 = vmatpush1.bf16.msra.mxu0 %v6604_v1  ;;  %3142 = vmatpush1.bf16.msra.mxu1 %v6607_v23  ;;  %p6936_p1 = scmp.ne.s32.totalorder %s6934_s7, 0 }
 0x549   : > { %3100 = vmatprep.subr.bf16.mxu0 %v6614_v58  ;;  %3143 = vmatprep.subr.bf16.mxu1 %v6617_v59  ;;  %p5455_p10 = por %p5454_p7, %p5453_p12 }
 0x54a   : > { %p5448_p5 = pnand %p5447_p13, %p6936_p1 }
 0x54c   : > { %3101 = vmatpush1.bf16.msra.mxu0 %v6620_v60  ;;  %3144 = vmatpush1.bf16.msra.mxu1 %v6623_v61  ;;  %p5449_p4 = pneg %p5448_p5 }
 0x54d   : > { %3102 = vmatprep.subr.bf16.mxu0 %v6633_v63  ;;  %3145 = vmatprep.subr.bf16.mxu1 %v6639_v7 }
 0x54e   : > { %p5456_p3 = pnand %p5455_p10, %p5449_p4 }
 0x550   : > { %3103 = vmatpush1.bf16.msra.mxu0 %v6630_v62  ;;  %3146 = vmatpush1.bf16.msra.mxu1 %v6636_v2 }
 0x551   : > { %3104 = vmatprep.subr.bf16.mxu0 %v6642_v27  ;;  %3147 = vmatprep.subr.bf16.mxu1 %v6646_v36 }
 0x554   : > { %3105 = vmatpush1.bf16.msra.mxu0 %v6651_v12  ;;  %3148 = vmatpush1.bf16.msra.mxu1 %v6656_v21 }
 0x555   : > { %3106 = vmatprep.subr.bf16.mxu0 %v6659_v13  ;;  %3149 = vmatprep.subr.bf16.mxu1 %v6663_v15 }
 0x558   : > { %3107 = vmatpush1.bf16.msra.mxu0 %v6667_v22  ;;  %3150 = vmatpush1.bf16.msra.mxu1 %v6672_v30 }
 0x559   : > { %3108 = vmatprep.subr.bf16.mxu0 %v6675_v24  ;;  %3151 = vmatprep.subr.bf16.mxu1 %v6679_v26 }
 0x55c   : > { %3109 = vmatpush1.bf16.msra.mxu0 %v6683_v11  ;;  %3152 = vmatpush1.bf16.msra.mxu1 %v6688_v28 }
 0x55d   : > { %3480 = vmatprep.subr.bf16.mxu0 %v6566_v25  ;;  %3523 = vmatprep.subr.bf16.mxu1 %v6569_v8 }
 0x611   : > { %v2742_v18 = vpop.f32.mrb[48].mxu0  ;;  %v2785_v31 = vpop.f32.mrb[48].mxu1 }
 0x612   : > { %v2794_v5 = vadd.f32 %v2742_v18, %v2507_v29  ;;  %v2744_v3 = vpop.f32.mrb[49].mxu0  ;;  %v2787_v6 = vpop.f32.mrb[49].mxu1  ;;  %v2796_v29 = vadd.f32 %v2785_v31, %v2509_v49 }
 0x613   : > { %v2795_v9 = vadd.f32 %v2744_v3, %v2508_v38  ;;  %v2746_v10 = vpop.f32.mrb[50].mxu0  ;;  %v2789_v40 = vpop.f32.mrb[50].mxu1  ;;  %v2797_v48 = vadd.f32 %v2787_v6, %v2510_v32 }
 0x614   : > { %v4515_v17 = vmul.f32 -1.442695, %v2794_v5  ;;  %v2798_v37 = vadd.f32 %v2746_v10, %v2511_v4  ;;  %v2748_v41 = vpop.f32.mrb[51].mxu0  ;;  %v2791_v42 = vpop.f32.mrb[51].mxu1  ;;  %v2800_v5 = vadd.f32 %v2789_v40, %v2513_v16 }
 0x615   : > { %v4517_v43 = vmul.f32 -1.442695, %v2795_v9  ;;  %v2799_v20 = vadd.f32 %v2748_v41, %v2512_v33  ;;  %v4519_v18 = vmul.f32 -1.442695, %v2797_v48  ;;  %v2801_v38 = vadd.f32 %v2791_v42, %v2514_v19  ;;  %v2857_v48 = vpop.permute.xlu0 %2856 }
 0x616   : > { %5172 = vpow2.f32 %v4515_v17  ;;  %v4516_v44 = vmul.f32 -1.442695, %v2798_v37  ;;  %vm2861_vm9 = vcmp.eq.s32.totalorder %v2857_v48, 1 }
 0x617   : > { %5174 = vpow2.f32 %v4517_v43  ;;  %v4518_v47 = vmul.f32 -1.442695, %v2799_v20  ;;  %v4520_v10 = vmul.f32 -1.442695, %v2801_v38 }
 0x618   : > { %5176 = vpow2.f32 %v4516_v44 }
 0x619   : > { %5178 = vpow2.f32 %v4518_v47 }
 0x61a   : > { %5180 = vtanh.f32 %v2796_v29 }
 0x61b   : > { %5182 = vpow2.f32 %v4519_v18 }
 0x61c   : > { %5184 = vtanh.f32 %v2800_v5  ;;  %v2860_v5 = vpop.permute.xlu1 %2859 }
 0x61d   : > { %vm2862_vm10 = vcmp.eq.s32.totalorder %v2860_v5, 1 }
 0x620   : > { %v5173_v3 = vpop.eup %5172 }
 0x621   : > { %v5175_v4 = vpop.eup %5174  ;;  %v2808_v9 = vadd.f32 1.0, %v5173_v3 }
 0x622   : > { %v2820_v33 = vadd.f32 1.0, %v5175_v4  ;;  %v5177_v17 = vpop.eup %5176 }
 0x623   : > { %5186 = vrcp.f32 %v2808_v9  ;;  %v2809_v6 = vadd.f32 1.0, %v5177_v17  ;;  %v5179_v37 = vpop.eup %5178 }
 0x624   : > { %5188 = vrcp.f32 %v2820_v33  ;;  %v2821_v31 = vadd.f32 1.0, %v5179_v37  ;;  %v5181_v34 = vpop.eup %5180 }
 0x625   : > { %5190 = vpow2.f32 %v4520_v10  ;;  %v5183_v41 = vpop.eup %5182 }
 0x626   : > { %5192 = vrcp.f32 %v2809_v6  ;;  %v5185_v40 = vpop.eup %5184  ;;  %v2834_v44 = vadd.f32 1.0, %v5183_v41 }
 0x627   : > { %5194 = vrcp.f32 %v2821_v31 }
 0x628   : > { %5196 = vrcp.f32 %v2834_v44 }
 0x62d   : > { %v5187_v42 = vpop.eup %5186 }
 0x62e   : > { %v5189_v43 = vpop.eup %5188  ;;  %v2842_v20 = vmul.f32 %v5187_v42, %v5181_v34 }
 0x62f   : > { %v5191_v45 = vpop.eup %5190  ;;  %v2840_v32 = vmul.f32 %v5189_v43, %v6546_v14 }
 0x630   : > { %v5193_v47 = vpop.eup %5192  ;;  %v2835_v16 = vadd.f32 1.0, %v5191_v45 }
 0x631   : > { %v2844_v49 = vadd.f32 %v2842_v20, %v2840_v32  ;;  %v2843_v19 = vmul.f32 %v5193_v47, %v5185_v40  ;;  %v5195_v29 = vpop.eup %5194 }
 0x632   : > { %v2841_v18 = vmul.f32 %v5195_v29, %v6549_v39  ;;  %v5197_v9 = vpop.eup %5196 }
 0x633   : > { %5198 = vtanh.f32 %v2844_v49  ;;  %v6700_v38 = vsel %vm2861_vm9, %v2844_v49, %v6546_v14 }
 0x634   : > { %v2845_v3 = vadd.f32 %v2843_v19, %v2841_v18  ;;  %5200 = vrcp.f32 %v2835_v16 }
 0x636   : > { %5202 = vtanh.f32 %v2845_v3  ;;  %v6703_v4 = vsel %vm2862_vm10, %v2845_v3, %v6549_v39 }
 0x63d   : > { %v5199_v10 = vpop.eup %5198 }
 0x63e   : > { %v2848_v33 = vmul.f32 %v5199_v10, %v5197_v9  ;;  %v5201_v17 = vpop.eup %5200 }
 0x640   : > { %v5203_v6 = vpop.eup %5202  ;;  %v6709_v14 = vsel %vm2861_vm9, %v2848_v33, %v6555_v35  ;;  %v2867_v34 = vsel %vm2861_vm9, %v2848_v33, 0.0  ;;  %v2889_v35 = vld [vmem:[%s2888_s5] sm:$0xff] }
 0x641   : > { %v2849_v37 = vmul.f32 %v5203_v6, %v5201_v17  ;;  %v2893_v42 = vunpack.c.l.bf16 %v2889_v35  ;;  %v2897_v48 = vunpack.c.h.bf16 %v2889_v35  ;;  %v2891_v17 = vld [vmem:[%s2888_s5 + $0x10] sm:$0xff] }
 0x642   : > { %v2899_v35 = vunpack.c.h.bf16 %v2891_v17 }
 0x643   : > { %v6712_v31 = vsel %vm2862_vm10, %v2849_v37, %v6558_v46  ;;  %v2868_v41 = vsel %vm2862_vm10, %v2849_v37, 0.0  ;;  %v2890_v46 = vld [vmem:[%s2888_s5 + $0x8] sm:$0xff] }
 0x644   : > { %v4722_v39 = vpack.c.bf16 %v2868_v41, %v2867_v34  ;;  %v2901_v40 = vpack.c.bf16 %v6712_v31, %v6709_v14  ;;  %v2894_v44 = vunpack.c.l.bf16 %v2890_v46  ;;  %v2895_v41 = vunpack.c.l.bf16 %v2891_v17 }
 0x646   : > { %4723 = vst [vmem:[%s2879_s2] sm:$0xff] %v4722_v39   ;;  %3127 = vmatmul.mubr.bf16.vlgmr.msra.gmra.mrb[52].mxu0 %v2901_v40  ;;  %3170 = vmatmul.mubr.bf16.vlgmr.msra.gmra.mrb[52].mxu1 %v2901_v40  ;;  %s4661_s2 = sshll.u32 %s5528_s21, 6  ;;  %s4037_s21 = scalar_lea.sflag [#allocation5], %s5857_s14 }
 0x647   : > { %3481 = vmatpush1.bf16.msra.mxu0 %v6572_v50  ;;  %3524 = vmatpush1.bf16.msra.mxu1 %v6575_v51 }
 0x648   : > { %3482 = vmatprep.subr.bf16.mxu0 %v6582_v52  ;;  %3525 = vmatprep.subr.bf16.mxu1 %v6585_v53 }
 0x649   : > { %3512 = vmatprep.mubr.bf16.mxu0 %v5549_v0  ;;  %3555 = vmatprep.mubr.bf16.mxu1 %v5549_v0 }
 0x64b   : > { %3483 = vmatpush1.bf16.msra.mxu0 %v6588_v54  ;;  %3526 = vmatpush1.bf16.msra.mxu1 %v6591_v55 }
 0x64c   : > { %3484 = vmatprep.subr.bf16.mxu0 %v6598_v56  ;;  %3527 = vmatprep.subr.bf16.mxu1 %v6601_v57 }
 0x64f   : > { %3485 = vmatpush1.bf16.msra.mxu0 %v6604_v1  ;;  %3528 = vmatpush1.bf16.msra.mxu1 %v6607_v23 }
 0x650   : > { %3486 = vmatprep.subr.bf16.mxu0 %v6614_v58  ;;  %3529 = vmatprep.subr.bf16.mxu1 %v6617_v59 }
 0x653   : > { %3487 = vmatpush1.bf16.msra.mxu0 %v6620_v60  ;;  %3530 = vmatpush1.bf16.msra.mxu1 %v6623_v61 }
 0x654   : > { %3488 = vmatprep.subr.bf16.mxu0 %v6633_v63  ;;  %3531 = vmatprep.subr.bf16.mxu1 %v6639_v7 }
 0x657   : > { %3489 = vmatpush1.bf16.msra.mxu0 %v6630_v62  ;;  %3532 = vmatpush1.bf16.msra.mxu1 %v6636_v2 }
 0x658   : > { %3490 = vmatprep.subr.bf16.mxu0 %v6642_v27  ;;  %3533 = vmatprep.subr.bf16.mxu1 %v6646_v36 }
 0x65b   : > { %3491 = vmatpush1.bf16.msra.mxu0 %v6651_v12  ;;  %3534 = vmatpush1.bf16.msra.mxu1 %v6656_v21 }
 0x65c   : > { %3492 = vmatprep.subr.bf16.mxu0 %v6659_v13  ;;  %3535 = vmatprep.subr.bf16.mxu1 %v6663_v15 }
 0x65f   : > { %3493 = vmatpush1.bf16.msra.mxu0 %v6667_v22  ;;  %3536 = vmatpush1.bf16.msra.mxu1 %v6672_v30 }
 0x660   : > { %3494 = vmatprep.subr.bf16.mxu0 %v6675_v24  ;;  %3537 = vmatprep.subr.bf16.mxu1 %v6679_v26 }
 0x663   : > { %3495 = vmatpush1.bf16.msra.mxu0 %v6683_v11  ;;  %3538 = vmatpush1.bf16.msra.mxu1 %v6688_v28 }
 0x664   : > { %3866 = vmatprep.subr.bf16.mxu0 %v6566_v25  ;;  %3909 = vmatprep.subr.bf16.mxu1 %v6569_v8  ;;  %v2898_v25 = vunpack.c.h.bf16 %v2890_v46  ;;  %v2892_v8 = vld [vmem:[%s2888_s5 + $0x18] sm:$0xff] }
 0x665   : > { %v2896_v6 = vunpack.c.l.bf16 %v2892_v8  ;;  %v2900_v39 = vunpack.c.h.bf16 %v2892_v8 }
 0x719   : > { %v3128_v43 = vpop.f32.mrb[52].mxu0  ;;  %v3171_v20 = vpop.f32.mrb[52].mxu1 }
 0x71a   : > { %v3180_v45 = vadd.f32 %v3128_v43, %v2893_v42  ;;  %v3130_v32 = vpop.f32.mrb[53].mxu0  ;;  %v3173_v47 = vpop.f32.mrb[53].mxu1  ;;  %v3182_v40 = vadd.f32 %v3171_v20, %v2895_v41 }
 0x71b   : > { %v3181_v49 = vadd.f32 %v3130_v32, %v2894_v44  ;;  %v3132_v19 = vpop.f32.mrb[54].mxu0  ;;  %v3175_v29 = vpop.f32.mrb[54].mxu1  ;;  %v3183_v34 = vadd.f32 %v3173_v47, %v2896_v6 }
 0x71c   : > { %v4560_v16 = vmul.f32 -1.442695, %v3180_v45  ;;  %v3184_v18 = vadd.f32 %v3132_v19, %v2897_v48  ;;  %v3134_v5 = vpop.f32.mrb[55].mxu0  ;;  %v3177_v3 = vpop.f32.mrb[55].mxu1  ;;  %v3186_v43 = vadd.f32 %v3175_v29, %v2899_v35 }
 0x71d   : > { %v4562_v9 = vmul.f32 -1.442695, %v3181_v49  ;;  %v3185_v10 = vadd.f32 %v3134_v5, %v2898_v25  ;;  %v4564_v46 = vmul.f32 -1.442695, %v3183_v34  ;;  %v3187_v42 = vadd.f32 %v3177_v3, %v2900_v39  ;;  %v3243_v6 = vpop.permute.xlu0 %3242 }
 0x71e   : > { %5204 = vpow2.f32 %v4560_v16  ;;  %v4561_v33 = vmul.f32 -1.442695, %v3184_v18  ;;  %vm3247_vm11 = vcmp.eq.s32.totalorder %v3243_v6, 1 }
 0x71f   : > { %5206 = vpow2.f32 %v4562_v9  ;;  %v4563_v37 = vmul.f32 -1.442695, %v3185_v10  ;;  %v4565_v48 = vmul.f32 -1.442695, %v3187_v42 }
 0x720   : > { %5208 = vpow2.f32 %v4561_v33 }
 0x721   : > { %5210 = vpow2.f32 %v4563_v37 }
 0x722   : > { %5212 = vtanh.f32 %v3182_v40 }
 0x723   : > { %5214 = vpow2.f32 %v4564_v46  ;;  %v3246_v46 = vpop.permute.xlu1 %3245 }
 0x724   : > { %5216 = vtanh.f32 %v3186_v43  ;;  %vm3248_vm12 = vcmp.eq.s32.totalorder %v3246_v46, 1 }
 0x728   : > { %v5205_v44 = vpop.eup %5204 }
 0x729   : > { %v5207_v45 = vpop.eup %5206  ;;  %v3194_v32 = vadd.f32 1.0, %v5205_v44 }
 0x72a   : > { %v3206_v49 = vadd.f32 1.0, %v5207_v45  ;;  %v5209_v19 = vpop.eup %5208 }
 0x72b   : > { %5218 = vrcp.f32 %v3194_v32  ;;  %v3195_v47 = vadd.f32 1.0, %v5209_v19  ;;  %v5211_v25 = vpop.eup %5210 }
 0x72c   : > { %5220 = vrcp.f32 %v3206_v49  ;;  %v3207_v20 = vadd.f32 1.0, %v5211_v25  ;;  %v5213_v16 = vpop.eup %5212 }
 0x72d   : > { %5222 = vpow2.f32 %v4565_v48  ;;  %v5215_v8 = vpop.eup %5214 }
 0x72e   : > { %5224 = vrcp.f32 %v3195_v47  ;;  %v5217_v29 = vpop.eup %5216  ;;  %v3220_v9 = vadd.f32 1.0, %v5215_v8 }
 0x72f   : > { %5226 = vrcp.f32 %v3207_v20 }
 0x730   : > { %5228 = vrcp.f32 %v3220_v9 }
 0x735   : > { %v5219_v18 = vpop.eup %5218 }
 0x736   : > { %v5221_v5 = vpop.eup %5220  ;;  %v3228_v3 = vmul.f32 %v5219_v18, %v5213_v16 }
 0x737   : > { %v5223_v10 = vpop.eup %5222  ;;  %v3226_v33 = vmul.f32 %v5221_v5, %v6700_v38 }
 0x738   : > { %v5225_v17 = vpop.eup %5224  ;;  %v3221_v39 = vadd.f32 1.0, %v5223_v10 }
 0x739   : > { %v3230_v37 = vadd.f32 %v3228_v3, %v3226_v33  ;;  %v3229_v34 = vmul.f32 %v5225_v17, %v5217_v29  ;;  %v5227_v41 = vpop.eup %5226 }
 0x73a   : > { %v3227_v40 = vmul.f32 %v5227_v41, %v6703_v4  ;;  %v5229_v44 = vpop.eup %5228 }
 0x73b   : > { %5230 = vtanh.f32 %v3230_v37  ;;  %v6756_v35 = vsel %vm3247_vm11, %v3230_v37, %v6700_v38 }
 0x73c   : > { %v3231_v42 = vadd.f32 %v3229_v34, %v3227_v40  ;;  %5232 = vrcp.f32 %v3221_v39 }
 0x73e   : > { %5234 = vtanh.f32 %v3231_v42  ;;  %v6759_v43 = vsel %vm3248_vm12, %v3231_v42, %v6703_v4 }
 0x745   : > { %v5231_v45 = vpop.eup %5230 }
 0x746   : > { %v3234_v32 = vmul.f32 %v5231_v45, %v5229_v44  ;;  %v5233_v48 = vpop.eup %5232 }
 0x748   : > { %v5235_v49 = vpop.eup %5234  ;;  %v6765_v38 = vsel %vm3247_vm11, %v3234_v32, %v6709_v14  ;;  %v3253_v25 = vsel %vm3247_vm11, %v3234_v32, 0.0  ;;  %v3629_v32 = vpop.permute.xlu0 %3628 }
 0x749   : > { %v3235_v19 = vmul.f32 %v5235_v49, %v5233_v48  ;;  %vm3633_vm13 = vcmp.eq.s32.totalorder %v3629_v32, 1 }
 0x74b   : > { %v6768_v47 = vsel %vm3248_vm12, %v3235_v19, %v6712_v31  ;;  %v3254_v20 = vsel %vm3248_vm12, %v3235_v19, 0.0 }
 0x74c   : > { %v4727_v4 = vpack.c.bf16 %v3254_v20, %v3253_v25  ;;  %v3287_v16 = vpack.c.bf16 %v6768_v47, %v6765_v38 }
 0x74e   : > { %4728 = vst [vmem:[%s3265_s13] sm:$0xff] %v4727_v4   ;;  %3513 = vmatmul.mubr.bf16.vlgmr.msra.gmra.mrb[56].mxu0 %v3287_v16  ;;  %3556 = vmatmul.mubr.bf16.vlgmr.msra.gmra.mrb[56].mxu1 %v3287_v16  ;;  %v3632_v16 = vpop.permute.xlu1 %3631  ;;  %s6935_s13 = sld [smem:[#allocation21_spill]] }
 0x74f   : > { %3867 = vmatpush1.bf16.msra.mxu0 %v6572_v50  ;;  %3910 = vmatpush1.bf16.msra.mxu1 %v6575_v51  ;;  %v3276_v50 = vld [vmem:[%s3274_s27 + $0x8] sm:$0xff]  ;;  %vm3634_vm14 = vcmp.eq.s32.totalorder %v3632_v16, 1 }
 0x750   : > { %3868 = vmatprep.subr.bf16.mxu0 %v6582_v52  ;;  %3911 = vmatprep.subr.bf16.mxu1 %v6585_v53 }
 0x751   : > { %3898 = vmatprep.mubr.bf16.mxu0 %v5549_v0  ;;  %3941 = vmatprep.mubr.bf16.mxu1 %v5549_v0  ;;  %v3275_v0 = vld [vmem:[%s3274_s27] sm:$0xff] }
 0x752   : > { %v3279_v51 = vunpack.c.l.bf16 %v3275_v0 }
 0x753   : > { %3869 = vmatpush1.bf16.msra.mxu0 %v6588_v54  ;;  %3912 = vmatpush1.bf16.msra.mxu1 %v6591_v55  ;;  %v3280_v54 = vunpack.c.l.bf16 %v3276_v50 }
 0x754   : > { %3870 = vmatprep.subr.bf16.mxu0 %v6598_v56  ;;  %3913 = vmatprep.subr.bf16.mxu1 %v6601_v57  ;;  %s6831_s16 = scalar_lea.hbm %s6935_s13, %s4661_s2 }
 0x757   : > { %3871 = vmatpush1.bf16.msra.mxu0 %v6604_v1  ;;  %3914 = vmatpush1.bf16.msra.mxu1 %v6607_v23  ;;  %v3283_v1 = vunpack.c.h.bf16 %v3275_v0 }
 0x758   : > { %3872 = vmatprep.subr.bf16.mxu0 %v6614_v58  ;;  %3915 = vmatprep.subr.bf16.mxu1 %v6617_v59 }
 0x75b   : > { %3873 = vmatpush1.bf16.msra.mxu0 %v6620_v60  ;;  %3916 = vmatpush1.bf16.msra.mxu1 %v6623_v61  ;;  %v3284_v60 = vunpack.c.h.bf16 %v3276_v50 }
 0x75c   : > { %3874 = vmatprep.subr.bf16.mxu0 %v6633_v63  ;;  %3917 = vmatprep.subr.bf16.mxu1 %v6639_v7 }
 0x75f   : > { %3875 = vmatpush1.bf16.msra.mxu0 %v6630_v62  ;;  %3918 = vmatpush1.bf16.msra.mxu1 %v6636_v2  ;;  %v3278_v62 = vld [vmem:[%s3274_s27 + $0x18] sm:$0xff] }
 0x760   : > { %3876 = vmatprep.subr.bf16.mxu0 %v6642_v27  ;;  %3919 = vmatprep.subr.bf16.mxu1 %v6646_v36 }
 0x763   : > { %3877 = vmatpush1.bf16.msra.mxu0 %v6651_v12  ;;  %3920 = vmatpush1.bf16.msra.mxu1 %v6656_v21  ;;  %v3277_v21 = vld [vmem:[%s3274_s27 + $0x10] sm:$0xff] }
 0x764   : > { %3878 = vmatprep.subr.bf16.mxu0 %v6659_v13  ;;  %3921 = vmatprep.subr.bf16.mxu1 %v6663_v15  ;;  %v3282_v13 = vunpack.c.l.bf16 %v3278_v62 }
 0x767   : > { %3879 = vmatpush1.bf16.msra.mxu0 %v6667_v22  ;;  %3922 = vmatpush1.bf16.msra.mxu1 %v6672_v30  ;;  %v3281_v30 = vunpack.c.l.bf16 %v3277_v21 }
 0x768   : > { %3880 = vmatprep.subr.bf16.mxu0 %v6675_v24  ;;  %3923 = vmatprep.subr.bf16.mxu1 %v6679_v26  ;;  %v3286_v24 = vunpack.c.h.bf16 %v3278_v62 }
 0x76b   : > { %3881 = vmatpush1.bf16.msra.mxu0 %v6683_v11  ;;  %3924 = vmatpush1.bf16.msra.mxu1 %v6688_v28  ;;  %v3285_v11 = vunpack.c.h.bf16 %v3277_v21 }
 0x821   : > { %v3514_v52 = vpop.f32.mrb[56].mxu0  ;;  %v3557_v53 = vpop.f32.mrb[56].mxu1 }
 0x822   : > { %v3566_v55 = vadd.f32 %v3514_v52, %v3279_v51  ;;  %v3516_v56 = vpop.f32.mrb[57].mxu0  ;;  %v3559_v57 = vpop.f32.mrb[57].mxu1  ;;  %v3568_v26 = vadd.f32 %v3557_v53, %v3281_v30 }
 0x823   : > { %v3567_v23 = vadd.f32 %v3516_v56, %v3280_v54  ;;  %v3518_v58 = vpop.f32.mrb[58].mxu0  ;;  %v3561_v59 = vpop.f32.mrb[58].mxu1  ;;  %v3569_v22 = vadd.f32 %v3559_v57, %v3282_v13 }
 0x824   : > { %v4605_v61 = vmul.f32 -1.442695, %v3566_v55  ;;  %v3570_v63 = vadd.f32 %v3518_v58, %v3283_v1  ;;  %v3520_v2 = vpop.f32.mrb[59].mxu0  ;;  %v3563_v7 = vpop.f32.mrb[59].mxu1  ;;  %v3572_v31 = vadd.f32 %v3561_v59, %v3285_v11  ;;  %v3661_v59 = vld [vmem:[%s3660_s24] sm:$0xff] }
 0x825   : > { %v4607_v27 = vmul.f32 -1.442695, %v3567_v23  ;;  %v3571_v36 = vadd.f32 %v3520_v2, %v3284_v60  ;;  %v4609_v28 = vmul.f32 -1.442695, %v3569_v22  ;;  %v3573_v14 = vadd.f32 %v3563_v7, %v3286_v24  ;;  %v3662_v60 = vld [vmem:[%s3660_s24 + $0x8] sm:$0xff]  ;;  %v3664_v22 = vld [vmem:[%s3660_s24 + $0x18] sm:$0xff] }
 0x826   : > { %5236 = vpow2.f32 %v4605_v61  ;;  %v4606_v12 = vmul.f32 -1.442695, %v3570_v63  ;;  %v3665_v61 = vunpack.c.l.bf16 %v3661_v59  ;;  %v3670_v13 = vunpack.c.h.bf16 %v3662_v60 }
 0x827   : > { %5238 = vpow2.f32 %v4607_v27  ;;  %v4608_v15 = vmul.f32 -1.442695, %v3571_v36  ;;  %v4610_v5 = vmul.f32 -1.442695, %v3573_v14  ;;  %v3669_v27 = vunpack.c.h.bf16 %v3661_v59  ;;  %v4018_v59 = vpop.permute.xlu1 %4017 }
 0x828   : > { %5240 = vpow2.f32 %v4606_v12  ;;  %vm4020_vm0 = vcmp.eq.s32.totalorder %v4018_v59, 1 }
 0x829   : > { %5242 = vpow2.f32 %v4608_v15 }
 0x82a   : > { %5244 = vtanh.f32 %v3568_v26 }
 0x82b   : > { %5246 = vpow2.f32 %v4609_v28 }
 0x82c   : > { %5248 = vtanh.f32 %v3572_v31  ;;  %v3663_v31 = vld [vmem:[%s3660_s24 + $0x10] sm:$0xff] }
 0x830   : > { %v5237_v8 = vpop.eup %5236 }
 0x831   : > { %v5239_v29 = vpop.eup %5238  ;;  %v3580_v18 = vadd.f32 1.0, %v5237_v8  ;;  %v3668_v8 = vunpack.c.l.bf16 %v3664_v22 }
 0x832   : > { %v3592_v3 = vadd.f32 1.0, %v5239_v29  ;;  %v5241_v9 = vpop.eup %5240 }
 0x833   : > { %5250 = vrcp.f32 %v3580_v18  ;;  %v3581_v10 = vadd.f32 1.0, %v5241_v9  ;;  %v5243_v33 = vpop.eup %5242 }
 0x834   : > { %5252 = vrcp.f32 %v3592_v3  ;;  %v3593_v17 = vadd.f32 1.0, %v5243_v33  ;;  %v5245_v6 = vpop.eup %5244  ;;  %v3672_v3 = vunpack.c.h.bf16 %v3664_v22 }
 0x835   : > { %5254 = vpow2.f32 %v4610_v5  ;;  %v5247_v37 = vpop.eup %5246  ;;  %v3667_v5 = vunpack.c.l.bf16 %v3663_v31 }
 0x836   : > { %5256 = vrcp.f32 %v3581_v10  ;;  %v5249_v34 = vpop.eup %5248  ;;  %v3606_v46 = vadd.f32 1.0, %v5247_v37  ;;  %v3671_v10 = vunpack.c.h.bf16 %v3663_v31 }
 0x837   : > { %5258 = vrcp.f32 %v3593_v17 }
 0x838   : > { %5260 = vrcp.f32 %v3606_v46 }
 0x83d   : > { %v5251_v41 = vpop.eup %5250 }
 0x83e   : > { %v5253_v39 = vpop.eup %5252  ;;  %v3614_v40 = vmul.f32 %v5251_v41, %v5245_v6 }
 0x83f   : > { %v5255_v42 = vpop.eup %5254  ;;  %v3612_v44 = vmul.f32 %v5253_v39, %v6756_v35 }
 0x840   : > { %v5257_v45 = vpop.eup %5256  ;;  %v3607_v25 = vadd.f32 1.0, %v5255_v42 }
 0x841   : > { %v3616_v48 = vadd.f32 %v3614_v40, %v3612_v44  ;;  %v3615_v49 = vmul.f32 %v5257_v45, %v5249_v34  ;;  %v5259_v19 = vpop.eup %5258 }
 0x842   : > { %v3613_v20 = vmul.f32 %v5259_v19, %v6759_v43  ;;  %v5261_v51 = vpop.eup %5260 }
 0x843   : > { %5262 = vtanh.f32 %v3616_v48  ;;  %v6810_v4 = vsel %vm3633_vm13, %v3616_v48, %v6756_v35 }
 0x844   : > { %v3617_v0 = vadd.f32 %v3615_v49, %v3613_v20  ;;  %5264 = vrcp.f32 %v3607_v25 }
 0x846   : > { %5266 = vtanh.f32 %v3617_v0  ;;  %v6813_v50 = vsel %vm3634_vm14, %v3617_v0, %v6759_v43 }
 0x84d   : > { %v5263_v52 = vpop.eup %5262 }
 0x84e   : > { %v3620_v53 = vmul.f32 %v5263_v52, %v5261_v51  ;;  %v5265_v54 = vpop.eup %5264 }
 0x850   : > { %v5267_v55 = vpop.eup %5266  ;;  %v3635_v35 = vsel %vm3633_vm13, %v3620_v53, %v6765_v38  ;;  %v3639_v1 = vsel %vm3633_vm13, %v3620_v53, 0.0  ;;  %v3666_v38 = vunpack.c.l.bf16 %v3662_v60 }
 0x851   : > { %v3621_v56 = vmul.f32 %v5267_v55, %v5265_v54 }
 0x853   : > { %v3636_v57 = vsel %vm3634_vm14, %v3621_v56, %v6768_v47  ;;  %v3640_v23 = vsel %vm3634_vm14, %v3621_v56, 0.0 }
 0x854   : > { %v4732_v58 = vpack.c.bf16 %v3640_v23, %v3639_v1  ;;  %v3673_v43 = vpack.c.bf16 %v3636_v57, %v3635_v35 }
 0x856   : > { %4733 = vst [vmem:[%s3651_s25] sm:$0xff] %v4732_v58   ;;  %3899 = vmatmul.mubr.bf16.vlgmr.msra.gmra.mrb[60].mxu0 %v3673_v43  ;;  %3942 = vmatmul.mubr.bf16.vlgmr.msra.gmra.mrb[60].mxu1 %v3673_v43  ;;  %v4015_v43 = vpop.permute.xlu0 %4014 }
 0x857   : > { %vm4019_vm15 = vcmp.eq.s32.totalorder %v4015_v43, 1 }
 0x929   : > { %v3900_v62 = vpop.f32.mrb[60].mxu0  ;;  %v3943_v63 = vpop.f32.mrb[60].mxu1 }
 0x92a   : > { %v3952_v2 = vadd.f32 %v3900_v62, %v3665_v61  ;;  %v3902_v47 = vpop.f32.mrb[61].mxu0  ;;  %v3945_v7 = vpop.f32.mrb[61].mxu1  ;;  %v3954_v9 = vadd.f32 %v3943_v63, %v3667_v5 }
 0x92b   : > { %v3953_v36 = vadd.f32 %v3902_v47, %v3666_v38  ;;  %v3904_v12 = vpop.f32.mrb[62].mxu0  ;;  %v3947_v21 = vpop.f32.mrb[62].mxu1  ;;  %v3955_v18 = vadd.f32 %v3945_v7, %v3668_v8 }
 0x92c   : > { %v4650_v15 = vmul.f32 -1.442695, %v3952_v2  ;;  %v3956_v30 = vadd.f32 %v3904_v12, %v3669_v27  ;;  %v3906_v24 = vpop.f32.mrb[63].mxu0  ;;  %v3949_v26 = vpop.f32.mrb[63].mxu1  ;;  %v3958_v6 = vadd.f32 %v3947_v21, %v3671_v10 }
 0x92d   : > { %v4652_v11 = vmul.f32 -1.442695, %v3953_v36  ;;  %v3957_v28 = vadd.f32 %v3906_v24, %v3670_v13  ;;  %v4654_v33 = vmul.f32 -1.442695, %v3955_v18  ;;  %v3959_v17 = vadd.f32 %v3949_v26, %v3672_v3 }
 0x92e   : > { %5268 = vpow2.f32 %v4650_v15  ;;  %v4651_v14 = vmul.f32 -1.442695, %v3956_v30 }
 0x92f   : > { %5270 = vpow2.f32 %v4652_v11  ;;  %v4653_v29 = vmul.f32 -1.442695, %v3957_v28  ;;  %v4655_v39 = vmul.f32 -1.442695, %v3959_v17 }
 0x930   : > { %5272 = vpow2.f32 %v4651_v14 }
 0x931   : > { %5274 = vpow2.f32 %v4653_v29 }
 0x932   : > { %5276 = vtanh.f32 %v3954_v9 }
 0x933   : > { %5278 = vpow2.f32 %v4654_v33 }
 0x934   : > { %5280 = vtanh.f32 %v3958_v6 }
 0x938   : > { %v5269_v37 = vpop.eup %5268 }
 0x939   : > { %v5271_v34 = vpop.eup %5270  ;;  %v3966_v41 = vadd.f32 1.0, %v5269_v37 }
 0x93a   : > { %v3978_v40 = vadd.f32 1.0, %v5271_v34  ;;  %v5273_v46 = vpop.eup %5272 }
 0x93b   : > { %5282 = vrcp.f32 %v3966_v41  ;;  %v3967_v42 = vadd.f32 1.0, %v5273_v46  ;;  %v5275_v44 = vpop.eup %5274 }
 0x93c   : > { %5284 = vrcp.f32 %v3978_v40  ;;  %v3979_v45 = vadd.f32 1.0, %v5275_v44  ;;  %v5277_v32 = vpop.eup %5276 }
 0x93d   : > { %5286 = vpow2.f32 %v4655_v39  ;;  %v5279_v48 = vpop.eup %5278 }
 0x93e   : > { %5288 = vrcp.f32 %v3967_v42  ;;  %v5281_v49 = vpop.eup %5280  ;;  %v3992_v16 = vadd.f32 1.0, %v5279_v48 }
 0x93f   : > { %5290 = vrcp.f32 %v3979_v45 }
 0x940   : > { %5292 = vrcp.f32 %v3992_v16 }
 0x945   : > { %v5283_v19 = vpop.eup %5282 }
 0x946   : > { %v5285_v25 = vpop.eup %5284  ;;  %v4000_v20 = vmul.f32 %v5283_v19, %v5277_v32 }
 0x947   : > { %v5287_v0 = vpop.eup %5286  ;;  %v3998_v51 = vmul.f32 %v5285_v25, %v6810_v4 }
 0x948   : > { %v5289_v52 = vpop.eup %5288  ;;  %v3993_v56 = vadd.f32 1.0, %v5287_v0 }
 0x949   : > { %v4002_v53 = vadd.f32 %v4000_v20, %v3998_v51  ;;  %v4001_v54 = vmul.f32 %v5289_v52, %v5281_v49  ;;  %v5291_v55 = vpop.eup %5290 }
 0x94a   : > { %v3999_v35 = vmul.f32 %v5291_v55, %v6813_v50  ;;  %v5293_v1 = vpop.eup %5292 }
 0x94b   : > { %5294 = vtanh.f32 %v4002_v53 }
 0x94c   : > { %v4003_v57 = vadd.f32 %v4001_v54, %v3999_v35  ;;  %5296 = vrcp.f32 %v3993_v56 }
 0x94e   : > { %5298 = vtanh.f32 %v4003_v57 }
 0x955   : > { %v5295_v23 = vpop.eup %5294 }
 0x956   : > { %v4006_v58 = vmul.f32 %v5295_v23, %v5293_v1  ;;  %v5297_v4 = vpop.eup %5296 }
 0x958   : > { %v5299_v60 = vpop.eup %5298  ;;  %v4021_v50 = vsel %vm4019_vm15, %v4006_v58, 0.0 }
 0x959   : > { %v4007_v61 = vmul.f32 %v5299_v60, %v5297_v4 }
 0x95b   : > { %v4022_v62 = vsel %vm4020_vm0, %v4007_v61, 0.0 }
 0x95c   : > { %v4737_v63 = vpack.c.bf16 %v4022_v62, %v4021_v50 }
 0x95e   : > { %4738 = vst [vmem:[%s4033_s10] sm:$0xff] %v4737_v63  }
 0x95f   : > { %5459 = shalt.err (!%p5456_p3)
}
 0x960   : > { %s5460_s27 = scalar_lea.hbm %s6831_s16, 1024  ;;  %s5464_s12 = scalar_lea.hbm %s6935_s13, 2048 }
 0x961   : > { %p5461_p8 = scmp.ne.s32.totalorder %s6831_s16, %s5460_s27  ;;  %p5465_p6 = scmp.lt.u32.totalorder %s6831_s16, %s6935_s13 }
 0x962   : > { %p5466_p2 = scmp.lt.u32.totalorder %s5464_s12, %s5460_s27  ;;  %p5468_p13 = scmp.lt.u32.totalorder %s5460_s27, %s6831_s16 }
 0x963   : > { %p5462_p9 = pnand %p5461_p8, %p6936_p1 }
 0x964   : > { %p5467_p11 = por %p5466_p2, %p5465_p6 }
 0x965   : > { %p5463_p0 = pneg %p5462_p9 }
 0x966   : > { %p5469_p5 = por %p5468_p13, %p5467_p11 }
 0x968   : > { %p5470_p4 = pnand %p5469_p5, %p5463_p0 }
 0x96a   : > { %5473 = shalt.err (!%p5470_p4)
}
 0x96b   : > { %s5551_s24 = smov 64   ;;  %s5552_s18 = smov 128  }
 0x96c   : > { %s5553_s2 = smov 4  }
 0x96d   : > { %4753 = dma.vmem_to_hbm [thread:$0]  (%p6936_p1), %s6833_s26, 1024, %s6831_s16, %s4037_s21, %s5551_s24, %s5552_s18, %s5553_s2  }
 0x96e PF: > { %s6937_s10 = sld [smem:[#allocation16_spill]]  ;;  %s6938_s5 = sld [smem:[#allocation18_spill]] }
 0x96f   : > { %p6940_p7 = scmp.ge.s32.totalorder %s5536_s23, 2 }
 0x974   : > { %s4067_s17 = sand.u32 1, %s6937_s10   ;;  %p6939_p12 = scmp.ne.s32.totalorder %s6938_s5, 0 }
 0x975   : > { %s4068_s9 = scalar_lea.sflag [#allocation5], %s4067_s17 }
 0x976   : > { %p4773_p10 = pnand %p6940_p7, %p6939_p12 }
 0x978   : > { %5511 = dma.done.wait (!%p4773_p10), %s4068_s9, 1024  }
 0x979   : > { %5513 = vsyncadd (!%p4773_p10), %s4068_s9, 4294966272  ;;  %s20_s23 = sadd.s32 1, %s5536_s23   ;;  %s6941_s18 = smov %s5520_s19 }
 0x97a   : > { %p17_p3 = scmp.ge.s32.totalorder %s20_s23, 4   ;;  %s6942_s19 = smov %s5524_s20 }
 0x97b   : > { %s6943_s20 = smov %s5717_s29  ;;  %s6944_s21 = smov %s5532_s22 }
 0x97c   : > { %s6945_s22 = smov %s6947_s11  ;;  %19 = sbr.rel (!%p17_p3) target bundleno = 10 (0xa), region = 134 }
 0x983   :  { %4073 = vsyncpa [#allocation4], 1 }
 0x984   :  { %4075 = vsyncpa [#allocation4 + $0x1], 1 }
 0x985   :  { %4076 = vsyncpa [#allocation7], 1 }
 0x986   :  { %4077 = vsyncpa [#allocation5], 1 }
 0x987   :  { %4079 = vsyncpa [#allocation5 + $0x1], 1 }

</bundles_post_ra>
